<compile_context>
chip_gen: v5e
topology: v5e:2x2
jax: 0.10.0
libtpu: 0.0.40
codegen_flags: <defaults>
</compile_context>

<pallas_src>
import jax
import jax.numpy as jnp
from jax import lax
from jax.experimental import pallas as pl
from jax.experimental.pallas import tpu as pltpu

C = 3       # conv channels (in == out == 3) == LSTM input size
K = 5       # conv kernel size
PAD = 2     # conv padding
NCONV = 3   # number of stacked Conv1d layers
NCLS = 25   # classifier output size


# ----------------------------------------------------------------------------
# Fused kernel: composed conv (1 banded matmul) -> layer-0 input projection
# staged in (t, b) order -> 2-layer LSTM recurrence -> masked mean pooling ->
# classifier.
# ----------------------------------------------------------------------------
def rnn_fused_kernel(x_ref, aconv_ref, cbias_ref, wih0_ref, b0_ref,
                     lens_ref, invt_ref,
                     whh0_ref, wih1_ref, whh1_ref, b1g_ref,
                     w1_ref, b1c_ref, w2_ref, b2c_ref,
                     out_ref, g0_scr):
    T, B, G4 = g0_scr.shape
    H = G4 // 4

    # ---- Phase 1: composed conv stack as a single banded MXU matmul -------
    # x_ref is the raw reshape of the (T, B, 3) input to (B, C*T); aconv is the
    # product of the three per-layer Toeplitz bands; y[b, co*T + t] == conv out.
    y = (jnp.dot(x_ref[...], aconv_ref[...],
                 preferred_element_type=jnp.float32) + cbias_ref[...])

    # ---- Phase 2: layer-0 input projection, staged per LSTM step ----------
    # The PyTorch raw reshape (B,3,T)->(T,B,3) means LSTM step (t, b) consumes
    # flat row r = t*B + b of the conv output, i.e.
    #     y[r // T, (r % T)*C : (r % T)*C + C].
    # Gather those rows with static slices, project with Wih0^T (gate-permuted)
    # via 3 broadcast-multiplies, and write g0_scr[t] so the serial loop below
    # only does a dynamic leading-dim read.  All one-time, off the serial path.
    wi = [wih0_ref[c:c + 1, :] for c in range(C)]          # 3 x (1, 4H)
    b0row = b0_ref[...]                                    # (1, 4H)
    for tt in range(T):
        rows = []
        for bb in range(B):
            r = tt * B + bb
            rows.append(y[r // T:r // T + 1, (r % T) * C:(r % T) * C + C])
        yb = jnp.concatenate(rows, axis=0)                 # (B, C)
        g0_scr[tt] = (b0row + yb[:, 0:1] * wi[0] + yb[:, 1:2] * wi[1]
                      + yb[:, 2:3] * wi[2])

    # ---- Phase 3: 2-layer LSTM recurrence + masked mean + classifier ------
    lens = lens_ref[...]                                   # (B, 1) int32
    b1g = jnp.broadcast_to(b1g_ref[...], (B, G4))          # hoisted broadcast

    def sigm(v):                                           # EUP path, no divide
        return 0.5 * jnp.tanh(0.5 * v) + 0.5

    def gates_to_state(g, c):                              # permuted order i,f,o,g
        sg = sigm(g[:, 0:3 * H])                           # one EUP slab
        i = sg[:, 0:H]
        f = sg[:, H:2 * H]
        o = sg[:, 2 * H:3 * H]
        gg = jnp.tanh(g[:, 3 * H:4 * H])
        c_new = f * c + i * gg
        return o * jnp.tanh(c_new), c_new

    def step(t, carry):
        h0, c0, h1, c1, acc = carry
        m = t < lens                                       # (B,1) packed-seq mask
        # layer-1 recurrent partial: depends only on t-1 state, so the unrolled
        # schedule overlaps it with the layer-0 matmul/gate chain.
        g1r = b1g + jnp.dot(h1.astype(jnp.bfloat16), whh1_ref[...],
                            preferred_element_type=jnp.float32)
        # layer 0: only the recurrent matmul is on the serial path
        g0 = g0_scr[t] + jnp.dot(h0.astype(jnp.bfloat16), whh0_ref[...],
                                 preferred_element_type=jnp.float32)
        h0n, c0n = gates_to_state(g0, c0)
        h0 = jnp.where(m, h0n, h0)
        c0 = jnp.where(m, c0n, c0)
        # layer 1: single K=H matmul on the critical path (concat removed)
        g1 = g1r + jnp.dot(h0n.astype(jnp.bfloat16), wih1_ref[...],
                           preferred_element_type=jnp.float32)
        h1n, c1n = gates_to_state(g1, c1)
        h1 = jnp.where(m, h1n, h1)
        c1 = jnp.where(m, c1n, c1)
        acc = acc + jnp.where(m, h1n, 0.0)                 # padded outputs are 0
        return h0, c0, h1, c1, acc

    z = jnp.zeros((B, H), jnp.float32)
    _, _, _, _, acc = lax.fori_loop(0, T, step, (z, z, z, z, z), unroll=True)

    pooled = acc * invt_ref[0]                             # mean over max(x_lens)
    hid = jnp.maximum(
        jnp.dot(pooled, w1_ref[...], preferred_element_type=jnp.float32)
        + b1c_ref[...], 0.0)
    logits = (jnp.dot(hid, w2_ref[...], preferred_element_type=jnp.float32)
              + b2c_ref[...])
    out_ref[...] = sigm(logits)


# ----------------------------------------------------------------------------
# Parameter init (PyTorch-style uniform bounds) and one-time packing.
# ----------------------------------------------------------------------------
def init_params(key, h):
    ks = jax.random.split(key, 18)

    def u(k, shape, bound):
        return jax.random.uniform(k, shape, jnp.float32, -bound, bound)

    bc = 1.0 / (C * K) ** 0.5
    conv_w = jnp.stack([u(ks[l], (C, C, K), bc) for l in range(NCONV)])   # (l,co,ci,k)
    conv_b = jnp.stack([u(ks[3 + l], (C,), bc) for l in range(NCONV)])    # (l,co)

    bl = 1.0 / float(h) ** 0.5
    return {
        "h": h,
        "conv_w": conv_w, "conv_b": conv_b,
        "wih0": u(ks[6], (4 * h, C), bl), "whh0": u(ks[7], (4 * h, h), bl),
        "bih0": u(ks[8], (4 * h,), bl), "bhh0": u(ks[9], (4 * h,), bl),
        "wih1": u(ks[10], (4 * h, h), bl), "whh1": u(ks[11], (4 * h, h), bl),
        "bih1": u(ks[12], (4 * h,), bl), "bhh1": u(ks[13], (4 * h,), bl),
        "w1": u(ks[14], (h, h), bl), "b1": u(ks[15], (h,), bl),
        "w2": u(ks[16], (NCLS, h), bl), "b2": u(ks[17], (NCLS,), bl),
    }


def _conv_band(w, T):
    # w: (C_out, C_in, K) -> Band (C_in*T, C_out*T) with
    # Band[ci*T + s, co*T + t] = w[co, ci, s - t + PAD]  (zero outside the taps).
    s = jnp.arange(T)
    t = jnp.arange(T)
    kk = s[:, None] - t[None, :] + PAD
    valid = (kk >= 0) & (kk < K)
    kc = jnp.clip(kk, 0, K - 1)
    wt = jnp.transpose(w, (1, 0, 2))                  # (ci, co, K)
    band = jnp.where(valid[None, None], wt[:, :, kc], 0.0)   # (ci, co, s, t)
    return jnp.transpose(band, (0, 2, 1, 3)).reshape(C * T, C * T)


def prepare_params(raw, T):
    h = raw["h"]

    def perm(m):   # last-dim gate order [i,f,g,o] -> [i,f,o,g] (3 sigmoids contiguous)
        return jnp.concatenate(
            [m[..., :2 * h], m[..., 3 * h:4 * h], m[..., 2 * h:3 * h]], axis=-1)

    # Compose the three conv layers (purely linear in eval mode) into one
    # effective Toeplitz band + bias row: y = x @ aconv + cbias.
    bands = [_conv_band(raw["conv_w"][l], T) for l in range(NCONV)]
    biases = [jnp.repeat(raw["conv_b"][l], T) for l in range(NCONV)]   # (C*T,)
    aconv = bands[0]
    cbias = biases[0]
    for l in range(1, NCONV):
        cbias = cbias @ bands[l] + biases[l]
        aconv = aconv @ bands[l]

    return {
        "h": h,
        "aconv": aconv,                                     # (C*T, C*T) f32
        "cbias": cbias[None, :],                            # (1, C*T)   f32
        "wih0": perm(raw["wih0"].T),                        # (C, 4h)    f32, permuted
        "b0": perm(raw["bih0"] + raw["bhh0"])[None, :],     # (1, 4h)    f32
        "whh0": perm(raw["whh0"].T).astype(jnp.bfloat16),   # (h, 4h)
        "wih1": perm(raw["wih1"].T).astype(jnp.bfloat16),   # (h, 4h)
        "whh1": perm(raw["whh1"].T).astype(jnp.bfloat16),   # (h, 4h)
        "b1g": perm(raw["bih1"] + raw["bhh1"])[None, :],    # (1, 4h)
        "w1": raw["w1"].T, "b1c": raw["b1"][None, :],
        "w2": raw["w2"].T, "b2c": raw["b2"][None, :],
    }


# ----------------------------------------------------------------------------
# Forward: one fused pallas_call; all host-side work is free reshapes/scalars.
# ----------------------------------------------------------------------------
def rnn_forward(p, x, x_lens):
    # x: (T, B, 3) f32, x_lens: (B,) int32
    T, B, _ = x.shape
    h = p["h"]
    xflat = jnp.reshape(x, (B, C * T))               # torch: x.reshape(B, 3, T)
    lens2d = x_lens.astype(jnp.int32).reshape(B, 1)
    # pad_packed_sequence pads to max(x_lens); mean(dim=0) divides by it.
    inv_tmax = (1.0 / jnp.max(x_lens).astype(jnp.float32)).reshape(1)

    vmem = pl.BlockSpec(memory_space=pltpu.MemorySpace.VMEM)
    smem = pl.BlockSpec(memory_space=pltpu.MemorySpace.SMEM)
    return pl.pallas_call(
        rnn_fused_kernel,
        out_shape=jax.ShapeDtypeStruct((B, NCLS), jnp.float32),
        in_specs=[vmem, vmem, vmem, vmem, vmem,      # xflat, aconv, cbias, wih0, b0
                  vmem, smem,                        # lens, 1/max(x_lens)
                  vmem, vmem, vmem, vmem,            # whh0, wih1, whh1, b1g
                  vmem, vmem, vmem, vmem],           # w1, b1c, w2, b2c
        out_specs=vmem,
        scratch_shapes=[pltpu.VMEM((T, B, 4 * h), jnp.float32)],
    )(xflat, p["aconv"], p["cbias"], p["wih0"], p["b0"],
      lens2d, inv_tmax,
      p["whh0"], p["wih1"], p["whh1"], p["b1g"],
      p["w1"], p["b1c"], p["w2"], p["b2c"])


if __name__ == "__main__":
    key = jax.random.PRNGKey(0)
    k_param, k_x = jax.random.split(key)

    T, B, H = 12, 4, 128
    raw = init_params(k_param, H)
    params = prepare_params(raw, T)

    x = jax.random.normal(k_x, (T, B, 3), jnp.float32)
    x_lens = jnp.array([12, 7, 9, 5], jnp.int32)     # unsorted (enforce_sorted=False)

    fwd = jax.jit(lambda xx, ll: rnn_forward(params, xx, ll))
    out = fwd(x, x_lens)
    jax.block_until_ready(out)
    assert out.shape == (B, NCLS) and out.dtype == jnp.float32
    assert bool(jnp.all(jnp.isfinite(out)))
    print("KERNEL_OK")
</pallas_src>

<mosaic_0001>
module attributes {stable_mosaic.version = 11 : i64} {
  func.func @rnn_fused_kernel(%arg0: memref<4x36xf32, #tpu.memory_space<vmem>>, %arg1: memref<36x36xf32, #tpu.memory_space<vmem>>, %arg2: memref<1x36xf32, #tpu.memory_space<vmem>>, %arg3: memref<3x512xf32, #tpu.memory_space<vmem>>, %arg4: memref<1x512xf32, #tpu.memory_space<vmem>>, %arg5: memref<4x1xi32, #tpu.memory_space<vmem>>, %arg6: memref<1xf32, #tpu.memory_space<smem>>, %arg7: memref<128x512xbf16, #tpu.memory_space<vmem>>, %arg8: memref<128x512xbf16, #tpu.memory_space<vmem>>, %arg9: memref<128x512xbf16, #tpu.memory_space<vmem>>, %arg10: memref<1x512xf32, #tpu.memory_space<vmem>>, %arg11: memref<128x128xf32, #tpu.memory_space<vmem>>, %arg12: memref<1x128xf32, #tpu.memory_space<vmem>>, %arg13: memref<128x25xf32, #tpu.memory_space<vmem>>, %arg14: memref<1x25xf32, #tpu.memory_space<vmem>>, %arg15: memref<4x25xf32, #tpu.memory_space<vmem>>, %arg16: memref<12x4x512xf32, #tpu.memory_space<vmem>>) attributes {dimension_semantics = [], scalar_prefetch = 0 : i64, scratch_operands = 1 : i64, tpu.core_type = #tpu.core_type<tc>} {
    %c0 = arith.constant 0 : index
    %c0_0 = arith.constant 0 : index
    %0 = vector.load %arg0[%c0, %c0_0] : memref<4x36xf32, #tpu.memory_space<vmem>>, vector<4x36xf32>
    %c0_1 = arith.constant 0 : index
    %c0_2 = arith.constant 0 : index
    %1 = vector.load %arg1[%c0_1, %c0_2] : memref<36x36xf32, #tpu.memory_space<vmem>>, vector<36x36xf32>
    %cst = arith.constant dense<0.000000e+00> : vector<4x36xf32>
    %2 = tpu.matmul %0, %1, %cst {dimension_numbers = #tpu.dot_dimension_numbers<[1], [0], [0], [1], [0, 0, 1, 1], [], []>} : vector<4x36xf32>, vector<36x36xf32>, vector<4x36xf32> -> vector<4x36xf32>
    %c0_3 = arith.constant 0 : index
    %c0_4 = arith.constant 0 : index
    %3 = vector.load %arg2[%c0_3, %c0_4] : memref<1x36xf32, #tpu.memory_space<vmem>>, vector<1x36xf32>
    %4 = vector.broadcast %3 : vector<1x36xf32> to vector<4x36xf32>
    %5 = arith.addf %2, %4 : vector<4x36xf32>
    %c0_5 = arith.constant 0 : index
    %c0_6 = arith.constant 0 : index
    %6 = vector.load %arg3[%c0_5, %c0_6] : memref<3x512xf32, #tpu.memory_space<vmem>>, vector<1x512xf32>
    %c1 = arith.constant 1 : index
    %c0_7 = arith.constant 0 : index
    %7 = vector.load %arg3[%c1, %c0_7] : memref<3x512xf32, #tpu.memory_space<vmem>>, vector<1x512xf32>
    %c2 = arith.constant 2 : index
    %c0_8 = arith.constant 0 : index
    %8 = vector.load %arg3[%c2, %c0_8] : memref<3x512xf32, #tpu.memory_space<vmem>>, vector<1x512xf32>
    %c0_9 = arith.constant 0 : index
    %c0_10 = arith.constant 0 : index
    %9 = vector.load %arg4[%c0_9, %c0_10] : memref<1x512xf32, #tpu.memory_space<vmem>>, vector<1x512xf32>
    %10 = vector.extract_strided_slice %5 {offsets = [0, 0], sizes = [1, 3], strides = [1, 1]} : vector<4x36xf32> to vector<1x3xf32>
    %11 = vector.extract_strided_slice %5 {offsets = [0, 3], sizes = [1, 3], strides = [1, 1]} : vector<4x36xf32> to vector<1x3xf32>
    %12 = vector.extract_strided_slice %5 {offsets = [0, 6], sizes = [1, 3], strides = [1, 1]} : vector<4x36xf32> to vector<1x3xf32>
    %13 = vector.extract_strided_slice %5 {offsets = [0, 9], sizes = [1, 3], strides = [1, 1]} : vector<4x36xf32> to vector<1x3xf32>
    %14 = tpu.concatenate %10, %11, %12, %13 in 0 : vector<1x3xf32>, vector<1x3xf32>, vector<1x3xf32>, vector<1x3xf32> -> vector<4x3xf32>
    %15 = vector.extract_strided_slice %14 {offsets = [0, 0], sizes = [4, 1], strides = [1, 1]} : vector<4x3xf32> to vector<4x1xf32>
    %16 = vector.broadcast %15 : vector<4x1xf32> to vector<4x512xf32>
    %17 = vector.broadcast %6 : vector<1x512xf32> to vector<4x512xf32>
    %18 = arith.mulf %16, %17 : vector<4x512xf32>
    %19 = vector.broadcast %9 : vector<1x512xf32> to vector<4x512xf32>
    %20 = arith.addf %19, %18 : vector<4x512xf32>
    %21 = vector.extract_strided_slice %14 {offsets = [0, 1], sizes = [4, 1], strides = [1, 1]} : vector<4x3xf32> to vector<4x1xf32>
    %22 = vector.broadcast %21 : vector<4x1xf32> to vector<4x512xf32>
    %23 = vector.broadcast %7 : vector<1x512xf32> to vector<4x512xf32>
    %24 = arith.mulf %22, %23 : vector<4x512xf32>
    %25 = arith.addf %20, %24 : vector<4x512xf32>
    %26 = vector.extract_strided_slice %14 {offsets = [0, 2], sizes = [4, 1], strides = [1, 1]} : vector<4x3xf32> to vector<4x1xf32>
    %27 = vector.broadcast %26 : vector<4x1xf32> to vector<4x512xf32>
    %28 = vector.broadcast %8 : vector<1x512xf32> to vector<4x512xf32>
    %29 = arith.mulf %27, %28 : vector<4x512xf32>
    %30 = arith.addf %25, %29 : vector<4x512xf32>
    %c0_11 = arith.constant 0 : index
    %c0_12 = arith.constant 0 : index
    %c0_13 = arith.constant 0 : index
    %31 = vector.load %arg16[%c0_11, %c0_12, %c0_13] : memref<12x4x512xf32, #tpu.memory_space<vmem>>, vector<1x4x512xf32>
    %32 = vector.shape_cast %31 : vector<1x4x512xf32> to vector<4x512xf32>
    %33 = vector.shape_cast %30 : vector<4x512xf32> to vector<1x4x512xf32>
    tpu.vector_store %arg16[%c0_11, %c0_12, %c0_13], %33 {strides = array<i32>} : memref<12x4x512xf32, #tpu.memory_space<vmem>>, vector<1x4x512xf32>,
    %34 = vector.extract_strided_slice %5 {offsets = [0, 12], sizes = [1, 3], strides = [1, 1]} : vector<4x36xf32> to vector<1x3xf32>
    %35 = vector.extract_strided_slice %5 {offsets = [0, 15], sizes = [1, 3], strides = [1, 1]} : vector<4x36xf32> to vector<1x3xf32>
    %36 = vector.extract_strided_slice %5 {offsets = [0, 18], sizes = [1, 3], strides = [1, 1]} : vector<4x36xf32> to vector<1x3xf32>
    %37 = vector.extract_strided_slice %5 {offsets = [0, 21], sizes = [1, 3], strides = [1, 1]} : vector<4x36xf32> to vector<1x3xf32>
    %38 = tpu.concatenate %34, %35, %36, %37 in 0 : vector<1x3xf32>, vector<1x3xf32>, vector<1x3xf32>, vector<1x3xf32> -> vector<4x3xf32>
    %39 = vector.extract_strided_slice %38 {offsets = [0, 0], sizes = [4, 1], strides = [1, 1]} : vector<4x3xf32> to vector<4x1xf32>
    %40 = vector.broadcast %39 : vector<4x1xf32> to vector<4x512xf32>
    %41 = vector.broadcast %6 : vector<1x512xf32> to vector<4x512xf32>
    %42 = arith.mulf %40, %41 : vector<4x512xf32>
    %43 = vector.broadcast %9 : vector<1x512xf32> to vector<4x512xf32>
    %44 = arith.addf %43, %42 : vector<4x512xf32>
    %45 = vector.extract_strided_slice %38 {offsets = [0, 1], sizes = [4, 1], strides = [1, 1]} : vector<4x3xf32> to vector<4x1xf32>
    %46 = vector.broadcast %45 : vector<4x1xf32> to vector<4x512xf32>
    %47 = vector.broadcast %7 : vector<1x512xf32> to vector<4x512xf32>
    %48 = arith.mulf %46, %47 : vector<4x512xf32>
    %49 = arith.addf %44, %48 : vector<4x512xf32>
    %50 = vector.extract_strided_slice %38 {offsets = [0, 2], sizes = [4, 1], strides = [1, 1]} : vector<4x3xf32> to vector<4x1xf32>
    %51 = vector.broadcast %50 : vector<4x1xf32> to vector<4x512xf32>
    %52 = vector.broadcast %8 : vector<1x512xf32> to vector<4x512xf32>
    %53 = arith.mulf %51, %52 : vector<4x512xf32>
    %54 = arith.addf %49, %53 : vector<4x512xf32>
    %c1_14 = arith.constant 1 : index
    %c0_15 = arith.constant 0 : index
    %c0_16 = arith.constant 0 : index
    %55 = vector.load %arg16[%c1_14, %c0_15, %c0_16] : memref<12x4x512xf32, #tpu.memory_space<vmem>>, vector<1x4x512xf32>
    %56 = vector.shape_cast %55 : vector<1x4x512xf32> to vector<4x512xf32>
    %57 = vector.shape_cast %54 : vector<4x512xf32> to vector<1x4x512xf32>
    tpu.vector_store %arg16[%c1_14, %c0_15, %c0_16], %57 {strides = array<i32>} : memref<12x4x512xf32, #tpu.memory_space<vmem>>, vector<1x4x512xf32>,
    %58 = vector.extract_strided_slice %5 {offsets = [0, 24], sizes = [1, 3], strides = [1, 1]} : vector<4x36xf32> to vector<1x3xf32>
    %59 = vector.extract_strided_slice %5 {offsets = [0, 27], sizes = [1, 3], strides = [1, 1]} : vector<4x36xf32> to vector<1x3xf32>
    %60 = vector.extract_strided_slice %5 {offsets = [0, 30], sizes = [1, 3], strides = [1, 1]} : vector<4x36xf32> to vector<1x3xf32>
    %61 = vector.extract_strided_slice %5 {offsets = [0, 33], sizes = [1, 3], strides = [1, 1]} : vector<4x36xf32> to vector<1x3xf32>
    %62 = tpu.concatenate %58, %59, %60, %61 in 0 : vector<1x3xf32>, vector<1x3xf32>, vector<1x3xf32>, vector<1x3xf32> -> vector<4x3xf32>
    %63 = vector.extract_strided_slice %62 {offsets = [0, 0], sizes = [4, 1], strides = [1, 1]} : vector<4x3xf32> to vector<4x1xf32>
    %64 = vector.broadcast %63 : vector<4x1xf32> to vector<4x512xf32>
    %65 = vector.broadcast %6 : vector<1x512xf32> to vector<4x512xf32>
    %66 = arith.mulf %64, %65 : vector<4x512xf32>
    %67 = vector.broadcast %9 : vector<1x512xf32> to vector<4x512xf32>
    %68 = arith.addf %67, %66 : vector<4x512xf32>
    %69 = vector.extract_strided_slice %62 {offsets = [0, 1], sizes = [4, 1], strides = [1, 1]} : vector<4x3xf32> to vector<4x1xf32>
    %70 = vector.broadcast %69 : vector<4x1xf32> to vector<4x512xf32>
    %71 = vector.broadcast %7 : vector<1x512xf32> to vector<4x512xf32>
    %72 = arith.mulf %70, %71 : vector<4x512xf32>
    %73 = arith.addf %68, %72 : vector<4x512xf32>
    %74 = vector.extract_strided_slice %62 {offsets = [0, 2], sizes = [4, 1], strides = [1, 1]} : vector<4x3xf32> to vector<4x1xf32>
    %75 = vector.broadcast %74 : vector<4x1xf32> to vector<4x512xf32>
    %76 = vector.broadcast %8 : vector<1x512xf32> to vector<4x512xf32>
    %77 = arith.mulf %75, %76 : vector<4x512xf32>
    %78 = arith.addf %73, %77 : vector<4x512xf32>
    %c2_17 = arith.constant 2 : index
    %c0_18 = arith.constant 0 : index
    %c0_19 = arith.constant 0 : index
    %79 = vector.load %arg16[%c2_17, %c0_18, %c0_19] : memref<12x4x512xf32, #tpu.memory_space<vmem>>, vector<1x4x512xf32>
    %80 = vector.shape_cast %79 : vector<1x4x512xf32> to vector<4x512xf32>
    %81 = vector.shape_cast %78 : vector<4x512xf32> to vector<1x4x512xf32>
    tpu.vector_store %arg16[%c2_17, %c0_18, %c0_19], %81 {strides = array<i32>} : memref<12x4x512xf32, #tpu.memory_space<vmem>>, vector<1x4x512xf32>,
    %82 = vector.extract_strided_slice %5 {offsets = [1, 0], sizes = [1, 3], strides = [1, 1]} : vector<4x36xf32> to vector<1x3xf32>
    %83 = vector.extract_strided_slice %5 {offsets = [1, 3], sizes = [1, 3], strides = [1, 1]} : vector<4x36xf32> to vector<1x3xf32>
    %84 = vector.extract_strided_slice %5 {offsets = [1, 6], sizes = [1, 3], strides = [1, 1]} : vector<4x36xf32> to vector<1x3xf32>
    %85 = vector.extract_strided_slice %5 {offsets = [1, 9], sizes = [1, 3], strides = [1, 1]} : vector<4x36xf32> to vector<1x3xf32>
    %86 = tpu.concatenate %82, %83, %84, %85 in 0 : vector<1x3xf32>, vector<1x3xf32>, vector<1x3xf32>, vector<1x3xf32> -> vector<4x3xf32>
    %87 = vector.extract_strided_slice %86 {offsets = [0, 0], sizes = [4, 1], strides = [1, 1]} : vector<4x3xf32> to vector<4x1xf32>
    %88 = vector.broadcast %87 : vector<4x1xf32> to vector<4x512xf32>
    %89 = vector.broadcast %6 : vector<1x512xf32> to vector<4x512xf32>
    %90 = arith.mulf %88, %89 : vector<4x512xf32>
    %91 = vector.broadcast %9 : vector<1x512xf32> to vector<4x512xf32>
    %92 = arith.addf %91, %90 : vector<4x512xf32>
    %93 = vector.extract_strided_slice %86 {offsets = [0, 1], sizes = [4, 1], strides = [1, 1]} : vector<4x3xf32> to vector<4x1xf32>
    %94 = vector.broadcast %93 : vector<4x1xf32> to vector<4x512xf32>
    %95 = vector.broadcast %7 : vector<1x512xf32> to vector<4x512xf32>
    %96 = arith.mulf %94, %95 : vector<4x512xf32>
    %97 = arith.addf %92, %96 : vector<4x512xf32>
    %98 = vector.extract_strided_slice %86 {offsets = [0, 2], sizes = [4, 1], strides = [1, 1]} : vector<4x3xf32> to vector<4x1xf32>
    %99 = vector.broadcast %98 : vector<4x1xf32> to vector<4x512xf32>
    %100 = vector.broadcast %8 : vector<1x512xf32> to vector<4x512xf32>
    %101 = arith.mulf %99, %100 : vector<4x512xf32>
    %102 = arith.addf %97, %101 : vector<4x512xf32>
    %c3 = arith.constant 3 : index
    %c0_20 = arith.constant 0 : index
    %c0_21 = arith.constant 0 : index
    %103 = vector.load %arg16[%c3, %c0_20, %c0_21] : memref<12x4x512xf32, #tpu.memory_space<vmem>>, vector<1x4x512xf32>
    %104 = vector.shape_cast %103 : vector<1x4x512xf32> to vector<4x512xf32>
    %105 = vector.shape_cast %102 : vector<4x512xf32> to vector<1x4x512xf32>
    tpu.vector_store %arg16[%c3, %c0_20, %c0_21], %105 {strides = array<i32>} : memref<12x4x512xf32, #tpu.memory_space<vmem>>, vector<1x4x512xf32>,
    %106 = vector.extract_strided_slice %5 {offsets = [1, 12], sizes = [1, 3], strides = [1, 1]} : vector<4x36xf32> to vector<1x3xf32>
    %107 = vector.extract_strided_slice %5 {offsets = [1, 15], sizes = [1, 3], strides = [1, 1]} : vector<4x36xf32> to vector<1x3xf32>
    %108 = vector.extract_strided_slice %5 {offsets = [1, 18], sizes = [1, 3], strides = [1, 1]} : vector<4x36xf32> to vector<1x3xf32>
    %109 = vector.extract_strided_slice %5 {offsets = [1, 21], sizes = [1, 3], strides = [1, 1]} : vector<4x36xf32> to vector<1x3xf32>
    %110 = tpu.concatenate %106, %107, %108, %109 in 0 : vector<1x3xf32>, vector<1x3xf32>, vector<1x3xf32>, vector<1x3xf32> -> vector<4x3xf32>
    %111 = vector.extract_strided_slice %110 {offsets = [0, 0], sizes = [4, 1], strides = [1, 1]} : vector<4x3xf32> to vector<4x1xf32>
    %112 = vector.broadcast %111 : vector<4x1xf32> to vector<4x512xf32>
    %113 = vector.broadcast %6 : vector<1x512xf32> to vector<4x512xf32>
    %114 = arith.mulf %112, %113 : vector<4x512xf32>
    %115 = vector.broadcast %9 : vector<1x512xf32> to vector<4x512xf32>
    %116 = arith.addf %115, %114 : vector<4x512xf32>
    %117 = vector.extract_strided_slice %110 {offsets = [0, 1], sizes = [4, 1], strides = [1, 1]} : vector<4x3xf32> to vector<4x1xf32>
    %118 = vector.broadcast %117 : vector<4x1xf32> to vector<4x512xf32>
    %119 = vector.broadcast %7 : vector<1x512xf32> to vector<4x512xf32>
    %120 = arith.mulf %118, %119 : vector<4x512xf32>
    %121 = arith.addf %116, %120 : vector<4x512xf32>
    %122 = vector.extract_strided_slice %110 {offsets = [0, 2], sizes = [4, 1], strides = [1, 1]} : vector<4x3xf32> to vector<4x1xf32>
    %123 = vector.broadcast %122 : vector<4x1xf32> to vector<4x512xf32>
    %124 = vector.broadcast %8 : vector<1x512xf32> to vector<4x512xf32>
    %125 = arith.mulf %123, %124 : vector<4x512xf32>
    %126 = arith.addf %121, %125 : vector<4x512xf32>
    %c4 = arith.constant 4 : index
    %c0_22 = arith.constant 0 : index
    %c0_23 = arith.constant 0 : index
    %127 = vector.load %arg16[%c4, %c0_22, %c0_23] : memref<12x4x512xf32, #tpu.memory_space<vmem>>, vector<1x4x512xf32>
    %128 = vector.shape_cast %127 : vector<1x4x512xf32> to vector<4x512xf32>
    %129 = vector.shape_cast %126 : vector<4x512xf32> to vector<1x4x512xf32>
    tpu.vector_store %arg16[%c4, %c0_22, %c0_23], %129 {strides = array<i32>} : memref<12x4x512xf32, #tpu.memory_space<vmem>>, vector<1x4x512xf32>,
    %130 = vector.extract_strided_slice %5 {offsets = [1, 24], sizes = [1, 3], strides = [1, 1]} : vector<4x36xf32> to vector<1x3xf32>
    %131 = vector.extract_strided_slice %5 {offsets = [1, 27], sizes = [1, 3], strides = [1, 1]} : vector<4x36xf32> to vector<1x3xf32>
    %132 = vector.extract_strided_slice %5 {offsets = [1, 30], sizes = [1, 3], strides = [1, 1]} : vector<4x36xf32> to vector<1x3xf32>
    %133 = vector.extract_strided_slice %5 {offsets = [1, 33], sizes = [1, 3], strides = [1, 1]} : vector<4x36xf32> to vector<1x3xf32>
    %134 = tpu.concatenate %130, %131, %132, %133 in 0 : vector<1x3xf32>, vector<1x3xf32>, vector<1x3xf32>, vector<1x3xf32> -> vector<4x3xf32>
    %135 = vector.extract_strided_slice %134 {offsets = [0, 0], sizes = [4, 1], strides = [1, 1]} : vector<4x3xf32> to vector<4x1xf32>
    %136 = vector.broadcast %135 : vector<4x1xf32> to vector<4x512xf32>
    %137 = vector.broadcast %6 : vector<1x512xf32> to vector<4x512xf32>
    %138 = arith.mulf %136, %137 : vector<4x512xf32>
    %139 = vector.broadcast %9 : vector<1x512xf32> to vector<4x512xf32>
    %140 = arith.addf %139, %138 : vector<4x512xf32>
    %141 = vector.extract_strided_slice %134 {offsets = [0, 1], sizes = [4, 1], strides = [1, 1]} : vector<4x3xf32> to vector<4x1xf32>
    %142 = vector.broadcast %141 : vector<4x1xf32> to vector<4x512xf32>
    %143 = vector.broadcast %7 : vector<1x512xf32> to vector<4x512xf32>
    %144 = arith.mulf %142, %143 : vector<4x512xf32>
    %145 = arith.addf %140, %144 : vector<4x512xf32>
    %146 = vector.extract_strided_slice %134 {offsets = [0, 2], sizes = [4, 1], strides = [1, 1]} : vector<4x3xf32> to vector<4x1xf32>
    %147 = vector.broadcast %146 : vector<4x1xf32> to vector<4x512xf32>
    %148 = vector.broadcast %8 : vector<1x512xf32> to vector<4x512xf32>
    %149 = arith.mulf %147, %148 : vector<4x512xf32>
    %150 = arith.addf %145, %149 : vector<4x512xf32>
    %c5 = arith.constant 5 : index
    %c0_24 = arith.constant 0 : index
    %c0_25 = arith.constant 0 : index
    %151 = vector.load %arg16[%c5, %c0_24, %c0_25] : memref<12x4x512xf32, #tpu.memory_space<vmem>>, vector<1x4x512xf32>
    %152 = vector.shape_cast %151 : vector<1x4x512xf32> to vector<4x512xf32>
    %153 = vector.shape_cast %150 : vector<4x512xf32> to vector<1x4x512xf32>
    tpu.vector_store %arg16[%c5, %c0_24, %c0_25], %153 {strides = array<i32>} : memref<12x4x512xf32, #tpu.memory_space<vmem>>, vector<1x4x512xf32>,
    %154 = vector.extract_strided_slice %5 {offsets = [2, 0], sizes = [1, 3], strides = [1, 1]} : vector<4x36xf32> to vector<1x3xf32>
    %155 = vector.extract_strided_slice %5 {offsets = [2, 3], sizes = [1, 3], strides = [1, 1]} : vector<4x36xf32> to vector<1x3xf32>
    %156 = vector.extract_strided_slice %5 {offsets = [2, 6], sizes = [1, 3], strides = [1, 1]} : vector<4x36xf32> to vector<1x3xf32>
    %157 = vector.extract_strided_slice %5 {offsets = [2, 9], sizes = [1, 3], strides = [1, 1]} : vector<4x36xf32> to vector<1x3xf32>
    %158 = tpu.concatenate %154, %155, %156, %157 in 0 : vector<1x3xf32>, vector<1x3xf32>, vector<1x3xf32>, vector<1x3xf32> -> vector<4x3xf32>
    %159 = vector.extract_strided_slice %158 {offsets = [0, 0], sizes = [4, 1], strides = [1, 1]} : vector<4x3xf32> to vector<4x1xf32>
    %160 = vector.broadcast %159 : vector<4x1xf32> to vector<4x512xf32>
    %161 = vector.broadcast %6 : vector<1x512xf32> to vector<4x512xf32>
    %162 = arith.mulf %160, %161 : vector<4x512xf32>
    %163 = vector.broadcast %9 : vector<1x512xf32> to vector<4x512xf32>
    %164 = arith.addf %163, %162 : vector<4x512xf32>
    %165 = vector.extract_strided_slice %158 {offsets = [0, 1], sizes = [4, 1], strides = [1, 1]} : vector<4x3xf32> to vector<4x1xf32>
    %166 = vector.broadcast %165 : vector<4x1xf32> to vector<4x512xf32>
    %167 = vector.broadcast %7 : vector<1x512xf32> to vector<4x512xf32>
    %168 = arith.mulf %166, %167 : vector<4x512xf32>
    %169 = arith.addf %164, %168 : vector<4x512xf32>
    %170 = vector.extract_strided_slice %158 {offsets = [0, 2], sizes = [4, 1], strides = [1, 1]} : vector<4x3xf32> to vector<4x1xf32>
    %171 = vector.broadcast %170 : vector<4x1xf32> to vector<4x512xf32>
    %172 = vector.broadcast %8 : vector<1x512xf32> to vector<4x512xf32>
    %173 = arith.mulf %171, %172 : vector<4x512xf32>
    %174 = arith.addf %169, %173 : vector<4x512xf32>
    %c6 = arith.constant 6 : index
    %c0_26 = arith.constant 0 : index
    %c0_27 = arith.constant 0 : index
    %175 = vector.load %arg16[%c6, %c0_26, %c0_27] : memref<12x4x512xf32, #tpu.memory_space<vmem>>, vector<1x4x512xf32>
    %176 = vector.shape_cast %175 : vector<1x4x512xf32> to vector<4x512xf32>
    %177 = vector.shape_cast %174 : vector<4x512xf32> to vector<1x4x512xf32>
    tpu.vector_store %arg16[%c6, %c0_26, %c0_27], %177 {strides = array<i32>} : memref<12x4x512xf32, #tpu.memory_space<vmem>>, vector<1x4x512xf32>,
    %178 = vector.extract_strided_slice %5 {offsets = [2, 12], sizes = [1, 3], strides = [1, 1]} : vector<4x36xf32> to vector<1x3xf32>
    %179 = vector.extract_strided_slice %5 {offsets = [2, 15], sizes = [1, 3], strides = [1, 1]} : vector<4x36xf32> to vector<1x3xf32>
    %180 = vector.extract_strided_slice %5 {offsets = [2, 18], sizes = [1, 3], strides = [1, 1]} : vector<4x36xf32> to vector<1x3xf32>
    %181 = vector.extract_strided_slice %5 {offsets = [2, 21], sizes = [1, 3], strides = [1, 1]} : vector<4x36xf32> to vector<1x3xf32>
    %182 = tpu.concatenate %178, %179, %180, %181 in 0 : vector<1x3xf32>, vector<1x3xf32>, vector<1x3xf32>, vector<1x3xf32> -> vector<4x3xf32>
    %183 = vector.extract_strided_slice %182 {offsets = [0, 0], sizes = [4, 1], strides = [1, 1]} : vector<4x3xf32> to vector<4x1xf32>
    %184 = vector.broadcast %183 : vector<4x1xf32> to vector<4x512xf32>
    %185 = vector.broadcast %6 : vector<1x512xf32> to vector<4x512xf32>
    %186 = arith.mulf %184, %185 : vector<4x512xf32>
    %187 = vector.broadcast %9 : vector<1x512xf32> to vector<4x512xf32>
    %188 = arith.addf %187, %186 : vector<4x512xf32>
    %189 = vector.extract_strided_slice %182 {offsets = [0, 1], sizes = [4, 1], strides = [1, 1]} : vector<4x3xf32> to vector<4x1xf32>
    %190 = vector.broadcast %189 : vector<4x1xf32> to vector<4x512xf32>
    %191 = vector.broadcast %7 : vector<1x512xf32> to vector<4x512xf32>
    %192 = arith.mulf %190, %191 : vector<4x512xf32>
    %193 = arith.addf %188, %192 : vector<4x512xf32>
    %194 = vector.extract_strided_slice %182 {offsets = [0, 2], sizes = [4, 1], strides = [1, 1]} : vector<4x3xf32> to vector<4x1xf32>
    %195 = vector.broadcast %194 : vector<4x1xf32> to vector<4x512xf32>
    %196 = vector.broadcast %8 : vector<1x512xf32> to vector<4x512xf32>
    %197 = arith.mulf %195, %196 : vector<4x512xf32>
    %198 = arith.addf %193, %197 : vector<4x512xf32>
    %c7 = arith.constant 7 : index
    %c0_28 = arith.constant 0 : index
    %c0_29 = arith.constant 0 : index
    %199 = vector.load %arg16[%c7, %c0_28, %c0_29] : memref<12x4x512xf32, #tpu.memory_space<vmem>>, vector<1x4x512xf32>
    %200 = vector.shape_cast %199 : vector<1x4x512xf32> to vector<4x512xf32>
    %201 = vector.shape_cast %198 : vector<4x512xf32> to vector<1x4x512xf32>
    tpu.vector_store %arg16[%c7, %c0_28, %c0_29], %201 {strides = array<i32>} : memref<12x4x512xf32, #tpu.memory_space<vmem>>, vector<1x4x512xf32>,
    %202 = vector.extract_strided_slice %5 {offsets = [2, 24], sizes = [1, 3], strides = [1, 1]} : vector<4x36xf32> to vector<1x3xf32>
    %203 = vector.extract_strided_slice %5 {offsets = [2, 27], sizes = [1, 3], strides = [1, 1]} : vector<4x36xf32> to vector<1x3xf32>
    %204 = vector.extract_strided_slice %5 {offsets = [2, 30], sizes = [1, 3], strides = [1, 1]} : vector<4x36xf32> to vector<1x3xf32>
    %205 = vector.extract_strided_slice %5 {offsets = [2, 33], sizes = [1, 3], strides = [1, 1]} : vector<4x36xf32> to vector<1x3xf32>
    %206 = tpu.concatenate %202, %203, %204, %205 in 0 : vector<1x3xf32>, vector<1x3xf32>, vector<1x3xf32>, vector<1x3xf32> -> vector<4x3xf32>
    %207 = vector.extract_strided_slice %206 {offsets = [0, 0], sizes = [4, 1], strides = [1, 1]} : vector<4x3xf32> to vector<4x1xf32>
    %208 = vector.broadcast %207 : vector<4x1xf32> to vector<4x512xf32>
    %209 = vector.broadcast %6 : vector<1x512xf32> to vector<4x512xf32>
    %210 = arith.mulf %208, %209 : vector<4x512xf32>
    %211 = vector.broadcast %9 : vector<1x512xf32> to vector<4x512xf32>
    %212 = arith.addf %211, %210 : vector<4x512xf32>
    %213 = vector.extract_strided_slice %206 {offsets = [0, 1], sizes = [4, 1], strides = [1, 1]} : vector<4x3xf32> to vector<4x1xf32>
    %214 = vector.broadcast %213 : vector<4x1xf32> to vector<4x512xf32>
    %215 = vector.broadcast %7 : vector<1x512xf32> to vector<4x512xf32>
    %216 = arith.mulf %214, %215 : vector<4x512xf32>
    %217 = arith.addf %212, %216 : vector<4x512xf32>
    %218 = vector.extract_strided_slice %206 {offsets = [0, 2], sizes = [4, 1], strides = [1, 1]} : vector<4x3xf32> to vector<4x1xf32>
    %219 = vector.broadcast %218 : vector<4x1xf32> to vector<4x512xf32>
    %220 = vector.broadcast %8 : vector<1x512xf32> to vector<4x512xf32>
    %221 = arith.mulf %219, %220 : vector<4x512xf32>
    %222 = arith.addf %217, %221 : vector<4x512xf32>
    %c8 = arith.constant 8 : index
    %c0_30 = arith.constant 0 : index
    %c0_31 = arith.constant 0 : index
    %223 = vector.load %arg16[%c8, %c0_30, %c0_31] : memref<12x4x512xf32, #tpu.memory_space<vmem>>, vector<1x4x512xf32>
    %224 = vector.shape_cast %223 : vector<1x4x512xf32> to vector<4x512xf32>
    %225 = vector.shape_cast %222 : vector<4x512xf32> to vector<1x4x512xf32>
    tpu.vector_store %arg16[%c8, %c0_30, %c0_31], %225 {strides = array<i32>} : memref<12x4x512xf32, #tpu.memory_space<vmem>>, vector<1x4x512xf32>,
    %226 = vector.extract_strided_slice %5 {offsets = [3, 0], sizes = [1, 3], strides = [1, 1]} : vector<4x36xf32> to vector<1x3xf32>
    %227 = vector.extract_strided_slice %5 {offsets = [3, 3], sizes = [1, 3], strides = [1, 1]} : vector<4x36xf32> to vector<1x3xf32>
    %228 = vector.extract_strided_slice %5 {offsets = [3, 6], sizes = [1, 3], strides = [1, 1]} : vector<4x36xf32> to vector<1x3xf32>
    %229 = vector.extract_strided_slice %5 {offsets = [3, 9], sizes = [1, 3], strides = [1, 1]} : vector<4x36xf32> to vector<1x3xf32>
    %230 = tpu.concatenate %226, %227, %228, %229 in 0 : vector<1x3xf32>, vector<1x3xf32>, vector<1x3xf32>, vector<1x3xf32> -> vector<4x3xf32>
    %231 = vector.extract_strided_slice %230 {offsets = [0, 0], sizes = [4, 1], strides = [1, 1]} : vector<4x3xf32> to vector<4x1xf32>
    %232 = vector.broadcast %231 : vector<4x1xf32> to vector<4x512xf32>
    %233 = vector.broadcast %6 : vector<1x512xf32> to vector<4x512xf32>
    %234 = arith.mulf %232, %233 : vector<4x512xf32>
    %235 = vector.broadcast %9 : vector<1x512xf32> to vector<4x512xf32>
    %236 = arith.addf %235, %234 : vector<4x512xf32>
    %237 = vector.extract_strided_slice %230 {offsets = [0, 1], sizes = [4, 1], strides = [1, 1]} : vector<4x3xf32> to vector<4x1xf32>
    %238 = vector.broadcast %237 : vector<4x1xf32> to vector<4x512xf32>
    %239 = vector.broadcast %7 : vector<1x512xf32> to vector<4x512xf32>
    %240 = arith.mulf %238, %239 : vector<4x512xf32>
    %241 = arith.addf %236, %240 : vector<4x512xf32>
    %242 = vector.extract_strided_slice %230 {offsets = [0, 2], sizes = [4, 1], strides = [1, 1]} : vector<4x3xf32> to vector<4x1xf32>
    %243 = vector.broadcast %242 : vector<4x1xf32> to vector<4x512xf32>
    %244 = vector.broadcast %8 : vector<1x512xf32> to vector<4x512xf32>
    %245 = arith.mulf %243, %244 : vector<4x512xf32>
    %246 = arith.addf %241, %245 : vector<4x512xf32>
    %c9 = arith.constant 9 : index
    %c0_32 = arith.constant 0 : index
    %c0_33 = arith.constant 0 : index
    %247 = vector.load %arg16[%c9, %c0_32, %c0_33] : memref<12x4x512xf32, #tpu.memory_space<vmem>>, vector<1x4x512xf32>
    %248 = vector.shape_cast %247 : vector<1x4x512xf32> to vector<4x512xf32>
    %249 = vector.shape_cast %246 : vector<4x512xf32> to vector<1x4x512xf32>
    tpu.vector_store %arg16[%c9, %c0_32, %c0_33], %249 {strides = array<i32>} : memref<12x4x512xf32, #tpu.memory_space<vmem>>, vector<1x4x512xf32>,
    %250 = vector.extract_strided_slice %5 {offsets = [3, 12], sizes = [1, 3], strides = [1, 1]} : vector<4x36xf32> to vector<1x3xf32>
    %251 = vector.extract_strided_slice %5 {offsets = [3, 15], sizes = [1, 3], strides = [1, 1]} : vector<4x36xf32> to vector<1x3xf32>
    %252 = vector.extract_strided_slice %5 {offsets = [3, 18], sizes = [1, 3], strides = [1, 1]} : vector<4x36xf32> to vector<1x3xf32>
    %253 = vector.extract_strided_slice %5 {offsets = [3, 21], sizes = [1, 3], strides = [1, 1]} : vector<4x36xf32> to vector<1x3xf32>
    %254 = tpu.concatenate %250, %251, %252, %253 in 0 : vector<1x3xf32>, vector<1x3xf32>, vector<1x3xf32>, vector<1x3xf32> -> vector<4x3xf32>
    %255 = vector.extract_strided_slice %254 {offsets = [0, 0], sizes = [4, 1], strides = [1, 1]} : vector<4x3xf32> to vector<4x1xf32>
    %256 = vector.broadcast %255 : vector<4x1xf32> to vector<4x512xf32>
    %257 = vector.broadcast %6 : vector<1x512xf32> to vector<4x512xf32>
    %258 = arith.mulf %256, %257 : vector<4x512xf32>
    %259 = vector.broadcast %9 : vector<1x512xf32> to vector<4x512xf32>
    %260 = arith.addf %259, %258 : vector<4x512xf32>
    %261 = vector.extract_strided_slice %254 {offsets = [0, 1], sizes = [4, 1], strides = [1, 1]} : vector<4x3xf32> to vector<4x1xf32>
    %262 = vector.broadcast %261 : vector<4x1xf32> to vector<4x512xf32>
    %263 = vector.broadcast %7 : vector<1x512xf32> to vector<4x512xf32>
    %264 = arith.mulf %262, %263 : vector<4x512xf32>
    %265 = arith.addf %260, %264 : vector<4x512xf32>
    %266 = vector.extract_strided_slice %254 {offsets = [0, 2], sizes = [4, 1], strides = [1, 1]} : vector<4x3xf32> to vector<4x1xf32>
    %267 = vector.broadcast %266 : vector<4x1xf32> to vector<4x512xf32>
    %268 = vector.broadcast %8 : vector<1x512xf32> to vector<4x512xf32>
    %269 = arith.mulf %267, %268 : vector<4x512xf32>
    %270 = arith.addf %265, %269 : vector<4x512xf32>
    %c10 = arith.constant 10 : index
    %c0_34 = arith.constant 0 : index
    %c0_35 = arith.constant 0 : index
    %271 = vector.load %arg16[%c10, %c0_34, %c0_35] : memref<12x4x512xf32, #tpu.memory_space<vmem>>, vector<1x4x512xf32>
    %272 = vector.shape_cast %271 : vector<1x4x512xf32> to vector<4x512xf32>
    %273 = vector.shape_cast %270 : vector<4x512xf32> to vector<1x4x512xf32>
    tpu.vector_store %arg16[%c10, %c0_34, %c0_35], %273 {strides = array<i32>} : memref<12x4x512xf32, #tpu.memory_space<vmem>>, vector<1x4x512xf32>,
    %274 = vector.extract_strided_slice %5 {offsets = [3, 24], sizes = [1, 3], strides = [1, 1]} : vector<4x36xf32> to vector<1x3xf32>
    %275 = vector.extract_strided_slice %5 {offsets = [3, 27], sizes = [1, 3], strides = [1, 1]} : vector<4x36xf32> to vector<1x3xf32>
    %276 = vector.extract_strided_slice %5 {offsets = [3, 30], sizes = [1, 3], strides = [1, 1]} : vector<4x36xf32> to vector<1x3xf32>
    %277 = vector.extract_strided_slice %5 {offsets = [3, 33], sizes = [1, 3], strides = [1, 1]} : vector<4x36xf32> to vector<1x3xf32>
    %278 = tpu.concatenate %274, %275, %276, %277 in 0 : vector<1x3xf32>, vector<1x3xf32>, vector<1x3xf32>, vector<1x3xf32> -> vector<4x3xf32>
    %279 = vector.extract_strided_slice %278 {offsets = [0, 0], sizes = [4, 1], strides = [1, 1]} : vector<4x3xf32> to vector<4x1xf32>
    %280 = vector.broadcast %279 : vector<4x1xf32> to vector<4x512xf32>
    %281 = vector.broadcast %6 : vector<1x512xf32> to vector<4x512xf32>
    %282 = arith.mulf %280, %281 : vector<4x512xf32>
    %283 = vector.broadcast %9 : vector<1x512xf32> to vector<4x512xf32>
    %284 = arith.addf %283, %282 : vector<4x512xf32>
    %285 = vector.extract_strided_slice %278 {offsets = [0, 1], sizes = [4, 1], strides = [1, 1]} : vector<4x3xf32> to vector<4x1xf32>
    %286 = vector.broadcast %285 : vector<4x1xf32> to vector<4x512xf32>
    %287 = vector.broadcast %7 : vector<1x512xf32> to vector<4x512xf32>
    %288 = arith.mulf %286, %287 : vector<4x512xf32>
    %289 = arith.addf %284, %288 : vector<4x512xf32>
    %290 = vector.extract_strided_slice %278 {offsets = [0, 2], sizes = [4, 1], strides = [1, 1]} : vector<4x3xf32> to vector<4x1xf32>
    %291 = vector.broadcast %290 : vector<4x1xf32> to vector<4x512xf32>
    %292 = vector.broadcast %8 : vector<1x512xf32> to vector<4x512xf32>
    %293 = arith.mulf %291, %292 : vector<4x512xf32>
    %294 = arith.addf %289, %293 : vector<4x512xf32>
    %c11 = arith.constant 11 : index
    %c0_36 = arith.constant 0 : index
    %c0_37 = arith.constant 0 : index
    %295 = vector.load %arg16[%c11, %c0_36, %c0_37] : memref<12x4x512xf32, #tpu.memory_space<vmem>>, vector<1x4x512xf32>
    %296 = vector.shape_cast %295 : vector<1x4x512xf32> to vector<4x512xf32>
    %297 = vector.shape_cast %294 : vector<4x512xf32> to vector<1x4x512xf32>
    tpu.vector_store %arg16[%c11, %c0_36, %c0_37], %297 {strides = array<i32>} : memref<12x4x512xf32, #tpu.memory_space<vmem>>, vector<1x4x512xf32>,
    %c0_38 = arith.constant 0 : index
    %c0_39 = arith.constant 0 : index
    %298 = vector.load %arg5[%c0_38, %c0_39] : memref<4x1xi32, #tpu.memory_space<vmem>>, vector<4x1xi32>
    %c0_40 = arith.constant 0 : index
    %c0_41 = arith.constant 0 : index
    %299 = vector.load %arg10[%c0_40, %c0_41] : memref<1x512xf32, #tpu.memory_space<vmem>>, vector<1x512xf32>
    %300 = vector.shape_cast %299 : vector<1x512xf32> to vector<1x512xf32>
    %301 = vector.broadcast %300 : vector<1x512xf32> to vector<4x512xf32>
    %cst_42 = arith.constant 0.000000e+00 : f32
    %302 = vector.broadcast %cst_42 : f32 to vector<4x128xf32>
    %c0_i32 = arith.constant 0 : i32
    %303 = vector.broadcast %c0_i32 : i32 to vector<4x1xi32>
    %304 = arith.cmpi slt, %303, %298 : vector<4x1xi32>
    %305 = arith.truncf %302 : vector<4x128xf32> to vector<4x128xbf16>
    %c0_43 = arith.constant 0 : index
    %c0_44 = arith.constant 0 : index
    %306 = vector.load %arg9[%c0_43, %c0_44] : memref<128x512xbf16, #tpu.memory_space<vmem>>, vector<128x512xbf16>
    %cst_45 = arith.constant dense<0.000000e+00> : vector<4x512xf32>
    %307 = tpu.matmul %305, %306, %cst_45 {dimension_numbers = #tpu.dot_dimension_numbers<[1], [0], [0], [1], [0, 0, 1, 1], [], []>} : vector<4x128xbf16>, vector<128x512xbf16>, vector<4x512xf32> -> vector<4x512xf32>
    %308 = arith.addf %301, %307 : vector<4x512xf32>
    %309 = arith.index_cast %c0_i32 : i32 to index
    %c0_46 = arith.constant 0 : index
    %c0_47 = arith.constant 0 : index
    %310 = vector.load %arg16[%309, %c0_46, %c0_47] : memref<12x4x512xf32, #tpu.memory_space<vmem>>, vector<1x4x512xf32>
    %311 = vector.shape_cast %310 : vector<1x4x512xf32> to vector<4x512xf32>
    %312 = arith.truncf %302 : vector<4x128xf32> to vector<4x128xbf16>
    %c0_48 = arith.constant 0 : index
    %c0_49 = arith.constant 0 : index
    %313 = vector.load %arg7[%c0_48, %c0_49] : memref<128x512xbf16, #tpu.memory_space<vmem>>, vector<128x512xbf16>
    %cst_50 = arith.constant dense<0.000000e+00> : vector<4x512xf32>
    %314 = tpu.matmul %312, %313, %cst_50 {dimension_numbers = #tpu.dot_dimension_numbers<[1], [0], [0], [1], [0, 0, 1, 1], [], []>} : vector<4x128xbf16>, vector<128x512xbf16>, vector<4x512xf32> -> vector<4x512xf32>
    %315 = arith.addf %311, %314 : vector<4x512xf32>
    %316 = vector.extract_strided_slice %315 {offsets = [0, 0], sizes = [4, 384], strides = [1, 1]} : vector<4x512xf32> to vector<4x384xf32>
    %cst_51 = arith.constant 5.000000e-01 : f32
    %317 = vector.broadcast %cst_51 : f32 to vector<4x384xf32>
    %318 = arith.mulf %317, %316 : vector<4x384xf32>
    %319 = math.tanh %318 : vector<4x384xf32>
    %cst_52 = arith.constant 5.000000e-01 : f32
    %320 = vector.broadcast %cst_52 : f32 to vector<4x384xf32>
    %321 = arith.mulf %320, %319 : vector<4x384xf32>
    %cst_53 = arith.constant 5.000000e-01 : f32
    %322 = vector.broadcast %cst_53 : f32 to vector<4x384xf32>
    %323 = arith.addf %321, %322 : vector<4x384xf32>
    %324 = vector.extract_strided_slice %323 {offsets = [0, 0], sizes = [4, 128], strides = [1, 1]} : vector<4x384xf32> to vector<4x128xf32>
    %325 = vector.extract_strided_slice %323 {offsets = [0, 128], sizes = [4, 128], strides = [1, 1]} : vector<4x384xf32> to vector<4x128xf32>
    %326 = vector.extract_strided_slice %323 {offsets = [0, 256], sizes = [4, 128], strides = [1, 1]} : vector<4x384xf32> to vector<4x128xf32>
    %327 = vector.extract_strided_slice %315 {offsets = [0, 384], sizes = [4, 128], strides = [1, 1]} : vector<4x512xf32> to vector<4x128xf32>
    %328 = math.tanh %327 : vector<4x128xf32>
    %329 = arith.mulf %325, %302 : vector<4x128xf32>
    %330 = arith.mulf %324, %328 : vector<4x128xf32>
    %331 = arith.addf %329, %330 : vector<4x128xf32>
    %332 = math.tanh %331 : vector<4x128xf32>
    %333 = arith.mulf %326, %332 : vector<4x128xf32>
    %334 = vector.shape_cast %304 : vector<4x1xi1> to vector<4x1xi1>
    %335 = vector.broadcast %334 : vector<4x1xi1> to vector<4x128xi1>
    %336 = arith.select %335, %333, %302 : vector<4x128xi1>, vector<4x128xf32>
    %337 = vector.shape_cast %304 : vector<4x1xi1> to vector<4x1xi1>
    %338 = vector.broadcast %337 : vector<4x1xi1> to vector<4x128xi1>
    %339 = arith.select %338, %331, %302 : vector<4x128xi1>, vector<4x128xf32>
    %340 = arith.truncf %333 : vector<4x128xf32> to vector<4x128xbf16>
    %c0_54 = arith.constant 0 : index
    %c0_55 = arith.constant 0 : index
    %341 = vector.load %arg8[%c0_54, %c0_55] : memref<128x512xbf16, #tpu.memory_space<vmem>>, vector<128x512xbf16>
    %cst_56 = arith.constant dense<0.000000e+00> : vector<4x512xf32>
    %342 = tpu.matmul %340, %341, %cst_56 {dimension_numbers = #tpu.dot_dimension_numbers<[1], [0], [0], [1], [0, 0, 1, 1], [], []>} : vector<4x128xbf16>, vector<128x512xbf16>, vector<4x512xf32> -> vector<4x512xf32>
    %343 = arith.addf %308, %342 : vector<4x512xf32>
    %344 = vector.extract_strided_slice %343 {offsets = [0, 0], sizes = [4, 384], strides = [1, 1]} : vector<4x512xf32> to vector<4x384xf32>
    %cst_57 = arith.constant 5.000000e-01 : f32
    %345 = vector.broadcast %cst_57 : f32 to vector<4x384xf32>
    %346 = arith.mulf %345, %344 : vector<4x384xf32>
    %347 = math.tanh %346 : vector<4x384xf32>
    %cst_58 = arith.constant 5.000000e-01 : f32
    %348 = vector.broadcast %cst_58 : f32 to vector<4x384xf32>
    %349 = arith.mulf %348, %347 : vector<4x384xf32>
    %cst_59 = arith.constant 5.000000e-01 : f32
    %350 = vector.broadcast %cst_59 : f32 to vector<4x384xf32>
    %351 = arith.addf %349, %350 : vector<4x384xf32>
    %352 = vector.extract_strided_slice %351 {offsets = [0, 0], sizes = [4, 128], strides = [1, 1]} : vector<4x384xf32> to vector<4x128xf32>
    %353 = vector.extract_strided_slice %351 {offsets = [0, 128], sizes = [4, 128], strides = [1, 1]} : vector<4x384xf32> to vector<4x128xf32>
    %354 = vector.extract_strided_slice %351 {offsets = [0, 256], sizes = [4, 128], strides = [1, 1]} : vector<4x384xf32> to vector<4x128xf32>
    %355 = vector.extract_strided_slice %343 {offsets = [0, 384], sizes = [4, 128], strides = [1, 1]} : vector<4x512xf32> to vector<4x128xf32>
    %356 = math.tanh %355 : vector<4x128xf32>
    %357 = arith.mulf %353, %302 : vector<4x128xf32>
    %358 = arith.mulf %352, %356 : vector<4x128xf32>
    %359 = arith.addf %357, %358 : vector<4x128xf32>
    %360 = math.tanh %359 : vector<4x128xf32>
    %361 = arith.mulf %354, %360 : vector<4x128xf32>
    %362 = vector.shape_cast %304 : vector<4x1xi1> to vector<4x1xi1>
    %363 = vector.broadcast %362 : vector<4x1xi1> to vector<4x128xi1>
    %364 = arith.select %363, %361, %302 : vector<4x128xi1>, vector<4x128xf32>
    %365 = vector.shape_cast %304 : vector<4x1xi1> to vector<4x1xi1>
    %366 = vector.broadcast %365 : vector<4x1xi1> to vector<4x128xi1>
    %367 = arith.select %366, %359, %302 : vector<4x128xi1>, vector<4x128xf32>
    %cst_60 = arith.constant 0.000000e+00 : f32
    %368 = vector.shape_cast %304 : vector<4x1xi1> to vector<4x1xi1>
    %369 = vector.broadcast %368 : vector<4x1xi1> to vector<4x128xi1>
    %370 = vector.broadcast %cst_60 : f32 to vector<4x128xf32>
    %371 = arith.select %369, %361, %370 : vector<4x128xi1>, vector<4x128xf32>
    %372 = arith.addf %302, %371 : vector<4x128xf32>
    %c1_i32 = arith.constant 1 : i32
    %373 = vector.broadcast %c1_i32 : i32 to vector<4x1xi32>
    %374 = arith.cmpi slt, %373, %298 : vector<4x1xi32>
    %375 = arith.truncf %364 : vector<4x128xf32> to vector<4x128xbf16>
    %c0_61 = arith.constant 0 : index
    %c0_62 = arith.constant 0 : index
    %376 = vector.load %arg9[%c0_61, %c0_62] : memref<128x512xbf16, #tpu.memory_space<vmem>>, vector<128x512xbf16>
    %cst_63 = arith.constant dense<0.000000e+00> : vector<4x512xf32>
    %377 = tpu.matmul %375, %376, %cst_63 {dimension_numbers = #tpu.dot_dimension_numbers<[1], [0], [0], [1], [0, 0, 1, 1], [], []>} : vector<4x128xbf16>, vector<128x512xbf16>, vector<4x512xf32> -> vector<4x512xf32>
    %378 = arith.addf %301, %377 : vector<4x512xf32>
    %379 = arith.index_cast %c1_i32 : i32 to index
    %c0_64 = arith.constant 0 : index
    %c0_65 = arith.constant 0 : index
    %380 = vector.load %arg16[%379, %c0_64, %c0_65] : memref<12x4x512xf32, #tpu.memory_space<vmem>>, vector<1x4x512xf32>
    %381 = vector.shape_cast %380 : vector<1x4x512xf32> to vector<4x512xf32>
    %382 = arith.truncf %336 : vector<4x128xf32> to vector<4x128xbf16>
    %c0_66 = arith.constant 0 : index
    %c0_67 = arith.constant 0 : index
    %383 = vector.load %arg7[%c0_66, %c0_67] : memref<128x512xbf16, #tpu.memory_space<vmem>>, vector<128x512xbf16>
    %cst_68 = arith.constant dense<0.000000e+00> : vector<4x512xf32>
    %384 = tpu.matmul %382, %383, %cst_68 {dimension_numbers = #tpu.dot_dimension_numbers<[1], [0], [0], [1], [0, 0, 1, 1], [], []>} : vector<4x128xbf16>, vector<128x512xbf16>, vector<4x512xf32> -> vector<4x512xf32>
    %385 = arith.addf %381, %384 : vector<4x512xf32>
    %386 = vector.extract_strided_slice %385 {offsets = [0, 0], sizes = [4, 384], strides = [1, 1]} : vector<4x512xf32> to vector<4x384xf32>
    %cst_69 = arith.constant 5.000000e-01 : f32
    %387 = vector.broadcast %cst_69 : f32 to vector<4x384xf32>
    %388 = arith.mulf %387, %386 : vector<4x384xf32>
    %389 = math.tanh %388 : vector<4x384xf32>
    %cst_70 = arith.constant 5.000000e-01 : f32
    %390 = vector.broadcast %cst_70 : f32 to vector<4x384xf32>
    %391 = arith.mulf %390, %389 : vector<4x384xf32>
    %cst_71 = arith.constant 5.000000e-01 : f32
    %392 = vector.broadcast %cst_71 : f32 to vector<4x384xf32>
    %393 = arith.addf %391, %392 : vector<4x384xf32>
    %394 = vector.extract_strided_slice %393 {offsets = [0, 0], sizes = [4, 128], strides = [1, 1]} : vector<4x384xf32> to vector<4x128xf32>
    %395 = vector.extract_strided_slice %393 {offsets = [0, 128], sizes = [4, 128], strides = [1, 1]} : vector<4x384xf32> to vector<4x128xf32>
    %396 = vector.extract_strided_slice %393 {offsets = [0, 256], sizes = [4, 128], strides = [1, 1]} : vector<4x384xf32> to vector<4x128xf32>
    %397 = vector.extract_strided_slice %385 {offsets = [0, 384], sizes = [4, 128], strides = [1, 1]} : vector<4x512xf32> to vector<4x128xf32>
    %398 = math.tanh %397 : vector<4x128xf32>
    %399 = arith.mulf %395, %339 : vector<4x128xf32>
    %400 = arith.mulf %394, %398 : vector<4x128xf32>
    %401 = arith.addf %399, %400 : vector<4x128xf32>
    %402 = math.tanh %401 : vector<4x128xf32>
    %403 = arith.mulf %396, %402 : vector<4x128xf32>
    %404 = vector.shape_cast %374 : vector<4x1xi1> to vector<4x1xi1>
    %405 = vector.broadcast %404 : vector<4x1xi1> to vector<4x128xi1>
    %406 = arith.select %405, %403, %336 : vector<4x128xi1>, vector<4x128xf32>
    %407 = vector.shape_cast %374 : vector<4x1xi1> to vector<4x1xi1>
    %408 = vector.broadcast %407 : vector<4x1xi1> to vector<4x128xi1>
    %409 = arith.select %408, %401, %339 : vector<4x128xi1>, vector<4x128xf32>
    %410 = arith.truncf %403 : vector<4x128xf32> to vector<4x128xbf16>
    %c0_72 = arith.constant 0 : index
    %c0_73 = arith.constant 0 : index
    %411 = vector.load %arg8[%c0_72, %c0_73] : memref<128x512xbf16, #tpu.memory_space<vmem>>, vector<128x512xbf16>
    %cst_74 = arith.constant dense<0.000000e+00> : vector<4x512xf32>
    %412 = tpu.matmul %410, %411, %cst_74 {dimension_numbers = #tpu.dot_dimension_numbers<[1], [0], [0], [1], [0, 0, 1, 1], [], []>} : vector<4x128xbf16>, vector<128x512xbf16>, vector<4x512xf32> -> vector<4x512xf32>
    %413 = arith.addf %378, %412 : vector<4x512xf32>
    %414 = vector.extract_strided_slice %413 {offsets = [0, 0], sizes = [4, 384], strides = [1, 1]} : vector<4x512xf32> to vector<4x384xf32>
    %cst_75 = arith.constant 5.000000e-01 : f32
    %415 = vector.broadcast %cst_75 : f32 to vector<4x384xf32>
    %416 = arith.mulf %415, %414 : vector<4x384xf32>
    %417 = math.tanh %416 : vector<4x384xf32>
    %cst_76 = arith.constant 5.000000e-01 : f32
    %418 = vector.broadcast %cst_76 : f32 to vector<4x384xf32>
    %419 = arith.mulf %418, %417 : vector<4x384xf32>
    %cst_77 = arith.constant 5.000000e-01 : f32
    %420 = vector.broadcast %cst_77 : f32 to vector<4x384xf32>
    %421 = arith.addf %419, %420 : vector<4x384xf32>
    %422 = vector.extract_strided_slice %421 {offsets = [0, 0], sizes = [4, 128], strides = [1, 1]} : vector<4x384xf32> to vector<4x128xf32>
    %423 = vector.extract_strided_slice %421 {offsets = [0, 128], sizes = [4, 128], strides = [1, 1]} : vector<4x384xf32> to vector<4x128xf32>
    %424 = vector.extract_strided_slice %421 {offsets = [0, 256], sizes = [4, 128], strides = [1, 1]} : vector<4x384xf32> to vector<4x128xf32>
    %425 = vector.extract_strided_slice %413 {offsets = [0, 384], sizes = [4, 128], strides = [1, 1]} : vector<4x512xf32> to vector<4x128xf32>
    %426 = math.tanh %425 : vector<4x128xf32>
    %427 = arith.mulf %423, %367 : vector<4x128xf32>
    %428 = arith.mulf %422, %426 : vector<4x128xf32>
    %429 = arith.addf %427, %428 : vector<4x128xf32>
    %430 = math.tanh %429 : vector<4x128xf32>
    %431 = arith.mulf %424, %430 : vector<4x128xf32>
    %432 = vector.shape_cast %374 : vector<4x1xi1> to vector<4x1xi1>
    %433 = vector.broadcast %432 : vector<4x1xi1> to vector<4x128xi1>
    %434 = arith.select %433, %431, %364 : vector<4x128xi1>, vector<4x128xf32>
    %435 = vector.shape_cast %374 : vector<4x1xi1> to vector<4x1xi1>
    %436 = vector.broadcast %435 : vector<4x1xi1> to vector<4x128xi1>
    %437 = arith.select %436, %429, %367 : vector<4x128xi1>, vector<4x128xf32>
    %cst_78 = arith.constant 0.000000e+00 : f32
    %438 = vector.shape_cast %374 : vector<4x1xi1> to vector<4x1xi1>
    %439 = vector.broadcast %438 : vector<4x1xi1> to vector<4x128xi1>
    %440 = vector.broadcast %cst_78 : f32 to vector<4x128xf32>
    %441 = arith.select %439, %431, %440 : vector<4x128xi1>, vector<4x128xf32>
    %442 = arith.addf %372, %441 : vector<4x128xf32>
    %c2_i32 = arith.constant 2 : i32
    %443 = vector.broadcast %c2_i32 : i32 to vector<4x1xi32>
    %444 = arith.cmpi slt, %443, %298 : vector<4x1xi32>
    %445 = arith.truncf %434 : vector<4x128xf32> to vector<4x128xbf16>
    %c0_79 = arith.constant 0 : index
    %c0_80 = arith.constant 0 : index
    %446 = vector.load %arg9[%c0_79, %c0_80] : memref<128x512xbf16, #tpu.memory_space<vmem>>, vector<128x512xbf16>
    %cst_81 = arith.constant dense<0.000000e+00> : vector<4x512xf32>
    %447 = tpu.matmul %445, %446, %cst_81 {dimension_numbers = #tpu.dot_dimension_numbers<[1], [0], [0], [1], [0, 0, 1, 1], [], []>} : vector<4x128xbf16>, vector<128x512xbf16>, vector<4x512xf32> -> vector<4x512xf32>
    %448 = arith.addf %301, %447 : vector<4x512xf32>
    %449 = arith.index_cast %c2_i32 : i32 to index
    %c0_82 = arith.constant 0 : index
    %c0_83 = arith.constant 0 : index
    %450 = vector.load %arg16[%449, %c0_82, %c0_83] : memref<12x4x512xf32, #tpu.memory_space<vmem>>, vector<1x4x512xf32>
    %451 = vector.shape_cast %450 : vector<1x4x512xf32> to vector<4x512xf32>
    %452 = arith.truncf %406 : vector<4x128xf32> to vector<4x128xbf16>
    %c0_84 = arith.constant 0 : index
    %c0_85 = arith.constant 0 : index
    %453 = vector.load %arg7[%c0_84, %c0_85] : memref<128x512xbf16, #tpu.memory_space<vmem>>, vector<128x512xbf16>
    %cst_86 = arith.constant dense<0.000000e+00> : vector<4x512xf32>
    %454 = tpu.matmul %452, %453, %cst_86 {dimension_numbers = #tpu.dot_dimension_numbers<[1], [0], [0], [1], [0, 0, 1, 1], [], []>} : vector<4x128xbf16>, vector<128x512xbf16>, vector<4x512xf32> -> vector<4x512xf32>
    %455 = arith.addf %451, %454 : vector<4x512xf32>
    %456 = vector.extract_strided_slice %455 {offsets = [0, 0], sizes = [4, 384], strides = [1, 1]} : vector<4x512xf32> to vector<4x384xf32>
    %cst_87 = arith.constant 5.000000e-01 : f32
    %457 = vector.broadcast %cst_87 : f32 to vector<4x384xf32>
    %458 = arith.mulf %457, %456 : vector<4x384xf32>
    %459 = math.tanh %458 : vector<4x384xf32>
    %cst_88 = arith.constant 5.000000e-01 : f32
    %460 = vector.broadcast %cst_88 : f32 to vector<4x384xf32>
    %461 = arith.mulf %460, %459 : vector<4x384xf32>
    %cst_89 = arith.constant 5.000000e-01 : f32
    %462 = vector.broadcast %cst_89 : f32 to vector<4x384xf32>
    %463 = arith.addf %461, %462 : vector<4x384xf32>
    %464 = vector.extract_strided_slice %463 {offsets = [0, 0], sizes = [4, 128], strides = [1, 1]} : vector<4x384xf32> to vector<4x128xf32>
    %465 = vector.extract_strided_slice %463 {offsets = [0, 128], sizes = [4, 128], strides = [1, 1]} : vector<4x384xf32> to vector<4x128xf32>
    %466 = vector.extract_strided_slice %463 {offsets = [0, 256], sizes = [4, 128], strides = [1, 1]} : vector<4x384xf32> to vector<4x128xf32>
    %467 = vector.extract_strided_slice %455 {offsets = [0, 384], sizes = [4, 128], strides = [1, 1]} : vector<4x512xf32> to vector<4x128xf32>
    %468 = math.tanh %467 : vector<4x128xf32>
    %469 = arith.mulf %465, %409 : vector<4x128xf32>
    %470 = arith.mulf %464, %468 : vector<4x128xf32>
    %471 = arith.addf %469, %470 : vector<4x128xf32>
    %472 = math.tanh %471 : vector<4x128xf32>
    %473 = arith.mulf %466, %472 : vector<4x128xf32>
    %474 = vector.shape_cast %444 : vector<4x1xi1> to vector<4x1xi1>
    %475 = vector.broadcast %474 : vector<4x1xi1> to vector<4x128xi1>
    %476 = arith.select %475, %473, %406 : vector<4x128xi1>, vector<4x128xf32>
    %477 = vector.shape_cast %444 : vector<4x1xi1> to vector<4x1xi1>
    %478 = vector.broadcast %477 : vector<4x1xi1> to vector<4x128xi1>
    %479 = arith.select %478, %471, %409 : vector<4x128xi1>, vector<4x128xf32>
    %480 = arith.truncf %473 : vector<4x128xf32> to vector<4x128xbf16>
    %c0_90 = arith.constant 0 : index
    %c0_91 = arith.constant 0 : index
    %481 = vector.load %arg8[%c0_90, %c0_91] : memref<128x512xbf16, #tpu.memory_space<vmem>>, vector<128x512xbf16>
    %cst_92 = arith.constant dense<0.000000e+00> : vector<4x512xf32>
    %482 = tpu.matmul %480, %481, %cst_92 {dimension_numbers = #tpu.dot_dimension_numbers<[1], [0], [0], [1], [0, 0, 1, 1], [], []>} : vector<4x128xbf16>, vector<128x512xbf16>, vector<4x512xf32> -> vector<4x512xf32>
    %483 = arith.addf %448, %482 : vector<4x512xf32>
    %484 = vector.extract_strided_slice %483 {offsets = [0, 0], sizes = [4, 384], strides = [1, 1]} : vector<4x512xf32> to vector<4x384xf32>
    %cst_93 = arith.constant 5.000000e-01 : f32
    %485 = vector.broadcast %cst_93 : f32 to vector<4x384xf32>
    %486 = arith.mulf %485, %484 : vector<4x384xf32>
    %487 = math.tanh %486 : vector<4x384xf32>
    %cst_94 = arith.constant 5.000000e-01 : f32
    %488 = vector.broadcast %cst_94 : f32 to vector<4x384xf32>
    %489 = arith.mulf %488, %487 : vector<4x384xf32>
    %cst_95 = arith.constant 5.000000e-01 : f32
    %490 = vector.broadcast %cst_95 : f32 to vector<4x384xf32>
    %491 = arith.addf %489, %490 : vector<4x384xf32>
    %492 = vector.extract_strided_slice %491 {offsets = [0, 0], sizes = [4, 128], strides = [1, 1]} : vector<4x384xf32> to vector<4x128xf32>
    %493 = vector.extract_strided_slice %491 {offsets = [0, 128], sizes = [4, 128], strides = [1, 1]} : vector<4x384xf32> to vector<4x128xf32>
    %494 = vector.extract_strided_slice %491 {offsets = [0, 256], sizes = [4, 128], strides = [1, 1]} : vector<4x384xf32> to vector<4x128xf32>
    %495 = vector.extract_strided_slice %483 {offsets = [0, 384], sizes = [4, 128], strides = [1, 1]} : vector<4x512xf32> to vector<4x128xf32>
    %496 = math.tanh %495 : vector<4x128xf32>
    %497 = arith.mulf %493, %437 : vector<4x128xf32>
    %498 = arith.mulf %492, %496 : vector<4x128xf32>
    %499 = arith.addf %497, %498 : vector<4x128xf32>
    %500 = math.tanh %499 : vector<4x128xf32>
    %501 = arith.mulf %494, %500 : vector<4x128xf32>
    %502 = vector.shape_cast %444 : vector<4x1xi1> to vector<4x1xi1>
    %503 = vector.broadcast %502 : vector<4x1xi1> to vector<4x128xi1>
    %504 = arith.select %503, %501, %434 : vector<4x128xi1>, vector<4x128xf32>
    %505 = vector.shape_cast %444 : vector<4x1xi1> to vector<4x1xi1>
    %506 = vector.broadcast %505 : vector<4x1xi1> to vector<4x128xi1>
    %507 = arith.select %506, %499, %437 : vector<4x128xi1>, vector<4x128xf32>
    %cst_96 = arith.constant 0.000000e+00 : f32
    %508 = vector.shape_cast %444 : vector<4x1xi1> to vector<4x1xi1>
    %509 = vector.broadcast %508 : vector<4x1xi1> to vector<4x128xi1>
    %510 = vector.broadcast %cst_96 : f32 to vector<4x128xf32>
    %511 = arith.select %509, %501, %510 : vector<4x128xi1>, vector<4x128xf32>
    %512 = arith.addf %442, %511 : vector<4x128xf32>
    %c3_i32 = arith.constant 3 : i32
    %513 = vector.broadcast %c3_i32 : i32 to vector<4x1xi32>
    %514 = arith.cmpi slt, %513, %298 : vector<4x1xi32>
    %515 = arith.truncf %504 : vector<4x128xf32> to vector<4x128xbf16>
    %c0_97 = arith.constant 0 : index
    %c0_98 = arith.constant 0 : index
    %516 = vector.load %arg9[%c0_97, %c0_98] : memref<128x512xbf16, #tpu.memory_space<vmem>>, vector<128x512xbf16>
    %cst_99 = arith.constant dense<0.000000e+00> : vector<4x512xf32>
    %517 = tpu.matmul %515, %516, %cst_99 {dimension_numbers = #tpu.dot_dimension_numbers<[1], [0], [0], [1], [0, 0, 1, 1], [], []>} : vector<4x128xbf16>, vector<128x512xbf16>, vector<4x512xf32> -> vector<4x512xf32>
    %518 = arith.addf %301, %517 : vector<4x512xf32>
    %519 = arith.index_cast %c3_i32 : i32 to index
    %c0_100 = arith.constant 0 : index
    %c0_101 = arith.constant 0 : index
    %520 = vector.load %arg16[%519, %c0_100, %c0_101] : memref<12x4x512xf32, #tpu.memory_space<vmem>>, vector<1x4x512xf32>
    %521 = vector.shape_cast %520 : vector<1x4x512xf32> to vector<4x512xf32>
    %522 = arith.truncf %476 : vector<4x128xf32> to vector<4x128xbf16>
    %c0_102 = arith.constant 0 : index
    %c0_103 = arith.constant 0 : index
    %523 = vector.load %arg7[%c0_102, %c0_103] : memref<128x512xbf16, #tpu.memory_space<vmem>>, vector<128x512xbf16>
    %cst_104 = arith.constant dense<0.000000e+00> : vector<4x512xf32>
    %524 = tpu.matmul %522, %523, %cst_104 {dimension_numbers = #tpu.dot_dimension_numbers<[1], [0], [0], [1], [0, 0, 1, 1], [], []>} : vector<4x128xbf16>, vector<128x512xbf16>, vector<4x512xf32> -> vector<4x512xf32>
    %525 = arith.addf %521, %524 : vector<4x512xf32>
    %526 = vector.extract_strided_slice %525 {offsets = [0, 0], sizes = [4, 384], strides = [1, 1]} : vector<4x512xf32> to vector<4x384xf32>
    %cst_105 = arith.constant 5.000000e-01 : f32
    %527 = vector.broadcast %cst_105 : f32 to vector<4x384xf32>
    %528 = arith.mulf %527, %526 : vector<4x384xf32>
    %529 = math.tanh %528 : vector<4x384xf32>
    %cst_106 = arith.constant 5.000000e-01 : f32
    %530 = vector.broadcast %cst_106 : f32 to vector<4x384xf32>
    %531 = arith.mulf %530, %529 : vector<4x384xf32>
    %cst_107 = arith.constant 5.000000e-01 : f32
    %532 = vector.broadcast %cst_107 : f32 to vector<4x384xf32>
    %533 = arith.addf %531, %532 : vector<4x384xf32>
    %534 = vector.extract_strided_slice %533 {offsets = [0, 0], sizes = [4, 128], strides = [1, 1]} : vector<4x384xf32> to vector<4x128xf32>
    %535 = vector.extract_strided_slice %533 {offsets = [0, 128], sizes = [4, 128], strides = [1, 1]} : vector<4x384xf32> to vector<4x128xf32>
    %536 = vector.extract_strided_slice %533 {offsets = [0, 256], sizes = [4, 128], strides = [1, 1]} : vector<4x384xf32> to vector<4x128xf32>
    %537 = vector.extract_strided_slice %525 {offsets = [0, 384], sizes = [4, 128], strides = [1, 1]} : vector<4x512xf32> to vector<4x128xf32>
    %538 = math.tanh %537 : vector<4x128xf32>
    %539 = arith.mulf %535, %479 : vector<4x128xf32>
    %540 = arith.mulf %534, %538 : vector<4x128xf32>
    %541 = arith.addf %539, %540 : vector<4x128xf32>
    %542 = math.tanh %541 : vector<4x128xf32>
    %543 = arith.mulf %536, %542 : vector<4x128xf32>
    %544 = vector.shape_cast %514 : vector<4x1xi1> to vector<4x1xi1>
    %545 = vector.broadcast %544 : vector<4x1xi1> to vector<4x128xi1>
    %546 = arith.select %545, %543, %476 : vector<4x128xi1>, vector<4x128xf32>
    %547 = vector.shape_cast %514 : vector<4x1xi1> to vector<4x1xi1>
    %548 = vector.broadcast %547 : vector<4x1xi1> to vector<4x128xi1>
    %549 = arith.select %548, %541, %479 : vector<4x128xi1>, vector<4x128xf32>
    %550 = arith.truncf %543 : vector<4x128xf32> to vector<4x128xbf16>
    %c0_108 = arith.constant 0 : index
    %c0_109 = arith.constant 0 : index
    %551 = vector.load %arg8[%c0_108, %c0_109] : memref<128x512xbf16, #tpu.memory_space<vmem>>, vector<128x512xbf16>
    %cst_110 = arith.constant dense<0.000000e+00> : vector<4x512xf32>
    %552 = tpu.matmul %550, %551, %cst_110 {dimension_numbers = #tpu.dot_dimension_numbers<[1], [0], [0], [1], [0, 0, 1, 1], [], []>} : vector<4x128xbf16>, vector<128x512xbf16>, vector<4x512xf32> -> vector<4x512xf32>
    %553 = arith.addf %518, %552 : vector<4x512xf32>
    %554 = vector.extract_strided_slice %553 {offsets = [0, 0], sizes = [4, 384], strides = [1, 1]} : vector<4x512xf32> to vector<4x384xf32>
    %cst_111 = arith.constant 5.000000e-01 : f32
    %555 = vector.broadcast %cst_111 : f32 to vector<4x384xf32>
    %556 = arith.mulf %555, %554 : vector<4x384xf32>
    %557 = math.tanh %556 : vector<4x384xf32>
    %cst_112 = arith.constant 5.000000e-01 : f32
    %558 = vector.broadcast %cst_112 : f32 to vector<4x384xf32>
    %559 = arith.mulf %558, %557 : vector<4x384xf32>
    %cst_113 = arith.constant 5.000000e-01 : f32
    %560 = vector.broadcast %cst_113 : f32 to vector<4x384xf32>
    %561 = arith.addf %559, %560 : vector<4x384xf32>
    %562 = vector.extract_strided_slice %561 {offsets = [0, 0], sizes = [4, 128], strides = [1, 1]} : vector<4x384xf32> to vector<4x128xf32>
    %563 = vector.extract_strided_slice %561 {offsets = [0, 128], sizes = [4, 128], strides = [1, 1]} : vector<4x384xf32> to vector<4x128xf32>
    %564 = vector.extract_strided_slice %561 {offsets = [0, 256], sizes = [4, 128], strides = [1, 1]} : vector<4x384xf32> to vector<4x128xf32>
    %565 = vector.extract_strided_slice %553 {offsets = [0, 384], sizes = [4, 128], strides = [1, 1]} : vector<4x512xf32> to vector<4x128xf32>
    %566 = math.tanh %565 : vector<4x128xf32>
    %567 = arith.mulf %563, %507 : vector<4x128xf32>
    %568 = arith.mulf %562, %566 : vector<4x128xf32>
    %569 = arith.addf %567, %568 : vector<4x128xf32>
    %570 = math.tanh %569 : vector<4x128xf32>
    %571 = arith.mulf %564, %570 : vector<4x128xf32>
    %572 = vector.shape_cast %514 : vector<4x1xi1> to vector<4x1xi1>
    %573 = vector.broadcast %572 : vector<4x1xi1> to vector<4x128xi1>
    %574 = arith.select %573, %571, %504 : vector<4x128xi1>, vector<4x128xf32>
    %575 = vector.shape_cast %514 : vector<4x1xi1> to vector<4x1xi1>
    %576 = vector.broadcast %575 : vector<4x1xi1> to vector<4x128xi1>
    %577 = arith.select %576, %569, %507 : vector<4x128xi1>, vector<4x128xf32>
    %cst_114 = arith.constant 0.000000e+00 : f32
    %578 = vector.shape_cast %514 : vector<4x1xi1> to vector<4x1xi1>
    %579 = vector.broadcast %578 : vector<4x1xi1> to vector<4x128xi1>
    %580 = vector.broadcast %cst_114 : f32 to vector<4x128xf32>
    %581 = arith.select %579, %571, %580 : vector<4x128xi1>, vector<4x128xf32>
    %582 = arith.addf %512, %581 : vector<4x128xf32>
    %c4_i32 = arith.constant 4 : i32
    %583 = vector.broadcast %c4_i32 : i32 to vector<4x1xi32>
    %584 = arith.cmpi slt, %583, %298 : vector<4x1xi32>
    %585 = arith.truncf %574 : vector<4x128xf32> to vector<4x128xbf16>
    %c0_115 = arith.constant 0 : index
    %c0_116 = arith.constant 0 : index
    %586 = vector.load %arg9[%c0_115, %c0_116] : memref<128x512xbf16, #tpu.memory_space<vmem>>, vector<128x512xbf16>
    %cst_117 = arith.constant dense<0.000000e+00> : vector<4x512xf32>
    %587 = tpu.matmul %585, %586, %cst_117 {dimension_numbers = #tpu.dot_dimension_numbers<[1], [0], [0], [1], [0, 0, 1, 1], [], []>} : vector<4x128xbf16>, vector<128x512xbf16>, vector<4x512xf32> -> vector<4x512xf32>
    %588 = arith.addf %301, %587 : vector<4x512xf32>
    %589 = arith.index_cast %c4_i32 : i32 to index
    %c0_118 = arith.constant 0 : index
    %c0_119 = arith.constant 0 : index
    %590 = vector.load %arg16[%589, %c0_118, %c0_119] : memref<12x4x512xf32, #tpu.memory_space<vmem>>, vector<1x4x512xf32>
    %591 = vector.shape_cast %590 : vector<1x4x512xf32> to vector<4x512xf32>
    %592 = arith.truncf %546 : vector<4x128xf32> to vector<4x128xbf16>
    %c0_120 = arith.constant 0 : index
    %c0_121 = arith.constant 0 : index
    %593 = vector.load %arg7[%c0_120, %c0_121] : memref<128x512xbf16, #tpu.memory_space<vmem>>, vector<128x512xbf16>
    %cst_122 = arith.constant dense<0.000000e+00> : vector<4x512xf32>
    %594 = tpu.matmul %592, %593, %cst_122 {dimension_numbers = #tpu.dot_dimension_numbers<[1], [0], [0], [1], [0, 0, 1, 1], [], []>} : vector<4x128xbf16>, vector<128x512xbf16>, vector<4x512xf32> -> vector<4x512xf32>
    %595 = arith.addf %591, %594 : vector<4x512xf32>
    %596 = vector.extract_strided_slice %595 {offsets = [0, 0], sizes = [4, 384], strides = [1, 1]} : vector<4x512xf32> to vector<4x384xf32>
    %cst_123 = arith.constant 5.000000e-01 : f32
    %597 = vector.broadcast %cst_123 : f32 to vector<4x384xf32>
    %598 = arith.mulf %597, %596 : vector<4x384xf32>
    %599 = math.tanh %598 : vector<4x384xf32>
    %cst_124 = arith.constant 5.000000e-01 : f32
    %600 = vector.broadcast %cst_124 : f32 to vector<4x384xf32>
    %601 = arith.mulf %600, %599 : vector<4x384xf32>
    %cst_125 = arith.constant 5.000000e-01 : f32
    %602 = vector.broadcast %cst_125 : f32 to vector<4x384xf32>
    %603 = arith.addf %601, %602 : vector<4x384xf32>
    %604 = vector.extract_strided_slice %603 {offsets = [0, 0], sizes = [4, 128], strides = [1, 1]} : vector<4x384xf32> to vector<4x128xf32>
    %605 = vector.extract_strided_slice %603 {offsets = [0, 128], sizes = [4, 128], strides = [1, 1]} : vector<4x384xf32> to vector<4x128xf32>
    %606 = vector.extract_strided_slice %603 {offsets = [0, 256], sizes = [4, 128], strides = [1, 1]} : vector<4x384xf32> to vector<4x128xf32>
    %607 = vector.extract_strided_slice %595 {offsets = [0, 384], sizes = [4, 128], strides = [1, 1]} : vector<4x512xf32> to vector<4x128xf32>
    %608 = math.tanh %607 : vector<4x128xf32>
    %609 = arith.mulf %605, %549 : vector<4x128xf32>
    %610 = arith.mulf %604, %608 : vector<4x128xf32>
    %611 = arith.addf %609, %610 : vector<4x128xf32>
    %612 = math.tanh %611 : vector<4x128xf32>
    %613 = arith.mulf %606, %612 : vector<4x128xf32>
    %614 = vector.shape_cast %584 : vector<4x1xi1> to vector<4x1xi1>
    %615 = vector.broadcast %614 : vector<4x1xi1> to vector<4x128xi1>
    %616 = arith.select %615, %613, %546 : vector<4x128xi1>, vector<4x128xf32>
    %617 = vector.shape_cast %584 : vector<4x1xi1> to vector<4x1xi1>
    %618 = vector.broadcast %617 : vector<4x1xi1> to vector<4x128xi1>
    %619 = arith.select %618, %611, %549 : vector<4x128xi1>, vector<4x128xf32>
    %620 = arith.truncf %613 : vector<4x128xf32> to vector<4x128xbf16>
    %c0_126 = arith.constant 0 : index
    %c0_127 = arith.constant 0 : index
    %621 = vector.load %arg8[%c0_126, %c0_127] : memref<128x512xbf16, #tpu.memory_space<vmem>>, vector<128x512xbf16>
    %cst_128 = arith.constant dense<0.000000e+00> : vector<4x512xf32>
    %622 = tpu.matmul %620, %621, %cst_128 {dimension_numbers = #tpu.dot_dimension_numbers<[1], [0], [0], [1], [0, 0, 1, 1], [], []>} : vector<4x128xbf16>, vector<128x512xbf16>, vector<4x512xf32> -> vector<4x512xf32>
    %623 = arith.addf %588, %622 : vector<4x512xf32>
    %624 = vector.extract_strided_slice %623 {offsets = [0, 0], sizes = [4, 384], strides = [1, 1]} : vector<4x512xf32> to vector<4x384xf32>
    %cst_129 = arith.constant 5.000000e-01 : f32
    %625 = vector.broadcast %cst_129 : f32 to vector<4x384xf32>
    %626 = arith.mulf %625, %624 : vector<4x384xf32>
    %627 = math.tanh %626 : vector<4x384xf32>
    %cst_130 = arith.constant 5.000000e-01 : f32
    %628 = vector.broadcast %cst_130 : f32 to vector<4x384xf32>
    %629 = arith.mulf %628, %627 : vector<4x384xf32>
    %cst_131 = arith.constant 5.000000e-01 : f32
    %630 = vector.broadcast %cst_131 : f32 to vector<4x384xf32>
    %631 = arith.addf %629, %630 : vector<4x384xf32>
    %632 = vector.extract_strided_slice %631 {offsets = [0, 0], sizes = [4, 128], strides = [1, 1]} : vector<4x384xf32> to vector<4x128xf32>
    %633 = vector.extract_strided_slice %631 {offsets = [0, 128], sizes = [4, 128], strides = [1, 1]} : vector<4x384xf32> to vector<4x128xf32>
    %634 = vector.extract_strided_slice %631 {offsets = [0, 256], sizes = [4, 128], strides = [1, 1]} : vector<4x384xf32> to vector<4x128xf32>
    %635 = vector.extract_strided_slice %623 {offsets = [0, 384], sizes = [4, 128], strides = [1, 1]} : vector<4x512xf32> to vector<4x128xf32>
    %636 = math.tanh %635 : vector<4x128xf32>
    %637 = arith.mulf %633, %577 : vector<4x128xf32>
    %638 = arith.mulf %632, %636 : vector<4x128xf32>
    %639 = arith.addf %637, %638 : vector<4x128xf32>
    %640 = math.tanh %639 : vector<4x128xf32>
    %641 = arith.mulf %634, %640 : vector<4x128xf32>
    %642 = vector.shape_cast %584 : vector<4x1xi1> to vector<4x1xi1>
    %643 = vector.broadcast %642 : vector<4x1xi1> to vector<4x128xi1>
    %644 = arith.select %643, %641, %574 : vector<4x128xi1>, vector<4x128xf32>
    %645 = vector.shape_cast %584 : vector<4x1xi1> to vector<4x1xi1>
    %646 = vector.broadcast %645 : vector<4x1xi1> to vector<4x128xi1>
    %647 = arith.select %646, %639, %577 : vector<4x128xi1>, vector<4x128xf32>
    %cst_132 = arith.constant 0.000000e+00 : f32
    %648 = vector.shape_cast %584 : vector<4x1xi1> to vector<4x1xi1>
    %649 = vector.broadcast %648 : vector<4x1xi1> to vector<4x128xi1>
    %650 = vector.broadcast %cst_132 : f32 to vector<4x128xf32>
    %651 = arith.select %649, %641, %650 : vector<4x128xi1>, vector<4x128xf32>
    %652 = arith.addf %582, %651 : vector<4x128xf32>
    %c5_i32 = arith.constant 5 : i32
    %653 = vector.broadcast %c5_i32 : i32 to vector<4x1xi32>
    %654 = arith.cmpi slt, %653, %298 : vector<4x1xi32>
    %655 = arith.truncf %644 : vector<4x128xf32> to vector<4x128xbf16>
    %c0_133 = arith.constant 0 : index
    %c0_134 = arith.constant 0 : index
    %656 = vector.load %arg9[%c0_133, %c0_134] : memref<128x512xbf16, #tpu.memory_space<vmem>>, vector<128x512xbf16>
    %cst_135 = arith.constant dense<0.000000e+00> : vector<4x512xf32>
    %657 = tpu.matmul %655, %656, %cst_135 {dimension_numbers = #tpu.dot_dimension_numbers<[1], [0], [0], [1], [0, 0, 1, 1], [], []>} : vector<4x128xbf16>, vector<128x512xbf16>, vector<4x512xf32> -> vector<4x512xf32>
    %658 = arith.addf %301, %657 : vector<4x512xf32>
    %659 = arith.index_cast %c5_i32 : i32 to index
    %c0_136 = arith.constant 0 : index
    %c0_137 = arith.constant 0 : index
    %660 = vector.load %arg16[%659, %c0_136, %c0_137] : memref<12x4x512xf32, #tpu.memory_space<vmem>>, vector<1x4x512xf32>
    %661 = vector.shape_cast %660 : vector<1x4x512xf32> to vector<4x512xf32>
    %662 = arith.truncf %616 : vector<4x128xf32> to vector<4x128xbf16>
    %c0_138 = arith.constant 0 : index
    %c0_139 = arith.constant 0 : index
    %663 = vector.load %arg7[%c0_138, %c0_139] : memref<128x512xbf16, #tpu.memory_space<vmem>>, vector<128x512xbf16>
    %cst_140 = arith.constant dense<0.000000e+00> : vector<4x512xf32>
    %664 = tpu.matmul %662, %663, %cst_140 {dimension_numbers = #tpu.dot_dimension_numbers<[1], [0], [0], [1], [0, 0, 1, 1], [], []>} : vector<4x128xbf16>, vector<128x512xbf16>, vector<4x512xf32> -> vector<4x512xf32>
    %665 = arith.addf %661, %664 : vector<4x512xf32>
    %666 = vector.extract_strided_slice %665 {offsets = [0, 0], sizes = [4, 384], strides = [1, 1]} : vector<4x512xf32> to vector<4x384xf32>
    %cst_141 = arith.constant 5.000000e-01 : f32
    %667 = vector.broadcast %cst_141 : f32 to vector<4x384xf32>
    %668 = arith.mulf %667, %666 : vector<4x384xf32>
    %669 = math.tanh %668 : vector<4x384xf32>
    %cst_142 = arith.constant 5.000000e-01 : f32
    %670 = vector.broadcast %cst_142 : f32 to vector<4x384xf32>
    %671 = arith.mulf %670, %669 : vector<4x384xf32>
    %cst_143 = arith.constant 5.000000e-01 : f32
    %672 = vector.broadcast %cst_143 : f32 to vector<4x384xf32>
    %673 = arith.addf %671, %672 : vector<4x384xf32>
    %674 = vector.extract_strided_slice %673 {offsets = [0, 0], sizes = [4, 128], strides = [1, 1]} : vector<4x384xf32> to vector<4x128xf32>
    %675 = vector.extract_strided_slice %673 {offsets = [0, 128], sizes = [4, 128], strides = [1, 1]} : vector<4x384xf32> to vector<4x128xf32>
    %676 = vector.extract_strided_slice %673 {offsets = [0, 256], sizes = [4, 128], strides = [1, 1]} : vector<4x384xf32> to vector<4x128xf32>
    %677 = vector.extract_strided_slice %665 {offsets = [0, 384], sizes = [4, 128], strides = [1, 1]} : vector<4x512xf32> to vector<4x128xf32>
    %678 = math.tanh %677 : vector<4x128xf32>
    %679 = arith.mulf %675, %619 : vector<4x128xf32>
    %680 = arith.mulf %674, %678 : vector<4x128xf32>
    %681 = arith.addf %679, %680 : vector<4x128xf32>
    %682 = math.tanh %681 : vector<4x128xf32>
    %683 = arith.mulf %676, %682 : vector<4x128xf32>
    %684 = vector.shape_cast %654 : vector<4x1xi1> to vector<4x1xi1>
    %685 = vector.broadcast %684 : vector<4x1xi1> to vector<4x128xi1>
    %686 = arith.select %685, %683, %616 : vector<4x128xi1>, vector<4x128xf32>
    %687 = vector.shape_cast %654 : vector<4x1xi1> to vector<4x1xi1>
    %688 = vector.broadcast %687 : vector<4x1xi1> to vector<4x128xi1>
    %689 = arith.select %688, %681, %619 : vector<4x128xi1>, vector<4x128xf32>
    %690 = arith.truncf %683 : vector<4x128xf32> to vector<4x128xbf16>
    %c0_144 = arith.constant 0 : index
    %c0_145 = arith.constant 0 : index
    %691 = vector.load %arg8[%c0_144, %c0_145] : memref<128x512xbf16, #tpu.memory_space<vmem>>, vector<128x512xbf16>
    %cst_146 = arith.constant dense<0.000000e+00> : vector<4x512xf32>
    %692 = tpu.matmul %690, %691, %cst_146 {dimension_numbers = #tpu.dot_dimension_numbers<[1], [0], [0], [1], [0, 0, 1, 1], [], []>} : vector<4x128xbf16>, vector<128x512xbf16>, vector<4x512xf32> -> vector<4x512xf32>
    %693 = arith.addf %658, %692 : vector<4x512xf32>
    %694 = vector.extract_strided_slice %693 {offsets = [0, 0], sizes = [4, 384], strides = [1, 1]} : vector<4x512xf32> to vector<4x384xf32>
    %cst_147 = arith.constant 5.000000e-01 : f32
    %695 = vector.broadcast %cst_147 : f32 to vector<4x384xf32>
    %696 = arith.mulf %695, %694 : vector<4x384xf32>
    %697 = math.tanh %696 : vector<4x384xf32>
    %cst_148 = arith.constant 5.000000e-01 : f32
    %698 = vector.broadcast %cst_148 : f32 to vector<4x384xf32>
    %699 = arith.mulf %698, %697 : vector<4x384xf32>
    %cst_149 = arith.constant 5.000000e-01 : f32
    %700 = vector.broadcast %cst_149 : f32 to vector<4x384xf32>
    %701 = arith.addf %699, %700 : vector<4x384xf32>
    %702 = vector.extract_strided_slice %701 {offsets = [0, 0], sizes = [4, 128], strides = [1, 1]} : vector<4x384xf32> to vector<4x128xf32>
    %703 = vector.extract_strided_slice %701 {offsets = [0, 128], sizes = [4, 128], strides = [1, 1]} : vector<4x384xf32> to vector<4x128xf32>
    %704 = vector.extract_strided_slice %701 {offsets = [0, 256], sizes = [4, 128], strides = [1, 1]} : vector<4x384xf32> to vector<4x128xf32>
    %705 = vector.extract_strided_slice %693 {offsets = [0, 384], sizes = [4, 128], strides = [1, 1]} : vector<4x512xf32> to vector<4x128xf32>
    %706 = math.tanh %705 : vector<4x128xf32>
    %707 = arith.mulf %703, %647 : vector<4x128xf32>
    %708 = arith.mulf %702, %706 : vector<4x128xf32>
    %709 = arith.addf %707, %708 : vector<4x128xf32>
    %710 = math.tanh %709 : vector<4x128xf32>
    %711 = arith.mulf %704, %710 : vector<4x128xf32>
    %712 = vector.shape_cast %654 : vector<4x1xi1> to vector<4x1xi1>
    %713 = vector.broadcast %712 : vector<4x1xi1> to vector<4x128xi1>
    %714 = arith.select %713, %711, %644 : vector<4x128xi1>, vector<4x128xf32>
    %715 = vector.shape_cast %654 : vector<4x1xi1> to vector<4x1xi1>
    %716 = vector.broadcast %715 : vector<4x1xi1> to vector<4x128xi1>
    %717 = arith.select %716, %709, %647 : vector<4x128xi1>, vector<4x128xf32>
    %cst_150 = arith.constant 0.000000e+00 : f32
    %718 = vector.shape_cast %654 : vector<4x1xi1> to vector<4x1xi1>
    %719 = vector.broadcast %718 : vector<4x1xi1> to vector<4x128xi1>
    %720 = vector.broadcast %cst_150 : f32 to vector<4x128xf32>
    %721 = arith.select %719, %711, %720 : vector<4x128xi1>, vector<4x128xf32>
    %722 = arith.addf %652, %721 : vector<4x128xf32>
    %c6_i32 = arith.constant 6 : i32
    %723 = vector.broadcast %c6_i32 : i32 to vector<4x1xi32>
    %724 = arith.cmpi slt, %723, %298 : vector<4x1xi32>
    %725 = arith.truncf %714 : vector<4x128xf32> to vector<4x128xbf16>
    %c0_151 = arith.constant 0 : index
    %c0_152 = arith.constant 0 : index
    %726 = vector.load %arg9[%c0_151, %c0_152] : memref<128x512xbf16, #tpu.memory_space<vmem>>, vector<128x512xbf16>
    %cst_153 = arith.constant dense<0.000000e+00> : vector<4x512xf32>
    %727 = tpu.matmul %725, %726, %cst_153 {dimension_numbers = #tpu.dot_dimension_numbers<[1], [0], [0], [1], [0, 0, 1, 1], [], []>} : vector<4x128xbf16>, vector<128x512xbf16>, vector<4x512xf32> -> vector<4x512xf32>
    %728 = arith.addf %301, %727 : vector<4x512xf32>
    %729 = arith.index_cast %c6_i32 : i32 to index
    %c0_154 = arith.constant 0 : index
    %c0_155 = arith.constant 0 : index
    %730 = vector.load %arg16[%729, %c0_154, %c0_155] : memref<12x4x512xf32, #tpu.memory_space<vmem>>, vector<1x4x512xf32>
    %731 = vector.shape_cast %730 : vector<1x4x512xf32> to vector<4x512xf32>
    %732 = arith.truncf %686 : vector<4x128xf32> to vector<4x128xbf16>
    %c0_156 = arith.constant 0 : index
    %c0_157 = arith.constant 0 : index
    %733 = vector.load %arg7[%c0_156, %c0_157] : memref<128x512xbf16, #tpu.memory_space<vmem>>, vector<128x512xbf16>
    %cst_158 = arith.constant dense<0.000000e+00> : vector<4x512xf32>
    %734 = tpu.matmul %732, %733, %cst_158 {dimension_numbers = #tpu.dot_dimension_numbers<[1], [0], [0], [1], [0, 0, 1, 1], [], []>} : vector<4x128xbf16>, vector<128x512xbf16>, vector<4x512xf32> -> vector<4x512xf32>
    %735 = arith.addf %731, %734 : vector<4x512xf32>
    %736 = vector.extract_strided_slice %735 {offsets = [0, 0], sizes = [4, 384], strides = [1, 1]} : vector<4x512xf32> to vector<4x384xf32>
    %cst_159 = arith.constant 5.000000e-01 : f32
    %737 = vector.broadcast %cst_159 : f32 to vector<4x384xf32>
    %738 = arith.mulf %737, %736 : vector<4x384xf32>
    %739 = math.tanh %738 : vector<4x384xf32>
    %cst_160 = arith.constant 5.000000e-01 : f32
    %740 = vector.broadcast %cst_160 : f32 to vector<4x384xf32>
    %741 = arith.mulf %740, %739 : vector<4x384xf32>
    %cst_161 = arith.constant 5.000000e-01 : f32
    %742 = vector.broadcast %cst_161 : f32 to vector<4x384xf32>
    %743 = arith.addf %741, %742 : vector<4x384xf32>
    %744 = vector.extract_strided_slice %743 {offsets = [0, 0], sizes = [4, 128], strides = [1, 1]} : vector<4x384xf32> to vector<4x128xf32>
    %745 = vector.extract_strided_slice %743 {offsets = [0, 128], sizes = [4, 128], strides = [1, 1]} : vector<4x384xf32> to vector<4x128xf32>
    %746 = vector.extract_strided_slice %743 {offsets = [0, 256], sizes = [4, 128], strides = [1, 1]} : vector<4x384xf32> to vector<4x128xf32>
    %747 = vector.extract_strided_slice %735 {offsets = [0, 384], sizes = [4, 128], strides = [1, 1]} : vector<4x512xf32> to vector<4x128xf32>
    %748 = math.tanh %747 : vector<4x128xf32>
    %749 = arith.mulf %745, %689 : vector<4x128xf32>
    %750 = arith.mulf %744, %748 : vector<4x128xf32>
    %751 = arith.addf %749, %750 : vector<4x128xf32>
    %752 = math.tanh %751 : vector<4x128xf32>
    %753 = arith.mulf %746, %752 : vector<4x128xf32>
    %754 = vector.shape_cast %724 : vector<4x1xi1> to vector<4x1xi1>
    %755 = vector.broadcast %754 : vector<4x1xi1> to vector<4x128xi1>
    %756 = arith.select %755, %753, %686 : vector<4x128xi1>, vector<4x128xf32>
    %757 = vector.shape_cast %724 : vector<4x1xi1> to vector<4x1xi1>
    %758 = vector.broadcast %757 : vector<4x1xi1> to vector<4x128xi1>
    %759 = arith.select %758, %751, %689 : vector<4x128xi1>, vector<4x128xf32>
    %760 = arith.truncf %753 : vector<4x128xf32> to vector<4x128xbf16>
    %c0_162 = arith.constant 0 : index
    %c0_163 = arith.constant 0 : index
    %761 = vector.load %arg8[%c0_162, %c0_163] : memref<128x512xbf16, #tpu.memory_space<vmem>>, vector<128x512xbf16>
    %cst_164 = arith.constant dense<0.000000e+00> : vector<4x512xf32>
    %762 = tpu.matmul %760, %761, %cst_164 {dimension_numbers = #tpu.dot_dimension_numbers<[1], [0], [0], [1], [0, 0, 1, 1], [], []>} : vector<4x128xbf16>, vector<128x512xbf16>, vector<4x512xf32> -> vector<4x512xf32>
    %763 = arith.addf %728, %762 : vector<4x512xf32>
    %764 = vector.extract_strided_slice %763 {offsets = [0, 0], sizes = [4, 384], strides = [1, 1]} : vector<4x512xf32> to vector<4x384xf32>
    %cst_165 = arith.constant 5.000000e-01 : f32
    %765 = vector.broadcast %cst_165 : f32 to vector<4x384xf32>
    %766 = arith.mulf %765, %764 : vector<4x384xf32>
    %767 = math.tanh %766 : vector<4x384xf32>
    %cst_166 = arith.constant 5.000000e-01 : f32
    %768 = vector.broadcast %cst_166 : f32 to vector<4x384xf32>
    %769 = arith.mulf %768, %767 : vector<4x384xf32>
    %cst_167 = arith.constant 5.000000e-01 : f32
    %770 = vector.broadcast %cst_167 : f32 to vector<4x384xf32>
    %771 = arith.addf %769, %770 : vector<4x384xf32>
    %772 = vector.extract_strided_slice %771 {offsets = [0, 0], sizes = [4, 128], strides = [1, 1]} : vector<4x384xf32> to vector<4x128xf32>
    %773 = vector.extract_strided_slice %771 {offsets = [0, 128], sizes = [4, 128], strides = [1, 1]} : vector<4x384xf32> to vector<4x128xf32>
    %774 = vector.extract_strided_slice %771 {offsets = [0, 256], sizes = [4, 128], strides = [1, 1]} : vector<4x384xf32> to vector<4x128xf32>
    %775 = vector.extract_strided_slice %763 {offsets = [0, 384], sizes = [4, 128], strides = [1, 1]} : vector<4x512xf32> to vector<4x128xf32>
    %776 = math.tanh %775 : vector<4x128xf32>
    %777 = arith.mulf %773, %717 : vector<4x128xf32>
    %778 = arith.mulf %772, %776 : vector<4x128xf32>
    %779 = arith.addf %777, %778 : vector<4x128xf32>
    %780 = math.tanh %779 : vector<4x128xf32>
    %781 = arith.mulf %774, %780 : vector<4x128xf32>
    %782 = vector.shape_cast %724 : vector<4x1xi1> to vector<4x1xi1>
    %783 = vector.broadcast %782 : vector<4x1xi1> to vector<4x128xi1>
    %784 = arith.select %783, %781, %714 : vector<4x128xi1>, vector<4x128xf32>
    %785 = vector.shape_cast %724 : vector<4x1xi1> to vector<4x1xi1>
    %786 = vector.broadcast %785 : vector<4x1xi1> to vector<4x128xi1>
    %787 = arith.select %786, %779, %717 : vector<4x128xi1>, vector<4x128xf32>
    %cst_168 = arith.constant 0.000000e+00 : f32
    %788 = vector.shape_cast %724 : vector<4x1xi1> to vector<4x1xi1>
    %789 = vector.broadcast %788 : vector<4x1xi1> to vector<4x128xi1>
    %790 = vector.broadcast %cst_168 : f32 to vector<4x128xf32>
    %791 = arith.select %789, %781, %790 : vector<4x128xi1>, vector<4x128xf32>
    %792 = arith.addf %722, %791 : vector<4x128xf32>
    %c7_i32 = arith.constant 7 : i32
    %793 = vector.broadcast %c7_i32 : i32 to vector<4x1xi32>
    %794 = arith.cmpi slt, %793, %298 : vector<4x1xi32>
    %795 = arith.truncf %784 : vector<4x128xf32> to vector<4x128xbf16>
    %c0_169 = arith.constant 0 : index
    %c0_170 = arith.constant 0 : index
    %796 = vector.load %arg9[%c0_169, %c0_170] : memref<128x512xbf16, #tpu.memory_space<vmem>>, vector<128x512xbf16>
    %cst_171 = arith.constant dense<0.000000e+00> : vector<4x512xf32>
    %797 = tpu.matmul %795, %796, %cst_171 {dimension_numbers = #tpu.dot_dimension_numbers<[1], [0], [0], [1], [0, 0, 1, 1], [], []>} : vector<4x128xbf16>, vector<128x512xbf16>, vector<4x512xf32> -> vector<4x512xf32>
    %798 = arith.addf %301, %797 : vector<4x512xf32>
    %799 = arith.index_cast %c7_i32 : i32 to index
    %c0_172 = arith.constant 0 : index
    %c0_173 = arith.constant 0 : index
    %800 = vector.load %arg16[%799, %c0_172, %c0_173] : memref<12x4x512xf32, #tpu.memory_space<vmem>>, vector<1x4x512xf32>
    %801 = vector.shape_cast %800 : vector<1x4x512xf32> to vector<4x512xf32>
    %802 = arith.truncf %756 : vector<4x128xf32> to vector<4x128xbf16>
    %c0_174 = arith.constant 0 : index
    %c0_175 = arith.constant 0 : index
    %803 = vector.load %arg7[%c0_174, %c0_175] : memref<128x512xbf16, #tpu.memory_space<vmem>>, vector<128x512xbf16>
    %cst_176 = arith.constant dense<0.000000e+00> : vector<4x512xf32>
    %804 = tpu.matmul %802, %803, %cst_176 {dimension_numbers = #tpu.dot_dimension_numbers<[1], [0], [0], [1], [0, 0, 1, 1], [], []>} : vector<4x128xbf16>, vector<128x512xbf16>, vector<4x512xf32> -> vector<4x512xf32>
    %805 = arith.addf %801, %804 : vector<4x512xf32>
    %806 = vector.extract_strided_slice %805 {offsets = [0, 0], sizes = [4, 384], strides = [1, 1]} : vector<4x512xf32> to vector<4x384xf32>
    %cst_177 = arith.constant 5.000000e-01 : f32
    %807 = vector.broadcast %cst_177 : f32 to vector<4x384xf32>
    %808 = arith.mulf %807, %806 : vector<4x384xf32>
    %809 = math.tanh %808 : vector<4x384xf32>
    %cst_178 = arith.constant 5.000000e-01 : f32
    %810 = vector.broadcast %cst_178 : f32 to vector<4x384xf32>
    %811 = arith.mulf %810, %809 : vector<4x384xf32>
    %cst_179 = arith.constant 5.000000e-01 : f32
    %812 = vector.broadcast %cst_179 : f32 to vector<4x384xf32>
    %813 = arith.addf %811, %812 : vector<4x384xf32>
    %814 = vector.extract_strided_slice %813 {offsets = [0, 0], sizes = [4, 128], strides = [1, 1]} : vector<4x384xf32> to vector<4x128xf32>
    %815 = vector.extract_strided_slice %813 {offsets = [0, 128], sizes = [4, 128], strides = [1, 1]} : vector<4x384xf32> to vector<4x128xf32>
    %816 = vector.extract_strided_slice %813 {offsets = [0, 256], sizes = [4, 128], strides = [1, 1]} : vector<4x384xf32> to vector<4x128xf32>
    %817 = vector.extract_strided_slice %805 {offsets = [0, 384], sizes = [4, 128], strides = [1, 1]} : vector<4x512xf32> to vector<4x128xf32>
    %818 = math.tanh %817 : vector<4x128xf32>
    %819 = arith.mulf %815, %759 : vector<4x128xf32>
    %820 = arith.mulf %814, %818 : vector<4x128xf32>
    %821 = arith.addf %819, %820 : vector<4x128xf32>
    %822 = math.tanh %821 : vector<4x128xf32>
    %823 = arith.mulf %816, %822 : vector<4x128xf32>
    %824 = vector.shape_cast %794 : vector<4x1xi1> to vector<4x1xi1>
    %825 = vector.broadcast %824 : vector<4x1xi1> to vector<4x128xi1>
    %826 = arith.select %825, %823, %756 : vector<4x128xi1>, vector<4x128xf32>
    %827 = vector.shape_cast %794 : vector<4x1xi1> to vector<4x1xi1>
    %828 = vector.broadcast %827 : vector<4x1xi1> to vector<4x128xi1>
    %829 = arith.select %828, %821, %759 : vector<4x128xi1>, vector<4x128xf32>
    %830 = arith.truncf %823 : vector<4x128xf32> to vector<4x128xbf16>
    %c0_180 = arith.constant 0 : index
    %c0_181 = arith.constant 0 : index
    %831 = vector.load %arg8[%c0_180, %c0_181] : memref<128x512xbf16, #tpu.memory_space<vmem>>, vector<128x512xbf16>
    %cst_182 = arith.constant dense<0.000000e+00> : vector<4x512xf32>
    %832 = tpu.matmul %830, %831, %cst_182 {dimension_numbers = #tpu.dot_dimension_numbers<[1], [0], [0], [1], [0, 0, 1, 1], [], []>} : vector<4x128xbf16>, vector<128x512xbf16>, vector<4x512xf32> -> vector<4x512xf32>
    %833 = arith.addf %798, %832 : vector<4x512xf32>
    %834 = vector.extract_strided_slice %833 {offsets = [0, 0], sizes = [4, 384], strides = [1, 1]} : vector<4x512xf32> to vector<4x384xf32>
    %cst_183 = arith.constant 5.000000e-01 : f32
    %835 = vector.broadcast %cst_183 : f32 to vector<4x384xf32>
    %836 = arith.mulf %835, %834 : vector<4x384xf32>
    %837 = math.tanh %836 : vector<4x384xf32>
    %cst_184 = arith.constant 5.000000e-01 : f32
    %838 = vector.broadcast %cst_184 : f32 to vector<4x384xf32>
    %839 = arith.mulf %838, %837 : vector<4x384xf32>
    %cst_185 = arith.constant 5.000000e-01 : f32
    %840 = vector.broadcast %cst_185 : f32 to vector<4x384xf32>
    %841 = arith.addf %839, %840 : vector<4x384xf32>
    %842 = vector.extract_strided_slice %841 {offsets = [0, 0], sizes = [4, 128], strides = [1, 1]} : vector<4x384xf32> to vector<4x128xf32>
    %843 = vector.extract_strided_slice %841 {offsets = [0, 128], sizes = [4, 128], strides = [1, 1]} : vector<4x384xf32> to vector<4x128xf32>
    %844 = vector.extract_strided_slice %841 {offsets = [0, 256], sizes = [4, 128], strides = [1, 1]} : vector<4x384xf32> to vector<4x128xf32>
    %845 = vector.extract_strided_slice %833 {offsets = [0, 384], sizes = [4, 128], strides = [1, 1]} : vector<4x512xf32> to vector<4x128xf32>
    %846 = math.tanh %845 : vector<4x128xf32>
    %847 = arith.mulf %843, %787 : vector<4x128xf32>
    %848 = arith.mulf %842, %846 : vector<4x128xf32>
    %849 = arith.addf %847, %848 : vector<4x128xf32>
    %850 = math.tanh %849 : vector<4x128xf32>
    %851 = arith.mulf %844, %850 : vector<4x128xf32>
    %852 = vector.shape_cast %794 : vector<4x1xi1> to vector<4x1xi1>
    %853 = vector.broadcast %852 : vector<4x1xi1> to vector<4x128xi1>
    %854 = arith.select %853, %851, %784 : vector<4x128xi1>, vector<4x128xf32>
    %855 = vector.shape_cast %794 : vector<4x1xi1> to vector<4x1xi1>
    %856 = vector.broadcast %855 : vector<4x1xi1> to vector<4x128xi1>
    %857 = arith.select %856, %849, %787 : vector<4x128xi1>, vector<4x128xf32>
    %cst_186 = arith.constant 0.000000e+00 : f32
    %858 = vector.shape_cast %794 : vector<4x1xi1> to vector<4x1xi1>
    %859 = vector.broadcast %858 : vector<4x1xi1> to vector<4x128xi1>
    %860 = vector.broadcast %cst_186 : f32 to vector<4x128xf32>
    %861 = arith.select %859, %851, %860 : vector<4x128xi1>, vector<4x128xf32>
    %862 = arith.addf %792, %861 : vector<4x128xf32>
    %c8_i32 = arith.constant 8 : i32
    %863 = vector.broadcast %c8_i32 : i32 to vector<4x1xi32>
    %864 = arith.cmpi slt, %863, %298 : vector<4x1xi32>
    %865 = arith.truncf %854 : vector<4x128xf32> to vector<4x128xbf16>
    %c0_187 = arith.constant 0 : index
    %c0_188 = arith.constant 0 : index
    %866 = vector.load %arg9[%c0_187, %c0_188] : memref<128x512xbf16, #tpu.memory_space<vmem>>, vector<128x512xbf16>
    %cst_189 = arith.constant dense<0.000000e+00> : vector<4x512xf32>
    %867 = tpu.matmul %865, %866, %cst_189 {dimension_numbers = #tpu.dot_dimension_numbers<[1], [0], [0], [1], [0, 0, 1, 1], [], []>} : vector<4x128xbf16>, vector<128x512xbf16>, vector<4x512xf32> -> vector<4x512xf32>
    %868 = arith.addf %301, %867 : vector<4x512xf32>
    %869 = arith.index_cast %c8_i32 : i32 to index
    %c0_190 = arith.constant 0 : index
    %c0_191 = arith.constant 0 : index
    %870 = vector.load %arg16[%869, %c0_190, %c0_191] : memref<12x4x512xf32, #tpu.memory_space<vmem>>, vector<1x4x512xf32>
    %871 = vector.shape_cast %870 : vector<1x4x512xf32> to vector<4x512xf32>
    %872 = arith.truncf %826 : vector<4x128xf32> to vector<4x128xbf16>
    %c0_192 = arith.constant 0 : index
    %c0_193 = arith.constant 0 : index
    %873 = vector.load %arg7[%c0_192, %c0_193] : memref<128x512xbf16, #tpu.memory_space<vmem>>, vector<128x512xbf16>
    %cst_194 = arith.constant dense<0.000000e+00> : vector<4x512xf32>
    %874 = tpu.matmul %872, %873, %cst_194 {dimension_numbers = #tpu.dot_dimension_numbers<[1], [0], [0], [1], [0, 0, 1, 1], [], []>} : vector<4x128xbf16>, vector<128x512xbf16>, vector<4x512xf32> -> vector<4x512xf32>
    %875 = arith.addf %871, %874 : vector<4x512xf32>
    %876 = vector.extract_strided_slice %875 {offsets = [0, 0], sizes = [4, 384], strides = [1, 1]} : vector<4x512xf32> to vector<4x384xf32>
    %cst_195 = arith.constant 5.000000e-01 : f32
    %877 = vector.broadcast %cst_195 : f32 to vector<4x384xf32>
    %878 = arith.mulf %877, %876 : vector<4x384xf32>
    %879 = math.tanh %878 : vector<4x384xf32>
    %cst_196 = arith.constant 5.000000e-01 : f32
    %880 = vector.broadcast %cst_196 : f32 to vector<4x384xf32>
    %881 = arith.mulf %880, %879 : vector<4x384xf32>
    %cst_197 = arith.constant 5.000000e-01 : f32
    %882 = vector.broadcast %cst_197 : f32 to vector<4x384xf32>
    %883 = arith.addf %881, %882 : vector<4x384xf32>
    %884 = vector.extract_strided_slice %883 {offsets = [0, 0], sizes = [4, 128], strides = [1, 1]} : vector<4x384xf32> to vector<4x128xf32>
    %885 = vector.extract_strided_slice %883 {offsets = [0, 128], sizes = [4, 128], strides = [1, 1]} : vector<4x384xf32> to vector<4x128xf32>
    %886 = vector.extract_strided_slice %883 {offsets = [0, 256], sizes = [4, 128], strides = [1, 1]} : vector<4x384xf32> to vector<4x128xf32>
    %887 = vector.extract_strided_slice %875 {offsets = [0, 384], sizes = [4, 128], strides = [1, 1]} : vector<4x512xf32> to vector<4x128xf32>
    %888 = math.tanh %887 : vector<4x128xf32>
    %889 = arith.mulf %885, %829 : vector<4x128xf32>
    %890 = arith.mulf %884, %888 : vector<4x128xf32>
    %891 = arith.addf %889, %890 : vector<4x128xf32>
    %892 = math.tanh %891 : vector<4x128xf32>
    %893 = arith.mulf %886, %892 : vector<4x128xf32>
    %894 = vector.shape_cast %864 : vector<4x1xi1> to vector<4x1xi1>
    %895 = vector.broadcast %894 : vector<4x1xi1> to vector<4x128xi1>
    %896 = arith.select %895, %893, %826 : vector<4x128xi1>, vector<4x128xf32>
    %897 = vector.shape_cast %864 : vector<4x1xi1> to vector<4x1xi1>
    %898 = vector.broadcast %897 : vector<4x1xi1> to vector<4x128xi1>
    %899 = arith.select %898, %891, %829 : vector<4x128xi1>, vector<4x128xf32>
    %900 = arith.truncf %893 : vector<4x128xf32> to vector<4x128xbf16>
    %c0_198 = arith.constant 0 : index
    %c0_199 = arith.constant 0 : index
    %901 = vector.load %arg8[%c0_198, %c0_199] : memref<128x512xbf16, #tpu.memory_space<vmem>>, vector<128x512xbf16>
    %cst_200 = arith.constant dense<0.000000e+00> : vector<4x512xf32>
    %902 = tpu.matmul %900, %901, %cst_200 {dimension_numbers = #tpu.dot_dimension_numbers<[1], [0], [0], [1], [0, 0, 1, 1], [], []>} : vector<4x128xbf16>, vector<128x512xbf16>, vector<4x512xf32> -> vector<4x512xf32>
    %903 = arith.addf %868, %902 : vector<4x512xf32>
    %904 = vector.extract_strided_slice %903 {offsets = [0, 0], sizes = [4, 384], strides = [1, 1]} : vector<4x512xf32> to vector<4x384xf32>
    %cst_201 = arith.constant 5.000000e-01 : f32
    %905 = vector.broadcast %cst_201 : f32 to vector<4x384xf32>
    %906 = arith.mulf %905, %904 : vector<4x384xf32>
    %907 = math.tanh %906 : vector<4x384xf32>
    %cst_202 = arith.constant 5.000000e-01 : f32
    %908 = vector.broadcast %cst_202 : f32 to vector<4x384xf32>
    %909 = arith.mulf %908, %907 : vector<4x384xf32>
    %cst_203 = arith.constant 5.000000e-01 : f32
    %910 = vector.broadcast %cst_203 : f32 to vector<4x384xf32>
    %911 = arith.addf %909, %910 : vector<4x384xf32>
    %912 = vector.extract_strided_slice %911 {offsets = [0, 0], sizes = [4, 128], strides = [1, 1]} : vector<4x384xf32> to vector<4x128xf32>
    %913 = vector.extract_strided_slice %911 {offsets = [0, 128], sizes = [4, 128], strides = [1, 1]} : vector<4x384xf32> to vector<4x128xf32>
    %914 = vector.extract_strided_slice %911 {offsets = [0, 256], sizes = [4, 128], strides = [1, 1]} : vector<4x384xf32> to vector<4x128xf32>
    %915 = vector.extract_strided_slice %903 {offsets = [0, 384], sizes = [4, 128], strides = [1, 1]} : vector<4x512xf32> to vector<4x128xf32>
    %916 = math.tanh %915 : vector<4x128xf32>
    %917 = arith.mulf %913, %857 : vector<4x128xf32>
    %918 = arith.mulf %912, %916 : vector<4x128xf32>
    %919 = arith.addf %917, %918 : vector<4x128xf32>
    %920 = math.tanh %919 : vector<4x128xf32>
    %921 = arith.mulf %914, %920 : vector<4x128xf32>
    %922 = vector.shape_cast %864 : vector<4x1xi1> to vector<4x1xi1>
    %923 = vector.broadcast %922 : vector<4x1xi1> to vector<4x128xi1>
    %924 = arith.select %923, %921, %854 : vector<4x128xi1>, vector<4x128xf32>
    %925 = vector.shape_cast %864 : vector<4x1xi1> to vector<4x1xi1>
    %926 = vector.broadcast %925 : vector<4x1xi1> to vector<4x128xi1>
    %927 = arith.select %926, %919, %857 : vector<4x128xi1>, vector<4x128xf32>
    %cst_204 = arith.constant 0.000000e+00 : f32
    %928 = vector.shape_cast %864 : vector<4x1xi1> to vector<4x1xi1>
    %929 = vector.broadcast %928 : vector<4x1xi1> to vector<4x128xi1>
    %930 = vector.broadcast %cst_204 : f32 to vector<4x128xf32>
    %931 = arith.select %929, %921, %930 : vector<4x128xi1>, vector<4x128xf32>
    %932 = arith.addf %862, %931 : vector<4x128xf32>
    %c9_i32 = arith.constant 9 : i32
    %933 = vector.broadcast %c9_i32 : i32 to vector<4x1xi32>
    %934 = arith.cmpi slt, %933, %298 : vector<4x1xi32>
    %935 = arith.truncf %924 : vector<4x128xf32> to vector<4x128xbf16>
    %c0_205 = arith.constant 0 : index
    %c0_206 = arith.constant 0 : index
    %936 = vector.load %arg9[%c0_205, %c0_206] : memref<128x512xbf16, #tpu.memory_space<vmem>>, vector<128x512xbf16>
    %cst_207 = arith.constant dense<0.000000e+00> : vector<4x512xf32>
    %937 = tpu.matmul %935, %936, %cst_207 {dimension_numbers = #tpu.dot_dimension_numbers<[1], [0], [0], [1], [0, 0, 1, 1], [], []>} : vector<4x128xbf16>, vector<128x512xbf16>, vector<4x512xf32> -> vector<4x512xf32>
    %938 = arith.addf %301, %937 : vector<4x512xf32>
    %939 = arith.index_cast %c9_i32 : i32 to index
    %c0_208 = arith.constant 0 : index
    %c0_209 = arith.constant 0 : index
    %940 = vector.load %arg16[%939, %c0_208, %c0_209] : memref<12x4x512xf32, #tpu.memory_space<vmem>>, vector<1x4x512xf32>
    %941 = vector.shape_cast %940 : vector<1x4x512xf32> to vector<4x512xf32>
    %942 = arith.truncf %896 : vector<4x128xf32> to vector<4x128xbf16>
    %c0_210 = arith.constant 0 : index
    %c0_211 = arith.constant 0 : index
    %943 = vector.load %arg7[%c0_210, %c0_211] : memref<128x512xbf16, #tpu.memory_space<vmem>>, vector<128x512xbf16>
    %cst_212 = arith.constant dense<0.000000e+00> : vector<4x512xf32>
    %944 = tpu.matmul %942, %943, %cst_212 {dimension_numbers = #tpu.dot_dimension_numbers<[1], [0], [0], [1], [0, 0, 1, 1], [], []>} : vector<4x128xbf16>, vector<128x512xbf16>, vector<4x512xf32> -> vector<4x512xf32>
    %945 = arith.addf %941, %944 : vector<4x512xf32>
    %946 = vector.extract_strided_slice %945 {offsets = [0, 0], sizes = [4, 384], strides = [1, 1]} : vector<4x512xf32> to vector<4x384xf32>
    %cst_213 = arith.constant 5.000000e-01 : f32
    %947 = vector.broadcast %cst_213 : f32 to vector<4x384xf32>
    %948 = arith.mulf %947, %946 : vector<4x384xf32>
    %949 = math.tanh %948 : vector<4x384xf32>
    %cst_214 = arith.constant 5.000000e-01 : f32
    %950 = vector.broadcast %cst_214 : f32 to vector<4x384xf32>
    %951 = arith.mulf %950, %949 : vector<4x384xf32>
    %cst_215 = arith.constant 5.000000e-01 : f32
    %952 = vector.broadcast %cst_215 : f32 to vector<4x384xf32>
    %953 = arith.addf %951, %952 : vector<4x384xf32>
    %954 = vector.extract_strided_slice %953 {offsets = [0, 0], sizes = [4, 128], strides = [1, 1]} : vector<4x384xf32> to vector<4x128xf32>
    %955 = vector.extract_strided_slice %953 {offsets = [0, 128], sizes = [4, 128], strides = [1, 1]} : vector<4x384xf32> to vector<4x128xf32>
    %956 = vector.extract_strided_slice %953 {offsets = [0, 256], sizes = [4, 128], strides = [1, 1]} : vector<4x384xf32> to vector<4x128xf32>
    %957 = vector.extract_strided_slice %945 {offsets = [0, 384], sizes = [4, 128], strides = [1, 1]} : vector<4x512xf32> to vector<4x128xf32>
    %958 = math.tanh %957 : vector<4x128xf32>
    %959 = arith.mulf %955, %899 : vector<4x128xf32>
    %960 = arith.mulf %954, %958 : vector<4x128xf32>
    %961 = arith.addf %959, %960 : vector<4x128xf32>
    %962 = math.tanh %961 : vector<4x128xf32>
    %963 = arith.mulf %956, %962 : vector<4x128xf32>
    %964 = vector.shape_cast %934 : vector<4x1xi1> to vector<4x1xi1>
    %965 = vector.broadcast %964 : vector<4x1xi1> to vector<4x128xi1>
    %966 = arith.select %965, %963, %896 : vector<4x128xi1>, vector<4x128xf32>
    %967 = vector.shape_cast %934 : vector<4x1xi1> to vector<4x1xi1>
    %968 = vector.broadcast %967 : vector<4x1xi1> to vector<4x128xi1>
    %969 = arith.select %968, %961, %899 : vector<4x128xi1>, vector<4x128xf32>
    %970 = arith.truncf %963 : vector<4x128xf32> to vector<4x128xbf16>
    %c0_216 = arith.constant 0 : index
    %c0_217 = arith.constant 0 : index
    %971 = vector.load %arg8[%c0_216, %c0_217] : memref<128x512xbf16, #tpu.memory_space<vmem>>, vector<128x512xbf16>
    %cst_218 = arith.constant dense<0.000000e+00> : vector<4x512xf32>
    %972 = tpu.matmul %970, %971, %cst_218 {dimension_numbers = #tpu.dot_dimension_numbers<[1], [0], [0], [1], [0, 0, 1, 1], [], []>} : vector<4x128xbf16>, vector<128x512xbf16>, vector<4x512xf32> -> vector<4x512xf32>
    %973 = arith.addf %938, %972 : vector<4x512xf32>
    %974 = vector.extract_strided_slice %973 {offsets = [0, 0], sizes = [4, 384], strides = [1, 1]} : vector<4x512xf32> to vector<4x384xf32>
    %cst_219 = arith.constant 5.000000e-01 : f32
    %975 = vector.broadcast %cst_219 : f32 to vector<4x384xf32>
    %976 = arith.mulf %975, %974 : vector<4x384xf32>
    %977 = math.tanh %976 : vector<4x384xf32>
    %cst_220 = arith.constant 5.000000e-01 : f32
    %978 = vector.broadcast %cst_220 : f32 to vector<4x384xf32>
    %979 = arith.mulf %978, %977 : vector<4x384xf32>
    %cst_221 = arith.constant 5.000000e-01 : f32
    %980 = vector.broadcast %cst_221 : f32 to vector<4x384xf32>
    %981 = arith.addf %979, %980 : vector<4x384xf32>
    %982 = vector.extract_strided_slice %981 {offsets = [0, 0], sizes = [4, 128], strides = [1, 1]} : vector<4x384xf32> to vector<4x128xf32>
    %983 = vector.extract_strided_slice %981 {offsets = [0, 128], sizes = [4, 128], strides = [1, 1]} : vector<4x384xf32> to vector<4x128xf32>
    %984 = vector.extract_strided_slice %981 {offsets = [0, 256], sizes = [4, 128], strides = [1, 1]} : vector<4x384xf32> to vector<4x128xf32>
    %985 = vector.extract_strided_slice %973 {offsets = [0, 384], sizes = [4, 128], strides = [1, 1]} : vector<4x512xf32> to vector<4x128xf32>
    %986 = math.tanh %985 : vector<4x128xf32>
    %987 = arith.mulf %983, %927 : vector<4x128xf32>
    %988 = arith.mulf %982, %986 : vector<4x128xf32>
    %989 = arith.addf %987, %988 : vector<4x128xf32>
    %990 = math.tanh %989 : vector<4x128xf32>
    %991 = arith.mulf %984, %990 : vector<4x128xf32>
    %992 = vector.shape_cast %934 : vector<4x1xi1> to vector<4x1xi1>
    %993 = vector.broadcast %992 : vector<4x1xi1> to vector<4x128xi1>
    %994 = arith.select %993, %991, %924 : vector<4x128xi1>, vector<4x128xf32>
    %995 = vector.shape_cast %934 : vector<4x1xi1> to vector<4x1xi1>
    %996 = vector.broadcast %995 : vector<4x1xi1> to vector<4x128xi1>
    %997 = arith.select %996, %989, %927 : vector<4x128xi1>, vector<4x128xf32>
    %cst_222 = arith.constant 0.000000e+00 : f32
    %998 = vector.shape_cast %934 : vector<4x1xi1> to vector<4x1xi1>
    %999 = vector.broadcast %998 : vector<4x1xi1> to vector<4x128xi1>
    %1000 = vector.broadcast %cst_222 : f32 to vector<4x128xf32>
    %1001 = arith.select %999, %991, %1000 : vector<4x128xi1>, vector<4x128xf32>
    %1002 = arith.addf %932, %1001 : vector<4x128xf32>
    %c10_i32 = arith.constant 10 : i32
    %1003 = vector.broadcast %c10_i32 : i32 to vector<4x1xi32>
    %1004 = arith.cmpi slt, %1003, %298 : vector<4x1xi32>
    %1005 = arith.truncf %994 : vector<4x128xf32> to vector<4x128xbf16>
    %c0_223 = arith.constant 0 : index
    %c0_224 = arith.constant 0 : index
    %1006 = vector.load %arg9[%c0_223, %c0_224] : memref<128x512xbf16, #tpu.memory_space<vmem>>, vector<128x512xbf16>
    %cst_225 = arith.constant dense<0.000000e+00> : vector<4x512xf32>
    %1007 = tpu.matmul %1005, %1006, %cst_225 {dimension_numbers = #tpu.dot_dimension_numbers<[1], [0], [0], [1], [0, 0, 1, 1], [], []>} : vector<4x128xbf16>, vector<128x512xbf16>, vector<4x512xf32> -> vector<4x512xf32>
    %1008 = arith.addf %301, %1007 : vector<4x512xf32>
    %1009 = arith.index_cast %c10_i32 : i32 to index
    %c0_226 = arith.constant 0 : index
    %c0_227 = arith.constant 0 : index
    %1010 = vector.load %arg16[%1009, %c0_226, %c0_227] : memref<12x4x512xf32, #tpu.memory_space<vmem>>, vector<1x4x512xf32>
    %1011 = vector.shape_cast %1010 : vector<1x4x512xf32> to vector<4x512xf32>
    %1012 = arith.truncf %966 : vector<4x128xf32> to vector<4x128xbf16>
    %c0_228 = arith.constant 0 : index
    %c0_229 = arith.constant 0 : index
    %1013 = vector.load %arg7[%c0_228, %c0_229] : memref<128x512xbf16, #tpu.memory_space<vmem>>, vector<128x512xbf16>
    %cst_230 = arith.constant dense<0.000000e+00> : vector<4x512xf32>
    %1014 = tpu.matmul %1012, %1013, %cst_230 {dimension_numbers = #tpu.dot_dimension_numbers<[1], [0], [0], [1], [0, 0, 1, 1], [], []>} : vector<4x128xbf16>, vector<128x512xbf16>, vector<4x512xf32> -> vector<4x512xf32>
    %1015 = arith.addf %1011, %1014 : vector<4x512xf32>
    %1016 = vector.extract_strided_slice %1015 {offsets = [0, 0], sizes = [4, 384], strides = [1, 1]} : vector<4x512xf32> to vector<4x384xf32>
    %cst_231 = arith.constant 5.000000e-01 : f32
    %1017 = vector.broadcast %cst_231 : f32 to vector<4x384xf32>
    %1018 = arith.mulf %1017, %1016 : vector<4x384xf32>
    %1019 = math.tanh %1018 : vector<4x384xf32>
    %cst_232 = arith.constant 5.000000e-01 : f32
    %1020 = vector.broadcast %cst_232 : f32 to vector<4x384xf32>
    %1021 = arith.mulf %1020, %1019 : vector<4x384xf32>
    %cst_233 = arith.constant 5.000000e-01 : f32
    %1022 = vector.broadcast %cst_233 : f32 to vector<4x384xf32>
    %1023 = arith.addf %1021, %1022 : vector<4x384xf32>
    %1024 = vector.extract_strided_slice %1023 {offsets = [0, 0], sizes = [4, 128], strides = [1, 1]} : vector<4x384xf32> to vector<4x128xf32>
    %1025 = vector.extract_strided_slice %1023 {offsets = [0, 128], sizes = [4, 128], strides = [1, 1]} : vector<4x384xf32> to vector<4x128xf32>
    %1026 = vector.extract_strided_slice %1023 {offsets = [0, 256], sizes = [4, 128], strides = [1, 1]} : vector<4x384xf32> to vector<4x128xf32>
    %1027 = vector.extract_strided_slice %1015 {offsets = [0, 384], sizes = [4, 128], strides = [1, 1]} : vector<4x512xf32> to vector<4x128xf32>
    %1028 = math.tanh %1027 : vector<4x128xf32>
    %1029 = arith.mulf %1025, %969 : vector<4x128xf32>
    %1030 = arith.mulf %1024, %1028 : vector<4x128xf32>
    %1031 = arith.addf %1029, %1030 : vector<4x128xf32>
    %1032 = math.tanh %1031 : vector<4x128xf32>
    %1033 = arith.mulf %1026, %1032 : vector<4x128xf32>
    %1034 = vector.shape_cast %1004 : vector<4x1xi1> to vector<4x1xi1>
    %1035 = vector.broadcast %1034 : vector<4x1xi1> to vector<4x128xi1>
    %1036 = arith.select %1035, %1033, %966 : vector<4x128xi1>, vector<4x128xf32>
    %1037 = vector.shape_cast %1004 : vector<4x1xi1> to vector<4x1xi1>
    %1038 = vector.broadcast %1037 : vector<4x1xi1> to vector<4x128xi1>
    %1039 = arith.select %1038, %1031, %969 : vector<4x128xi1>, vector<4x128xf32>
    %1040 = arith.truncf %1033 : vector<4x128xf32> to vector<4x128xbf16>
    %c0_234 = arith.constant 0 : index
    %c0_235 = arith.constant 0 : index
    %1041 = vector.load %arg8[%c0_234, %c0_235] : memref<128x512xbf16, #tpu.memory_space<vmem>>, vector<128x512xbf16>
    %cst_236 = arith.constant dense<0.000000e+00> : vector<4x512xf32>
    %1042 = tpu.matmul %1040, %1041, %cst_236 {dimension_numbers = #tpu.dot_dimension_numbers<[1], [0], [0], [1], [0, 0, 1, 1], [], []>} : vector<4x128xbf16>, vector<128x512xbf16>, vector<4x512xf32> -> vector<4x512xf32>
    %1043 = arith.addf %1008, %1042 : vector<4x512xf32>
    %1044 = vector.extract_strided_slice %1043 {offsets = [0, 0], sizes = [4, 384], strides = [1, 1]} : vector<4x512xf32> to vector<4x384xf32>
    %cst_237 = arith.constant 5.000000e-01 : f32
    %1045 = vector.broadcast %cst_237 : f32 to vector<4x384xf32>
    %1046 = arith.mulf %1045, %1044 : vector<4x384xf32>
    %1047 = math.tanh %1046 : vector<4x384xf32>
    %cst_238 = arith.constant 5.000000e-01 : f32
    %1048 = vector.broadcast %cst_238 : f32 to vector<4x384xf32>
    %1049 = arith.mulf %1048, %1047 : vector<4x384xf32>
    %cst_239 = arith.constant 5.000000e-01 : f32
    %1050 = vector.broadcast %cst_239 : f32 to vector<4x384xf32>
    %1051 = arith.addf %1049, %1050 : vector<4x384xf32>
    %1052 = vector.extract_strided_slice %1051 {offsets = [0, 0], sizes = [4, 128], strides = [1, 1]} : vector<4x384xf32> to vector<4x128xf32>
    %1053 = vector.extract_strided_slice %1051 {offsets = [0, 128], sizes = [4, 128], strides = [1, 1]} : vector<4x384xf32> to vector<4x128xf32>
    %1054 = vector.extract_strided_slice %1051 {offsets = [0, 256], sizes = [4, 128], strides = [1, 1]} : vector<4x384xf32> to vector<4x128xf32>
    %1055 = vector.extract_strided_slice %1043 {offsets = [0, 384], sizes = [4, 128], strides = [1, 1]} : vector<4x512xf32> to vector<4x128xf32>
    %1056 = math.tanh %1055 : vector<4x128xf32>
    %1057 = arith.mulf %1053, %997 : vector<4x128xf32>
    %1058 = arith.mulf %1052, %1056 : vector<4x128xf32>
    %1059 = arith.addf %1057, %1058 : vector<4x128xf32>
    %1060 = math.tanh %1059 : vector<4x128xf32>
    %1061 = arith.mulf %1054, %1060 : vector<4x128xf32>
    %1062 = vector.shape_cast %1004 : vector<4x1xi1> to vector<4x1xi1>
    %1063 = vector.broadcast %1062 : vector<4x1xi1> to vector<4x128xi1>
    %1064 = arith.select %1063, %1061, %994 : vector<4x128xi1>, vector<4x128xf32>
    %1065 = vector.shape_cast %1004 : vector<4x1xi1> to vector<4x1xi1>
    %1066 = vector.broadcast %1065 : vector<4x1xi1> to vector<4x128xi1>
    %1067 = arith.select %1066, %1059, %997 : vector<4x128xi1>, vector<4x128xf32>
    %cst_240 = arith.constant 0.000000e+00 : f32
    %1068 = vector.shape_cast %1004 : vector<4x1xi1> to vector<4x1xi1>
    %1069 = vector.broadcast %1068 : vector<4x1xi1> to vector<4x128xi1>
    %1070 = vector.broadcast %cst_240 : f32 to vector<4x128xf32>
    %1071 = arith.select %1069, %1061, %1070 : vector<4x128xi1>, vector<4x128xf32>
    %1072 = arith.addf %1002, %1071 : vector<4x128xf32>
    %c11_i32 = arith.constant 11 : i32
    %1073 = vector.broadcast %c11_i32 : i32 to vector<4x1xi32>
    %1074 = arith.cmpi slt, %1073, %298 : vector<4x1xi32>
    %1075 = arith.truncf %1064 : vector<4x128xf32> to vector<4x128xbf16>
    %c0_241 = arith.constant 0 : index
    %c0_242 = arith.constant 0 : index
    %1076 = vector.load %arg9[%c0_241, %c0_242] : memref<128x512xbf16, #tpu.memory_space<vmem>>, vector<128x512xbf16>
    %cst_243 = arith.constant dense<0.000000e+00> : vector<4x512xf32>
    %1077 = tpu.matmul %1075, %1076, %cst_243 {dimension_numbers = #tpu.dot_dimension_numbers<[1], [0], [0], [1], [0, 0, 1, 1], [], []>} : vector<4x128xbf16>, vector<128x512xbf16>, vector<4x512xf32> -> vector<4x512xf32>
    %1078 = arith.addf %301, %1077 : vector<4x512xf32>
    %1079 = arith.index_cast %c11_i32 : i32 to index
    %c0_244 = arith.constant 0 : index
    %c0_245 = arith.constant 0 : index
    %1080 = vector.load %arg16[%1079, %c0_244, %c0_245] : memref<12x4x512xf32, #tpu.memory_space<vmem>>, vector<1x4x512xf32>
    %1081 = vector.shape_cast %1080 : vector<1x4x512xf32> to vector<4x512xf32>
    %1082 = arith.truncf %1036 : vector<4x128xf32> to vector<4x128xbf16>
    %c0_246 = arith.constant 0 : index
    %c0_247 = arith.constant 0 : index
    %1083 = vector.load %arg7[%c0_246, %c0_247] : memref<128x512xbf16, #tpu.memory_space<vmem>>, vector<128x512xbf16>
    %cst_248 = arith.constant dense<0.000000e+00> : vector<4x512xf32>
    %1084 = tpu.matmul %1082, %1083, %cst_248 {dimension_numbers = #tpu.dot_dimension_numbers<[1], [0], [0], [1], [0, 0, 1, 1], [], []>} : vector<4x128xbf16>, vector<128x512xbf16>, vector<4x512xf32> -> vector<4x512xf32>
    %1085 = arith.addf %1081, %1084 : vector<4x512xf32>
    %1086 = vector.extract_strided_slice %1085 {offsets = [0, 0], sizes = [4, 384], strides = [1, 1]} : vector<4x512xf32> to vector<4x384xf32>
    %cst_249 = arith.constant 5.000000e-01 : f32
    %1087 = vector.broadcast %cst_249 : f32 to vector<4x384xf32>
    %1088 = arith.mulf %1087, %1086 : vector<4x384xf32>
    %1089 = math.tanh %1088 : vector<4x384xf32>
    %cst_250 = arith.constant 5.000000e-01 : f32
    %1090 = vector.broadcast %cst_250 : f32 to vector<4x384xf32>
    %1091 = arith.mulf %1090, %1089 : vector<4x384xf32>
    %cst_251 = arith.constant 5.000000e-01 : f32
    %1092 = vector.broadcast %cst_251 : f32 to vector<4x384xf32>
    %1093 = arith.addf %1091, %1092 : vector<4x384xf32>
    %1094 = vector.extract_strided_slice %1093 {offsets = [0, 0], sizes = [4, 128], strides = [1, 1]} : vector<4x384xf32> to vector<4x128xf32>
    %1095 = vector.extract_strided_slice %1093 {offsets = [0, 128], sizes = [4, 128], strides = [1, 1]} : vector<4x384xf32> to vector<4x128xf32>
    %1096 = vector.extract_strided_slice %1093 {offsets = [0, 256], sizes = [4, 128], strides = [1, 1]} : vector<4x384xf32> to vector<4x128xf32>
    %1097 = vector.extract_strided_slice %1085 {offsets = [0, 384], sizes = [4, 128], strides = [1, 1]} : vector<4x512xf32> to vector<4x128xf32>
    %1098 = math.tanh %1097 : vector<4x128xf32>
    %1099 = arith.mulf %1095, %1039 : vector<4x128xf32>
    %1100 = arith.mulf %1094, %1098 : vector<4x128xf32>
    %1101 = arith.addf %1099, %1100 : vector<4x128xf32>
    %1102 = math.tanh %1101 : vector<4x128xf32>
    %1103 = arith.mulf %1096, %1102 : vector<4x128xf32>
    %1104 = vector.shape_cast %1074 : vector<4x1xi1> to vector<4x1xi1>
    %1105 = vector.broadcast %1104 : vector<4x1xi1> to vector<4x128xi1>
    %1106 = arith.select %1105, %1103, %1036 : vector<4x128xi1>, vector<4x128xf32>
    %1107 = vector.shape_cast %1074 : vector<4x1xi1> to vector<4x1xi1>
    %1108 = vector.broadcast %1107 : vector<4x1xi1> to vector<4x128xi1>
    %1109 = arith.select %1108, %1101, %1039 : vector<4x128xi1>, vector<4x128xf32>
    %1110 = arith.truncf %1103 : vector<4x128xf32> to vector<4x128xbf16>
    %c0_252 = arith.constant 0 : index
    %c0_253 = arith.constant 0 : index
    %1111 = vector.load %arg8[%c0_252, %c0_253] : memref<128x512xbf16, #tpu.memory_space<vmem>>, vector<128x512xbf16>
    %cst_254 = arith.constant dense<0.000000e+00> : vector<4x512xf32>
    %1112 = tpu.matmul %1110, %1111, %cst_254 {dimension_numbers = #tpu.dot_dimension_numbers<[1], [0], [0], [1], [0, 0, 1, 1], [], []>} : vector<4x128xbf16>, vector<128x512xbf16>, vector<4x512xf32> -> vector<4x512xf32>
    %1113 = arith.addf %1078, %1112 : vector<4x512xf32>
    %1114 = vector.extract_strided_slice %1113 {offsets = [0, 0], sizes = [4, 384], strides = [1, 1]} : vector<4x512xf32> to vector<4x384xf32>
    %cst_255 = arith.constant 5.000000e-01 : f32
    %1115 = vector.broadcast %cst_255 : f32 to vector<4x384xf32>
    %1116 = arith.mulf %1115, %1114 : vector<4x384xf32>
    %1117 = math.tanh %1116 : vector<4x384xf32>
    %cst_256 = arith.constant 5.000000e-01 : f32
    %1118 = vector.broadcast %cst_256 : f32 to vector<4x384xf32>
    %1119 = arith.mulf %1118, %1117 : vector<4x384xf32>
    %cst_257 = arith.constant 5.000000e-01 : f32
    %1120 = vector.broadcast %cst_257 : f32 to vector<4x384xf32>
    %1121 = arith.addf %1119, %1120 : vector<4x384xf32>
    %1122 = vector.extract_strided_slice %1121 {offsets = [0, 0], sizes = [4, 128], strides = [1, 1]} : vector<4x384xf32> to vector<4x128xf32>
    %1123 = vector.extract_strided_slice %1121 {offsets = [0, 128], sizes = [4, 128], strides = [1, 1]} : vector<4x384xf32> to vector<4x128xf32>
    %1124 = vector.extract_strided_slice %1121 {offsets = [0, 256], sizes = [4, 128], strides = [1, 1]} : vector<4x384xf32> to vector<4x128xf32>
    %1125 = vector.extract_strided_slice %1113 {offsets = [0, 384], sizes = [4, 128], strides = [1, 1]} : vector<4x512xf32> to vector<4x128xf32>
    %1126 = math.tanh %1125 : vector<4x128xf32>
    %1127 = arith.mulf %1123, %1067 : vector<4x128xf32>
    %1128 = arith.mulf %1122, %1126 : vector<4x128xf32>
    %1129 = arith.addf %1127, %1128 : vector<4x128xf32>
    %1130 = math.tanh %1129 : vector<4x128xf32>
    %1131 = arith.mulf %1124, %1130 : vector<4x128xf32>
    %1132 = vector.shape_cast %1074 : vector<4x1xi1> to vector<4x1xi1>
    %1133 = vector.broadcast %1132 : vector<4x1xi1> to vector<4x128xi1>
    %1134 = arith.select %1133, %1131, %1064 : vector<4x128xi1>, vector<4x128xf32>
    %1135 = vector.shape_cast %1074 : vector<4x1xi1> to vector<4x1xi1>
    %1136 = vector.broadcast %1135 : vector<4x1xi1> to vector<4x128xi1>
    %1137 = arith.select %1136, %1129, %1067 : vector<4x128xi1>, vector<4x128xf32>
    %cst_258 = arith.constant 0.000000e+00 : f32
    %1138 = vector.shape_cast %1074 : vector<4x1xi1> to vector<4x1xi1>
    %1139 = vector.broadcast %1138 : vector<4x1xi1> to vector<4x128xi1>
    %1140 = vector.broadcast %cst_258 : f32 to vector<4x128xf32>
    %1141 = arith.select %1139, %1131, %1140 : vector<4x128xi1>, vector<4x128xf32>
    %1142 = arith.addf %1072, %1141 : vector<4x128xf32>
    %c12_i32 = arith.constant 12 : i32
    %c0_259 = arith.constant 0 : index
    %1143 = memref.load %arg6[%c0_259] : memref<1xf32, #tpu.memory_space<smem>>
    %1144 = vector.broadcast %1143 : f32 to vector<4x128xf32>
    %1145 = arith.mulf %1142, %1144 : vector<4x128xf32>
    %c0_260 = arith.constant 0 : index
    %c0_261 = arith.constant 0 : index
    %1146 = vector.load %arg11[%c0_260, %c0_261] : memref<128x128xf32, #tpu.memory_space<vmem>>, vector<128x128xf32>
    %cst_262 = arith.constant dense<0.000000e+00> : vector<4x128xf32>
    %1147 = tpu.matmul %1145, %1146, %cst_262 {dimension_numbers = #tpu.dot_dimension_numbers<[1], [0], [0], [1], [0, 0, 1, 1], [], []>} : vector<4x128xf32>, vector<128x128xf32>, vector<4x128xf32> -> vector<4x128xf32>
    %c0_263 = arith.constant 0 : index
    %c0_264 = arith.constant 0 : index
    %1148 = vector.load %arg12[%c0_263, %c0_264] : memref<1x128xf32, #tpu.memory_space<vmem>>, vector<1x128xf32>
    %1149 = vector.broadcast %1148 : vector<1x128xf32> to vector<4x128xf32>
    %1150 = arith.addf %1147, %1149 : vector<4x128xf32>
    %cst_265 = arith.constant 0.000000e+00 : f32
    %1151 = vector.broadcast %cst_265 : f32 to vector<4x128xf32>
    %1152 = arith.maximumf %1150, %1151 : vector<4x128xf32>
    %c0_266 = arith.constant 0 : index
    %c0_267 = arith.constant 0 : index
    %1153 = vector.load %arg13[%c0_266, %c0_267] : memref<128x25xf32, #tpu.memory_space<vmem>>, vector<128x25xf32>
    %cst_268 = arith.constant dense<0.000000e+00> : vector<4x25xf32>
    %1154 = tpu.matmul %1152, %1153, %cst_268 {dimension_numbers = #tpu.dot_dimension_numbers<[1], [0], [0], [1], [0, 0, 1, 1], [], []>} : vector<4x128xf32>, vector<128x25xf32>, vector<4x25xf32> -> vector<4x25xf32>
    %c0_269 = arith.constant 0 : index
    %c0_270 = arith.constant 0 : index
    %1155 = vector.load %arg14[%c0_269, %c0_270] : memref<1x25xf32, #tpu.memory_space<vmem>>, vector<1x25xf32>
    %1156 = vector.broadcast %1155 : vector<1x25xf32> to vector<4x25xf32>
    %1157 = arith.addf %1154, %1156 : vector<4x25xf32>
    %cst_271 = arith.constant 5.000000e-01 : f32
    %1158 = vector.broadcast %cst_271 : f32 to vector<4x25xf32>
    %1159 = arith.mulf %1158, %1157 : vector<4x25xf32>
    %1160 = math.tanh %1159 : vector<4x25xf32>
    %cst_272 = arith.constant 5.000000e-01 : f32
    %1161 = vector.broadcast %cst_272 : f32 to vector<4x25xf32>
    %1162 = arith.mulf %1161, %1160 : vector<4x25xf32>
    %cst_273 = arith.constant 5.000000e-01 : f32
    %1163 = vector.broadcast %cst_273 : f32 to vector<4x25xf32>
    %1164 = arith.addf %1162, %1163 : vector<4x25xf32>
    %c0_274 = arith.constant 0 : index
    %c0_275 = arith.constant 0 : index
    %1165 = vector.load %arg15[%c0_274, %c0_275] : memref<4x25xf32, #tpu.memory_space<vmem>>, vector<4x25xf32>
    tpu.vector_store %arg15[%c0_274, %c0_275], %1164 {strides = array<i32>} : memref<4x25xf32, #tpu.memory_space<vmem>>, vector<4x25xf32>,
    return
  }
}

</mosaic_0001>

<bundles_post_ra>
// kernel: _lambda_.1
= control target key start
LH: loop header
LB: loop body
LE: loop exit
PB: predicated region body
PF: predicated region fallthrough
CT: control target
= control target key end

     0   :  { %s7918_s0 = inlined_call_operand.vmem [shape: f32[4,36], index: 0, kind: input, shape index: {}]   ;;  %s7919_s1 = inlined_call_operand.vmem [shape: f32[36,36], index: 1, kind: input, shape index: {}]   ;;  %s7920_s2 = inlined_call_operand.vmem [shape: f32[1,36], index: 2, kind: input, shape index: {}]   ;;  %s7921_s3 = inlined_call_operand.vmem [shape: f32[3,512], index: 3, kind: input, shape index: {}]   ;;  %s7922_s4 = inlined_call_operand.vmem [shape: f32[1,512], index: 4, kind: input, shape index: {}]   ;;  %s7923_s5 = inlined_call_operand.vmem [shape: s32[4,1], index: 5, kind: input, shape index: {}]   ;;  %s7924_s6 = inlined_call_operand.<no memory space> [shape: f32[1], index: 6, kind: input, shape index: {}]   ;;  %s7925_s7 = inlined_call_operand.hbm [shape: bf16[128,512], index: 7, kind: input, shape index: {}]   ;;  %s7926_s8 = inlined_call_operand.hbm [shape: bf16[128,512], index: 8, kind: input, shape index: {}]   ;;  %s7927_s9 = inlined_call_operand.hbm [shape: bf16[128,512], index: 9, kind: input, shape index: {}]   ;;  %s7928_s10 = inlined_call_operand.vmem [shape: f32[1,512], index: 10, kind: input, shape index: {}]   ;;  %s7929_s11 = inlined_call_operand.hbm [shape: f32[128,128], index: 11, kind: input, shape index: {}]   ;;  %s7930_s12 = inlined_call_operand.vmem [shape: f32[1,128], index: 12, kind: input, shape index: {}]   ;;  %s7931_s13 = inlined_call_operand.hbm [shape: f32[128,25], index: 13, kind: input, shape index: {}]   ;;  %s7932_s14 = inlined_call_operand.vmem [shape: f32[1,25], index: 14, kind: input, shape index: {}]   ;;  %s7933_s15 = inlined_call_operand.hbm [shape: f32[4,25], index: 15, kind: output, shape index: {}]  }
   0x1   :  { %8227 = sst [smem:[#allocation158_spill]] %s7933_s15 }
   0x2   :  { %21 = vsyncpa [#allocation5], 0 }
   0x3   :  { %22 = vsyncpa [#allocation8], 0 }
   0x4   :  { %23 = vsyncpa [#allocation11], 0 }
   0x5   :  { %24 = vsyncpa [#allocation6], 0  ;;  %s56_s20 = sshll.u32 %s7926_s8, 4  ;;  %s5274_s21 = smov [#allocation7]   ;;  %s57_s20 = int_to_ptr.hbm [resolvable:$true] %s56_s20 }
   0x6   :  { %s58_s22 = sshll.u32 %s5274_s21, 4  ;;  %s84_s25 = sshll.u32 %s7929_s11, 4  ;;  %s59_s22 = int_to_ptr.vmem [resolvable:$true] %s58_s22  ;;  %s85_s25 = int_to_ptr.hbm [resolvable:$true] %s84_s25 }
   0x7   :  { %s5275_s26 = smov 256   ;;  %s5276_s27 = smov 16  }
   0x8   :  { %64 = dma.hbm_to_vmem [thread:$0]  %s57_s20, 4096, %s59_s22, [#allocation8], %s5275_s26, %s5275_s26, %s5276_s27  }
   0x9   :  { %s5277_s28 = smov [#allocation10]   ;;  %s5278_s30 = smov 128  }
   0xa   :  { %s86_s29 = sshll.u32 %s5277_s28, 4  ;;  %s5279_s16 = smov 8   ;;  %s87_s29 = int_to_ptr.vmem [resolvable:$true] %s86_s29 }
   0xb   :  { %92 = dma.hbm_to_vmem [thread:$0]  %s85_s25, 2048, %s87_s29, [#allocation11], %s5278_s30, %s5278_s30, %s5279_s16  }
   0xc   :  { %s43_s18 = sshll.u32 %s7925_s7, 4  ;;  %s5280_s19 = smov [#allocation4]   ;;  %s44_s18 = int_to_ptr.hbm [resolvable:$true] %s43_s18 }
   0xd   :  { %s45_s21 = sshll.u32 %s5280_s19, 4  ;;  %s69_s24 = sshll.u32 %s7927_s9, 4  ;;  %s46_s21 = int_to_ptr.vmem [resolvable:$true] %s45_s21  ;;  %s70_s24 = int_to_ptr.hbm [resolvable:$true] %s69_s24 }
   0xe   :  { %51 = dma.hbm_to_vmem [thread:$0]  %s44_s18, 4096, %s46_s21, [#allocation5], %s5275_s26, %s5275_s26, %s5276_s27  }
   0xf   :  { %s5281_s20 = smov [#allocation9]   ;;  %s99_s25 = sshll.u32 %s7931_s13, 4  ;;  %s100_s25 = int_to_ptr.hbm [resolvable:$true] %s99_s25 }
  0x10   :  { %s71_s22 = sshll.u32 %s5281_s20, 4  ;;  %s5282_s7 = smov [#allocation12]   ;;  %s72_s22 = int_to_ptr.vmem [resolvable:$true] %s71_s22 }
  0x11   :  { %77 = dma.hbm_to_vmem [thread:$0]  %s70_s24, 4096, %s72_s22, [#allocation8], %s5275_s26, %s5275_s26, %s5276_s27  }
  0x12   :  { %s101_s29 = sshll.u32 %s5282_s7, 4  ;;  %s102_s29 = int_to_ptr.vmem [resolvable:$true] %s101_s29 }
  0x13   :  { %107 = dma.hbm_to_vmem [thread:$0]  %s100_s25, 2048, %s102_s29, [#allocation11], %s5278_s30, %s5278_s30, %s5279_s16  }
  0x14   :  { %5266 = dma.done.wait [#allocation5], 4096  }
  0x15   :  { %5267 = vsyncadd [#allocation5], 4294963200 }
  0x16   :  { %5268 = dma.done.wait [#allocation8], 8192  }
  0x17   :  { %5269 = vsyncadd [#allocation8], 4294959104 }
  0x18   :  { %5270 = dma.done.wait [#allocation11], 4096  }
  0x19   :  { %5271 = vsyncadd [#allocation11], 4294963200  ;;  %vm145_vm0 = vcmask 1043456   ;;  %v136_v0 = vld [vmem:[%s7919_s1 + $0x20] sm:$0xf]  ;;  %v135_v1 = vld [vmem:[%s7919_s1 + $0x18] sm:$0xff] }
  0x1a   :  { %4324 = vmatpush.msk.msra.mxu0 %vm145_vm0, %v136_v0  ;;  %v134_v2 = vld [vmem:[%s7919_s1 + $0x10] sm:$0xff]  ;;  %v133_v3 = vld [vmem:[%s7919_s1 + $0x8] sm:$0xff]  ;;  %v132_v4 = vld [vmem:[%s7919_s1] sm:$0xff]  ;;  %vm141_vm1 = vcmask 293888   ;;  %s5284_s23 = smov 125   ;;  %s5286_s11 = smov 122  }
  0x1b   :  { %v131_v5 = vld [vmem:[%s7918_s0] sm:$0xf]  ;;  %v4764_v6 = vld [vmem:[#allocation9 + $0xe4] sm:$0xf]  ;;  %v4444_v7 = vld [vmem:[#allocation9 + $0xf0] sm:$0xf0] }
  0x1c   :  { %161 = vmatpush.msra.mxu0 %v135_v1  ;;  %v4760_v8 = vld [vmem:[#allocation9 + $0xc4] sm:$0xf]  ;;  %v5410_v9 = vor.u32 %v4764_v6, %v4444_v7  ;;  %v4428_v10 = vld [vmem:[#allocation9 + $0xd0] sm:$0xf0]  ;;  %v4442_v11 = vld [vmem:[#allocation9 + $0xe0] sm:$0xf] }
  0x1d   :  { %v4766_v12 = vld [vmem:[#allocation9 + $0xec] sm:$0xf0]  ;;  %v4450_v14 = vld [vmem:[#allocation9 + $0xe8] sm:$0xf]  ;;  %v5415_v15 = vor.u32 %v4760_v8, %v4428_v10  ;;  %v4767_v16 = vld [vmem:[#allocation9 + $0xf4] sm:$0xf0] }
  0x1e   :  { %162 = vmatpush.msra.mxu0 %v134_v2  ;;  %8228 = vst [vmem:[#allocation18_spill] sm:$0xff] %v5410_v9  ;;  %v5412_v13 = vor.u32 %v4766_v12, %v4442_v11  ;;  %1080 = vmatpush.bf16.msra.mxu2 %v5410_v9  ;;  %v4426_v17 = vld [vmem:[#allocation9 + $0xc0] sm:$0xf]  ;;  %v4762_v18 = vld [vmem:[#allocation9 + $0xcc] sm:$0xf0]  ;;  %v5418_v21 = vor.u32 %v4767_v16, %v4450_v14  ;;  %vm188_vm3 = vcmask 1040384  }
  0x1f   :  { %8230 = vst [vmem:[#allocation20_spill] sm:$0xff] %v5415_v15  ;;  %v4756_v19 = vld [vmem:[#allocation9 + $0xa4] sm:$0xf]  ;;  %v4412_v20 = vld [vmem:[#allocation9 + $0xb0] sm:$0xf0]  ;;  %v5420_v22 = vor.u32 %v4762_v18, %v4426_v17  ;;  %vm190_vm4 = vcmask 1041408  }
  0x20   :  { %163 = vmatpush.msra.mxu0 %v133_v3  ;;  %8229 = vst [vmem:[#allocation19_spill] sm:$0xff] %v5412_v13  ;;  %1067 = vmatpush.bf16.msra.mxu1 %v5412_v13  ;;  %v4434_v23 = vld [vmem:[#allocation9 + $0xc8] sm:$0xf]  ;;  %v4763_v24 = vld [vmem:[#allocation9 + $0xd4] sm:$0xf0]  ;;  %v5428_v31 = vor.u32 %v4756_v19, %v4412_v20  ;;  %vm192_vm5 = vcmask 1042432  }
  0x21   :  { %8231 = vst [vmem:[#allocation21_spill] sm:$0xff] %v5418_v21  ;;  %v4765_v25 = vld [vmem:[#allocation9 + $0xec] sm:$0xf]  ;;  %v4452_v26 = vld [vmem:[#allocation9 + $0xf8] sm:$0xf0]  ;;  %1093 = vmatpush.bf16.msra.mxu3 %v5418_v21  ;;  %v5423_v27 = vor.u32 %v4763_v24, %v4434_v23  ;;  %s5295_s19 = smov [#allocation13]  }
  0x22   :  { %164 = vmatpush.msra.mxu0 %v132_v4  ;;  %8232 = vst [vmem:[#allocation22_spill] sm:$0xff] %v5420_v22  ;;  %v5425_v28 = vor.u32 %v4765_v25, %v4452_v26  ;;  %v4410_v29 = vld [vmem:[#allocation9 + $0xa0] sm:$0xf]  ;;  %v4758_v30 = vld [vmem:[#allocation9 + $0xac] sm:$0xf0]  ;;  %1081 = vmatpush.bf16.msra.mxu2 %v5415_v15  ;;  %s4310_s21 = sshll.u32 %s5295_s19, 4  ;;  %s4311_s21 = int_to_ptr.vmem [resolvable:$true] %s4310_s21 }
  0x23   :  { %4325 = vmatmul.msk.f32.vlgmr.msra.gmra.mxu0 %vm141_vm1, %v131_v5  ;;  %8233 = vst [vmem:[#allocation23_spill] sm:$0xff] %v5423_v27  ;;  %v4752_v32 = vld [vmem:[#allocation9 + $0x84] sm:$0xf]  ;;  %v4418_v33 = vld [vmem:[#allocation9 + $0xa8] sm:$0xf]  ;;  %v5432_v36 = vor.u32 %v4758_v30, %v4410_v29 }
  0x24   :  { %8234 = vst [vmem:[#allocation24_spill] sm:$0xff] %v5425_v28  ;;  %v4759_v34 = vld [vmem:[#allocation9 + $0xb4] sm:$0xf0]  ;;  %1068 = vmatpush.bf16.msra.mxu1 %v5420_v22  ;;  %v4396_v35 = vld [vmem:[#allocation9 + $0x90] sm:$0xf0]  ;;  %1106 = vmatpush.bf16.msrb.mxu0 %v5425_v28 }
  0x25   :  { %8235 = vst [vmem:[#allocation25_spill] sm:$0xff] %v5428_v31  ;;  %v4761_v37 = vld [vmem:[#allocation9 + $0xcc] sm:$0xf]  ;;  %v4436_v38 = vld [vmem:[#allocation9 + $0xd8] sm:$0xf0]  ;;  %1094 = vmatpush.bf16.msra.mxu3 %v5423_v27  ;;  %v5437_v42 = vor.u32 %v4759_v34, %v4418_v33  ;;  %v5440_v44 = vor.u32 %v4752_v32, %v4396_v35 }
  0x26   :  { %8236 = vst [vmem:[#allocation26_spill] sm:$0xff] %v5432_v36  ;;  %v5434_v39 = vor.u32 %v4761_v37, %v4436_v38  ;;  %v4394_v40 = vld [vmem:[#allocation9 + $0x80] sm:$0xf]  ;;  %v4754_v41 = vld [vmem:[#allocation9 + $0x8c] sm:$0xf0]  ;;  %1082 = vmatpush.bf16.msra.mxu2 %v5428_v31 }
  0x27   :  { %8238 = vst [vmem:[#allocation28_spill] sm:$0xff] %v5437_v42  ;;  %v4757_v43 = vld [vmem:[#allocation9 + $0xac] sm:$0xf]  ;;  %v4402_v45 = vld [vmem:[#allocation9 + $0x88] sm:$0xf]  ;;  %v5444_v50 = vor.u32 %v4754_v41, %v4394_v40 }
  0x28   :  { %8237 = vst [vmem:[#allocation27_spill] sm:$0xff] %v5434_v39  ;;  %v4755_v46 = vld [vmem:[#allocation9 + $0x94] sm:$0xf0]  ;;  %v4420_v47 = vld [vmem:[#allocation9 + $0xb8] sm:$0xf0]  ;;  %1069 = vmatpush.bf16.msra.mxu1 %v5432_v36  ;;  %1107 = vmatpush.bf16.msrb.mxu0 %v5434_v39 }
  0x29   :  { %8239 = vst [vmem:[#allocation29_spill] sm:$0xff] %v5440_v44  ;;  %v4748_v48 = vld [vmem:[#allocation9 + $0x64] sm:$0xf]  ;;  %v4380_v49 = vld [vmem:[#allocation9 + $0x70] sm:$0xf0]  ;;  %v5446_v51 = vor.u32 %v4757_v43, %v4420_v47  ;;  %1095 = vmatpush.bf16.msra.mxu3 %v5437_v42  ;;  %v5449_v56 = vor.u32 %v4755_v46, %v4402_v45 }
  0x2a   :  { %8240 = vst [vmem:[#allocation30_spill] sm:$0xff] %v5444_v50  ;;  %v4378_v52 = vld [vmem:[#allocation9 + $0x60] sm:$0xf]  ;;  %v4750_v53 = vld [vmem:[#allocation9 + $0x6c] sm:$0xf0]  ;;  %1083 = vmatpush.bf16.msra.mxu2 %v5440_v44  ;;  %v5452_v57 = vor.u32 %v4748_v48, %v4380_v49 }
  0x2b   :  { %8241 = vst [vmem:[#allocation31_spill] sm:$0xff] %v5446_v51  ;;  %v4753_v54 = vld [vmem:[#allocation9 + $0x8c] sm:$0xf]  ;;  %v4404_v55 = vld [vmem:[#allocation9 + $0x98] sm:$0xf0]  ;;  %v5459_v63 = vor.u32 %v4750_v53, %v4378_v52 }
  0x2c   :  { %8242 = vst [vmem:[#allocation32_spill] sm:$0xff] %v5449_v56  ;;  %v4386_v58 = vld [vmem:[#allocation9 + $0x68] sm:$0xf]  ;;  %v4751_v59 = vld [vmem:[#allocation9 + $0x74] sm:$0xf0]  ;;  %1070 = vmatpush.bf16.msra.mxu1 %v5444_v50  ;;  %1108 = vmatpush.bf16.msrb.mxu0 %v5446_v51  ;;  %v5461_v0 = vor.u32 %v4753_v54, %v4404_v55 }
  0x2d   :  { %8243 = vst [vmem:[#allocation33_spill] sm:$0xff] %v5452_v57  ;;  %v4899_v60 = vld [vmem:[%s7920_s2] ss:$0 sm:$0xff]  ;;  %v4744_v61 = vld [vmem:[#allocation9 + $0x44] sm:$0xf]  ;;  %1096 = vmatpush.bf16.msra.mxu3 %v5449_v56  ;;  %v5464_v2 = vor.u32 %v4751_v59, %v4386_v58  ;;  %s5283_s2 = smov 119  }
  0x2e   :  { %v4364_v62 = vld [vmem:[#allocation9 + $0x50] sm:$0xf0]  ;;  %8244 = vst [vmem:[#allocation34_spill] sm:$0xff] %v5459_v63  ;;  %v4362_v1 = vld [vmem:[#allocation9 + $0x40] sm:$0xf]  ;;  %1084 = vmatpush.bf16.msra.mxu2 %v5452_v57 }
  0x2f   :  { %8245 = vst [vmem:[#allocation35_spill] sm:$0xff] %v5461_v0  ;;  %v4746_v3 = vld [vmem:[#allocation9 + $0x4c] sm:$0xf0]  ;;  %v4749_v4 = vld [vmem:[#allocation9 + $0x6c] sm:$0xf]  ;;  %v5467_v7 = vor.u32 %v4744_v61, %v4364_v62 }
  0x30   :  { %8246 = vst [vmem:[#allocation36_spill] sm:$0xff] %v5464_v2  ;;  %v4388_v5 = vld [vmem:[#allocation9 + $0x78] sm:$0xf0]  ;;  %v4370_v8 = vld [vmem:[#allocation9 + $0x48] sm:$0xf]  ;;  %1071 = vmatpush.bf16.msra.mxu1 %v5459_v63  ;;  %1109 = vmatpush.bf16.msrb.mxu0 %v5461_v0  ;;  %v5473_v16 = vor.u32 %v4746_v3, %v4362_v1 }
  0x31   :  { %8247 = vst [vmem:[#allocation37_spill] sm:$0xff] %v5467_v7  ;;  %v4747_v10 = vld [vmem:[#allocation9 + $0x54] sm:$0xf0]  ;;  %v4740_v12 = vld [vmem:[#allocation9 + $0x24] sm:$0xf]  ;;  %v5475_v17 = vor.u32 %v4749_v4, %v4388_v5  ;;  %1097 = vmatpush.bf16.msra.mxu3 %v5464_v2 }
  0x32   :  { %v4348_v14 = vld [vmem:[#allocation9 + $0x30] sm:$0xf0]  ;;  %8249 = vst [vmem:[#allocation39_spill] sm:$0xff] %v5473_v16  ;;  %v4346_v18 = vld [vmem:[#allocation9 + $0x20] sm:$0xf]  ;;  %v5482_v24 = vor.u32 %v4747_v10, %v4370_v8  ;;  %1085 = vmatpush.bf16.msra.mxu2 %v5467_v7 }
  0x33   :  { %8250 = vst [vmem:[#allocation40_spill] sm:$0xff] %v5475_v17  ;;  %v4742_v19 = vld [vmem:[#allocation9 + $0x2c] sm:$0xf0]  ;;  %v4745_v25 = vld [vmem:[#allocation9 + $0x4c] sm:$0xf]  ;;  %v5485_v29 = vor.u32 %v4740_v12, %v4348_v14  ;;  %v7935_v12 = vmov 0  }
  0x34   :  { %8252 = vst [vmem:[#allocation42_spill] sm:$0xff] %v5482_v24  ;;  %v4372_v26 = vld [vmem:[#allocation9 + $0x58] sm:$0xf0]  ;;  %v4354_v30 = vld [vmem:[#allocation9 + $0x28] sm:$0xf]  ;;  %1072 = vmatpush.bf16.msra.mxu1 %v5473_v16  ;;  %1110 = vmatpush.bf16.msrb.mxu0 %v5475_v17  ;;  %v5492_v38 = vor.u32 %v4742_v19, %v4346_v18 }
  0x35   :  { %8253 = vst [vmem:[#allocation43_spill] sm:$0xff] %v5485_v29  ;;  %v4743_v32 = vld [vmem:[#allocation9 + $0x34] sm:$0xf0]  ;;  %v4736_v33 = vld [vmem:[#allocation9 + $0x4] sm:$0xf]  ;;  %v5494_v40 = vor.u32 %v4745_v25, %v4372_v26  ;;  %1098 = vmatpush.bf16.msra.mxu3 %v5482_v24  ;;  %4857 = vset.pattern.permute.xlu0 %v7935_v12 }
  0x36   :  { %v4332_v34 = vld [vmem:[#allocation9 + $0x10] sm:$0xf0]  ;;  %v4796_v35 = vld [vmem:[#allocation4 + $0xe4] sm:$0xf]  ;;  %8254 = vst [vmem:[#allocation44_spill] sm:$0xff] %v5492_v38  ;;  %v5497_v45 = vor.u32 %v4743_v32, %v4354_v30  ;;  %1086 = vmatpush.bf16.msra.mxu2 %v5485_v29  ;;  %4854 = vset.pattern.permute.xlu1 %v7935_v12 }
  0x37   :  { %v4572_v37 = vld [vmem:[#allocation4 + $0xf0] sm:$0xf0]  ;;  %8255 = vst [vmem:[#allocation45_spill] sm:$0xff] %v5494_v40  ;;  %v4330_v41 = vld [vmem:[#allocation9] sm:$0xf]  ;;  %v5500_v49 = vor.u32 %v4736_v33, %v4332_v34 }
  0x38   :  { %v4738_v43 = vld [vmem:[#allocation9 + $0xc] sm:$0xf0]  ;;  %8256 = vst [vmem:[#allocation46_spill] sm:$0xff] %v5497_v45  ;;  %v4338_v46 = vld [vmem:[#allocation9 + $0x8] sm:$0xf]  ;;  %v5502_v55 = vor.u32 %v4796_v35, %v4572_v37  ;;  %1073 = vmatpush.bf16.msra.mxu1 %v5492_v38  ;;  %1111 = vmatpush.bf16.msrb.mxu0 %v5494_v40 }
  0x39   :  { %v4741_v47 = vld [vmem:[#allocation9 + $0x2c] sm:$0xf]  ;;  %v4356_v48 = vld [vmem:[#allocation9 + $0x38] sm:$0xf0]  ;;  %8257 = vst [vmem:[#allocation47_spill] sm:$0xff] %v5500_v49  ;;  %v5507_v1 = vor.u32 %v4738_v43, %v4330_v41  ;;  %1099 = vmatpush.bf16.msra.mxu3 %v5497_v45 }
  0x3a   :  { %v4739_v52 = vld [vmem:[#allocation9 + $0x14] sm:$0xf0]  ;;  %v4570_v53 = vld [vmem:[#allocation4 + $0xe0] sm:$0xf]  ;;  %v4798_v54 = vld [vmem:[#allocation4 + $0xec] sm:$0xf0]  ;;  %v5509_v3 = vor.u32 %v4741_v47, %v4356_v48  ;;  %1087 = vmatpush.bf16.msra.mxu2 %v5500_v49 }
  0x3b   :  { %8258 = vst [vmem:[#allocation48_spill] sm:$0xff] %v5502_v55  ;;  %v4578_v58 = vld [vmem:[#allocation4 + $0xe8] sm:$0xf]  ;;  %v4799_v59 = vld [vmem:[#allocation4 + $0xf4] sm:$0xf0]  ;;  %v5512_v4 = vor.u32 %v4739_v52, %v4338_v46  ;;  %v5514_v5 = vor.u32 %v4798_v54, %v4570_v53 }
  0x3c   :  { %v4792_v61 = vld [vmem:[#allocation4 + $0xc4] sm:$0xf]  ;;  %v4556_v62 = vld [vmem:[#allocation4 + $0xd0] sm:$0xf0]  ;;  %8259 = vst [vmem:[#allocation49_spill] sm:$0xff] %v5507_v1  ;;  %v5518_v14 = vor.u32 %v4799_v59, %v4578_v58  ;;  %1074 = vmatpush.bf16.msra.mxu1 %v5507_v1  ;;  %1112 = vmatpush.bf16.msrb.mxu0 %v5509_v3 }
  0x3d   :  { %8260 = vst [vmem:[#allocation50_spill] sm:$0xff] %v5509_v3  ;;  %v4340_v8 = vld [vmem:[#allocation9 + $0x18] sm:$0xf0]  ;;  %v4554_v10 = vld [vmem:[#allocation4 + $0xc0] sm:$0xf]  ;;  %v5525_v25 = vor.u32 %v4792_v61, %v4556_v62  ;;  %1100 = vmatpush.bf16.msra.mxu3 %v5512_v4  ;;  %1088 = vmatmul.bf16.vlgmr.msra.gmra.mxu2 %v7935_v12 }
  0x3e   :  { %8261 = vst [vmem:[#allocation51_spill] sm:$0xff] %v5512_v4  ;;  %v4794_v18 = vld [vmem:[#allocation4 + $0xcc] sm:$0xf0]  ;;  %v4797_v19 = vld [vmem:[#allocation4 + $0xec] sm:$0xf]  ;;  %1330 = vmatpush.bf16.msrb.mxu2 %v5502_v55 }
  0x3f   :  { %8262 = vst [vmem:[#allocation52_spill] sm:$0xff] %v5514_v5  ;;  %v4562_v26 = vld [vmem:[#allocation4 + $0xc8] sm:$0xf]  ;;  %v4795_v30 = vld [vmem:[#allocation4 + $0xd4] sm:$0xf0]  ;;  %v5533_v35 = vor.u32 %v4794_v18, %v4554_v10  ;;  %1075 = vmatmul.bf16.vlgmr.msra.gmra.mxu1 %v7935_v12 }
  0x40   :  { %8263 = vst [vmem:[#allocation53_spill] sm:$0xff] %v5518_v14  ;;  %v4788_v32 = vld [vmem:[#allocation4 + $0xa4] sm:$0xf]  ;;  %v4540_v33 = vld [vmem:[#allocation4 + $0xb0] sm:$0xf0]  ;;  %1317 = vmatpush.bf16.msrb.mxu1 %v5514_v5  ;;  %v5538_v43 = vor.u32 %v4795_v30, %v4562_v26  ;;  %1101 = vmatmul.bf16.vlgmr.msra.gmra.mxu3 %v7935_v12 }
  0x41   :  { %8264 = vst [vmem:[#allocation54_spill] sm:$0xff] %v5525_v25  ;;  %v4538_v41 = vld [vmem:[#allocation4 + $0xa0] sm:$0xf]  ;;  %1343 = vmatpush.bf16.msrb.mxu3 %v5518_v14  ;;  %v4790_v46 = vld [vmem:[#allocation4 + $0xac] sm:$0xf0]  ;;  %v5542_v52 = vor.u32 %v4788_v32, %v4540_v33 }
  0x42   :  { %8266 = vst [vmem:[#allocation56_spill] sm:$0xff] %v5533_v35  ;;  %v4793_v47 = vld [vmem:[#allocation4 + $0xcc] sm:$0xf]  ;;  %v4564_v48 = vld [vmem:[#allocation4 + $0xd8] sm:$0xf0]  ;;  %1331 = vmatpush.bf16.msrb.mxu2 %v5525_v25  ;;  %v5549_v61 = vor.u32 %v4790_v46, %v4538_v41 }
  0x43   :  { %8268 = vst [vmem:[#allocation58_spill] sm:$0xff] %v5538_v43  ;;  %v4546_v53 = vld [vmem:[#allocation4 + $0xa8] sm:$0xf]  ;;  %v4791_v54 = vld [vmem:[#allocation4 + $0xb4] sm:$0xf0]  ;;  %v5551_v62 = vor.u32 %v4793_v47, %v4564_v48 }
  0x44   :  { %8269 = vst [vmem:[#allocation59_spill] sm:$0xff] %v5542_v52  ;;  %v4784_v58 = vld [vmem:[#allocation4 + $0x84] sm:$0xf]  ;;  %v4524_v59 = vld [vmem:[#allocation4 + $0x90] sm:$0xf0]  ;;  %1318 = vmatpush.bf16.msrb.mxu1 %v5533_v35 }
  0x45   :  { %8270 = vst [vmem:[#allocation60_spill] sm:$0xff] %v5549_v61  ;;  %1344 = vmatpush.bf16.msrb.mxu3 %v5538_v43  ;;  %v4786_v10 = vld [vmem:[#allocation4 + $0x8c] sm:$0xf0]  ;;  %v4789_v18 = vld [vmem:[#allocation4 + $0xac] sm:$0xf] }
  0x46   :  { %8271 = vst [vmem:[#allocation61_spill] sm:$0xff] %v5551_v62  ;;  %1332 = vmatpush.bf16.msrb.mxu2 %v5542_v52  ;;  %v4530_v26 = vld [vmem:[#allocation4 + $0x88] sm:$0xf]  ;;  %v4787_v30 = vld [vmem:[#allocation4 + $0x94] sm:$0xf0] }
  0x47   :  { %v4780_v32 = vld [vmem:[#allocation4 + $0x64] sm:$0xf]  ;;  %v4508_v33 = vld [vmem:[#allocation4 + $0x70] sm:$0xf0]  ;;  %v4506_v47 = vld [vmem:[#allocation4 + $0x60] sm:$0xf]  ;;  %v5567_v48 = vor.u32 %v4787_v30, %v4530_v26 }
  0x48   :  { %1319 = vmatpush.bf16.msrb.mxu1 %v5549_v61  ;;  %v4776_v52 = vld [vmem:[#allocation4 + $0x44] sm:$0xf]  ;;  %v4492_v61 = vld [vmem:[#allocation4 + $0x50] sm:$0xf0]  ;;  %v4778_v26 = vld [vmem:[#allocation4 + $0x4c] sm:$0xf0] }
  0x49   :  { %8276 = vst [vmem:[#allocation66_spill] sm:$0xff] %v5567_v48  ;;  %v4781_v30 = vld [vmem:[#allocation4 + $0x6c] sm:$0xf]  ;;  %v4676_v25 = vld [vmem:[#allocation7 + $0xb8] sm:$0xf0] }
  0x4a   :  { %v4821_v43 = vld [vmem:[#allocation7 + $0xac] sm:$0xf]  ;;  %v4652_v5 = vld [vmem:[#allocation7 + $0x90] sm:$0xf0]  ;;  %v4819_v4 = vld [vmem:[#allocation7 + $0x94] sm:$0xf0] }
  0x4b   :  { %v4642_v45 = vld [vmem:[#allocation7 + $0x68] sm:$0xf]  ;;  %v4815_v29 = vld [vmem:[#allocation7 + $0x74] sm:$0xf0]  ;;  %v4644_v2 = vld [vmem:[#allocation7 + $0x78] sm:$0xf0] }
  0x4c   :  { %v4810_v57 = vld [vmem:[#allocation7 + $0x4c] sm:$0xf0]  ;;  %v4626_v0 = vld [vmem:[#allocation7 + $0x48] sm:$0xf]  ;;  %v4811_v50 = vld [vmem:[#allocation7 + $0x54] sm:$0xf0] }
  0x4d   :  { %v4809_v51 = vld [vmem:[#allocation7 + $0x4c] sm:$0xf]  ;;  %v4628_v42 = vld [vmem:[#allocation7 + $0x58] sm:$0xf0] }
  0xa0   :  { %v166_v6 = vpop.f32.mrf.mxu0 }
  0xa1   :  { %v5469_v11 = vadd.f32 %v4899_v60, %v166_v6  ;;  %v4737_v6 = vld [vmem:[#allocation9 + $0xc] sm:$0xf] }
  0xa2   :  { %v5529_v34 = vor.u32 %v4737_v6, %v4340_v8  ;;  %v4522_v6 = vld [vmem:[#allocation4 + $0x80] sm:$0xf]  ;;  %v5554_v8 = vor.u32 %v4791_v54, %v4546_v53  ;;  %v4782_v53 = vld [vmem:[#allocation4 + $0x6c] sm:$0xf0]  ;;  %v4785_v54 = vld [vmem:[#allocation4 + $0x8c] sm:$0xf] }
  0xa3   :  { %8248 = vst [vmem:[#allocation38_spill] sm:$0xff] %v5469_v11  ;;  %v184_v20 = vrot.slane %v5469_v11, 5  ;;  %v5479_v23 = vrot.slane %v5469_v11, 7  ;;  %v7934_v60 = vrot.slane %v5469_v11, 6  ;;  %v5562_v41 = vor.u32 %v4786_v10, %v4522_v6 }
  0xa4   :  { %8265 = vst [vmem:[#allocation55_spill] sm:$0xff] %v5529_v34  ;;  %1113 = vmatpush.bf16.msrb.mxu0 %v5529_v34  ;;  %1345 = vmatpush.bf16.msrb.mxu3 %v5554_v8  ;;  %v5574_v6 = vor.u32 %v4782_v53, %v4506_v47  ;;  %v4658_v34 = vld [vmem:[#allocation7 + $0x88] sm:$0xf] }
  0xa5   :  { %8251 = vst [vmem:[#allocation41_spill] sm:$0xff] %v5479_v23  ;;  %185 = vrot.lane.b32.xlu1 %v184_v20, %s5283_s2  ;;  %177 = vrot.lane.b32.xlu0 %v5479_v23, %s5284_s23  ;;  %v4580_v20 = vld [vmem:[#allocation4 + $0xf8] sm:$0xf0] }
  0xa6   :  { %v5535_v37 = vor.u32 %v4797_v19, %v4580_v20  ;;  %8272 = vst [vmem:[#allocation62_spill] sm:$0xff] %v5554_v8  ;;  %v4548_v19 = vld [vmem:[#allocation4 + $0xb8] sm:$0xf0]  ;;  %v5557_v20 = vor.u32 %v4784_v58, %v4524_v59  ;;  %v5570_v59 = vor.u32 %v4780_v32, %v4508_v33  ;;  %1320 = vmatpush.bf16.msrb.mxu1 %v5562_v41  ;;  %v4772_v8 = vld [vmem:[#allocation4 + $0x24] sm:$0xf] }
  0xa7   :  { %1114 = vmatmul.bf16.vlgmr.msrb.gmra.mxu0 %v7935_v12  ;;  %8274 = vst [vmem:[#allocation64_spill] sm:$0xff] %v5562_v41  ;;  %v5564_v46 = vor.u32 %v4789_v18, %v4548_v19  ;;  %v4532_v58 = vld [vmem:[#allocation4 + $0x98] sm:$0xf0]  ;;  %v4783_v12 = vld [vmem:[#allocation4 + $0x74] sm:$0xf0]  ;;  %v5582_v33 = vor.u32 %v4776_v52, %v4492_v61 }
  0xa8   :  { %8267 = vst [vmem:[#allocation57_spill] sm:$0xff] %v5535_v37  ;;  %1356 = vmatpush.bf16.msra.mxu0 %v5535_v37  ;;  %1333 = vmatpush.bf16.msrb.mxu2 %v5557_v20  ;;  %v5576_v10 = vor.u32 %v4785_v54, %v4532_v58  ;;  %v4490_v18 = vld [vmem:[#allocation4 + $0x40] sm:$0xf]  ;;  %v4516_v32 = vld [vmem:[#allocation4 + $0x78] sm:$0xf0] }
  0xa9   :  { %8273 = vst [vmem:[#allocation63_spill] sm:$0xff] %v5557_v20  ;;  %1346 = vmatpush.bf16.msrb.mxu3 %v5567_v48  ;;  %v4498_v20 = vld [vmem:[#allocation4 + $0x48] sm:$0xf]  ;;  %v4779_v41 = vld [vmem:[#allocation4 + $0x54] sm:$0xf0]  ;;  %v5586_v47 = vor.u32 %v4778_v26, %v4490_v18  ;;  %v5588_v53 = vor.u32 %v4781_v30, %v4516_v32 }
  0xaa   :  { %8275 = vst [vmem:[#allocation65_spill] sm:$0xff] %v5564_v46  ;;  %1321 = vmatpush.bf16.msrb.mxu1 %v5574_v6  ;;  %v4774_v54 = vld [vmem:[#allocation4 + $0x2c] sm:$0xf0]  ;;  %v4777_v52 = vld [vmem:[#allocation4 + $0x4c] sm:$0xf] }
  0xab   :  { %8277 = vst [vmem:[#allocation67_spill] sm:$0xff] %v5570_v59  ;;  %v4500_v61 = vld [vmem:[#allocation4 + $0x58] sm:$0xf0]  ;;  %v4768_v48 = vld [vmem:[#allocation4 + $0x4] sm:$0xf] }
  0xac   :  { %1357 = vmatpush.bf16.msra.mxu0 %v5551_v62  ;;  %8278 = vst [vmem:[#allocation68_spill] sm:$0xff] %v5574_v6  ;;  %1334 = vmatpush.bf16.msrb.mxu2 %v5570_v59  ;;  %v4482_v59 = vld [vmem:[#allocation4 + $0x28] sm:$0xf]  ;;  %v4775_v6 = vld [vmem:[#allocation4 + $0x34] sm:$0xf0]  ;;  %v5600_v26 = vor.u32 %v4777_v52, %v4500_v61  ;;  %v7963_v61 = vmov 1  }
  0xad   :  { %181 = vrot.lane.b32.xlu0 %v7934_v60, %s5286_s11  ;;  %v4514_v60 = vld [vmem:[#allocation4 + $0x68] sm:$0xf]  ;;  %8279 = vst [vmem:[#allocation69_spill] sm:$0xff] %v5576_v10  ;;  %v4770_v30 = vld [vmem:[#allocation4 + $0xc] sm:$0xf0]  ;;  %4855 = vset.pattern.permute.xlu2 %v7963_v61  ;;  %v7973_v61 = vmov 12  }
  0xae   :  { %v5579_v19 = vor.u32 %v4783_v12, %v4514_v60  ;;  %8281 = vst [vmem:[#allocation71_spill] sm:$0xff] %v5582_v33  ;;  %v4474_v60 = vld [vmem:[#allocation4 + $0x20] sm:$0xf]  ;;  %v5591_v12 = vor.u32 %v4779_v41, %v4498_v20  ;;  %1322 = vmatpush.bf16.msrb.mxu1 %v5586_v47  ;;  %v5603_v41 = vor.u32 %v4775_v6, %v4482_v59 }
  0xaf   :  { %8282 = vst [vmem:[#allocation72_spill] sm:$0xff] %v5586_v47  ;;  %v5598_v18 = vor.u32 %v4774_v54, %v4474_v60  ;;  %v4458_v20 = vld [vmem:[#allocation4] sm:$0xf]  ;;  %v4771_v47 = vld [vmem:[#allocation4 + $0x14] sm:$0xf0] }
  0xb0   :  { %1358 = vmatpush.bf16.msra.mxu0 %v5564_v46  ;;  %8280 = vst [vmem:[#allocation70_spill] sm:$0xff] %v5579_v19  ;;  %v4476_v46 = vld [vmem:[#allocation4 + $0x30] sm:$0xf0]  ;;  %1347 = vmatpush.bf16.msrb.mxu3 %v5579_v19  ;;  %v5610_v60 = vor.u32 %v4770_v30, %v4458_v20  ;;  %v5627_v6 = vld [vmem:[%s7923_s5] sm:$0xf]  ;;  %v7961_v20 = vmov 24  }
  0xb1   :  { %8283 = vst [vmem:[#allocation73_spill] sm:$0xff] %v5588_v53  ;;  %1335 = vmatpush.bf16.msrb.mxu2 %v5582_v33  ;;  %v5594_v58 = vor.u32 %v4772_v8, %v4476_v46  ;;  %v4773_v8 = vld [vmem:[#allocation4 + $0x2c] sm:$0xf]  ;;  %v4484_v46 = vld [vmem:[#allocation4 + $0x38] sm:$0xf0]  ;;  %vm874_vm2 = vcmp.gt.s32.totalorder %v5627_v6, 0 }
  0xb2   :  { %8284 = vst [vmem:[#allocation74_spill] sm:$0xff] %v5591_v12  ;;  %v4466_v33 = vld [vmem:[#allocation4 + $0x8] sm:$0xf]  ;;  %1323 = vmatpush.bf16.msrb.mxu1 %v5598_v18  ;;  %v5612_v54 = vor.u32 %v4773_v8, %v4484_v46  ;;  %vm1678_vm6 = vcmp.gt.s32.totalorder %v5627_v6, 1  ;;  %vm1909_vm7 = vcmp.gt.s32.totalorder %v5627_v6, 2 }
  0xb3   :  { %8285 = vst [vmem:[#allocation75_spill] sm:$0xff] %v5594_v58  ;;  %v5615_v59 = vor.u32 %v4771_v47, %v4466_v33  ;;  %v4468_v33 = vld [vmem:[#allocation4 + $0x18] sm:$0xf0] }
  0xb4   :  { %1359 = vmatpush.bf16.msra.mxu0 %v5576_v10  ;;  %v4460_v10 = vld [vmem:[#allocation4 + $0x10] sm:$0xf0]  ;;  %8286 = vst [vmem:[#allocation76_spill] sm:$0xff] %v5598_v18  ;;  %1348 = vmatpush.bf16.msrb.mxu3 %v5591_v12  ;;  %v4708_v18 = vld [vmem:[#allocation7 + $0xf8] sm:$0xf0] }
  0xb5   :  { %8287 = vst [vmem:[#allocation77_spill] sm:$0xff] %v5600_v26  ;;  %1336 = vmatpush.bf16.msrb.mxu2 %v5594_v58  ;;  %v5606_v32 = vor.u32 %v4768_v48, %v4460_v10  ;;  %v8293_v48 = vmov 0   ;;  %v4769_v10 = vld [vmem:[#allocation4 + $0xc] sm:$0xf]  ;;  %v4692_v19 = vld [vmem:[#allocation7 + $0xd8] sm:$0xf0] }
  0xb6   :  { %8288 = vst [vmem:[#allocation78_spill] sm:$0xff] %v5603_v41  ;;  %1324 = vmatpush.bf16.msrb.mxu1 %v5610_v60  ;;  %v1401_v47 = vsel %vm874_vm2, 1, %v8293_v48  ;;  %v5631_v52 = vor.u32 %v4769_v10, %v4468_v33  ;;  %v4829_v58 = vld [vmem:[#allocation7 + $0xec] sm:$0xf] }
  0xb7   :  { %8289 = vst [vmem:[#allocation79_spill] sm:$0xff] %v5606_v32  ;;  %1403 = vperm.xlu0 %4857, %v1401_v47  }
  0xb8   :  { %1360 = vmatpush.bf16.msra.mxu0 %v5588_v53  ;;  %8290 = vst [vmem:[#allocation80_spill] sm:$0xff] %v5610_v60  ;;  %1349 = vmatpush.bf16.msrb.mxu3 %v5603_v41  ;;  %v4825_v53 = vld [vmem:[#allocation7 + $0xcc] sm:$0xf] }
  0xb9   :  { %8291 = vst [vmem:[#allocation81_spill] sm:$0xff] %v5612_v54  ;;  %1337 = vmatpush.bf16.msrb.mxu2 %v5606_v32  ;;  %1325 = vmatmul.bf16.vlgmr.msrb.gmra.mxu1 %v8293_v48 }
  0xba   :  { %8292 = vst [vmem:[#allocation82_spill] sm:$0xff] %v5615_v59 }
  0xbb   :  { %8294 = vst [vmem:[#allocation83_spill] sm:$0xff] %v5627_v6  ;;  %v4636_v6 = vld [vmem:[#allocation7 + $0x70] sm:$0xf0] }
  0xbc   :  { %1361 = vmatpush.bf16.msra.mxu0 %v5600_v26  ;;  %1338 = vmatmul.bf16.vlgmr.msrb.gmra.mxu2 %v8293_v48  ;;  %8295 = vst [vmem:[#allocation84_spill] sm:$0xff] %v5631_v52  ;;  %v5686_v26 = vor.u32 %v4829_v58, %v4708_v18  ;;  %v4827_v58 = vld [vmem:[#allocation7 + $0xd4] sm:$0xf0] }
  0xbd   :  { %1350 = vmatpush.bf16.msrb.mxu3 %v5615_v59 }
  0xbe   :  { %8305 = vst [vmem:[#allocation92_spill] sm:$0xff] %v5686_v26 }
  0xbf   :  { %4862 = vset.pattern.permute.xlu0 %v7961_v20  ;;  %v7984_v20 = vmov 2  }
  0xc0   :  { %1362 = vmatpush.bf16.msra.mxu0 %v5612_v54  ;;  %1351 = vmatmul.bf16.vlgmr.msrb.gmra.mxu3 %v8293_v48  ;;  %v4830_v54 = vld [vmem:[#allocation7 + $0xec] sm:$0xf0] }
  0xc4   :  { %1363 = vmatpush.bf16.msra.mxu0 %v5631_v52  ;;  %v7967_v52 = vmov 13  }
  0xc7   :  { %1364 = vmatmul.bf16.vlgmr.msra.gmra.mxu0 %v8293_v48 }
  0xc8   :  { %1640 = vmatpush.bf16.msrb.mxu0 %v5686_v26 }
 0x117   :  { %v178_v30 = vpop.permute.xlu0 %177  ;;  %v186_v10 = vpop.permute.xlu1 %185 }
 0x118   :  { %v189_v8 = vsel %vm188_vm3, %v5469_v11, %v178_v30  ;;  %v8296_v30 = vmov 1  }
 0x11f   :  { %v182_v46 = vpop.permute.xlu0 %181 }
 0x120   :  { %v191_v33 = vsel %vm190_vm4, %v189_v8, %v182_v46  ;;  %v7969_v8 = vmov 14   ;;  %v1823_v46 = vsel %vm1678_vm6, 1, %v8293_v48 }
 0x121   :  { %v193_v47 = vsel %vm192_vm5, %v191_v33, %v186_v10  ;;  %v7971_v10 = vmov 25   ;;  %v2054_v33 = vsel %vm1909_vm7, 1, %v8293_v48 }
 0x122   :  { %329 = vperm.xlu0 %4862, %v193_v47   ;;  %226 = vperm.xlu2 %4855, %v193_v47  }
 0x123   :  { %196 = vperm.xlu1 %4854, %v193_v47  }
 0x12a   :  { %382 = vrot.lane.b32.xlu0 %v5479_v23, %s5286_s11  ;;  %4856 = vset.pattern.permute.xlu2 %v7984_v20 }
 0x12b   :  { %4858 = vset.pattern.permute.xlu1 %v7973_v61  ;;  %247 = vperm.xlu2 %4856, %v193_v47   ;;  %v5665_v61 = vpop.f32.mrf.mxu1 }
 0x12c   :  { %280 = vperm.xlu1 %4858, %v193_v47   ;;  %4867 = vset.pattern.permute.xlu0 %v8296_v30  ;;  %8299 = vst [vmem:[#allocation86_spill] sm:$0xff] %v5665_v61  ;;  %v4828_v61 = vld [vmem:[#allocation7 + $0xe4] sm:$0xf] }
 0x133   :  { %4859 = vset.pattern.permute.xlu2 %v7967_v52  ;;  %v7975_v52 = vmov 26  }
 0x134   :  { %4860 = vset.pattern.permute.xlu1 %v7969_v8  ;;  %292 = vperm.xlu2 %4859, %v193_v47   ;;  %v8297_v8 = vrot.slane %v5469_v11, 6 }
 0x135   :  { %304 = vperm.xlu1 %4860, %v193_v47  }
 0x13c   :  { %4861 = vset.pattern.permute.xlu2 %v8293_v48 }
 0x13d   :  { %4863 = vset.pattern.permute.xlu1 %v7971_v10  ;;  %1825 = vperm.xlu2 %4861, %v1823_v46   ;;  %v5663_v46 = vpop.f32.mrf.mxu2 }
 0x13e   :  { %341 = vperm.xlu1 %4863, %v193_v47   ;;  %8298 = vst [vmem:[#allocation85_spill] sm:$0xff] %v5663_v46 }
 0x145   :  { %4864 = vset.pattern.permute.xlu2 %v7975_v52  ;;  %v1091_v10 = vpop.f32.mrf.mxu2  ;;  %v5667_v52 = vpop.f32.mrf.mxu0 }
 0x146   :  { %4865 = vset.pattern.permute.xlu1 %v8293_v48  ;;  %353 = vperm.xlu2 %4864, %v193_v47   ;;  %8300 = vst [vmem:[#allocation87_spill] sm:$0xff] %v5667_v52  ;;  %v5669_v47 = vpop.f32.mrf.mxu3  ;;  %v4698_v10 = vld [vmem:[#allocation7 + $0xe0] sm:$0xf]  ;;  %v4700_v52 = vld [vmem:[#allocation7 + $0xf0] sm:$0xf0] }
 0x147   :  { %2056 = vperm.xlu1 %4865, %v2054_v33   ;;  %8301 = vst [vmem:[#allocation88_spill] sm:$0xff] %v5669_v47  ;;  %v1078_v33 = vpop.f32.mrf.mxu1  ;;  %v5679_v41 = vor.u32 %v4830_v54, %v4698_v10  ;;  %v4706_v47 = vld [vmem:[#allocation7 + $0xe8] sm:$0xf]  ;;  %v4824_v10 = vld [vmem:[#allocation7 + $0xc4] sm:$0xf] }
 0x148   :  { %v4831_v33 = vld [vmem:[#allocation7 + $0xf4] sm:$0xf0] }
 0x149   :  { %8302 = vst [vmem:[#allocation89_spill] sm:$0xff] %v5679_v41  ;;  %1601 = vmatpush.bf16.msra.mxu1 %v5679_v41 }
 0x14d   :  { %v1117_v30 = vpop.f32.mrf.mxu0  ;;  %v5671_v59 = vpop.f32.mrf.mxu2 }
 0x14e   :  { %379 = vrot.lane.b32.xlu2 %v5469_v11, %s5284_s23  ;;  %v1104_v23 = vpop.f32.mrf.mxu3  ;;  %v5681_v30 = vor.u32 %v4828_v61, %v4700_v52  ;;  %v4682_v61 = vld [vmem:[#allocation7 + $0xc0] sm:$0xf] }
 0x14f   :  { %385 = vrot.lane.b32.xlu1 %v8297_v8, %s5283_s2  ;;  %4866 = vset.pattern.permute.xlu2 %v8293_v48  ;;  %v5673_v32 = vpop.f32.mrf.mxu1  ;;  %v5683_v23 = vor.u32 %v4831_v33, %v4706_v47  ;;  %v4826_v47 = vld [vmem:[#allocation7 + $0xcc] sm:$0xf0]  ;;  %v4684_v33 = vld [vmem:[#allocation7 + $0xd0] sm:$0xf0]  ;;  %v4618_v11 = vld [vmem:[#allocation7 + $0x40] sm:$0xf] }
 0x150   :  { %4868 = vset.pattern.permute.xlu1 %v7984_v20  ;;  %8303 = vst [vmem:[#allocation90_spill] sm:$0xff] %v5681_v30  ;;  %1614 = vmatpush.bf16.msra.mxu2 %v5681_v30  ;;  %v5696_v18 = vor.u32 %v4826_v47, %v4682_v61  ;;  %v5698_v41 = vor.u32 %v4824_v10, %v4684_v33  ;;  %v4327_v61 = vld [vmem:[%s7921_s3 + $0x2] ss:$4 sm:$0xf]  ;;  %v4822_v47 = vld [vmem:[#allocation7 + $0xac] sm:$0xf0] }
 0x151   :  { %8304 = vst [vmem:[#allocation91_spill] sm:$0xff] %v5683_v23  ;;  %1627 = vmatpush.bf16.msra.mxu3 %v5683_v23  ;;  %v5702_v30 = vor.u32 %v4825_v53, %v4692_v19  ;;  %v169_v19 = vld [vmem:[%s7921_s3] ss:$4 sm:$0xf]  ;;  %v5730_v35 = vperm.slane %v4327_v61, 1  ;;  %v5732_v37 = vperm.slane %v4327_v61, 2 }
 0x152   :  { %8306 = vst [vmem:[#allocation93_spill] sm:$0xff] %v5696_v18  ;;  %1602 = vmatpush.bf16.msra.mxu1 %v5696_v18  ;;  %v4666_v53 = vld [vmem:[#allocation7 + $0xa0] sm:$0xf]  ;;  %v4820_v10 = vld [vmem:[#allocation7 + $0xa4] sm:$0xf]  ;;  %v5750_v49 = vperm.slane %v169_v19, 2 }
 0x153   :  { %8307 = vst [vmem:[#allocation94_spill] sm:$0xff] %v5698_v41  ;;  %1641 = vmatpush.bf16.msrb.mxu0 %v5702_v30  ;;  %v5720_v33 = vor.u32 %v4822_v47, %v4666_v53  ;;  %v174_v53 = vld [vmem:[%s7922_s4] sm:$0xf]  ;;  %v5741_v47 = vperm.slane %v169_v19, 1  ;;  %v5752_v48 = vperm.slane %v169_v19, 3 }
 0x154   :  { %8309 = vst [vmem:[#allocation96_spill] sm:$0xff] %v5702_v30  ;;  %1615 = vmatpush.bf16.msra.mxu2 %v5698_v41  ;;  %v4823_v41 = vld [vmem:[#allocation7 + $0xb4] sm:$0xf0]  ;;  %v5768_v3 = vperm.slane %v174_v53, 1 }
 0x155   :  { %v1341_v8 = vpop.f32.mrf.mxu2  ;;  %v5675_v60 = vpop.f32.mrf.mxu0  ;;  %8313 = vst [vmem:[#allocation100_spill] sm:$0xff] %v5720_v33 }
 0x156   :  { %v5677_v20 = vpop.f32.mrf.mxu3  ;;  %8318 = vst [vmem:[#allocation105_spill] sm:$0xff] %v5730_v35  ;;  %1603 = vmatpush.bf16.msra.mxu1 %v5720_v33 }
 0x157   :  { %v1328_v46 = vpop.f32.mrf.mxu1  ;;  %8319 = vst [vmem:[#allocation106_spill] sm:$0xff] %v5732_v37 }
 0x158   :  { %v4326_v46 = vld [vmem:[%s7921_s3 + $0x1] ss:$4 sm:$0xf]  ;;  %8321 = vst [vmem:[#allocation108_spill] sm:$0xff] %v5741_v47 }
 0x159   :  { %v5708_v26 = vperm.slane %v4326_v46, 1  ;;  %v5710_v23 = vperm.slane %v4326_v46, 2  ;;  %v5722_v18 = vperm.slane %v4326_v46, 3  ;;  %8324 = vst [vmem:[#allocation111_spill] sm:$0xff] %v5750_v49 }
 0x15a   :  { %8325 = vst [vmem:[#allocation112_spill] sm:$0xff] %v5752_v48 }
 0x15b   :  { %8311 = vst [vmem:[#allocation98_spill] sm:$0xff] %v5708_v26 }
 0x15c   :  { %8312 = vst [vmem:[#allocation99_spill] sm:$0xff] %v5710_v23 }
 0x15d   :  { %v1367_v8 = vpop.f32.mrf.mxu0  ;;  %8314 = vst [vmem:[#allocation101_spill] sm:$0xff] %v5722_v18 }
 0x15e   :  { %v1354_v52 = vpop.f32.mrf.mxu3  ;;  %v4690_v8 = vld [vmem:[#allocation7 + $0xc8] sm:$0xf]  ;;  %8331 = vst [vmem:[#allocation118_spill] sm:$0xff] %v5768_v3 }
 0x15f   :  { %v5700_v12 = vor.u32 %v4827_v58, %v4690_v8  ;;  %v5706_v52 = vperm.slane %v4326_v46, 0  ;;  %v4668_v8 = vld [vmem:[#allocation7 + $0xb0] sm:$0xf0]  ;;  %v4674_v58 = vld [vmem:[#allocation7 + $0xa8] sm:$0xf]  ;;  %v5739_v46 = vperm.slane %v169_v19, 0 }
 0x160   :  { %v5726_v30 = vor.u32 %v4820_v10, %v4668_v8  ;;  %v5728_v62 = vor.u32 %v4823_v41, %v4674_v58  ;;  %v5746_v41 = vor.u32 %v4821_v43, %v4676_v25  ;;  %v4650_v10 = vld [vmem:[#allocation7 + $0x80] sm:$0xf]  ;;  %v4818_v8 = vld [vmem:[#allocation7 + $0x8c] sm:$0xf0]  ;;  %v4816_v58 = vld [vmem:[#allocation7 + $0x84] sm:$0xf] }
 0x161   :  { %8308 = vst [vmem:[#allocation95_spill] sm:$0xff] %v5700_v12  ;;  %1628 = vmatpush.bf16.msra.mxu3 %v5700_v12  ;;  %v5724_v12 = vperm.slane %v4327_v61, 0  ;;  %v5748_v55 = vor.u32 %v4818_v8, %v4650_v10  ;;  %v5755_v33 = vor.u32 %v4816_v58, %v4652_v5  ;;  %v4817_v25 = vld [vmem:[#allocation7 + $0x8c] sm:$0xf]  ;;  %v4660_v43 = vld [vmem:[#allocation7 + $0x98] sm:$0xf0] }
 0x162   :  { %8310 = vst [vmem:[#allocation97_spill] sm:$0xff] %v5706_v52  ;;  %1616 = vmatpush.bf16.msra.mxu2 %v5726_v30  ;;  %1642 = vmatpush.bf16.msrb.mxu0 %v5746_v41  ;;  %v1373_v10 = vrot.slane %v5671_v59, 4  ;;  %v1374_v8 = vrot.slane %v5675_v60, 4  ;;  %v5764_v1 = vor.u32 %v4817_v25, %v4660_v43  ;;  %v5766_v19 = vperm.slane %v174_v53, 0  ;;  %v4634_v25 = vld [vmem:[#allocation7 + $0x60] sm:$0xf] }
 0x163   :  { %8315 = vst [vmem:[#allocation102_spill] sm:$0xff] %v5724_v12  ;;  %1604 = vmatpush.bf16.msra.mxu1 %v5748_v55  ;;  %v5770_v5 = vperm.slane %v174_v53, 2  ;;  %v4812_v43 = vld [vmem:[#allocation7 + $0x64] sm:$0xf] }
 0x164   :  { %8316 = vst [vmem:[#allocation103_spill] sm:$0xff] %v5726_v30  ;;  %v5757_v30 = vor.u32 %v4819_v4, %v4658_v34  ;;  %v5772_v4 = vperm.slane %v174_v53, 3  ;;  %v4814_v53 = vld [vmem:[#allocation7 + $0x6c] sm:$0xf0]  ;;  %v5795_v40 = vsel %vm145_vm0, %v5673_v32, %v1373_v10  ;;  %v5799_v24 = vsel %vm145_vm0, %v5677_v20, %v1374_v8 }
 0x165   :  { %8317 = vst [vmem:[#allocation104_spill] sm:$0xff] %v5728_v62  ;;  %1629 = vmatpush.bf16.msra.mxu3 %v5728_v62  ;;  %v5759_v62 = vperm.slane %v4327_v61, 3  ;;  %v5809_v63 = vor.u32 %v4814_v53, %v4634_v25  ;;  %v5811_v20 = vor.u32 %v4812_v43, %v4636_v6  ;;  %v5813_v8 = vor.u32 %v4815_v29, %v4642_v45  ;;  %v4807_v25 = vld [vmem:[#allocation7 + $0x34] sm:$0xf0] }
 0x166   :  { %8320 = vst [vmem:[#allocation107_spill] sm:$0xff] %v5739_v46  ;;  %1617 = vmatpush.bf16.msra.mxu2 %v5755_v33  ;;  %1643 = vmatpush.bf16.msrb.mxu0 %v5764_v1  ;;  %v5821_v29 = vor.u32 %v4810_v57, %v4618_v11  ;;  %v5831_v57 = vor.u32 %v4809_v51, %v4628_v42  ;;  %v4604_v11 = vld [vmem:[#allocation7 + $0x30] sm:$0xf0] }
 0x167   :  { %8322 = vst [vmem:[#allocation109_spill] sm:$0xff] %v5746_v41  ;;  %1605 = vmatpush.bf16.msra.mxu1 %v5809_v63 }
 0x168   :  { %8323 = vst [vmem:[#allocation110_spill] sm:$0xff] %v5748_v55 }
 0x169   :  { %8326 = vst [vmem:[#allocation113_spill] sm:$0xff] %v5755_v33  ;;  %1630 = vmatpush.bf16.msra.mxu3 %v5757_v30 }
 0x16a   :  { %8327 = vst [vmem:[#allocation114_spill] sm:$0xff] %v5757_v30  ;;  %1618 = vmatpush.bf16.msra.mxu2 %v5811_v20 }
 0x16b   :  { %8328 = vst [vmem:[#allocation115_spill] sm:$0xff] %v5759_v62  ;;  %1606 = vmatpush.bf16.msra.mxu1 %v5821_v29 }
 0x16c   :  { %8329 = vst [vmem:[#allocation116_spill] sm:$0xff] %v5764_v1 }
 0x16d   :  { %8330 = vst [vmem:[#allocation117_spill] sm:$0xff] %v5766_v19  ;;  %1631 = vmatpush.bf16.msra.mxu3 %v5813_v8 }
 0x16e   :  { %8332 = vst [vmem:[#allocation119_spill] sm:$0xff] %v5770_v5 }
 0x16f   :  { %8333 = vst [vmem:[#allocation120_spill] sm:$0xff] %v5772_v4 }
 0x170   :  { %8334 = vst [vmem:[#allocation121_spill] sm:$0xff] %v5809_v63 }
 0x171   :  { %8335 = vst [vmem:[#allocation122_spill] sm:$0xff] %v5811_v20 }
 0x172   :  { %8336 = vst [vmem:[#allocation123_spill] sm:$0xff] %v5813_v8 }
 0x173   :  { %8338 = vst [vmem:[#allocation125_spill] sm:$0xff] %v5821_v29 }
 0x174   :  { %8341 = vst [vmem:[#allocation128_spill] sm:$0xff] %v5831_v57 }
 0x17c   :  { %v5691_v54 = vpop.permute.xlu2 %226 }
 0x17d   :  { %v238_v34 = vmul.f32 %v5706_v52, %v5691_v54  ;;  %v239_v60 = vmul.f32 %v5708_v26, %v5691_v54  ;;  %v240_v59 = vmul.f32 %v5710_v23, %v5691_v54  ;;  %v241_v61 = vmul.f32 %v5722_v18, %v5691_v54 }
 0x185   :  { %v5734_v14 = vpop.permute.xlu2 %247 }
 0x186   :  { %v259_v54 = vmul.f32 %v5724_v12, %v5734_v14  ;;  %v260_v38 = vmul.f32 %v5730_v35, %v5734_v14  ;;  %v262_v32 = vmul.f32 %v5759_v62, %v5734_v14  ;;  %v261_v31 = vmul.f32 %v5732_v37, %v5734_v14  ;;  %v4804_v14 = vld [vmem:[#allocation7 + $0x24] sm:$0xf] }
 0x18e   :  { %v5807_v10 = vpop.permute.xlu2 %292 }
 0x18f   :  { %v295_v45 = vmul.f32 %v5807_v10, %v5706_v52 }
 0x195   :  { %v197_v58 = vpop.permute.xlu1 %196 }
 0x196   :  { %v208_v33 = vmul.f32 %v5739_v46, %v197_v58  ;;  %v209_v30 = vmul.f32 %v5741_v47, %v197_v58  ;;  %v210_v55 = vmul.f32 %v5750_v49, %v197_v58  ;;  %v211_v41 = vmul.f32 %v5752_v48, %v197_v58  ;;  %v4813_v58 = vld [vmem:[#allocation7 + $0x6c] sm:$0xf] }
 0x197   :  { %v5819_v6 = vor.u32 %v4813_v58, %v4644_v2  ;;  %v5829_v2 = vor.u32 %v4811_v50, %v4626_v0  ;;  %v5837_v58 = vor.u32 %v4804_v14, %v4604_v11  ;;  %v4800_v14 = vld [vmem:[#allocation7 + $0x4] sm:$0xf] }
 0x198   :  { %v221_v1 = vadd.f32 %v5766_v19, %v208_v33  ;;  %v222_v7 = vadd.f32 %v5768_v3, %v209_v30  ;;  %v223_v16 = vadd.f32 %v5770_v5, %v210_v55  ;;  %v224_v17 = vadd.f32 %v5772_v4, %v211_v41  ;;  %v4808_v33 = vld [vmem:[#allocation7 + $0x44] sm:$0xf]  ;;  %v4620_v30 = vld [vmem:[#allocation7 + $0x50] sm:$0xf0] }
 0x199   :  { %8337 = vst [vmem:[#allocation124_spill] sm:$0xff] %v5819_v6  ;;  %1644 = vmatpush.bf16.msrb.mxu0 %v5819_v6  ;;  %1632 = vmatpush.bf16.msra.mxu3 %v5829_v2 }
 0x19a   :  { %v242_v55 = vadd.f32 %v238_v34, %v221_v1  ;;  %v243_v56 = vadd.f32 %v239_v60, %v222_v7  ;;  %v244_v41 = vadd.f32 %v240_v59, %v223_v16  ;;  %v245_v44 = vadd.f32 %v241_v61, %v224_v17  ;;  %v4602_v1 = vld [vmem:[#allocation7 + $0x20] sm:$0xf]  ;;  %v4806_v34 = vld [vmem:[#allocation7 + $0x2c] sm:$0xf0]  ;;  %8340 = vst [vmem:[#allocation127_spill] sm:$0xff] %v5829_v2 }
 0x19b   :  { %v5826_v17 = vor.u32 %v4808_v33, %v4620_v30  ;;  %v4610_v61 = vld [vmem:[#allocation7 + $0x28] sm:$0xf]  ;;  %v5835_v43 = vor.u32 %v4806_v34, %v4602_v1  ;;  %8343 = vst [vmem:[#allocation130_spill] sm:$0xff] %v5837_v58  ;;  %v4586_v1 = vld [vmem:[#allocation7] sm:$0xf] }
 0x19c   :  { %v264_v7 = vadd.f32 %v260_v38, %v243_v56  ;;  %v266_v16 = vadd.f32 %v262_v32, %v245_v44  ;;  %v263_v60 = vadd.f32 %v259_v54, %v242_v55  ;;  %v265_v59 = vadd.f32 %v261_v31, %v244_v41  ;;  %v5833_v56 = vpop.permute.xlu0 %1403  ;;  %v4805_v54 = vld [vmem:[#allocation7 + $0x2c] sm:$0xf]  ;;  %v4612_v31 = vld [vmem:[#allocation7 + $0x38] sm:$0xf0]  ;;  %v4802_v34 = vld [vmem:[#allocation7 + $0xc] sm:$0xf0] }
 0x19d   :  { %8339 = vst [vmem:[#allocation126_spill] sm:$0xff] %v5826_v17  ;;  %1619 = vmatpush.bf16.msra.mxu2 %v5826_v17  ;;  %v5848_v30 = vor.u32 %v4807_v25, %v4610_v61  ;;  %1645 = vmatpush.bf16.msrb.mxu0 %v5831_v57  ;;  %v4588_v61 = vld [vmem:[#allocation7 + $0x10] sm:$0xf0]  ;;  %v4594_v25 = vld [vmem:[#allocation7 + $0x8] sm:$0xf]  ;;  %vm1405_vm11 = vcmp.eq.s32.totalorder %v5833_v56, 1 }
 0x19e   :  { %v271_v44 = vrot.slane %v264_v7, 4  ;;  %v272_v38 = vrot.slane %v266_v16, 4  ;;  %v281_v53 = vpop.permute.xlu1 %280  ;;  %8342 = vst [vmem:[#allocation129_spill] sm:$0xff] %v5835_v43  ;;  %v5854_v16 = vor.u32 %v4805_v54, %v4612_v31  ;;  %v5864_v54 = vpop.permute.xlu2 %1825  ;;  %1607 = vmatpush.bf16.msra.mxu1 %v5835_v43  ;;  %vm6132_vm12 = vmpackc.low %vm1405_vm11, %vm1405_vm11  ;;  %v8556_v56 = vld [vmem:[#allocation95_spill] sm:$0xff] }
 0x19f   :  { %v283_v32 = vmul.f32 %v281_v53, %v5739_v46  ;;  %v284_v50 = vmul.f32 %v281_v53, %v5741_v47  ;;  %v285_v42 = vmul.f32 %v281_v53, %v5750_v49  ;;  %v286_v51 = vmul.f32 %v281_v53, %v5752_v48  ;;  %8344 = vst [vmem:[#allocation131_spill] sm:$0xff] %v5848_v30 }
 0x1a0   :  { %v273_v0 = vsel %vm145_vm0, %v263_v60, %v271_v44  ;;  %v274_v33 = vsel %vm145_vm0, %v265_v59, %v272_v38  ;;  %8345 = vst [vmem:[#allocation132_spill] sm:$0xff] %v5854_v16  ;;  %v296_v60 = vmul.f32 %v5807_v10, %v5708_v26  ;;  %v297_v59 = vmul.f32 %v5807_v10, %v5710_v23  ;;  %v4803_v44 = vld [vmem:[#allocation7 + $0x14] sm:$0xf0] }
 0x1a1   :  { %v1379_v55 = vadd.f32 %v5795_v40, %v273_v0  ;;  %v287_v41 = vadd.f32 %v283_v32, %v5766_v19  ;;  %v288_v7 = vadd.f32 %v284_v50, %v5768_v3  ;;  %v289_v11 = vadd.f32 %v285_v42, %v5770_v5  ;;  %8346 = vst [vmem:[#allocation133_spill] sm:$0xff] %v5864_v54  ;;  %v4801_v32 = vld [vmem:[#allocation7 + $0xc] sm:$0xf]  ;;  %v4596_v50 = vld [vmem:[#allocation7 + $0x18] sm:$0xf0] }
 0x1a2   :  { %v290_v40 = vadd.f32 %v286_v51, %v5772_v4  ;;  %v298_v38 = vmul.f32 %v5807_v10, %v5722_v18  ;;  %v1380_v31 = vadd.f32 %v5799_v24, %v274_v33  ;;  %1620 = vmatpush.bf16.msra.mxu2 %v5837_v58  ;;  %1633 = vmatpush.bf16.msra.mxu3 %v5848_v30 }
 0x1a3   :  { %v1381_v53 = vmul.f32 0.5, %v1379_v55  ;;  %v299_v0 = vadd.f32 %v295_v45, %v287_v41  ;;  %v300_v57 = vadd.f32 %v296_v60, %v288_v7  ;;  %v301_v42 = vadd.f32 %v297_v59, %v289_v11  ;;  %1646 = vmatpush.bf16.msrb.mxu0 %v5854_v16  ;;  %v8430_v16 = vld [vmem:[#allocation87_spill] sm:$0xff] }
 0x1a4   :  { %v302_v51 = vadd.f32 %v298_v38, %v290_v40  ;;  %v5871_v10 = vor.u32 %v4802_v34, %v4586_v1  ;;  %v5873_v55 = vor.u32 %v4800_v14, %v4588_v61  ;;  %v5875_v24 = vor.u32 %v4803_v44, %v4594_v25  ;;  %v330_v41 = vpop.permute.xlu0 %329 }
 0x1a5   :  { %4902 = vtanh.f32 %v1381_v53  ;;  %v5877_v33 = vor.u32 %v4801_v32, %v4596_v50  ;;  %v1390_v54 = vrot.slane %v1380_v31, 4  ;;  %v1382_v34 = vmul.f32 0.5, %v1380_v31 }
 0x1a6   :  { %8347 = vst [vmem:[#allocation134_spill] sm:$0xff] %v5871_v10  ;;  %1608 = vmatpush.bf16.msra.mxu1 %v5871_v10  ;;  %1621 = vmatpush.bf16.msra.mxu2 %v5873_v55  ;;  %v332_v44 = vmul.f32 %v330_v41, %v5739_v46  ;;  %v333_v38 = vmul.f32 %v330_v41, %v5741_v47 }
 0x1a7   :  { %8348 = vst [vmem:[#allocation135_spill] sm:$0xff] %v5873_v55  ;;  %v305_v45 = vpop.permute.xlu1 %304  ;;  %1634 = vmatpush.bf16.msra.mxu3 %v5875_v24  ;;  %1647 = vmatpush.bf16.msrb.mxu0 %v5877_v33  ;;  %v334_v53 = vmul.f32 %v330_v41, %v5750_v49  ;;  %4904 = vtanh.f32 %v1390_v54  ;;  %v335_v31 = vmul.f32 %v330_v41, %v5752_v48 }
 0x1a8   :  { %8349 = vst [vmem:[#allocation136_spill] sm:$0xff] %v5875_v24  ;;  %v307_v7 = vmul.f32 %v305_v45, %v5724_v12  ;;  %v308_v60 = vmul.f32 %v305_v45, %v5730_v35  ;;  %v309_v59 = vmul.f32 %v305_v45, %v5732_v37  ;;  %v310_v1 = vmul.f32 %v305_v45, %v5759_v62 }
 0x1a9   :  { %8350 = vst [vmem:[#allocation137_spill] sm:$0xff] %v5877_v33  ;;  %4906 = vtanh.f32 %v1382_v34  ;;  %v336_v45 = vadd.f32 %v332_v44, %v5766_v19  ;;  %v337_v41 = vadd.f32 %v333_v38, %v5768_v3 }
 0x1aa   :  { %v311_v14 = vadd.f32 %v307_v7, %v299_v0  ;;  %v312_v11 = vadd.f32 %v308_v60, %v300_v57  ;;  %v313_v40 = vadd.f32 %v309_v59, %v301_v42  ;;  %v314_v61 = vadd.f32 %v310_v1, %v302_v51  ;;  %1680 = vmatpush.bf16.msrb.mxu1 %v5412_v13  ;;  %v354_v0 = vpop.permute.xlu2 %353 }
 0x1ab   :  { %v4903_v25 = vpop.eup %4902  ;;  %1693 = vmatpush.bf16.msrb.mxu2 %v5410_v9  ;;  %1706 = vmatpush.bf16.msrb.mxu3 %v5418_v21  ;;  %v338_v7 = vadd.f32 %v334_v53, %v5770_v5  ;;  %v339_v60 = vadd.f32 %v335_v31, %v5772_v4  ;;  %v356_v1 = vmul.f32 %v354_v0, %v5724_v12 }
 0x1ac   :  { %v1385_v32 = vmul.f32 0.5, %v4903_v25  ;;  %v319_v57 = vrot.slane %v312_v11, 4  ;;  %1719 = vmatpush.bf16.msra.mxu0 %v5425_v28  ;;  %v320_v50 = vrot.slane %v314_v61, 4  ;;  %v357_v53 = vmul.f32 %v354_v0, %v5730_v35 }
 0x1ad   :  { %v358_v31 = vmul.f32 %v354_v0, %v5732_v37 }
 0x1ae   :  { %v1387_v42 = vadd.f32 0.5, %v1385_v32  ;;  %1681 = vmatpush.bf16.msrb.mxu1 %v5420_v22  ;;  %v5897_v51 = vsel %vm145_vm0, %v311_v14, %v319_v57  ;;  %v5900_v54 = vsel %vm145_vm0, %v313_v40, %v320_v50  ;;  %v4905_v14 = vpop.eup %4904 }
 0x1af   :  { %8351 = vst [vmem:[#allocation138_spill] sm:$0xff] %v5897_v51  ;;  %1694 = vmatpush.bf16.msrb.mxu2 %v5415_v15  ;;  %1707 = vmatpush.bf16.msrb.mxu3 %v5423_v27  ;;  %v8353_v51 = vld [vmem:[#allocation25_spill] sm:$0xff]  ;;  %v359_v15 = vmul.f32 %v354_v0, %v5759_v62 }
 0x1b0   :  { %8352 = vst [vmem:[#allocation139_spill] sm:$0xff] %v5900_v54  ;;  %v1394_v59 = vrot.slane %v1387_v42, 4  ;;  %v342_v34 = vpop.permute.xlu1 %341  ;;  %1720 = vmatpush.bf16.msra.mxu0 %v5434_v39  ;;  %v1397_v38 = vmul.f32 %v4905_v14, %v1387_v42  ;;  %v4907_v39 = vpop.eup %4906  ;;  %v8356_v42 = vld [vmem:[#allocation31_spill] sm:$0xff] }
 0x1b1   :  { %v344_v11 = vmul.f32 %v342_v34, %v5706_v52  ;;  %v345_v40 = vmul.f32 %v342_v34, %v5708_v26  ;;  %v346_v61 = vmul.f32 %v342_v34, %v5710_v23  ;;  %v347_v25 = vmul.f32 %v342_v34, %v5722_v18  ;;  %v8355_v34 = vld [vmem:[#allocation28_spill] sm:$0xff] }
 0x1b2   :  { %v1396_v44 = vmul.f32 0.0, %v1394_v59  ;;  %1682 = vmatpush.bf16.msrb.mxu1 %v5432_v36 }
 0x1b3   :  { %v348_v32 = vadd.f32 %v344_v11, %v336_v45  ;;  %v349_v57 = vadd.f32 %v345_v40, %v337_v41  ;;  %v350_v50 = vadd.f32 %v346_v61, %v338_v7  ;;  %v351_v54 = vadd.f32 %v347_v25, %v339_v60  ;;  %1695 = vmatpush.bf16.msrb.mxu2 %v8353_v51  ;;  %v8357_v45 = vld [vmem:[#allocation30_spill] sm:$0xff]  ;;  %v8358_v11 = vld [vmem:[#allocation29_spill] sm:$0xff]  ;;  %v8359_v40 = vld [vmem:[#allocation32_spill] sm:$0xff] }
 0x1b4   :  { %v5918_v27 = vadd.f32 %v1397_v38, %v1396_v44  ;;  %1708 = vmatpush.bf16.msrb.mxu3 %v8355_v34  ;;  %1721 = vmatpush.bf16.msra.mxu0 %v8356_v42  ;;  %v1386_v7 = vmul.f32 0.5, %v4907_v39  ;;  %v8360_v61 = vld [vmem:[#allocation35_spill] sm:$0xff]  ;;  %v8363_v44 = vld [vmem:[#allocation34_spill] sm:$0xff]  ;;  %v380_v39 = vpop.permute.xlu2 %379 }
 0x1b5   :  { %v360_v59 = vadd.f32 %v356_v1, %v348_v32  ;;  %v361_v14 = vadd.f32 %v357_v53, %v349_v57  ;;  %v362_v22 = vadd.f32 %v358_v31, %v350_v50  ;;  %v363_v41 = vadd.f32 %v359_v15, %v351_v54  ;;  %v8365_v54 = vld [vmem:[#allocation33_spill] sm:$0xff]  ;;  %v8366_v31 = vld [vmem:[#allocation38_spill] sm:$0xff]  ;;  %v8368_v57 = vld [vmem:[#allocation36_spill] sm:$0xff] }
 0x1b6   :  { %8354 = vst [vmem:[#allocation140_spill] sm:$0xff] %v5918_v27  ;;  %4908 = vtanh.f32 %v5918_v27  ;;  %1683 = vmatpush.bf16.msrb.mxu1 %v8357_v45  ;;  %v1388_v15 = vadd.f32 0.5, %v1386_v7  ;;  %v5939_v32 = vrot.slane %v8366_v31, 1  ;;  %v8369_v50 = vld [vmem:[#allocation40_spill] sm:$0xff]  ;;  %v8372_v7 = vld [vmem:[#allocation37_spill] sm:$0xff]  ;;  %v8378_v27 = vld [vmem:[#allocation83_spill] sm:$0xff] }
 0x1b7   :  { %v368_v60 = vrot.slane %v361_v14, 4  ;;  %1696 = vmatpush.bf16.msrb.mxu2 %v8358_v11  ;;  %v369_v0 = vrot.slane %v363_v41, 4  ;;  %v8371_v41 = vld [vmem:[#allocation39_spill] sm:$0xff]  ;;  %vm2140_vm8 = vcmp.gt.s32.totalorder %v8378_v27, 3  ;;  %vm2371_vm9 = vcmp.gt.s32.totalorder %v8378_v27, 4 }
 0x1b8   :  { %1709 = vmatpush.bf16.msrb.mxu3 %v8359_v40  ;;  %1722 = vmatpush.bf16.msra.mxu0 %v8360_v61  ;;  %8367 = vst [vmem:[#allocation38_spill] sm:$0xff] %v5939_v32  ;;  %v8397_v27 = vld [vmem:[#allocation59_spill] sm:$0xff] }
 0x1b9   :  { %v5928_v25 = vpop.permute.xlu1 %2056  ;;  %v5931_v1 = vsel %vm145_vm0, %v360_v59, %v368_v60  ;;  %v5935_v38 = vsel %vm145_vm0, %v362_v22, %v369_v0  ;;  %v388_v59 = vsel %vm188_vm3, %v5939_v32, %v380_v39  ;;  %v383_v60 = vpop.permute.xlu0 %382  ;;  %v8373_v0 = vld [vmem:[#allocation42_spill] sm:$0xff] }
 0x1ba   :  { %8361 = vst [vmem:[#allocation141_spill] sm:$0xff] %v5928_v25  ;;  %1684 = vmatpush.bf16.msrb.mxu1 %v8363_v44  ;;  %v8374_v25 = vld [vmem:[#allocation45_spill] sm:$0xff]  ;;  %v389_v39 = vsel %vm190_vm4, %v388_v59, %v383_v60  ;;  %v8381_v60 = vmov 0  }
 0x1bb   :  { %8362 = vst [vmem:[#allocation142_spill] sm:$0xff] %v5931_v1  ;;  %1697 = vmatpush.bf16.msrb.mxu2 %v8365_v54  ;;  %v8376_v1 = vld [vmem:[#allocation43_spill] sm:$0xff]  ;;  %v8380_v59 = vld [vmem:[#allocation49_spill] sm:$0xff]  ;;  %v8415_v54 = vmov 26  }
 0x1bc   :  { %8364 = vst [vmem:[#allocation143_spill] sm:$0xff] %v5935_v38  ;;  %v4909_v53 = vpop.eup %4908  ;;  %1710 = vmatpush.bf16.msrb.mxu3 %v8368_v57  ;;  %1723 = vmatpush.bf16.msra.mxu0 %v8369_v50  ;;  %v8375_v38 = vld [vmem:[#allocation44_spill] sm:$0xff]  ;;  %v8394_v50 = vld [vmem:[#allocation61_spill] sm:$0xff]  ;;  %v8396_v57 = vmov 13  }
 0x1bd   :  { %v5943_v14 = vmul.f32 %v4909_v53, %v1388_v15  ;;  %v8424_v44 = vld [vmem:[#allocation41_spill] sm:$0xff] }
 0x1be   :  { %1685 = vmatpush.bf16.msrb.mxu1 %v8371_v41  ;;  %v8385_v41 = vld [vmem:[#allocation52_spill] sm:$0xff] }
 0x1bf   :  { %8370 = vst [vmem:[#allocation144_spill] sm:$0xff] %v5943_v14  ;;  %v5950_v22 = vpack.c.bf16 %v5943_v14, %v5943_v14  ;;  %1698 = vmatpush.bf16.msrb.mxu2 %v8372_v7  ;;  %v8377_v14 = vld [vmem:[#allocation46_spill] sm:$0xff]  ;;  %v8382_v7 = vld [vmem:[#allocation47_spill] sm:$0xff] }
 0x1c0   :  { %1711 = vmatpush.bf16.msrb.mxu3 %v8373_v0  ;;  %1724 = vmatpush.bf16.msra.mxu0 %v8374_v25  ;;  %v8379_v25 = vld [vmem:[#allocation50_spill] sm:$0xff]  ;;  %v2285_v0 = vsel %vm2140_vm8, 1, %v8381_v60 }
 0x1c1   :  { %1609 = vmatmul.bf16.vlgmr.msra.gmra.mxu1 %v5950_v22  ;;  %1622 = vmatmul.bf16.vlgmr.msra.gmra.mxu2 %v5950_v22  ;;  %v386_v15 = vpop.permute.xlu1 %385 }
 0x1c2   :  { %1635 = vmatmul.bf16.vlgmr.msra.gmra.mxu3 %v5950_v22  ;;  %1648 = vmatmul.bf16.vlgmr.msrb.gmra.mxu0 %v5950_v22  ;;  %v390_v53 = vsel %vm192_vm5, %v389_v39, %v386_v15  ;;  %v8383_v15 = vld [vmem:[#allocation51_spill] sm:$0xff] }
 0x1c3   :  { %417 = vperm.xlu1 %4868, %v390_v53   ;;  %405 = vperm.xlu0 %4867, %v390_v53   ;;  %v8384_v39 = vld [vmem:[#allocation55_spill] sm:$0xff] }
 0x1c4   :  { %393 = vperm.xlu2 %4866, %v390_v53   ;;  %1686 = vmatpush.bf16.msrb.mxu1 %v8375_v38  ;;  %v8386_v38 = vmov 12  }
 0x1c5   :  { %1699 = vmatpush.bf16.msrb.mxu2 %v8376_v1  ;;  %1712 = vmatpush.bf16.msrb.mxu3 %v8377_v14  ;;  %v8387_v1 = vmov 14   ;;  %v8390_v14 = vld [vmem:[#allocation57_spill] sm:$0xff] }
 0x1c6   :  { %1725 = vmatpush.bf16.msra.mxu0 %v8379_v25  ;;  %v8388_v25 = vld [vmem:[#allocation48_spill] sm:$0xff] }
 0x1c8   :  { %1687 = vmatpush.bf16.msrb.mxu1 %v8380_v59  ;;  %v8389_v59 = vld [vmem:[#allocation53_spill] sm:$0xff] }
 0x1c9   :  { %1700 = vmatpush.bf16.msrb.mxu2 %v8382_v7  ;;  %1713 = vmatpush.bf16.msrb.mxu3 %v8383_v15  ;;  %v8391_v15 = vld [vmem:[#allocation56_spill] sm:$0xff]  ;;  %v8393_v7 = vld [vmem:[#allocation58_spill] sm:$0xff] }
 0x1ca   :  { %1726 = vmatpush.bf16.msra.mxu0 %v8384_v39  ;;  %v8392_v39 = vld [vmem:[#allocation54_spill] sm:$0xff] }
 0x1cb   :  { %4869 = vset.pattern.permute.xlu1 %v8386_v38  ;;  %4871 = vset.pattern.permute.xlu0 %v8387_v1 }
 0x1cc   :  { %1739 = vmatpush.bf16.msra.mxu1 %v8385_v41  ;;  %2287 = vperm.xlu2 %4866, %v2285_v0   ;;  %v2516_v41 = vsel %vm2371_vm9, 1, %v8381_v60  ;;  %v8395_v0 = vld [vmem:[#allocation60_spill] sm:$0xff] }
 0x1cd   :  { %442 = vperm.xlu1 %4869, %v390_v53   ;;  %466 = vperm.xlu0 %4871, %v390_v53  }
 0x1ce   :  { %1752 = vmatpush.bf16.msra.mxu2 %v8388_v25  ;;  %1765 = vmatpush.bf16.msra.mxu3 %v8389_v59  ;;  %v8404_v59 = vld [vmem:[#allocation68_spill] sm:$0xff]  ;;  %v8405_v25 = vmov 24  }
 0x1cf   :  { %1778 = vmatpush.bf16.msrb.mxu0 %v8390_v14  ;;  %v8400_v14 = vld [vmem:[#allocation64_spill] sm:$0xff] }
 0x1d0   :  { %1740 = vmatpush.bf16.msra.mxu1 %v8391_v15  ;;  %v8398_v15 = vld [vmem:[#allocation62_spill] sm:$0xff] }
 0x1d2   :  { %1753 = vmatpush.bf16.msra.mxu2 %v8392_v39  ;;  %1766 = vmatpush.bf16.msra.mxu3 %v8393_v7  ;;  %v8399_v39 = vld [vmem:[#allocation65_spill] sm:$0xff]  ;;  %v8401_v7 = vld [vmem:[#allocation63_spill] sm:$0xff] }
 0x1d3   :  { %1779 = vmatpush.bf16.msrb.mxu0 %v8394_v50  ;;  %v8402_v50 = vld [vmem:[#allocation66_spill] sm:$0xff] }
 0x1d4   :  { %1741 = vmatpush.bf16.msra.mxu1 %v8395_v0  ;;  %4870 = vset.pattern.permute.xlu2 %v8396_v57  ;;  %v8403_v0 = vld [vmem:[#allocation69_spill] sm:$0xff] }
 0x1d5   :  { %4872 = vset.pattern.permute.xlu1 %v8381_v60  ;;  %454 = vperm.xlu2 %4870, %v390_v53  }
 0x1d6   :  { %2518 = vperm.xlu1 %4872, %v2516_v41   ;;  %4876 = vset.pattern.permute.xlu0 %v8381_v60  ;;  %v8406_v41 = vmov 25  }
 0x1d7   :  { %1754 = vmatpush.bf16.msra.mxu2 %v8397_v27  ;;  %1767 = vmatpush.bf16.msra.mxu3 %v8398_v15  ;;  %v8407_v27 = vld [vmem:[#allocation67_spill] sm:$0xff]  ;;  %v8408_v15 = vld [vmem:[#allocation70_spill] sm:$0xff] }
 0x1d8   :  { %1780 = vmatpush.bf16.msrb.mxu0 %v8399_v39  ;;  %1742 = vmatpush.bf16.msra.mxu1 %v8400_v14  ;;  %v8409_v39 = vld [vmem:[#allocation73_spill] sm:$0xff]  ;;  %v8410_v14 = vld [vmem:[#allocation72_spill] sm:$0xff] }
 0x1db   :  { %1755 = vmatpush.bf16.msra.mxu2 %v8401_v7  ;;  %1768 = vmatpush.bf16.msra.mxu3 %v8402_v50  ;;  %v8411_v7 = vld [vmem:[#allocation71_spill] sm:$0xff]  ;;  %v8412_v50 = vld [vmem:[#allocation74_spill] sm:$0xff] }
 0x1dc   :  { %1781 = vmatpush.bf16.msrb.mxu0 %v8403_v0  ;;  %1743 = vmatpush.bf16.msra.mxu1 %v8404_v59  ;;  %v8413_v0 = vld [vmem:[#allocation77_spill] sm:$0xff]  ;;  %v8414_v59 = vld [vmem:[#allocation76_spill] sm:$0xff] }
 0x1dd   :  { %4873 = vset.pattern.permute.xlu2 %v8405_v25 }
 0x1de   :  { %4874 = vset.pattern.permute.xlu1 %v8406_v41  ;;  %491 = vperm.xlu2 %4873, %v390_v53  }
 0x1df   :  { %503 = vperm.xlu1 %4874, %v390_v53   ;;  %1756 = vmatpush.bf16.msra.mxu2 %v8407_v27  ;;  %v8416_v27 = vmov 2  }
 0x1e0   :  { %1769 = vmatpush.bf16.msra.mxu3 %v8408_v15  ;;  %1782 = vmatpush.bf16.msrb.mxu0 %v8409_v39  ;;  %v8417_v15 = vld [vmem:[#allocation75_spill] sm:$0xff]  ;;  %v8418_v39 = vld [vmem:[#allocation78_spill] sm:$0xff] }
 0x1e1   :  { %1744 = vmatpush.bf16.msra.mxu1 %v8410_v14  ;;  %v8419_v14 = vld [vmem:[#allocation81_spill] sm:$0xff] }
 0x1e3   :  { %1757 = vmatpush.bf16.msra.mxu2 %v8411_v7  ;;  %v8420_v7 = vld [vmem:[#allocation80_spill] sm:$0xff] }
 0x1e4   :  { %1770 = vmatpush.bf16.msra.mxu3 %v8412_v50  ;;  %1783 = vmatpush.bf16.msrb.mxu0 %v8413_v0  ;;  %v8421_v50 = vld [vmem:[#allocation79_spill] sm:$0xff]  ;;  %v8422_v0 = vld [vmem:[#allocation82_spill] sm:$0xff] }
 0x1e5   :  { %1745 = vmatpush.bf16.msra.mxu1 %v8414_v59  ;;  %v8423_v59 = vld [vmem:[#allocation84_spill] sm:$0xff] }
 0x1e6   :  { %4875 = vset.pattern.permute.xlu2 %v8415_v54 }
 0x1e7   :  { %541 = vrot.lane.b32.xlu1 %v5939_v32, %s5284_s23  ;;  %515 = vperm.xlu2 %4875, %v390_v53  }
 0x1e8   :  { %4879 = vset.pattern.permute.xlu1 %v8416_v27  ;;  %1758 = vmatpush.bf16.msra.mxu2 %v8417_v15  ;;  %v8429_v27 = vld [vmem:[#allocation86_spill] sm:$0xff] }
 0x1e9   :  { %1771 = vmatpush.bf16.msra.mxu3 %v8418_v39  ;;  %1784 = vmatpush.bf16.msrb.mxu0 %v8419_v14 }
 0x1ea   :  { %1746 = vmatpush.bf16.msra.mxu1 %v8420_v7 }
 0x1ec   :  { %1759 = vmatpush.bf16.msra.mxu2 %v8421_v50 }
 0x1ed   :  { %1772 = vmatpush.bf16.msra.mxu3 %v8422_v0  ;;  %1785 = vmatpush.bf16.msrb.mxu0 %v8423_v59 }
 0x1ef   :  { %547 = vrot.lane.b32.xlu1 %v8424_v44, %s5283_s2  ;;  %544 = vrot.lane.b32.xlu2 %v8366_v31, %s5286_s11  ;;  %v864_v44 = vld [vmem:[%s7928_s10] sm:$0xf] }
 0x1f0   :  { %4877 = vset.pattern.permute.xlu2 %v8381_v60  ;;  %v6030_v59 = vperm.slane %v864_v44, 0  ;;  %v6044_v9 = vperm.slane %v864_v44, 3 }
 0x1f2   :  { %8426 = vst [vmem:[#allocation41_spill] sm:$0xff] %v6030_v59  ;;  %v1119_v54 = vadd.f32 %v8429_v27, %v6030_v59  ;;  %v1122_v30 = vadd.f32 %v8430_v16, %v6044_v9 }
 0x1f3   :  { %8427 = vst [vmem:[#allocation145_spill] sm:$0xff] %v6044_v9 }
 0x21e   :  { %v394_v53 = vpop.permute.xlu2 %393 }
 0x21f   :  { %v396_v14 = vmul.f32 %v394_v53, %v5739_v46  ;;  %v397_v7 = vmul.f32 %v394_v53, %v5741_v47  ;;  %v398_v50 = vmul.f32 %v394_v53, %v5750_v49  ;;  %v399_v0 = vmul.f32 %v394_v53, %v5752_v48 }
 0x221   :  { %v400_v40 = vadd.f32 %v396_v14, %v5766_v19  ;;  %v402_v11 = vadd.f32 %v398_v50, %v5770_v5  ;;  %v403_v45 = vadd.f32 %v399_v0, %v5772_v4 }
 0x226   :  { %v6021_v39 = vpop.permute.xlu2 %2287 }
 0x227   :  { %8425 = vst [vmem:[#allocation83_spill] sm:$0xff] %v6021_v39  ;;  %v401_v39 = vadd.f32 %v397_v7, %v5768_v3 }
 0x22f   :  { %v455_v13 = vpop.permute.xlu2 %454 }
 0x230   :  { %v460_v16 = vmul.f32 %v455_v13, %v5722_v18 }
 0x235   :  { %v418_v15 = vpop.permute.xlu1 %417  ;;  %v406_v61 = vpop.permute.xlu0 %405 }
 0x236   :  { %v408_v42 = vmul.f32 %v406_v61, %v5706_v52  ;;  %v409_v53 = vmul.f32 %v406_v61, %v5708_v26  ;;  %v410_v34 = vmul.f32 %v406_v61, %v5710_v23  ;;  %v411_v51 = vmul.f32 %v406_v61, %v5722_v18 }
 0x237   :  { %v420_v36 = vmul.f32 %v418_v15, %v5724_v12  ;;  %v421_v32 = vmul.f32 %v418_v15, %v5730_v35  ;;  %v422_v14 = vmul.f32 %v418_v15, %v5732_v37  ;;  %v423_v7 = vmul.f32 %v418_v15, %v5759_v62 }
 0x238   :  { %v412_v28 = vadd.f32 %v408_v42, %v400_v40  ;;  %v413_v50 = vadd.f32 %v409_v53, %v401_v39  ;;  %v414_v21 = vadd.f32 %v410_v34, %v402_v11  ;;  %v415_v0 = vadd.f32 %v411_v51, %v403_v45 }
 0x239   :  { %v6046_v61 = vperm.slane %v864_v44, 1  ;;  %v6052_v15 = vperm.slane %v864_v44, 2  ;;  %v457_v34 = vmul.f32 %v455_v13, %v5706_v52  ;;  %v458_v51 = vmul.f32 %v455_v13, %v5708_v26 }
 0x23a   :  { %v424_v33 = vadd.f32 %v420_v36, %v412_v28  ;;  %v425_v24 = vadd.f32 %v421_v32, %v413_v50  ;;  %v426_v55 = vadd.f32 %v422_v14, %v414_v21  ;;  %v427_v10 = vadd.f32 %v423_v7, %v415_v0 }
 0x23b   :  { %8428 = vst [vmem:[#allocation146_spill] sm:$0xff] %v6046_v61  ;;  %v459_v39 = vmul.f32 %v455_v13, %v5710_v23 }
 0x23c   :  { %8431 = vst [vmem:[#allocation86_spill] sm:$0xff] %v6052_v15  ;;  %v432_v50 = vrot.slane %v425_v24, 4  ;;  %v433_v9 = vrot.slane %v427_v10, 4  ;;  %v8433_v24 = vld [vmem:[#allocation88_spill] sm:$0xff] }
 0x23e   :  { %v1610_v42 = vpop.f32.mrf.mxu1 }
 0x23f   :  { %v443_v45 = vpop.permute.xlu1 %442  ;;  %v1653_v28 = vadd.f32 %v1610_v42, %v1119_v54  ;;  %v1649_v36 = vpop.f32.mrf.mxu0 }
 0x240   :  { %v445_v21 = vmul.f32 %v443_v45, %v5739_v46  ;;  %v446_v11 = vmul.f32 %v443_v45, %v5741_v47  ;;  %v447_v40 = vmul.f32 %v443_v45, %v5750_v49  ;;  %v467_v32 = vpop.permute.xlu0 %466  ;;  %v1656_v27 = vadd.f32 %v1649_v36, %v1122_v30  ;;  %v8432_v30 = vld [vmem:[#allocation85_spill] sm:$0xff] }
 0x241   :  { %v448_v44 = vmul.f32 %v443_v45, %v5752_v48  ;;  %v1657_v53 = vmul.f32 0.5, %v1653_v28  ;;  %v470_v42 = vmul.f32 %v467_v32, %v5730_v35  ;;  %v1120_v45 = vadd.f32 %v8432_v30, %v6046_v61 }
 0x242   :  { %v449_v14 = vadd.f32 %v445_v21, %v5766_v19  ;;  %v450_v54 = vadd.f32 %v446_v11, %v5768_v3  ;;  %v451_v7 = vadd.f32 %v447_v40, %v5770_v5  ;;  %v469_v36 = vmul.f32 %v467_v32, %v5724_v12 }
 0x243   :  { %v452_v0 = vadd.f32 %v448_v44, %v5772_v4  ;;  %4910 = vtanh.f32 %v1657_v53  ;;  %v472_v21 = vmul.f32 %v467_v32, %v5759_v62  ;;  %v1121_v40 = vadd.f32 %v8433_v24, %v6052_v15  ;;  %v492_v44 = vpop.permute.xlu2 %491 }
 0x244   :  { %v461_v59 = vadd.f32 %v457_v34, %v449_v14  ;;  %v462_v58 = vadd.f32 %v458_v51, %v450_v54  ;;  %v463_v13 = vadd.f32 %v459_v39, %v451_v7  ;;  %v1623_v11 = vpop.f32.mrf.mxu2  ;;  %4912 = vtanh.f32 %v1656_v27 }
 0x245   :  { %v464_v28 = vadd.f32 %v460_v16, %v452_v0  ;;  %v471_v10 = vmul.f32 %v467_v32, %v5732_v37  ;;  %v1636_v34 = vpop.f32.mrf.mxu3  ;;  %v1654_v14 = vadd.f32 %v1623_v11, %v1120_v45  ;;  %v6077_v16 = vld [vmem:[%s7923_s5] sm:$0xf] }
 0x246   :  { %v474_v53 = vadd.f32 %v470_v42, %v462_v58  ;;  %v473_v51 = vadd.f32 %v469_v36, %v461_v59  ;;  %v1612_v54 = vpop.f32.mrf.mxu1  ;;  %vm2602_vm10 = vcmp.gt.s32.totalorder %v6077_v16, 5  ;;  %v6084_v58 = vsel %vm145_vm0, %v424_v33, %v432_v50 }
 0x247   :  { %v476_v39 = vadd.f32 %v472_v21, %v464_v28  ;;  %v1651_v0 = vpop.f32.mrf.mxu0  ;;  %v2747_v27 = vsel %vm2602_vm10, 1, %v8381_v60  ;;  %8435 = vst [vmem:[#allocation85_spill] sm:$0xff] %v6084_v58  ;;  %v6087_v59 = vsel %vm145_vm0, %v426_v55, %v433_v9  ;;  %v475_v32 = vadd.f32 %v471_v10, %v463_v13 }
 0x248   :  { %v481_v7 = vrot.slane %v474_v53, 4  ;;  %v6080_v30 = vpop.permute.xlu1 %2518  ;;  %8436 = vst [vmem:[#allocation88_spill] sm:$0xff] %v6087_v59  ;;  %v1658_v42 = vmul.f32 0.5, %v1654_v14  ;;  %v1655_v45 = vadd.f32 %v1636_v34, %v1121_v40  ;;  %2749 = vperm.xlu0 %4876, %v2747_v27   ;;  %v494_v33 = vmul.f32 %v492_v44, %v5739_v46 }
 0x249   :  { %8434 = vst [vmem:[#allocation87_spill] sm:$0xff] %v6080_v30  ;;  %v482_v28 = vrot.slane %v476_v39, 4  ;;  %v4911_v36 = vpop.eup %4910  ;;  %v495_v9 = vmul.f32 %v492_v44, %v5741_v47  ;;  %v496_v55 = vmul.f32 %v492_v44, %v5750_v49  ;;  %v497_v50 = vmul.f32 %v492_v44, %v5752_v48 }
 0x24a   :  { %v6090_v21 = vsel %vm145_vm0, %v473_v51, %v481_v7  ;;  %v1663_v11 = vmul.f32 0.5, %v4911_v36  ;;  %4914 = vtanh.f32 %v1658_v42  ;;  %v4913_v53 = vpop.eup %4912  ;;  %v1659_v40 = vmul.f32 0.5, %v1655_v45 }
 0x24b   :  { %8437 = vst [vmem:[#allocation147_spill] sm:$0xff] %v6090_v21  ;;  %v6093_v24 = vsel %vm145_vm0, %v475_v32, %v482_v28  ;;  %v498_v39 = vadd.f32 %v494_v33, %v5766_v19  ;;  %v516_v14 = vpop.permute.xlu2 %515  ;;  %v499_v7 = vadd.f32 %v495_v9, %v5768_v3  ;;  %v500_v0 = vadd.f32 %v496_v55, %v5770_v5 }
 0x24c   :  { %8438 = vst [vmem:[#allocation148_spill] sm:$0xff] %v6093_v24  ;;  %v1666_v13 = vadd.f32 0.5, %v1663_v11  ;;  %v1625_v10 = vpop.f32.mrf.mxu2  ;;  %v501_v27 = vadd.f32 %v497_v50, %v5772_v4  ;;  %4916 = vtanh.f32 %v1659_v40  ;;  %v8439_v42 = vmov 1  }
 0x24d   :  { %v1638_v34 = vpop.f32.mrf.mxu3  ;;  %v518_v11 = vmul.f32 %v516_v14, %v5724_v12  ;;  %v520_v33 = vmul.f32 %v516_v14, %v5732_v37  ;;  %v521_v10 = vmul.f32 %v516_v14, %v5759_v62  ;;  %vm2833_vm13 = vcmp.gt.s32.totalorder %v6077_v16, 6 }
 0x24e   :  { %v1671_v51 = vmul.f32 %v4913_v53, %v1666_v13  ;;  %v519_v53 = vmul.f32 %v516_v14, %v5730_v35  ;;  %vm3064_vm14 = vcmp.gt.s32.totalorder %v6077_v16, 7  ;;  %vm3295_vm15 = vcmp.gt.s32.totalorder %v6077_v16, 8 }
 0x24f   :  { %vm3526_vm1 = vcmp.gt.s32.totalorder %v6077_v16, 9 }
 0x250   :  { %v4915_v54 = vpop.eup %4914  ;;  %4878 = vset.pattern.permute.xlu0 %v8439_v42 }
 0x251   :  { %v504_v32 = vpop.permute.xlu1 %503  ;;  %v1664_v44 = vmul.f32 0.5, %v4915_v54 }
 0x252   :  { %v506_v45 = vmul.f32 %v504_v32, %v5706_v52  ;;  %v507_v28 = vmul.f32 %v504_v32, %v5708_v26  ;;  %v508_v36 = vmul.f32 %v504_v32, %v5710_v23  ;;  %v509_v9 = vmul.f32 %v504_v32, %v5722_v18  ;;  %v4917_v59 = vpop.eup %4916 }
 0x253   :  { %v1667_v55 = vadd.f32 0.5, %v1664_v44 }
 0x254   :  { %v510_v50 = vadd.f32 %v506_v45, %v498_v39  ;;  %v511_v13 = vadd.f32 %v507_v28, %v499_v7  ;;  %v512_v40 = vadd.f32 %v508_v36, %v500_v0  ;;  %v513_v34 = vadd.f32 %v509_v9, %v501_v27  ;;  %v8446_v45 = vld [vmem:[#allocation91_spill] sm:$0xff]  ;;  %v8447_v28 = vld [vmem:[#allocation92_spill] sm:$0xff] }
 0x255   :  { %v1670_v54 = vmul.f32 0.0, %v1667_v55  ;;  %v1665_v7 = vmul.f32 0.5, %v4917_v59  ;;  %v539_v0 = vrot.slane %v8366_v31, 2  ;;  %v2978_v36 = vsel %vm2833_vm13, 1, %v8381_v60  ;;  %v8451_v9 = vld [vmem:[#allocation96_spill] sm:$0xff] }
 0x256   :  { %v522_v30 = vadd.f32 %v518_v11, %v510_v50  ;;  %v523_v24 = vadd.f32 %v519_v53, %v511_v13  ;;  %v524_v21 = vadd.f32 %v520_v33, %v512_v40  ;;  %v525_v58 = vadd.f32 %v521_v10, %v513_v34  ;;  %v8448_v11 = vld [vmem:[#allocation93_spill] sm:$0xff]  ;;  %v8449_v53 = vld [vmem:[#allocation94_spill] sm:$0xff]  ;;  %v8450_v33 = vld [vmem:[#allocation95_spill] sm:$0xff] }
 0x257   :  { %v6112_v15 = vadd.f32 %v1671_v51, %v1670_v54  ;;  %v1668_v51 = vadd.f32 0.5, %v1665_v7  ;;  %v8452_v55 = vld [vmem:[#allocation100_spill] sm:$0xff]  ;;  %v8453_v50 = vld [vmem:[#allocation103_spill] sm:$0xff]  ;;  %v8455_v40 = vld [vmem:[#allocation109_spill] sm:$0xff]  ;;  %v3209_v10 = vsel %vm3064_vm14, 1, %v8381_v60  ;;  %vm4303_vm14 = vcmask 199680  }
 0x258   :  { %v530_v61 = vrot.slane %v523_v24, 4  ;;  %v531_v37 = vrot.slane %v525_v58, 4  ;;  %v545_v24 = vpop.permute.xlu2 %544  ;;  %v8454_v13 = vld [vmem:[#allocation104_spill] sm:$0xff]  ;;  %v8456_v34 = vld [vmem:[#allocation110_spill] sm:$0xff]  ;;  %v8457_v54 = vld [vmem:[#allocation113_spill] sm:$0xff] }
 0x259   :  { %v542_v42 = vpop.permute.xlu1 %541  ;;  %4918 = vtanh.f32 %v6112_v15  ;;  %v8458_v7 = vld [vmem:[#allocation114_spill] sm:$0xff] }
 0x25a   :  { %v6116_v39 = vsel %vm145_vm0, %v522_v30, %v530_v61  ;;  %v6119_v14 = vsel %vm145_vm0, %v524_v21, %v531_v37  ;;  %v550_v27 = vsel %vm188_vm3, %v539_v0, %v542_v42  ;;  %v8444_v21 = vld [vmem:[#allocation89_spill] sm:$0xff]  ;;  %v8445_v42 = vld [vmem:[#allocation90_spill] sm:$0xff] }
 0x25b   :  { %8440 = vst [vmem:[#allocation149_spill] sm:$0xff] %v6116_v39  ;;  %v551_v61 = vsel %vm190_vm4, %v550_v27, %v545_v24  ;;  %v8459_v27 = vld [vmem:[#allocation116_spill] sm:$0xff]  ;;  %v8466_v37 = vld [vmem:[#allocation134_spill] sm:$0xff] }
 0x25c   :  { %8441 = vst [vmem:[#allocation150_spill] sm:$0xff] %v6119_v14  ;;  %v8463_v24 = vld [vmem:[#allocation132_spill] sm:$0xff]  ;;  %v8470_v14 = vld [vmem:[#allocation19_spill] sm:$0xff]  ;;  %v8471_v39 = vld [vmem:[#allocation18_spill] sm:$0xff] }
 0x25f   :  { %v4919_v32 = vpop.eup %4918 }
 0x260   :  { %v6126_v58 = vmul.f32 %v4919_v32, %v1668_v51  ;;  %v8461_v51 = vld [vmem:[#allocation130_spill] sm:$0xff]  ;;  %v8462_v32 = vld [vmem:[#allocation131_spill] sm:$0xff] }
 0x261   :  { %v548_v44 = vpop.permute.xlu1 %547 }
 0x262   :  { %v552_v30 = vsel %vm192_vm5, %v551_v61, %v548_v44  ;;  %v4713_v59 = vpack.c.bf16 %v6126_v58, %v6126_v58  ;;  %v8464_v44 = vmov 26   ;;  %v8465_v61 = vmov 2  }
 0x263   :  { %579 = vperm.xlu1 %4879, %v552_v30   ;;  %567 = vperm.xlu0 %4878, %v552_v30  }
 0x264   :  { %555 = vperm.xlu2 %4877, %v552_v30   ;;  %4714 = vmatmul.msk.bf16.vlgmr.msrb.gmra.mxu1 %vm6132_vm12, %v4713_v59 }
 0x265   :  { %4717 = vmatmul.msk.bf16.vlgmr.msrb.gmra.mxu2 %vm6132_vm12, %v4713_v59  ;;  %4720 = vmatmul.msk.bf16.vlgmr.msrb.gmra.mxu3 %vm6132_vm12, %v4713_v59 }
 0x266   :  { %4723 = vmatmul.msk.bf16.vlgmr.msra.gmra.mxu0 %vm6132_vm12, %v4713_v59  ;;  %1831 = vmatpush.bf16.msrb.mxu1 %v8444_v21  ;;  %v8467_v59 = vld [vmem:[#allocation135_spill] sm:$0xff] }
 0x267   :  { %1844 = vmatpush.bf16.msrb.mxu2 %v8445_v42  ;;  %1857 = vmatpush.bf16.msrb.mxu3 %v8446_v45 }
 0x268   :  { %1870 = vmatpush.bf16.msra.mxu0 %v8447_v28 }
 0x26a   :  { %1832 = vmatpush.bf16.msrb.mxu1 %v8448_v11 }
 0x26b   :  { %4880 = vset.pattern.permute.xlu1 %v8386_v38  ;;  %4882 = vset.pattern.permute.xlu0 %v8387_v1 }
 0x26c   :  { %2980 = vperm.xlu2 %4877, %v2978_v36   ;;  %604 = vperm.xlu1 %4880, %v552_v30   ;;  %v8468_v36 = vld [vmem:[#allocation136_spill] sm:$0xff] }
 0x26d   :  { %628 = vperm.xlu0 %4882, %v552_v30   ;;  %1845 = vmatpush.bf16.msrb.mxu2 %v8449_v53 }
 0x26e   :  { %1858 = vmatpush.bf16.msrb.mxu3 %v8450_v33  ;;  %1871 = vmatpush.bf16.msra.mxu0 %v8451_v9 }
 0x26f   :  { %1833 = vmatpush.bf16.msrb.mxu1 %v8452_v55 }
 0x271   :  { %1846 = vmatpush.bf16.msrb.mxu2 %v8453_v50 }
 0x272   :  { %1859 = vmatpush.bf16.msrb.mxu3 %v8454_v13  ;;  %1872 = vmatpush.bf16.msra.mxu0 %v8455_v40 }
 0x273   :  { %1834 = vmatpush.bf16.msrb.mxu1 %v8456_v34 }
 0x274   :  { %4881 = vset.pattern.permute.xlu2 %v8396_v57  ;;  %4883 = vset.pattern.permute.xlu1 %v8381_v60 }
 0x275   :  { %4726 = vmatmul.msk.bf16.vlgmr.msra.gmra.mxu1 %vm6132_vm12, %v5950_v22  ;;  %4729 = vmatmul.msk.bf16.vlgmr.msra.gmra.mxu2 %vm6132_vm12, %v5950_v22 }
 0x276   :  { %4732 = vmatmul.msk.bf16.vlgmr.msra.gmra.mxu3 %vm6132_vm12, %v5950_v22  ;;  %4735 = vmatmul.msk.bf16.vlgmr.msrb.gmra.mxu0 %vm6132_vm12, %v5950_v22  ;;  %v8460_v22 = vld [vmem:[#allocation128_spill] sm:$0xff] }
 0x277   :  { %616 = vperm.xlu2 %4881, %v552_v30   ;;  %3211 = vperm.xlu1 %4883, %v3209_v10   ;;  %v8469_v10 = vld [vmem:[#allocation137_spill] sm:$0xff] }
 0x278   :  { %4887 = vset.pattern.permute.xlu0 %v8381_v60  ;;  %1847 = vmatpush.bf16.msrb.mxu2 %v8457_v54 }
 0x279   :  { %1860 = vmatpush.bf16.msrb.mxu3 %v8458_v7  ;;  %1873 = vmatpush.bf16.msra.mxu0 %v8459_v27 }
 0x27a   :  { %1835 = vmatpush.bf16.msrb.mxu1 %v5809_v63 }
 0x27c   :  { %1848 = vmatpush.bf16.msrb.mxu2 %v5811_v20 }
 0x27d   :  { %1861 = vmatpush.bf16.msrb.mxu3 %v5813_v8  ;;  %1874 = vmatpush.bf16.msra.mxu0 %v5819_v6  ;;  %v8505_v8 = vld [vmem:[#allocation106_spill] sm:$0xff] }
 0x27e   :  { %1836 = vmatpush.bf16.msrb.mxu1 %v5821_v29 }
 0x27f   :  { %4884 = vset.pattern.permute.xlu2 %v8405_v25  ;;  %4885 = vset.pattern.permute.xlu1 %v8406_v41 }
 0x280   :  { %653 = vperm.xlu2 %4884, %v552_v30   ;;  %665 = vperm.xlu1 %4885, %v552_v30  }
 0x281   :  { %1849 = vmatpush.bf16.msrb.mxu2 %v5826_v17  ;;  %1862 = vmatpush.bf16.msrb.mxu3 %v5829_v2 }
 0x282   :  { %1875 = vmatpush.bf16.msra.mxu0 %v8460_v22  ;;  %1837 = vmatpush.bf16.msrb.mxu1 %v5835_v43 }
 0x285   :  { %1850 = vmatpush.bf16.msrb.mxu2 %v8461_v51  ;;  %1863 = vmatpush.bf16.msrb.mxu3 %v8462_v32  ;;  %v8473_v32 = vld [vmem:[#allocation24_spill] sm:$0xff] }
 0x286   :  { %1876 = vmatpush.bf16.msra.mxu0 %v8463_v24  ;;  %1838 = vmatpush.bf16.msrb.mxu1 %v8466_v37  ;;  %v8472_v24 = vld [vmem:[#allocation21_spill] sm:$0xff]  ;;  %v8487_v37 = vld [vmem:[#allocation34_spill] sm:$0xff] }
 0x288   :  { %4886 = vset.pattern.permute.xlu2 %v8464_v44  ;;  %703 = vrot.lane.b32.xlu1 %v539_v0, %s5284_s23  ;;  %v8474_v0 = vld [vmem:[#allocation22_spill] sm:$0xff] }
 0x289   :  { %677 = vperm.xlu2 %4886, %v552_v30   ;;  %4890 = vset.pattern.permute.xlu1 %v8465_v61  ;;  %v8475_v30 = vld [vmem:[#allocation38_spill] sm:$0xff]  ;;  %v8476_v61 = vld [vmem:[#allocation20_spill] sm:$0xff] }
 0x28a   :  { %1851 = vmatpush.bf16.msrb.mxu2 %v8467_v59  ;;  %1864 = vmatpush.bf16.msrb.mxu3 %v8468_v36  ;;  %v8482_v36 = vld [vmem:[#allocation31_spill] sm:$0xff]  ;;  %v8484_v59 = vld [vmem:[#allocation29_spill] sm:$0xff] }
 0x28b   :  { %1877 = vmatpush.bf16.msra.mxu0 %v8469_v10  ;;  %1911 = vmatpush.bf16.msra.mxu1 %v8470_v14  ;;  %v8477_v10 = vld [vmem:[#allocation23_spill] sm:$0xff] }
 0x28c   :  { %v8478_v14 = vld [vmem:[#allocation27_spill] sm:$0xff] }
 0x28e   :  { %1924 = vmatpush.bf16.msra.mxu2 %v8471_v39  ;;  %1937 = vmatpush.bf16.msra.mxu3 %v8472_v24  ;;  %v8479_v39 = vld [vmem:[#allocation26_spill] sm:$0xff]  ;;  %v8480_v24 = vld [vmem:[#allocation25_spill] sm:$0xff] }
 0x28f   :  { %1950 = vmatpush.bf16.msrb.mxu0 %v8473_v32  ;;  %1912 = vmatpush.bf16.msra.mxu1 %v8474_v0  ;;  %v8481_v32 = vld [vmem:[#allocation28_spill] sm:$0xff]  ;;  %v8483_v0 = vld [vmem:[#allocation30_spill] sm:$0xff] }
 0x290   :  { %709 = vrot.lane.b32.xlu1 %v8366_v31, %s5283_s2  ;;  %s9272_s2 = sld [smem:[#allocation158_spill]] }
 0x291   :  { %706 = vrot.lane.b32.xlu2 %v8475_v30, %s5286_s11  ;;  %v8485_v30 = vld [vmem:[#allocation32_spill] sm:$0xff] }
 0x292   :  { %1925 = vmatpush.bf16.msra.mxu2 %v8476_v61  ;;  %4888 = vset.pattern.permute.xlu2 %v8381_v60  ;;  %v8486_v61 = vld [vmem:[#allocation35_spill] sm:$0xff] }
 0x293   :  { %1938 = vmatpush.bf16.msra.mxu3 %v8477_v10  ;;  %1951 = vmatpush.bf16.msrb.mxu0 %v8478_v14  ;;  %v8488_v10 = vld [vmem:[#allocation33_spill] sm:$0xff]  ;;  %v8489_v14 = vld [vmem:[#allocation36_spill] sm:$0xff] }
 0x294   :  { %1913 = vmatpush.bf16.msra.mxu1 %v8479_v39  ;;  %v8490_v39 = vld [vmem:[#allocation40_spill] sm:$0xff] }
 0x296   :  { %1926 = vmatpush.bf16.msra.mxu2 %v8480_v24  ;;  %v8491_v24 = vld [vmem:[#allocation39_spill] sm:$0xff]  ;;  %s4312_s23 = sshll.u32 %s9272_s2, 4  ;;  %s4313_s23 = int_to_ptr.hbm [resolvable:$true] %s4312_s23 }
 0x297   :  { %1939 = vmatpush.bf16.msra.mxu3 %v8481_v32  ;;  %1952 = vmatpush.bf16.msrb.mxu0 %v8482_v36  ;;  %v8492_v32 = vld [vmem:[#allocation37_spill] sm:$0xff]  ;;  %v8493_v36 = vld [vmem:[#allocation42_spill] sm:$0xff] }
 0x298   :  { %1914 = vmatpush.bf16.msra.mxu1 %v8483_v0  ;;  %v8494_v0 = vld [vmem:[#allocation45_spill] sm:$0xff] }
 0x29a   :  { %1927 = vmatpush.bf16.msra.mxu2 %v8484_v59  ;;  %v8495_v59 = vld [vmem:[#allocation44_spill] sm:$0xff] }
 0x29b   :  { %1940 = vmatpush.bf16.msra.mxu3 %v8485_v30  ;;  %1953 = vmatpush.bf16.msrb.mxu0 %v8486_v61  ;;  %v8496_v30 = vld [vmem:[#allocation43_spill] sm:$0xff]  ;;  %v8497_v61 = vld [vmem:[#allocation46_spill] sm:$0xff] }
 0x29c   :  { %1915 = vmatpush.bf16.msra.mxu1 %v8487_v37  ;;  %v8498_v37 = vld [vmem:[#allocation50_spill] sm:$0xff] }
 0x29e   :  { %1928 = vmatpush.bf16.msra.mxu2 %v8488_v10  ;;  %v8499_v10 = vld [vmem:[#allocation49_spill] sm:$0xff] }
 0x29f   :  { %1941 = vmatpush.bf16.msra.mxu3 %v8489_v14  ;;  %1954 = vmatpush.bf16.msrb.mxu0 %v8490_v39  ;;  %v8500_v14 = vld [vmem:[#allocation47_spill] sm:$0xff] }
 0x2a0   :  { %1916 = vmatpush.bf16.msra.mxu1 %v8491_v24  ;;  %v8501_v39 = vld [vmem:[#allocation51_spill] sm:$0xff] }
 0x2a1   :  { %v8502_v24 = vld [vmem:[#allocation55_spill] sm:$0xff] }
 0x2a2   :  { %1929 = vmatpush.bf16.msra.mxu2 %v8492_v32 }
 0x2a3   :  { %1942 = vmatpush.bf16.msra.mxu3 %v8493_v36  ;;  %1955 = vmatpush.bf16.msrb.mxu0 %v8494_v0 }
 0x2a4   :  { %1917 = vmatpush.bf16.msra.mxu1 %v8495_v59 }
 0x2a6   :  { %1930 = vmatpush.bf16.msra.mxu2 %v8496_v30 }
 0x2a7   :  { %1943 = vmatpush.bf16.msra.mxu3 %v8497_v61  ;;  %1956 = vmatpush.bf16.msrb.mxu0 %v8498_v37 }
 0x2a8   :  { %1918 = vmatpush.bf16.msra.mxu1 %v8499_v10 }
 0x2aa   :  { %1931 = vmatpush.bf16.msra.mxu2 %v8500_v14 }
 0x2ab   :  { %1944 = vmatpush.bf16.msra.mxu3 %v8501_v39  ;;  %1957 = vmatpush.bf16.msrb.mxu0 %v8502_v24 }
 0x2ba   :  { %v6244_v36 = vpop.permute.xlu0 %2749 }
 0x2bb   :  { %8503 = vst [vmem:[#allocation38_spill] sm:$0xff] %v6244_v36 }
 0x2be   :  { %v556_v32 = vpop.permute.xlu2 %555 }
 0x2bf   :  { %v558_v0 = vmul.f32 %v556_v32, %v5739_v46  ;;  %v559_v59 = vmul.f32 %v556_v32, %v5741_v47  ;;  %v560_v30 = vmul.f32 %v556_v32, %v5750_v49  ;;  %v561_v61 = vmul.f32 %v556_v32, %v5752_v48 }
 0x2c1   :  { %v562_v14 = vadd.f32 %v558_v0, %v5766_v19  ;;  %v563_v39 = vadd.f32 %v559_v59, %v5768_v3  ;;  %v564_v24 = vadd.f32 %v560_v30, %v5770_v5  ;;  %v565_v36 = vadd.f32 %v561_v61, %v5772_v4 }
 0x2c6   :  { %v6250_v37 = vpop.permute.xlu2 %2980 }
 0x2c7   :  { %8504 = vst [vmem:[#allocation151_spill] sm:$0xff] %v6250_v37 }
 0x2d1   :  { %v617_v54 = vpop.permute.xlu2 %616 }
 0x2d5   :  { %v580_v10 = vpop.permute.xlu1 %579  ;;  %v568_v51 = vpop.permute.xlu0 %567 }
 0x2d6   :  { %v570_v43 = vmul.f32 %v568_v51, %v5706_v52  ;;  %v571_v22 = vmul.f32 %v568_v51, %v5708_v26  ;;  %v572_v2 = vmul.f32 %v568_v51, %v5710_v23  ;;  %v573_v32 = vmul.f32 %v568_v51, %v5722_v18 }
 0x2d7   :  { %v582_v37 = vmul.f32 %v580_v10, %v5724_v12  ;;  %v583_v17 = vmul.f32 %v580_v10, %v5730_v35  ;;  %v584_v30 = vmul.f32 %v580_v10, %v8505_v8  ;;  %v585_v61 = vmul.f32 %v580_v10, %v5759_v62 }
 0x2d8   :  { %v574_v29 = vadd.f32 %v570_v43, %v562_v14  ;;  %v575_v0 = vadd.f32 %v571_v22, %v563_v39  ;;  %v576_v6 = vadd.f32 %v572_v2, %v564_v24  ;;  %v577_v59 = vadd.f32 %v573_v32, %v565_v36 }
 0x2d9   :  { %v619_v14 = vmul.f32 %v617_v54, %v5706_v52 }
 0x2da   :  { %v586_v20 = vadd.f32 %v582_v37, %v574_v29  ;;  %v587_v63 = vadd.f32 %v583_v17, %v575_v0  ;;  %v588_v27 = vadd.f32 %v584_v30, %v576_v6  ;;  %v589_v7 = vadd.f32 %v585_v61, %v577_v59  ;;  %v654_v55 = vpop.permute.xlu2 %653 }
 0x2db   :  { %v620_v29 = vmul.f32 %v617_v54, %v5708_v26  ;;  %v621_v6 = vmul.f32 %v617_v54, %v5710_v23  ;;  %v622_v17 = vmul.f32 %v617_v54, %v5722_v18 }
 0x2dc   :  { %v594_v34 = vrot.slane %v587_v63, 4  ;;  %v595_v51 = vrot.slane %v589_v7, 4 }
 0x2de   :  { %v605_v40 = vpop.permute.xlu1 %604  ;;  %v6281_v10 = vsel %vm145_vm0, %v586_v20, %v594_v34  ;;  %v6284_v32 = vsel %vm145_vm0, %v588_v27, %v595_v51 }
 0x2df   :  { %v607_v13 = vmul.f32 %v605_v40, %v5739_v46  ;;  %v608_v50 = vmul.f32 %v605_v40, %v5741_v47  ;;  %v609_v43 = vmul.f32 %v605_v40, %v5750_v49  ;;  %v610_v2 = vmul.f32 %v605_v40, %v5752_v48  ;;  %v629_v39 = vpop.permute.xlu0 %628  ;;  %8506 = vst [vmem:[#allocation152_spill] sm:$0xff] %v6281_v10 }
 0x2e0   :  { %v632_v37 = vmul.f32 %v629_v39, %v5730_v35  ;;  %v634_v40 = vmul.f32 %v629_v39, %v5759_v62  ;;  %8507 = vst [vmem:[#allocation153_spill] sm:$0xff] %v6284_v32  ;;  %v631_v30 = vmul.f32 %v629_v39, %v5724_v12  ;;  %v633_v61 = vmul.f32 %v629_v39, %v8505_v8 }
 0x2e1   :  { %v611_v63 = vadd.f32 %v607_v13, %v5766_v19  ;;  %v612_v7 = vadd.f32 %v608_v50, %v5768_v3  ;;  %v613_v22 = vadd.f32 %v609_v43, %v5770_v5  ;;  %v614_v24 = vadd.f32 %v610_v2, %v5772_v4  ;;  %v6278_v36 = vpop.f32.mrf.mxu1 }
 0x2e3   :  { %v623_v54 = vadd.f32 %v619_v14, %v611_v63  ;;  %v624_v13 = vadd.f32 %v620_v29, %v612_v7  ;;  %v625_v0 = vadd.f32 %v621_v6, %v613_v22  ;;  %v626_v50 = vadd.f32 %v622_v17, %v614_v24  ;;  %v6286_v59 = vpop.f32.mrf.mxu0 }
 0x2e4   :  { %v3440_v17 = vsel %vm3295_vm15, 1, %v8381_v60  ;;  %v656_v63 = vmul.f32 %v654_v55, %v5739_v46  ;;  %v657_v7 = vmul.f32 %v654_v55, %v5741_v47  ;;  %v658_v22 = vmul.f32 %v654_v55, %v5750_v49 }
 0x2e5   :  { %v636_v43 = vadd.f32 %v632_v37, %v624_v13  ;;  %v638_v2 = vadd.f32 %v634_v40, %v626_v50  ;;  %v635_v9 = vadd.f32 %v631_v30, %v623_v54  ;;  %v637_v33 = vadd.f32 %v633_v61, %v625_v0  ;;  %3442 = vperm.xlu0 %4887, %v3440_v17   ;;  %v678_v37 = vpop.permute.xlu2 %677 }
 0x2e6   :  { %v659_v24 = vmul.f32 %v654_v55, %v5752_v48  ;;  %v661_v54 = vadd.f32 %v657_v7, %v5768_v3  ;;  %v662_v13 = vadd.f32 %v658_v22, %v5770_v5  ;;  %v8554_v48 = vld [vmem:[#allocation146_spill] sm:$0xff] }
 0x2e7   :  { %v643_v20 = vrot.slane %v636_v43, 4  ;;  %v644_v34 = vrot.slane %v638_v2, 4 }
 0x2e8   :  { %v6290_v10 = vpop.f32.mrf.mxu2  ;;  %v6292_v27 = vpop.f32.mrf.mxu3  ;;  %v663_v0 = vadd.f32 %v659_v24, %v5772_v4  ;;  %v8511_v24 = vmov 1  }
 0x2e9   :  { %v6294_v51 = vpop.permute.xlu1 %3211  ;;  %v6297_v14 = vsel %vm145_vm0, %v635_v9, %v643_v20  ;;  %v6300_v29 = vsel %vm145_vm0, %v637_v33, %v644_v34  ;;  %v1691_v39 = vpop.f32.mrf.mxu1  ;;  %v660_v33 = vadd.f32 %v656_v63, %v5766_v19  ;;  %v680_v34 = vmul.f32 %v678_v37, %v5724_v12 }
 0x2ea   :  { %8508 = vst [vmem:[#allocation154_spill] sm:$0xff] %v6294_v51  ;;  %v681_v39 = vmul.f32 %v678_v37, %v5730_v35  ;;  %v1733_v47 = vadd.f32 %v6290_v10, %v8554_v48 }
 0x2eb   :  { %8509 = vst [vmem:[#allocation155_spill] sm:$0xff] %v6297_v14  ;;  %v1730_v6 = vpop.f32.mrf.mxu0  ;;  %v8555_v14 = vld [vmem:[#allocation86_spill] sm:$0xff] }
 0x2ec   :  { %8510 = vst [vmem:[#allocation156_spill] sm:$0xff] %v6300_v29  ;;  %v682_v6 = vmul.f32 %v678_v37, %v8505_v8  ;;  %v1734_v32 = vadd.f32 %v6292_v27, %v8555_v14  ;;  %v1676_v27 = vsel %vm1405_vm11, %v6112_v15, 0.0 }
 0x2ed   :  { %4889 = vset.pattern.permute.xlu0 %v8511_v24  ;;  %v8516_v24 = vld [vmem:[#allocation140_spill] sm:$0xff] }
 0x2f0   :  { %v1704_v9 = vpop.f32.mrf.mxu2  ;;  %v1717_v40 = vpop.f32.mrf.mxu3 }
 0x2f1   :  { %v683_v9 = vmul.f32 %v678_v37, %v5759_v62  ;;  %v8513_v37 = vld [vmem:[#allocation138_spill] sm:$0xff] }
 0x2f2   :  { %v666_v50 = vpop.permute.xlu1 %665  ;;  %v1748_v30 = vpop.f32.mrf.mxu1 }
 0x2f3   :  { %v668_v61 = vmul.f32 %v666_v50, %v5706_v52  ;;  %v669_v43 = vmul.f32 %v666_v50, %v5708_v26  ;;  %v670_v2 = vmul.f32 %v666_v50, %v5710_v23  ;;  %v671_v55 = vmul.f32 %v666_v50, %v5722_v18  ;;  %v1787_v20 = vpop.f32.mrf.mxu0  ;;  %v8553_v18 = vld [vmem:[#allocation145_spill] sm:$0xff] }
 0x2f4   :  { %v1796_v19 = vrot.slane %v1787_v20, 4  ;;  %v1735_v3 = vadd.f32 %v6286_v59, %v8553_v18 }
 0x2f5   :  { %v672_v17 = vadd.f32 %v668_v61, %v660_v33  ;;  %v673_v63 = vadd.f32 %v669_v43, %v661_v54  ;;  %v674_v7 = vadd.f32 %v670_v2, %v662_v13  ;;  %v675_v22 = vadd.f32 %v671_v55, %v663_v0  ;;  %v8514_v2 = vld [vmem:[#allocation139_spill] sm:$0xff] }
 0x2f7   :  { %v684_v40 = vadd.f32 %v680_v34, %v672_v17  ;;  %v685_v5 = vadd.f32 %v681_v39, %v673_v63  ;;  %v686_v23 = vadd.f32 %v682_v6, %v674_v7  ;;  %v687_v52 = vadd.f32 %v683_v9, %v675_v22 }
 0x2f8   :  { %v1761_v50 = vpop.f32.mrf.mxu2  ;;  %v3671_v63 = vsel %vm3526_vm1, 1, %v8381_v60  ;;  %v1407_v9 = vsel %vm1405_vm11, %v8516_v24, 0.0  ;;  %v8541_v24 = vld [vmem:[#allocation71_spill] sm:$0xff] }
 0x2f9   :  { %v692_v49 = vrot.slane %v685_v5, 4  ;;  %v1795_v12 = vrot.slane %v1761_v50, 4  ;;  %v1774_v4 = vpop.f32.mrf.mxu3  ;;  %v693_v54 = vrot.slane %v687_v52, 4  ;;  %v701_v5 = vrot.slane %v8366_v31, 3  ;;  %v8517_v50 = vld [vmem:[#allocation133_spill] sm:$0xff] }
 0x2fa   :  { %v1798_v35 = vsel %vm145_vm0, %v1774_v4, %v1796_v19  ;;  %v704_v8 = vpop.permute.xlu1 %703  ;;  %v1750_v33 = vpop.f32.mrf.mxu1  ;;  %vm1827_vm2 = vcmp.eq.s32.totalorder %v8517_v50, 1  ;;  %v8558_v50 = vld [vmem:[#allocation100_spill] sm:$0xff] }
 0x2fb   :  { %v1797_v13 = vsel %vm145_vm0, %v1748_v30, %v1795_v12  ;;  %v1789_v0 = vpop.f32.mrf.mxu0  ;;  %v6324_v61 = vsel %vm145_vm0, %v684_v40, %v692_v49  ;;  %v1802_v55 = vadd.f32 %v1798_v35, %v8514_v2  ;;  %v6329_v20 = vsel %vm145_vm0, %v686_v23, %v693_v54  ;;  %v707_v12 = vpop.permute.xlu2 %706 }
 0x2fc   :  { %8512 = vst [vmem:[#allocation157_spill] sm:$0xff] %v6324_v61  ;;  %v1801_v43 = vadd.f32 %v1797_v13, %v8513_v37  ;;  %v712_v19 = vsel %vm188_vm3, %v701_v5, %v704_v8  ;;  %vm3757_vm3 = vcmp.gt.s32.totalorder %v6077_v16, 10  ;;  %v8518_v16 = vld [vmem:[#allocation144_spill] sm:$0xff] }
 0x2fd   :  { %8515 = vst [vmem:[#allocation138_spill] sm:$0xff] %v6329_v20  ;;  %v1812_v52 = vrot.slane %v1802_v55, 4  ;;  %v713_v49 = vsel %vm190_vm4, %v712_v19, %v707_v12  ;;  %v1804_v35 = vmul.f32 0.5, %v1802_v55  ;;  %v1406_v2 = vsel %vm1405_vm11, %v8518_v16, 0.0  ;;  %v8522_v19 = vld [vmem:[#allocation53_spill] sm:$0xff]  ;;  %v8525_v12 = vld [vmem:[#allocation54_spill] sm:$0xff] }
 0x2fe   :  { %v1803_v34 = vmul.f32 0.5, %v1801_v43  ;;  %v8551_v16 = vld [vmem:[#allocation84_spill] sm:$0xff] }
 0x300   :  { %4920 = vtanh.f32 %v1803_v34  ;;  %v1763_v4 = vpop.f32.mrf.mxu2  ;;  %v8521_v34 = vld [vmem:[#allocation48_spill] sm:$0xff] }
 0x301   :  { %v1776_v30 = vpop.f32.mrf.mxu3  ;;  %4922 = vtanh.f32 %v1812_v52  ;;  %v8523_v52 = vld [vmem:[#allocation57_spill] sm:$0xff]  ;;  %v8524_v4 = vld [vmem:[#allocation56_spill] sm:$0xff] }
 0x302   :  { %v710_v39 = vpop.permute.xlu1 %709  ;;  %4924 = vtanh.f32 %v1804_v35  ;;  %v8526_v30 = vld [vmem:[#allocation58_spill] sm:$0xff]  ;;  %v8531_v35 = vld [vmem:[#allocation65_spill] sm:$0xff] }
 0x303   :  { %v714_v6 = vsel %vm192_vm5, %v713_v49, %v710_v39  ;;  %v8527_v39 = vld [vmem:[#allocation61_spill] sm:$0xff]  ;;  %v8530_v49 = vld [vmem:[#allocation62_spill] sm:$0xff] }
 0x304   :  { %741 = vperm.xlu1 %4890, %v714_v6   ;;  %729 = vperm.xlu0 %4889, %v714_v6  }
 0x305   :  { %717 = vperm.xlu2 %4888, %v714_v6  }
 0x306   :  { %v4921_v23 = vpop.eup %4920 }
 0x307   :  { %v1807_v31 = vmul.f32 0.5, %v4921_v23  ;;  %v4923_v17 = vpop.eup %4922  ;;  %v8532_v23 = vld [vmem:[#allocation64_spill] sm:$0xff] }
 0x308   :  { %v4925_v33 = vpop.eup %4924 }
 0x309   :  { %v1809_v8 = vadd.f32 0.5, %v1807_v31  ;;  %v1808_v0 = vmul.f32 0.5, %v4925_v33  ;;  %v8533_v31 = vld [vmem:[#allocation63_spill] sm:$0xff]  ;;  %v8544_v33 = vld [vmem:[#allocation76_spill] sm:$0xff] }
 0x30b   :  { %v1816_v7 = vrot.slane %v1809_v8, 4  ;;  %v1819_v22 = vmul.f32 %v4923_v17, %v1809_v8  ;;  %v8534_v8 = vld [vmem:[#allocation66_spill] sm:$0xff]  ;;  %v8535_v17 = vld [vmem:[#allocation69_spill] sm:$0xff] }
 0x30c   :  { %4891 = vset.pattern.permute.xlu1 %v8386_v38  ;;  %4893 = vset.pattern.permute.xlu0 %v8387_v1  ;;  %v3902_v38 = vsel %vm3757_vm3, 1, %v8381_v60  ;;  %v1810_v1 = vadd.f32 0.5, %v1808_v0  ;;  %v8546_v0 = vld [vmem:[#allocation78_spill] sm:$0xff] }
 0x30d   :  { %v1818_v40 = vmul.f32 %v1816_v7, %v1407_v9  ;;  %3673 = vperm.xlu2 %4888, %v3671_v63   ;;  %766 = vperm.xlu1 %4891, %v714_v6   ;;  %v8536_v63 = vld [vmem:[#allocation68_spill] sm:$0xff]  ;;  %v8539_v7 = vld [vmem:[#allocation73_spill] sm:$0xff] }
 0x30e   :  { %790 = vperm.xlu0 %4893, %v714_v6  }
 0x30f   :  { %v1820_v54 = vadd.f32 %v1819_v22, %v1818_v40  ;;  %v8540_v22 = vld [vmem:[#allocation72_spill] sm:$0xff]  ;;  %v8543_v40 = vld [vmem:[#allocation77_spill] sm:$0xff] }
 0x311   :  { %4926 = vtanh.f32 %v1820_v54  ;;  %v6346_v13 = vsel %vm1827_vm2, %v1820_v54, %v1407_v9  ;;  %v8542_v9 = vld [vmem:[#allocation74_spill] sm:$0xff]  ;;  %v8545_v54 = vld [vmem:[#allocation75_spill] sm:$0xff] }
 0x315   :  { %4892 = vset.pattern.permute.xlu2 %v8396_v57  ;;  %4894 = vset.pattern.permute.xlu1 %v8381_v60  ;;  %v8520_v57 = vld [vmem:[#allocation52_spill] sm:$0xff] }
 0x316   :  { %778 = vperm.xlu2 %4892, %v714_v6   ;;  %3904 = vperm.xlu1 %4894, %v3902_v38   ;;  %v8547_v38 = vld [vmem:[#allocation81_spill] sm:$0xff] }
 0x317   :  { %v4927_v37 = vpop.eup %4926  ;;  %4898 = vset.pattern.permute.xlu0 %v8381_v60 }
 0x318   :  { %v1822_v43 = vmul.f32 %v4927_v37, %v1810_v1  ;;  %v8548_v1 = vld [vmem:[#allocation80_spill] sm:$0xff]  ;;  %v8549_v37 = vld [vmem:[#allocation79_spill] sm:$0xff] }
 0x31a   :  { %v1830_v55 = vpack.c.bf16 %v1822_v43, %v1822_v43  ;;  %v6357_v5 = vsel %vm1827_vm2, %v1822_v43, %v1406_v2  ;;  %v8550_v43 = vld [vmem:[#allocation82_spill] sm:$0xff]  ;;  %v8552_v2 = vld [vmem:[#allocation41_spill] sm:$0xff] }
 0x31b   :  { %8519 = vst [vmem:[#allocation139_spill] sm:$0xff] %v6357_v5 }
 0x31c   :  { %1839 = vmatmul.bf16.vlgmr.msrb.gmra.mxu1 %v1830_v55  ;;  %1852 = vmatmul.bf16.vlgmr.msrb.gmra.mxu2 %v1830_v55 }
 0x31d   :  { %1865 = vmatmul.bf16.vlgmr.msrb.gmra.mxu3 %v1830_v55  ;;  %1878 = vmatmul.bf16.vlgmr.msra.gmra.mxu0 %v1830_v55  ;;  %v1732_v55 = vadd.f32 %v6278_v36, %v8552_v2 }
 0x31e   :  { %4895 = vset.pattern.permute.xlu2 %v8405_v25  ;;  %4896 = vset.pattern.permute.xlu1 %v8406_v41  ;;  %v8528_v25 = vld [vmem:[#allocation60_spill] sm:$0xff]  ;;  %v8529_v41 = vld [vmem:[#allocation59_spill] sm:$0xff] }
 0x31f   :  { %815 = vperm.xlu2 %4895, %v714_v6   ;;  %827 = vperm.xlu1 %4896, %v714_v6  }
 0x320   :  { %1970 = vmatpush.bf16.msrb.mxu1 %v8520_v57  ;;  %1983 = vmatpush.bf16.msrb.mxu2 %v8521_v34 }
 0x321   :  { %1996 = vmatpush.bf16.msrb.mxu3 %v8522_v19  ;;  %2009 = vmatpush.bf16.msra.mxu0 %v8523_v52 }
 0x324   :  { %1971 = vmatpush.bf16.msrb.mxu1 %v8524_v4  ;;  %1984 = vmatpush.bf16.msrb.mxu2 %v8525_v12 }
 0x325   :  { %1997 = vmatpush.bf16.msrb.mxu3 %v8526_v30  ;;  %2010 = vmatpush.bf16.msra.mxu0 %v8527_v39 }
 0x327   :  { %4897 = vset.pattern.permute.xlu2 %v8464_v44  ;;  %v8537_v44 = vld [vmem:[#allocation67_spill] sm:$0xff] }
 0x328   :  { %839 = vperm.xlu2 %4897, %v714_v6   ;;  %1972 = vmatpush.bf16.msrb.mxu1 %v8528_v25  ;;  %v8538_v6 = vld [vmem:[#allocation70_spill] sm:$0xff] }
 0x329   :  { %1985 = vmatpush.bf16.msrb.mxu2 %v8529_v41  ;;  %1998 = vmatpush.bf16.msrb.mxu3 %v8530_v49 }
 0x32a   :  { %2011 = vmatpush.bf16.msra.mxu0 %v8531_v35 }
 0x32c   :  { %1973 = vmatpush.bf16.msrb.mxu1 %v8532_v23 }
 0x32d   :  { %1986 = vmatpush.bf16.msrb.mxu2 %v8533_v31  ;;  %1999 = vmatpush.bf16.msrb.mxu3 %v8534_v8 }
 0x32e   :  { %2012 = vmatpush.bf16.msra.mxu0 %v8535_v17 }
 0x330   :  { %1974 = vmatpush.bf16.msrb.mxu1 %v8536_v63 }
 0x331   :  { %1987 = vmatpush.bf16.msrb.mxu2 %v8537_v44  ;;  %2000 = vmatpush.bf16.msrb.mxu3 %v8538_v6 }
 0x332   :  { %2013 = vmatpush.bf16.msra.mxu0 %v8539_v7 }
 0x334   :  { %1975 = vmatpush.bf16.msrb.mxu1 %v8540_v22 }
 0x335   :  { %1988 = vmatpush.bf16.msrb.mxu2 %v8541_v24  ;;  %2001 = vmatpush.bf16.msrb.mxu3 %v8542_v9 }
 0x336   :  { %2014 = vmatpush.bf16.msra.mxu0 %v8543_v40 }
 0x338   :  { %1976 = vmatpush.bf16.msrb.mxu1 %v8544_v33 }
 0x339   :  { %1989 = vmatpush.bf16.msrb.mxu2 %v8545_v54  ;;  %2002 = vmatpush.bf16.msrb.mxu3 %v8546_v0 }
 0x33a   :  { %2015 = vmatpush.bf16.msra.mxu0 %v8547_v38 }
 0x33c   :  { %1977 = vmatpush.bf16.msrb.mxu1 %v8548_v1 }
 0x33d   :  { %1990 = vmatpush.bf16.msrb.mxu2 %v8549_v37  ;;  %2003 = vmatpush.bf16.msrb.mxu3 %v8550_v43 }
 0x33e   :  { %2016 = vmatpush.bf16.msra.mxu0 %v8551_v16 }
 0x399   :  { %v1840_v60 = vpop.f32.mrf.mxu1 }
 0x39a   :  { %v1883_v62 = vadd.f32 %v1840_v60, %v1732_v55  ;;  %v1879_v46 = vpop.f32.mrf.mxu0 }
 0x39b   :  { %v1886_v20 = vadd.f32 %v1879_v46, %v1735_v3 }
 0x39c   :  { %v1887_v26 = vmul.f32 0.5, %v1883_v62 }
 0x39e   :  { %4928 = vtanh.f32 %v1887_v26 }
 0x39f   :  { %v1853_v61 = vpop.f32.mrf.mxu2  ;;  %4930 = vtanh.f32 %v1886_v20 }
 0x3a0   :  { %v1884_v51 = vadd.f32 %v1853_v61, %v1733_v47  ;;  %v1866_v29 = vpop.f32.mrf.mxu3 }
 0x3a1   :  { %v1842_v16 = vpop.f32.mrf.mxu1  ;;  %v1885_v55 = vadd.f32 %v1866_v29, %v1734_v32 }
 0x3a2   :  { %v1888_v36 = vmul.f32 0.5, %v1884_v51  ;;  %v1881_v60 = vpop.f32.mrf.mxu0 }
 0x3a3   :  { %v1889_v18 = vmul.f32 0.5, %v1885_v55 }
 0x3a4   :  { %v4929_v2 = vpop.eup %4928  ;;  %4932 = vtanh.f32 %v1888_v36 }
 0x3a5   :  { %v1893_v59 = vmul.f32 0.5, %v4929_v2  ;;  %v4931_v10 = vpop.eup %4930  ;;  %4934 = vtanh.f32 %v1889_v18  ;;  %v1675_v18 = vsel %vm1405_vm11, %v6126_v58, 0.0  ;;  %v8557_v58 = vld [vmem:[#allocation96_spill] sm:$0xff] }
 0x3a7   :  { %v1896_v62 = vadd.f32 0.5, %v1893_v59  ;;  %v1855_v43 = vpop.f32.mrf.mxu2 }
 0x3a8   :  { %v1868_v26 = vpop.f32.mrf.mxu3 }
 0x3a9   :  { %v1901_v3 = vmul.f32 %v4931_v10, %v1896_v62  ;;  %v8559_v62 = vld [vmem:[#allocation103_spill] sm:$0xff]  ;;  %v8560_v10 = vld [vmem:[#allocation104_spill] sm:$0xff]  ;;  %v8561_v26 = vld [vmem:[#allocation109_spill] sm:$0xff] }
 0x3aa   :  { %v4933_v46 = vpop.eup %4932 }
 0x3ab   :  { %v1894_v47 = vmul.f32 0.5, %v4933_v46  ;;  %v4935_v20 = vpop.eup %4934  ;;  %v8562_v46 = vld [vmem:[#allocation110_spill] sm:$0xff] }
 0x3ac   :  { %v1895_v43 = vmul.f32 0.5, %v4935_v20  ;;  %v8567_v20 = vld [vmem:[#allocation122_spill] sm:$0xff] }
 0x3ad   :  { %v1897_v61 = vadd.f32 0.5, %v1894_v47  ;;  %v8563_v47 = vld [vmem:[#allocation113_spill] sm:$0xff] }
 0x3ae   :  { %v1898_v16 = vadd.f32 0.5, %v1895_v43  ;;  %v8569_v43 = vld [vmem:[#allocation124_spill] sm:$0xff] }
 0x3af   :  { %v1900_v51 = vmul.f32 %v1897_v61, %v1676_v27  ;;  %v8564_v61 = vld [vmem:[#allocation114_spill] sm:$0xff] }
 0x3b1   :  { %v1902_v32 = vadd.f32 %v1901_v3, %v1900_v51  ;;  %v1969_v3 = vpack.c.bf16 %v6357_v5, %v6357_v5  ;;  %v8566_v51 = vld [vmem:[#allocation121_spill] sm:$0xff] }
 0x3b3   :  { %4936 = vtanh.f32 %v1902_v32  ;;  %v6407_v29 = vsel %vm1827_vm2, %v1902_v32, %v1676_v27  ;;  %v8565_v27 = vld [vmem:[#allocation116_spill] sm:$0xff]  ;;  %v8568_v32 = vld [vmem:[#allocation123_spill] sm:$0xff] }
 0x3b9   :  { %v4937_v2 = vpop.eup %4936 }
 0x3ba   :  { %v1904_v36 = vmul.f32 %v4937_v2, %v1898_v16  ;;  %v8570_v16 = vld [vmem:[#allocation125_spill] sm:$0xff]  ;;  %v8571_v2 = vld [vmem:[#allocation126_spill] sm:$0xff] }
 0x3bc   :  { %v1907_v60 = vsel %vm1827_vm2, %v1904_v36, 0.0  ;;  %v6416_v15 = vsel %vm1827_vm2, %v1904_v36, %v1675_v18  ;;  %v8572_v36 = vld [vmem:[#allocation127_spill] sm:$0xff] }
 0x3bd   :  { %v6418_v55 = vadd.f32 %v1907_v60, %v1675_v18  ;;  %v1910_v59 = vpack.c.bf16 %v6416_v15, %v6416_v15  ;;  %v8573_v18 = vld [vmem:[#allocation128_spill] sm:$0xff]  ;;  %v8574_v60 = vld [vmem:[#allocation129_spill] sm:$0xff] }
 0x3bf   :  { %1919 = vmatmul.bf16.vlgmr.msra.gmra.mxu1 %v1910_v59  ;;  %1932 = vmatmul.bf16.vlgmr.msra.gmra.mxu2 %v1910_v59 }
 0x3c0   :  { %1945 = vmatmul.bf16.vlgmr.msra.gmra.mxu3 %v1910_v59  ;;  %1958 = vmatmul.bf16.vlgmr.msrb.gmra.mxu0 %v1910_v59  ;;  %v8575_v59 = vld [vmem:[#allocation130_spill] sm:$0xff] }
 0x3c1   :  { %2062 = vmatpush.bf16.msra.mxu1 %v8444_v21  ;;  %2075 = vmatpush.bf16.msra.mxu2 %v8445_v42 }
 0x3c2   :  { %2088 = vmatpush.bf16.msra.mxu3 %v8446_v45  ;;  %2101 = vmatpush.bf16.msrb.mxu0 %v8447_v28 }
 0x3c5   :  { %2063 = vmatpush.bf16.msra.mxu1 %v8448_v11  ;;  %2076 = vmatpush.bf16.msra.mxu2 %v8449_v53 }
 0x3c6   :  { %2089 = vmatpush.bf16.msra.mxu3 %v8556_v56  ;;  %2102 = vmatpush.bf16.msrb.mxu0 %v8557_v58  ;;  %v8615_v58 = vld [vmem:[#allocation143_spill] sm:$0xff] }
 0x3c9   :  { %2064 = vmatpush.bf16.msra.mxu1 %v8558_v50  ;;  %2077 = vmatpush.bf16.msra.mxu2 %v8559_v62  ;;  %v8614_v62 = vld [vmem:[#allocation142_spill] sm:$0xff] }
 0x3ca   :  { %2090 = vmatpush.bf16.msra.mxu3 %v8560_v10  ;;  %2103 = vmatpush.bf16.msrb.mxu0 %v8561_v26 }
 0x3cd   :  { %2065 = vmatpush.bf16.msra.mxu1 %v8562_v46  ;;  %2078 = vmatpush.bf16.msra.mxu2 %v8563_v47 }
 0x3ce   :  { %2091 = vmatpush.bf16.msra.mxu3 %v8564_v61  ;;  %2104 = vmatpush.bf16.msrb.mxu0 %v8565_v27 }
 0x3cf   :  { %1978 = vmatmul.bf16.vlgmr.msrb.gmra.mxu1 %v1969_v3  ;;  %1991 = vmatmul.bf16.vlgmr.msrb.gmra.mxu2 %v1969_v3 }
 0x3d0   :  { %2004 = vmatmul.bf16.vlgmr.msrb.gmra.mxu3 %v1969_v3  ;;  %2017 = vmatmul.bf16.vlgmr.msra.gmra.mxu0 %v1969_v3  ;;  %v8576_v3 = vld [vmem:[#allocation131_spill] sm:$0xff] }
 0x3d1   :  { %2066 = vmatpush.bf16.msra.mxu1 %v8566_v51  ;;  %2079 = vmatpush.bf16.msra.mxu2 %v8567_v20  ;;  %v8577_v51 = vld [vmem:[#allocation132_spill] sm:$0xff]  ;;  %v8578_v20 = vld [vmem:[#allocation134_spill] sm:$0xff] }
 0x3d2   :  { %2092 = vmatpush.bf16.msra.mxu3 %v8568_v32  ;;  %2105 = vmatpush.bf16.msrb.mxu0 %v8569_v43  ;;  %v8579_v32 = vld [vmem:[#allocation135_spill] sm:$0xff]  ;;  %v8580_v43 = vld [vmem:[#allocation136_spill] sm:$0xff] }
 0x3d5   :  { %2067 = vmatpush.bf16.msra.mxu1 %v8570_v16  ;;  %2080 = vmatpush.bf16.msra.mxu2 %v8571_v2  ;;  %v8581_v16 = vld [vmem:[#allocation137_spill] sm:$0xff]  ;;  %v8582_v2 = vld [vmem:[#allocation19_spill] sm:$0xff] }
 0x3d6   :  { %2093 = vmatpush.bf16.msra.mxu3 %v8572_v36  ;;  %2106 = vmatpush.bf16.msrb.mxu0 %v8573_v18  ;;  %v8583_v36 = vld [vmem:[#allocation18_spill] sm:$0xff]  ;;  %v8584_v18 = vld [vmem:[#allocation21_spill] sm:$0xff] }
 0x3d9   :  { %2068 = vmatpush.bf16.msra.mxu1 %v8574_v60  ;;  %2081 = vmatpush.bf16.msra.mxu2 %v8575_v59  ;;  %v8585_v60 = vld [vmem:[#allocation24_spill] sm:$0xff]  ;;  %v8586_v59 = vld [vmem:[#allocation22_spill] sm:$0xff] }
 0x3da   :  { %2094 = vmatpush.bf16.msra.mxu3 %v8576_v3  ;;  %2107 = vmatpush.bf16.msrb.mxu0 %v8577_v51  ;;  %v8587_v3 = vld [vmem:[#allocation20_spill] sm:$0xff]  ;;  %v8588_v51 = vld [vmem:[#allocation23_spill] sm:$0xff] }
 0x3dd   :  { %2069 = vmatpush.bf16.msra.mxu1 %v8578_v20  ;;  %2082 = vmatpush.bf16.msra.mxu2 %v8579_v32  ;;  %v8589_v20 = vld [vmem:[#allocation27_spill] sm:$0xff]  ;;  %v8590_v32 = vld [vmem:[#allocation26_spill] sm:$0xff] }
 0x3de   :  { %2095 = vmatpush.bf16.msra.mxu3 %v8580_v43  ;;  %2108 = vmatpush.bf16.msrb.mxu0 %v8581_v16  ;;  %v8591_v43 = vld [vmem:[#allocation25_spill] sm:$0xff]  ;;  %v8592_v16 = vld [vmem:[#allocation28_spill] sm:$0xff] }
 0x3e1   :  { %2142 = vmatpush.bf16.msrb.mxu1 %v8582_v2  ;;  %2155 = vmatpush.bf16.msrb.mxu2 %v8583_v36  ;;  %v8593_v2 = vld [vmem:[#allocation31_spill] sm:$0xff]  ;;  %v8594_v36 = vld [vmem:[#allocation30_spill] sm:$0xff] }
 0x3e2   :  { %2168 = vmatpush.bf16.msrb.mxu3 %v8584_v18  ;;  %2181 = vmatpush.bf16.msra.mxu0 %v8585_v60  ;;  %v8595_v18 = vld [vmem:[#allocation29_spill] sm:$0xff]  ;;  %v8596_v60 = vld [vmem:[#allocation32_spill] sm:$0xff] }
 0x3e5   :  { %2143 = vmatpush.bf16.msrb.mxu1 %v8586_v59  ;;  %2156 = vmatpush.bf16.msrb.mxu2 %v8587_v3  ;;  %v8597_v59 = vld [vmem:[#allocation35_spill] sm:$0xff]  ;;  %v8598_v3 = vld [vmem:[#allocation34_spill] sm:$0xff] }
 0x3e6   :  { %2169 = vmatpush.bf16.msrb.mxu3 %v8588_v51  ;;  %2182 = vmatpush.bf16.msra.mxu0 %v8589_v20  ;;  %v8599_v51 = vld [vmem:[#allocation33_spill] sm:$0xff]  ;;  %v8600_v20 = vld [vmem:[#allocation36_spill] sm:$0xff] }
 0x3e9   :  { %2144 = vmatpush.bf16.msrb.mxu1 %v8590_v32  ;;  %2157 = vmatpush.bf16.msrb.mxu2 %v8591_v43  ;;  %v8601_v32 = vld [vmem:[#allocation40_spill] sm:$0xff]  ;;  %v8602_v43 = vld [vmem:[#allocation39_spill] sm:$0xff] }
 0x3ea   :  { %2170 = vmatpush.bf16.msrb.mxu3 %v8592_v16  ;;  %2183 = vmatpush.bf16.msra.mxu0 %v8593_v2  ;;  %v8603_v16 = vld [vmem:[#allocation37_spill] sm:$0xff]  ;;  %v8604_v2 = vld [vmem:[#allocation42_spill] sm:$0xff] }
 0x3ed   :  { %2145 = vmatpush.bf16.msrb.mxu1 %v8594_v36  ;;  %2158 = vmatpush.bf16.msrb.mxu2 %v8595_v18  ;;  %v8605_v36 = vld [vmem:[#allocation45_spill] sm:$0xff]  ;;  %v8606_v18 = vld [vmem:[#allocation44_spill] sm:$0xff] }
 0x3ee   :  { %2171 = vmatpush.bf16.msrb.mxu3 %v8596_v60  ;;  %2184 = vmatpush.bf16.msra.mxu0 %v8597_v59  ;;  %v8607_v60 = vld [vmem:[#allocation43_spill] sm:$0xff]  ;;  %v8608_v59 = vld [vmem:[#allocation46_spill] sm:$0xff] }
 0x3f1   :  { %2146 = vmatpush.bf16.msrb.mxu1 %v8598_v3  ;;  %2159 = vmatpush.bf16.msrb.mxu2 %v8599_v51  ;;  %v8609_v3 = vld [vmem:[#allocation50_spill] sm:$0xff]  ;;  %v8610_v51 = vld [vmem:[#allocation49_spill] sm:$0xff] }
 0x3f2   :  { %2172 = vmatpush.bf16.msrb.mxu3 %v8600_v20  ;;  %2185 = vmatpush.bf16.msra.mxu0 %v8601_v32  ;;  %v8611_v20 = vld [vmem:[#allocation47_spill] sm:$0xff] }
 0x3f3   :  { %v8612_v32 = vld [vmem:[#allocation51_spill] sm:$0xff] }
 0x3f5   :  { %2147 = vmatpush.bf16.msrb.mxu1 %v8602_v43  ;;  %2160 = vmatpush.bf16.msrb.mxu2 %v8603_v16  ;;  %v8613_v43 = vld [vmem:[#allocation55_spill] sm:$0xff] }
 0x3f6   :  { %2173 = vmatpush.bf16.msrb.mxu3 %v8604_v2  ;;  %2186 = vmatpush.bf16.msra.mxu0 %v8605_v36 }
 0x3f9   :  { %2148 = vmatpush.bf16.msrb.mxu1 %v8606_v18  ;;  %2161 = vmatpush.bf16.msrb.mxu2 %v8607_v60 }
 0x3fa   :  { %2174 = vmatpush.bf16.msrb.mxu3 %v8608_v59  ;;  %2187 = vmatpush.bf16.msra.mxu0 %v8609_v3 }
 0x3fd   :  { %2149 = vmatpush.bf16.msrb.mxu1 %v8610_v51  ;;  %2162 = vmatpush.bf16.msrb.mxu2 %v8611_v20 }
 0x3fe   :  { %2175 = vmatpush.bf16.msrb.mxu3 %v8612_v32  ;;  %2188 = vmatpush.bf16.msra.mxu0 %v8613_v43 }
 0x43c   :  { %v6488_v16 = vpop.f32.mrf.mxu1 }
 0x43d   :  { %v6490_v2 = vpop.f32.mrf.mxu0 }
 0x442   :  { %v6492_v36 = vpop.f32.mrf.mxu2 }
 0x443   :  { %v6494_v18 = vpop.f32.mrf.mxu3 }
 0x444   :  { %v1922_v60 = vpop.f32.mrf.mxu1 }
 0x445   :  { %v1961_v59 = vpop.f32.mrf.mxu0 }
 0x44a   :  { %v1935_v27 = vpop.f32.mrf.mxu2 }
 0x44b   :  { %v1948_v3 = vpop.f32.mrf.mxu3 }
 0x44c   :  { %v1979_v61 = vpop.f32.mrf.mxu1 }
 0x44d   :  { %v2018_v51 = vpop.f32.mrf.mxu0 }
 0x44e   :  { %v2027_v47 = vrot.slane %v2018_v51, 4 }
 0x452   :  { %v1992_v20 = vpop.f32.mrf.mxu2 }
 0x453   :  { %v2026_v46 = vrot.slane %v1992_v20, 4  ;;  %v2005_v32 = vpop.f32.mrf.mxu3 }
 0x454   :  { %v2029_v43 = vsel %vm145_vm0, %v2005_v32, %v2027_v47  ;;  %v1981_v26 = vpop.f32.mrf.mxu1 }
 0x455   :  { %v2028_v10 = vsel %vm145_vm0, %v1979_v61, %v2026_v46  ;;  %v2020_v5 = vpop.f32.mrf.mxu0  ;;  %v2033_v56 = vadd.f32 %v2029_v43, %v8615_v58  ;;  %v8616_v46 = vld [vmem:[#allocation141_spill] sm:$0xff]  ;;  %v8618_v43 = vld [vmem:[#allocation84_spill] sm:$0xff] }
 0x456   :  { %v2032_v50 = vadd.f32 %v2028_v10, %v8614_v62  ;;  %vm2058_vm4 = vcmp.eq.s32.totalorder %v8616_v46, 1  ;;  %v8635_v46 = vld [vmem:[#allocation121_spill] sm:$0xff] }
 0x457   :  { %v2043_v27 = vrot.slane %v2033_v56, 4  ;;  %v2035_v51 = vmul.f32 0.5, %v2033_v56 }
 0x458   :  { %v2034_v60 = vmul.f32 0.5, %v2032_v50 }
 0x45a   :  { %4938 = vtanh.f32 %v2034_v60  ;;  %v1994_v59 = vpop.f32.mrf.mxu2  ;;  %v8619_v60 = vld [vmem:[#allocation41_spill] sm:$0xff] }
 0x45b   :  { %v2007_v3 = vpop.f32.mrf.mxu3  ;;  %4940 = vtanh.f32 %v2043_v27  ;;  %v1963_v27 = vadd.f32 %v6488_v16, %v8619_v60 }
 0x45c   :  { %4942 = vtanh.f32 %v2035_v51 }
 0x460   :  { %v4939_v53 = vpop.eup %4938 }
 0x461   :  { %v2038_v20 = vmul.f32 0.5, %v4939_v53  ;;  %v4941_v47 = vpop.eup %4940 }
 0x462   :  { %v4943_v62 = vpop.eup %4942 }
 0x463   :  { %v2040_v11 = vadd.f32 0.5, %v2038_v20  ;;  %v2039_v56 = vmul.f32 0.5, %v4943_v62  ;;  %v8620_v20 = vld [vmem:[#allocation145_spill] sm:$0xff] }
 0x465   :  { %v2047_v26 = vrot.slane %v2040_v11, 4  ;;  %v2050_v32 = vmul.f32 %v4941_v47, %v2040_v11  ;;  %v2041_v10 = vadd.f32 0.5, %v2039_v56  ;;  %v1966_v47 = vadd.f32 %v6490_v2, %v8620_v20 }
 0x467   :  { %v2049_v5 = vmul.f32 %v2047_v26, %v6346_v13 }
 0x469   :  { %v2051_v58 = vadd.f32 %v2050_v32, %v2049_v5  ;;  %v1964_v32 = vadd.f32 %v6492_v36, %v8554_v48 }
 0x46b   :  { %4944 = vtanh.f32 %v2051_v58  ;;  %v6505_v50 = vsel %vm2058_vm4, %v2051_v58, %v6346_v13  ;;  %v8617_v13 = vld [vmem:[#allocation82_spill] sm:$0xff] }
 0x471   :  { %v4945_v53 = vpop.eup %4944 }
 0x472   :  { %v6507_v61 = vmul.f32 %v4945_v53, %v2041_v10  ;;  %v1965_v10 = vadd.f32 %v6494_v18, %v8555_v14 }
 0x474   :  { %v2061_v11 = vpack.c.bf16 %v6507_v61, %v6507_v61 }
 0x476   :  { %2070 = vmatmul.bf16.vlgmr.msra.gmra.mxu1 %v2061_v11  ;;  %2083 = vmatmul.bf16.vlgmr.msra.gmra.mxu2 %v2061_v11 }
 0x477   :  { %2096 = vmatmul.bf16.vlgmr.msra.gmra.mxu3 %v2061_v11  ;;  %2109 = vmatmul.bf16.vlgmr.msrb.gmra.mxu0 %v2061_v11 }
 0x478   :  { %2201 = vmatpush.bf16.msra.mxu1 %v8520_v57  ;;  %2214 = vmatpush.bf16.msra.mxu2 %v8521_v34 }
 0x479   :  { %2227 = vmatpush.bf16.msra.mxu3 %v8522_v19  ;;  %2240 = vmatpush.bf16.msrb.mxu0 %v8523_v52 }
 0x47c   :  { %2202 = vmatpush.bf16.msra.mxu1 %v8524_v4  ;;  %2215 = vmatpush.bf16.msra.mxu2 %v8525_v12 }
 0x47d   :  { %2228 = vmatpush.bf16.msra.mxu3 %v8526_v30  ;;  %2241 = vmatpush.bf16.msrb.mxu0 %v8527_v39 }
 0x480   :  { %2203 = vmatpush.bf16.msra.mxu1 %v8528_v25  ;;  %2216 = vmatpush.bf16.msra.mxu2 %v8529_v41 }
 0x481   :  { %2229 = vmatpush.bf16.msra.mxu3 %v8530_v49  ;;  %2242 = vmatpush.bf16.msrb.mxu0 %v8531_v35 }
 0x484   :  { %2204 = vmatpush.bf16.msra.mxu1 %v8532_v23  ;;  %2217 = vmatpush.bf16.msra.mxu2 %v8533_v31 }
 0x485   :  { %2230 = vmatpush.bf16.msra.mxu3 %v8534_v8  ;;  %2243 = vmatpush.bf16.msrb.mxu0 %v8535_v17 }
 0x488   :  { %2205 = vmatpush.bf16.msra.mxu1 %v8536_v63  ;;  %2218 = vmatpush.bf16.msra.mxu2 %v8537_v44 }
 0x489   :  { %2231 = vmatpush.bf16.msra.mxu3 %v8538_v6  ;;  %2244 = vmatpush.bf16.msrb.mxu0 %v8539_v7 }
 0x48c   :  { %2206 = vmatpush.bf16.msra.mxu1 %v8540_v22  ;;  %2219 = vmatpush.bf16.msra.mxu2 %v8541_v24 }
 0x48d   :  { %2232 = vmatpush.bf16.msra.mxu3 %v8542_v9  ;;  %2245 = vmatpush.bf16.msrb.mxu0 %v8543_v40 }
 0x490   :  { %2207 = vmatpush.bf16.msra.mxu1 %v8544_v33  ;;  %2220 = vmatpush.bf16.msra.mxu2 %v8545_v54 }
 0x491   :  { %2233 = vmatpush.bf16.msra.mxu3 %v8546_v0  ;;  %2246 = vmatpush.bf16.msrb.mxu0 %v8547_v38 }
 0x494   :  { %2208 = vmatpush.bf16.msra.mxu1 %v8548_v1  ;;  %2221 = vmatpush.bf16.msra.mxu2 %v8549_v37 }
 0x495   :  { %2234 = vmatpush.bf16.msra.mxu3 %v8617_v13  ;;  %2247 = vmatpush.bf16.msrb.mxu0 %v8618_v43 }
 0x4f3   :  { %v2071_v59 = vpop.f32.mrf.mxu1 }
 0x4f4   :  { %v2114_v3 = vadd.f32 %v2071_v59, %v1963_v27  ;;  %v2110_v51 = vpop.f32.mrf.mxu0 }
 0x4f5   :  { %v2117_v5 = vadd.f32 %v2110_v51, %v1966_v47 }
 0x4f6   :  { %v2118_v26 = vmul.f32 0.5, %v2114_v3 }
 0x4f8   :  { %4946 = vtanh.f32 %v2118_v26 }
 0x4f9   :  { %v2084_v62 = vpop.f32.mrf.mxu2  ;;  %4948 = vtanh.f32 %v2117_v5 }
 0x4fa   :  { %v2115_v58 = vadd.f32 %v2084_v62, %v1964_v32  ;;  %v2097_v56 = vpop.f32.mrf.mxu3 }
 0x4fb   :  { %v2073_v53 = vpop.f32.mrf.mxu1  ;;  %v2116_v27 = vadd.f32 %v2097_v56, %v1965_v10 }
 0x4fc   :  { %v2119_v16 = vmul.f32 0.5, %v2115_v58  ;;  %v2112_v11 = vpop.f32.mrf.mxu0 }
 0x4fd   :  { %v2120_v20 = vmul.f32 0.5, %v2116_v27 }
 0x4fe   :  { %v4947_v59 = vpop.eup %4946  ;;  %4950 = vtanh.f32 %v2119_v16 }
 0x4ff   :  { %v2124_v2 = vmul.f32 0.5, %v4947_v59  ;;  %v4949_v36 = vpop.eup %4948  ;;  %4952 = vtanh.f32 %v2120_v20 }
 0x501   :  { %v2127_v3 = vadd.f32 0.5, %v2124_v2  ;;  %v2086_v60 = vpop.f32.mrf.mxu2  ;;  %v8624_v2 = vld [vmem:[#allocation96_spill] sm:$0xff] }
 0x502   :  { %v2099_v26 = vpop.f32.mrf.mxu3 }
 0x503   :  { %v2132_v51 = vmul.f32 %v4949_v36, %v2127_v3  ;;  %v8625_v3 = vld [vmem:[#allocation100_spill] sm:$0xff]  ;;  %v8626_v36 = vld [vmem:[#allocation103_spill] sm:$0xff] }
 0x504   :  { %v4951_v47 = vpop.eup %4950  ;;  %v8627_v26 = vld [vmem:[#allocation139_spill] sm:$0xff] }
 0x505   :  { %v2125_v32 = vmul.f32 0.5, %v4951_v47  ;;  %v4953_v53 = vpop.eup %4952  ;;  %v8629_v47 = vld [vmem:[#allocation104_spill] sm:$0xff] }
 0x506   :  { %v2126_v56 = vmul.f32 0.5, %v4953_v53  ;;  %v8632_v53 = vld [vmem:[#allocation113_spill] sm:$0xff] }
 0x507   :  { %v2128_v62 = vadd.f32 0.5, %v2125_v32  ;;  %v8630_v32 = vld [vmem:[#allocation109_spill] sm:$0xff] }
 0x508   :  { %v2129_v10 = vadd.f32 0.5, %v2126_v56  ;;  %v8634_v56 = vld [vmem:[#allocation116_spill] sm:$0xff] }
 0x509   :  { %v2131_v18 = vmul.f32 %v2128_v62, %v6407_v29 }
 0x50b   :  { %v2133_v5 = vadd.f32 %v2132_v51, %v2131_v18  ;;  %v6583_v51 = vsel %vm2058_vm4, %v6507_v61, %v8627_v26  ;;  %v8631_v18 = vld [vmem:[#allocation110_spill] sm:$0xff]  ;;  %v8642_v26 = vld [vmem:[#allocation128_spill] sm:$0xff] }
 0x50c   :  { %8628 = vst [vmem:[#allocation140_spill] sm:$0xff] %v6583_v51  ;;  %v2200_v62 = vpack.c.bf16 %v6583_v51, %v6583_v51  ;;  %v8636_v61 = vld [vmem:[#allocation122_spill] sm:$0xff] }
 0x50d   :  { %4954 = vtanh.f32 %v2133_v5  ;;  %v6555_v58 = vsel %vm2058_vm4, %v2133_v5, %v6407_v29  ;;  %v8621_v29 = vld [vmem:[#allocation93_spill] sm:$0xff]  ;;  %v8633_v5 = vld [vmem:[#allocation114_spill] sm:$0xff] }
 0x513   :  { %v4955_v60 = vpop.eup %4954 }
 0x514   :  { %v2135_v16 = vmul.f32 %v4955_v60, %v2129_v10  ;;  %v8637_v10 = vld [vmem:[#allocation123_spill] sm:$0xff]  ;;  %v8638_v60 = vld [vmem:[#allocation124_spill] sm:$0xff] }
 0x516   :  { %v2138_v11 = vsel %vm2058_vm4, %v2135_v16, 0.0  ;;  %v6562_v20 = vsel %vm2058_vm4, %v2135_v16, %v6416_v15  ;;  %v8622_v15 = vld [vmem:[#allocation94_spill] sm:$0xff]  ;;  %v8639_v16 = vld [vmem:[#allocation125_spill] sm:$0xff] }
 0x517   :  { %v6565_v27 = vadd.f32 %v2138_v11, %v6418_v55  ;;  %v2141_v59 = vpack.c.bf16 %v6562_v20, %v6562_v20  ;;  %v8623_v55 = vld [vmem:[#allocation95_spill] sm:$0xff]  ;;  %v8640_v11 = vld [vmem:[#allocation126_spill] sm:$0xff] }
 0x519   :  { %2150 = vmatmul.bf16.vlgmr.msrb.gmra.mxu1 %v2141_v59  ;;  %2163 = vmatmul.bf16.vlgmr.msrb.gmra.mxu2 %v2141_v59 }
 0x51a   :  { %2176 = vmatmul.bf16.vlgmr.msrb.gmra.mxu3 %v2141_v59  ;;  %2189 = vmatmul.bf16.vlgmr.msra.gmra.mxu0 %v2141_v59  ;;  %v8641_v59 = vld [vmem:[#allocation127_spill] sm:$0xff] }
 0x51b   :  { %2293 = vmatpush.bf16.msrb.mxu1 %v8444_v21  ;;  %2306 = vmatpush.bf16.msrb.mxu2 %v8445_v42 }
 0x51c   :  { %2319 = vmatpush.bf16.msrb.mxu3 %v8446_v45  ;;  %2332 = vmatpush.bf16.msra.mxu0 %v8447_v28 }
 0x51f   :  { %2294 = vmatpush.bf16.msrb.mxu1 %v8621_v29  ;;  %2307 = vmatpush.bf16.msrb.mxu2 %v8622_v15  ;;  %v8684_v15 = vld [vmem:[#allocation88_spill] sm:$0xff] }
 0x520   :  { %2320 = vmatpush.bf16.msrb.mxu3 %v8623_v55  ;;  %2333 = vmatpush.bf16.msra.mxu0 %v8624_v2  ;;  %v8683_v2 = vld [vmem:[#allocation85_spill] sm:$0xff] }
 0x523   :  { %2295 = vmatpush.bf16.msrb.mxu1 %v8625_v3  ;;  %2308 = vmatpush.bf16.msrb.mxu2 %v8626_v36 }
 0x524   :  { %2321 = vmatpush.bf16.msrb.mxu3 %v8629_v47  ;;  %2334 = vmatpush.bf16.msra.mxu0 %v8630_v32 }
 0x527   :  { %2296 = vmatpush.bf16.msrb.mxu1 %v8631_v18  ;;  %2309 = vmatpush.bf16.msrb.mxu2 %v8632_v53 }
 0x528   :  { %2322 = vmatpush.bf16.msrb.mxu3 %v8633_v5  ;;  %2335 = vmatpush.bf16.msra.mxu0 %v8634_v56  ;;  %v8643_v56 = vld [vmem:[#allocation129_spill] sm:$0xff]  ;;  %v8644_v5 = vld [vmem:[#allocation130_spill] sm:$0xff] }
 0x529   :  { %2209 = vmatmul.bf16.vlgmr.msra.gmra.mxu1 %v2200_v62  ;;  %2222 = vmatmul.bf16.vlgmr.msra.gmra.mxu2 %v2200_v62 }
 0x52a   :  { %2235 = vmatmul.bf16.vlgmr.msra.gmra.mxu3 %v2200_v62  ;;  %2248 = vmatmul.bf16.vlgmr.msrb.gmra.mxu0 %v2200_v62  ;;  %v8645_v62 = vld [vmem:[#allocation131_spill] sm:$0xff] }
 0x52b   :  { %2297 = vmatpush.bf16.msrb.mxu1 %v8635_v46  ;;  %2310 = vmatpush.bf16.msrb.mxu2 %v8636_v61  ;;  %v8646_v46 = vld [vmem:[#allocation132_spill] sm:$0xff]  ;;  %v8647_v61 = vld [vmem:[#allocation134_spill] sm:$0xff] }
 0x52c   :  { %2323 = vmatpush.bf16.msrb.mxu3 %v8637_v10  ;;  %2336 = vmatpush.bf16.msra.mxu0 %v8638_v60  ;;  %v8648_v10 = vld [vmem:[#allocation135_spill] sm:$0xff]  ;;  %v8649_v60 = vld [vmem:[#allocation136_spill] sm:$0xff] }
 0x52f   :  { %2298 = vmatpush.bf16.msrb.mxu1 %v8639_v16  ;;  %2311 = vmatpush.bf16.msrb.mxu2 %v8640_v11  ;;  %v8650_v16 = vld [vmem:[#allocation137_spill] sm:$0xff]  ;;  %v8651_v11 = vld [vmem:[#allocation19_spill] sm:$0xff] }
 0x530   :  { %2324 = vmatpush.bf16.msrb.mxu3 %v8641_v59  ;;  %2337 = vmatpush.bf16.msra.mxu0 %v8642_v26  ;;  %v8652_v59 = vld [vmem:[#allocation18_spill] sm:$0xff]  ;;  %v8653_v26 = vld [vmem:[#allocation21_spill] sm:$0xff] }
 0x533   :  { %2299 = vmatpush.bf16.msrb.mxu1 %v8643_v56  ;;  %2312 = vmatpush.bf16.msrb.mxu2 %v8644_v5  ;;  %v8654_v56 = vld [vmem:[#allocation24_spill] sm:$0xff]  ;;  %v8655_v5 = vld [vmem:[#allocation22_spill] sm:$0xff] }
 0x534   :  { %2325 = vmatpush.bf16.msrb.mxu3 %v8645_v62  ;;  %2338 = vmatpush.bf16.msra.mxu0 %v8646_v46  ;;  %v8656_v62 = vld [vmem:[#allocation20_spill] sm:$0xff]  ;;  %v8657_v46 = vld [vmem:[#allocation23_spill] sm:$0xff] }
 0x537   :  { %2300 = vmatpush.bf16.msrb.mxu1 %v8647_v61  ;;  %2313 = vmatpush.bf16.msrb.mxu2 %v8648_v10  ;;  %v8658_v61 = vld [vmem:[#allocation27_spill] sm:$0xff]  ;;  %v8659_v10 = vld [vmem:[#allocation26_spill] sm:$0xff] }
 0x538   :  { %2326 = vmatpush.bf16.msrb.mxu3 %v8649_v60  ;;  %2339 = vmatpush.bf16.msra.mxu0 %v8650_v16  ;;  %v8660_v60 = vld [vmem:[#allocation25_spill] sm:$0xff]  ;;  %v8661_v16 = vld [vmem:[#allocation28_spill] sm:$0xff] }
 0x53b   :  { %2373 = vmatpush.bf16.msra.mxu1 %v8651_v11  ;;  %2386 = vmatpush.bf16.msra.mxu2 %v8652_v59  ;;  %v8662_v11 = vld [vmem:[#allocation31_spill] sm:$0xff]  ;;  %v8663_v59 = vld [vmem:[#allocation30_spill] sm:$0xff] }
 0x53c   :  { %2399 = vmatpush.bf16.msra.mxu3 %v8653_v26  ;;  %2412 = vmatpush.bf16.msrb.mxu0 %v8654_v56  ;;  %v8664_v26 = vld [vmem:[#allocation29_spill] sm:$0xff]  ;;  %v8665_v56 = vld [vmem:[#allocation32_spill] sm:$0xff] }
 0x53f   :  { %2374 = vmatpush.bf16.msra.mxu1 %v8655_v5  ;;  %2387 = vmatpush.bf16.msra.mxu2 %v8656_v62  ;;  %v8666_v5 = vld [vmem:[#allocation35_spill] sm:$0xff]  ;;  %v8667_v62 = vld [vmem:[#allocation34_spill] sm:$0xff] }
 0x540   :  { %2400 = vmatpush.bf16.msra.mxu3 %v8657_v46  ;;  %2413 = vmatpush.bf16.msrb.mxu0 %v8658_v61  ;;  %v8668_v46 = vld [vmem:[#allocation33_spill] sm:$0xff]  ;;  %v8669_v61 = vld [vmem:[#allocation36_spill] sm:$0xff] }
 0x543   :  { %2375 = vmatpush.bf16.msra.mxu1 %v8659_v10  ;;  %2388 = vmatpush.bf16.msra.mxu2 %v8660_v60  ;;  %v8670_v10 = vld [vmem:[#allocation40_spill] sm:$0xff]  ;;  %v8671_v60 = vld [vmem:[#allocation39_spill] sm:$0xff] }
 0x544   :  { %2401 = vmatpush.bf16.msra.mxu3 %v8661_v16  ;;  %2414 = vmatpush.bf16.msrb.mxu0 %v8662_v11  ;;  %v8672_v16 = vld [vmem:[#allocation37_spill] sm:$0xff]  ;;  %v8673_v11 = vld [vmem:[#allocation42_spill] sm:$0xff] }
 0x547   :  { %2376 = vmatpush.bf16.msra.mxu1 %v8663_v59  ;;  %2389 = vmatpush.bf16.msra.mxu2 %v8664_v26  ;;  %v8674_v59 = vld [vmem:[#allocation45_spill] sm:$0xff]  ;;  %v8675_v26 = vld [vmem:[#allocation44_spill] sm:$0xff] }
 0x548   :  { %2402 = vmatpush.bf16.msra.mxu3 %v8665_v56  ;;  %2415 = vmatpush.bf16.msrb.mxu0 %v8666_v5  ;;  %v8676_v56 = vld [vmem:[#allocation43_spill] sm:$0xff]  ;;  %v8677_v5 = vld [vmem:[#allocation46_spill] sm:$0xff] }
 0x54b   :  { %2377 = vmatpush.bf16.msra.mxu1 %v8667_v62  ;;  %2390 = vmatpush.bf16.msra.mxu2 %v8668_v46  ;;  %v8678_v62 = vld [vmem:[#allocation50_spill] sm:$0xff]  ;;  %v8679_v46 = vld [vmem:[#allocation49_spill] sm:$0xff] }
 0x54c   :  { %2403 = vmatpush.bf16.msra.mxu3 %v8669_v61  ;;  %2416 = vmatpush.bf16.msrb.mxu0 %v8670_v10  ;;  %v8680_v61 = vld [vmem:[#allocation47_spill] sm:$0xff] }
 0x54d   :  { %v8681_v10 = vld [vmem:[#allocation51_spill] sm:$0xff] }
 0x54f   :  { %2378 = vmatpush.bf16.msra.mxu1 %v8671_v60  ;;  %2391 = vmatpush.bf16.msra.mxu2 %v8672_v16  ;;  %v8682_v60 = vld [vmem:[#allocation55_spill] sm:$0xff] }
 0x550   :  { %2404 = vmatpush.bf16.msra.mxu3 %v8673_v11  ;;  %2417 = vmatpush.bf16.msrb.mxu0 %v8674_v59 }
 0x553   :  { %2379 = vmatpush.bf16.msra.mxu1 %v8675_v26  ;;  %2392 = vmatpush.bf16.msra.mxu2 %v8676_v56 }
 0x554   :  { %2405 = vmatpush.bf16.msra.mxu3 %v8677_v5  ;;  %2418 = vmatpush.bf16.msrb.mxu0 %v8678_v62 }
 0x557   :  { %2380 = vmatpush.bf16.msra.mxu1 %v8679_v46  ;;  %2393 = vmatpush.bf16.msra.mxu2 %v8680_v61 }
 0x558   :  { %2406 = vmatpush.bf16.msra.mxu3 %v8681_v10  ;;  %2419 = vmatpush.bf16.msrb.mxu0 %v8682_v60 }
 0x596   :  { %v6641_v16 = vpop.f32.mrf.mxu1 }
 0x597   :  { %v6643_v11 = vpop.f32.mrf.mxu0 }
 0x59c   :  { %v6645_v59 = vpop.f32.mrf.mxu2 }
 0x59d   :  { %v6647_v26 = vpop.f32.mrf.mxu3 }
 0x59e   :  { %v2153_v56 = vpop.f32.mrf.mxu1 }
 0x59f   :  { %v2192_v5 = vpop.f32.mrf.mxu0 }
 0x5a4   :  { %v2166_v53 = vpop.f32.mrf.mxu2 }
 0x5a5   :  { %v2179_v62 = vpop.f32.mrf.mxu3 }
 0x5a6   :  { %v2210_v18 = vpop.f32.mrf.mxu1 }
 0x5a7   :  { %v2249_v46 = vpop.f32.mrf.mxu0 }
 0x5a8   :  { %v2258_v32 = vrot.slane %v2249_v46, 4 }
 0x5ac   :  { %v2223_v61 = vpop.f32.mrf.mxu2 }
 0x5ad   :  { %v2257_v47 = vrot.slane %v2223_v61, 4  ;;  %v2236_v10 = vpop.f32.mrf.mxu3 }
 0x5ae   :  { %v2260_v60 = vsel %vm145_vm0, %v2236_v10, %v2258_v32  ;;  %v2212_v51 = vpop.f32.mrf.mxu1 }
 0x5af   :  { %v2259_v36 = vsel %vm145_vm0, %v2210_v18, %v2257_v47  ;;  %v2251_v3 = vpop.f32.mrf.mxu0  ;;  %v2264_v29 = vadd.f32 %v2260_v60, %v8684_v15 }
 0x5b0   :  { %v2263_v55 = vadd.f32 %v2259_v36, %v8683_v2  ;;  %v8685_v36 = vld [vmem:[#allocation83_spill] sm:$0xff] }
 0x5b1   :  { %v2274_v53 = vrot.slane %v2264_v29, 4  ;;  %v2266_v46 = vmul.f32 0.5, %v2264_v29  ;;  %vm2289_vm5 = vcmp.eq.s32.totalorder %v8685_v36, 1  ;;  %v8704_v36 = vld [vmem:[#allocation121_spill] sm:$0xff] }
 0x5b2   :  { %v2265_v56 = vmul.f32 0.5, %v2263_v55 }
 0x5b4   :  { %4956 = vtanh.f32 %v2265_v56  ;;  %v2225_v5 = vpop.f32.mrf.mxu2 }
 0x5b5   :  { %v2238_v62 = vpop.f32.mrf.mxu3  ;;  %4958 = vtanh.f32 %v2274_v53 }
 0x5b6   :  { %4960 = vtanh.f32 %v2266_v46  ;;  %v8687_v62 = vld [vmem:[#allocation145_spill] sm:$0xff] }
 0x5b7   :  { %v2197_v46 = vadd.f32 %v6643_v11, %v8687_v62 }
 0x5ba   :  { %v4957_v28 = vpop.eup %4956 }
 0x5bb   :  { %v2269_v61 = vmul.f32 0.5, %v4957_v28  ;;  %v4959_v32 = vpop.eup %4958 }
 0x5bc   :  { %v4961_v47 = vpop.eup %4960 }
 0x5bd   :  { %v2271_v45 = vadd.f32 0.5, %v2269_v61  ;;  %v2270_v29 = vmul.f32 0.5, %v4961_v47 }
 0x5bf   :  { %v2278_v51 = vrot.slane %v2271_v45, 4  ;;  %v2281_v10 = vmul.f32 %v4959_v32, %v2271_v45  ;;  %v2272_v55 = vadd.f32 0.5, %v2270_v29  ;;  %v2195_v32 = vadd.f32 %v6645_v59, %v8554_v48 }
 0x5c1   :  { %v2280_v3 = vmul.f32 %v2278_v51, %v6505_v50 }
 0x5c3   :  { %v2282_v2 = vadd.f32 %v2281_v10, %v2280_v3 }
 0x5c5   :  { %4962 = vtanh.f32 %v2282_v2  ;;  %v6658_v15 = vsel %vm2289_vm5, %v2282_v2, %v6505_v50  ;;  %v8686_v50 = vld [vmem:[#allocation41_spill] sm:$0xff]  ;;  %v2196_v2 = vadd.f32 %v6647_v26, %v8555_v14 }
 0x5c6   :  { %v2194_v60 = vadd.f32 %v6641_v16, %v8686_v50 }
 0x5cb   :  { %v4963_v28 = vpop.eup %4962 }
 0x5cc   :  { %v6660_v18 = vmul.f32 %v4963_v28, %v2272_v55 }
 0x5ce   :  { %v2292_v45 = vpack.c.bf16 %v6660_v18, %v6660_v18 }
 0x5d0   :  { %2301 = vmatmul.bf16.vlgmr.msrb.gmra.mxu1 %v2292_v45  ;;  %2314 = vmatmul.bf16.vlgmr.msrb.gmra.mxu2 %v2292_v45 }
 0x5d1   :  { %2327 = vmatmul.bf16.vlgmr.msrb.gmra.mxu3 %v2292_v45  ;;  %2340 = vmatmul.bf16.vlgmr.msra.gmra.mxu0 %v2292_v45 }
 0x5d2   :  { %2432 = vmatpush.bf16.msrb.mxu1 %v8520_v57  ;;  %2445 = vmatpush.bf16.msrb.mxu2 %v8521_v34 }
 0x5d3   :  { %2458 = vmatpush.bf16.msrb.mxu3 %v8522_v19  ;;  %2471 = vmatpush.bf16.msra.mxu0 %v8523_v52 }
 0x5d6   :  { %2433 = vmatpush.bf16.msrb.mxu1 %v8524_v4  ;;  %2446 = vmatpush.bf16.msrb.mxu2 %v8525_v12 }
 0x5d7   :  { %2459 = vmatpush.bf16.msrb.mxu3 %v8526_v30  ;;  %2472 = vmatpush.bf16.msra.mxu0 %v8527_v39 }
 0x5da   :  { %2434 = vmatpush.bf16.msrb.mxu1 %v8528_v25  ;;  %2447 = vmatpush.bf16.msrb.mxu2 %v8529_v41 }
 0x5db   :  { %2460 = vmatpush.bf16.msrb.mxu3 %v8530_v49  ;;  %2473 = vmatpush.bf16.msra.mxu0 %v8531_v35 }
 0x5de   :  { %2435 = vmatpush.bf16.msrb.mxu1 %v8532_v23  ;;  %2448 = vmatpush.bf16.msrb.mxu2 %v8533_v31 }
 0x5df   :  { %2461 = vmatpush.bf16.msrb.mxu3 %v8534_v8  ;;  %2474 = vmatpush.bf16.msra.mxu0 %v8535_v17 }
 0x5e2   :  { %2436 = vmatpush.bf16.msrb.mxu1 %v8536_v63  ;;  %2449 = vmatpush.bf16.msrb.mxu2 %v8537_v44 }
 0x5e3   :  { %2462 = vmatpush.bf16.msrb.mxu3 %v8538_v6  ;;  %2475 = vmatpush.bf16.msra.mxu0 %v8539_v7 }
 0x5e6   :  { %2437 = vmatpush.bf16.msrb.mxu1 %v8540_v22  ;;  %2450 = vmatpush.bf16.msrb.mxu2 %v8541_v24 }
 0x5e7   :  { %2463 = vmatpush.bf16.msrb.mxu3 %v8542_v9  ;;  %2476 = vmatpush.bf16.msra.mxu0 %v8543_v40 }
 0x5ea   :  { %2438 = vmatpush.bf16.msrb.mxu1 %v8544_v33  ;;  %2451 = vmatpush.bf16.msrb.mxu2 %v8545_v54 }
 0x5eb   :  { %2464 = vmatpush.bf16.msrb.mxu3 %v8546_v0  ;;  %2477 = vmatpush.bf16.msra.mxu0 %v8547_v38 }
 0x5ee   :  { %2439 = vmatpush.bf16.msrb.mxu1 %v8548_v1  ;;  %2452 = vmatpush.bf16.msrb.mxu2 %v8549_v37 }
 0x5ef   :  { %2465 = vmatpush.bf16.msrb.mxu3 %v8617_v13  ;;  %2478 = vmatpush.bf16.msra.mxu0 %v8618_v43 }
 0x64d   :  { %v2302_v56 = vpop.f32.mrf.mxu1 }
 0x64e   :  { %v2345_v53 = vadd.f32 %v2302_v56, %v2194_v60  ;;  %v2341_v5 = vpop.f32.mrf.mxu0 }
 0x64f   :  { %v2348_v51 = vadd.f32 %v2341_v5, %v2197_v46 }
 0x650   :  { %v2349_v61 = vmul.f32 0.5, %v2345_v53 }
 0x652   :  { %4964 = vtanh.f32 %v2349_v61 }
 0x653   :  { %v2315_v10 = vpop.f32.mrf.mxu2  ;;  %4966 = vtanh.f32 %v2348_v51 }
 0x654   :  { %v2346_v3 = vadd.f32 %v2315_v10, %v2195_v32  ;;  %v2328_v47 = vpop.f32.mrf.mxu3 }
 0x655   :  { %v2304_v29 = vpop.f32.mrf.mxu1  ;;  %v2347_v28 = vadd.f32 %v2328_v47, %v2196_v2 }
 0x656   :  { %v2350_v16 = vmul.f32 0.5, %v2346_v3  ;;  %v2343_v55 = vpop.f32.mrf.mxu0 }
 0x657   :  { %v2351_v56 = vmul.f32 0.5, %v2347_v28 }
 0x658   :  { %v4965_v45 = vpop.eup %4964  ;;  %4968 = vtanh.f32 %v2350_v16 }
 0x659   :  { %v2355_v11 = vmul.f32 0.5, %v4965_v45  ;;  %v4967_v59 = vpop.eup %4966  ;;  %4970 = vtanh.f32 %v2351_v56  ;;  %v8690_v56 = vld [vmem:[#allocation93_spill] sm:$0xff] }
 0x65b   :  { %v2358_v60 = vadd.f32 0.5, %v2355_v11  ;;  %v2317_v53 = vpop.f32.mrf.mxu2 }
 0x65c   :  { %v2330_v61 = vpop.f32.mrf.mxu3  ;;  %v8691_v53 = vld [vmem:[#allocation94_spill] sm:$0xff] }
 0x65d   :  { %v2363_v5 = vmul.f32 %v4967_v59, %v2358_v60  ;;  %v8693_v59 = vld [vmem:[#allocation96_spill] sm:$0xff] }
 0x65e   :  { %v4969_v46 = vpop.eup %4968  ;;  %v8694_v61 = vld [vmem:[#allocation100_spill] sm:$0xff] }
 0x65f   :  { %v2356_v32 = vmul.f32 0.5, %v4969_v46  ;;  %v4971_v29 = vpop.eup %4970  ;;  %v8696_v46 = vld [vmem:[#allocation140_spill] sm:$0xff] }
 0x660   :  { %v2357_v47 = vmul.f32 0.5, %v4971_v29 }
 0x661   :  { %v2359_v10 = vadd.f32 0.5, %v2356_v32  ;;  %v6736_v32 = vsel %vm2289_vm5, %v6660_v18, %v8696_v46  ;;  %v8705_v18 = vld [vmem:[#allocation122_spill] sm:$0xff] }
 0x662   :  { %v2360_v2 = vadd.f32 0.5, %v2357_v47  ;;  %8697 = vst [vmem:[#allocation133_spill] sm:$0xff] %v6736_v32  ;;  %v2431_v29 = vpack.c.bf16 %v6736_v32, %v6736_v32  ;;  %v8701_v47 = vld [vmem:[#allocation113_spill] sm:$0xff]  ;;  %v8709_v46 = vld [vmem:[#allocation126_spill] sm:$0xff] }
 0x663   :  { %v2362_v26 = vmul.f32 %v2359_v10, %v6555_v58  ;;  %v8698_v10 = vld [vmem:[#allocation104_spill] sm:$0xff] }
 0x665   :  { %v2364_v51 = vadd.f32 %v2363_v5, %v2362_v26  ;;  %v8695_v5 = vld [vmem:[#allocation103_spill] sm:$0xff]  ;;  %v8699_v26 = vld [vmem:[#allocation109_spill] sm:$0xff] }
 0x667   :  { %4972 = vtanh.f32 %v2364_v51  ;;  %v6708_v3 = vsel %vm2289_vm5, %v2364_v51, %v6555_v58  ;;  %v8688_v58 = vld [vmem:[#allocation91_spill] sm:$0xff]  ;;  %v8700_v51 = vld [vmem:[#allocation110_spill] sm:$0xff] }
 0x66d   :  { %v4973_v16 = vpop.eup %4972 }
 0x66e   :  { %v2366_v55 = vmul.f32 %v4973_v16, %v2360_v2  ;;  %v8702_v2 = vld [vmem:[#allocation114_spill] sm:$0xff]  ;;  %v8703_v16 = vld [vmem:[#allocation116_spill] sm:$0xff] }
 0x670   :  { %v6713_v28 = vsel %vm2289_vm5, %v2366_v55, %v6562_v20  ;;  %v2369_v45 = vsel %vm2289_vm5, %v2366_v55, 0.0  ;;  %v8689_v20 = vld [vmem:[#allocation92_spill] sm:$0xff]  ;;  %v8706_v55 = vld [vmem:[#allocation123_spill] sm:$0xff] }
 0x671   :  { %v6718_v11 = vadd.f32 %v2369_v45, %v6565_v27  ;;  %v2372_v60 = vpack.c.bf16 %v6713_v28, %v6713_v28  ;;  %v8692_v27 = vld [vmem:[#allocation95_spill] sm:$0xff]  ;;  %v8707_v45 = vld [vmem:[#allocation124_spill] sm:$0xff] }
 0x673   :  { %2381 = vmatmul.bf16.vlgmr.msra.gmra.mxu1 %v2372_v60  ;;  %2394 = vmatmul.bf16.vlgmr.msra.gmra.mxu2 %v2372_v60 }
 0x674   :  { %2407 = vmatmul.bf16.vlgmr.msra.gmra.mxu3 %v2372_v60  ;;  %2420 = vmatmul.bf16.vlgmr.msrb.gmra.mxu0 %v2372_v60  ;;  %v8708_v60 = vld [vmem:[#allocation125_spill] sm:$0xff] }
 0x675   :  { %2524 = vmatpush.bf16.msra.mxu1 %v8444_v21  ;;  %2537 = vmatpush.bf16.msra.mxu2 %v8445_v42 }
 0x676   :  { %2550 = vmatpush.bf16.msra.mxu3 %v8688_v58  ;;  %2563 = vmatpush.bf16.msrb.mxu0 %v8689_v20  ;;  %v8753_v20 = vld [vmem:[#allocation148_spill] sm:$0xff] }
 0x679   :  { %2525 = vmatpush.bf16.msra.mxu1 %v8690_v56  ;;  %2538 = vmatpush.bf16.msra.mxu2 %v8691_v53  ;;  %v8752_v53 = vld [vmem:[#allocation147_spill] sm:$0xff] }
 0x67a   :  { %2551 = vmatpush.bf16.msra.mxu3 %v8692_v27  ;;  %2564 = vmatpush.bf16.msrb.mxu0 %v8693_v59 }
 0x67d   :  { %2526 = vmatpush.bf16.msra.mxu1 %v8694_v61  ;;  %2539 = vmatpush.bf16.msra.mxu2 %v8695_v5 }
 0x67e   :  { %2552 = vmatpush.bf16.msra.mxu3 %v8698_v10  ;;  %2565 = vmatpush.bf16.msrb.mxu0 %v8699_v26 }
 0x681   :  { %2527 = vmatpush.bf16.msra.mxu1 %v8700_v51  ;;  %2540 = vmatpush.bf16.msra.mxu2 %v8701_v47  ;;  %v8710_v47 = vld [vmem:[#allocation127_spill] sm:$0xff]  ;;  %v8713_v51 = vld [vmem:[#allocation130_spill] sm:$0xff] }
 0x682   :  { %2553 = vmatpush.bf16.msra.mxu3 %v8702_v2  ;;  %2566 = vmatpush.bf16.msrb.mxu0 %v8703_v16  ;;  %v8711_v2 = vld [vmem:[#allocation128_spill] sm:$0xff]  ;;  %v8712_v16 = vld [vmem:[#allocation129_spill] sm:$0xff] }
 0x683   :  { %2440 = vmatmul.bf16.vlgmr.msrb.gmra.mxu1 %v2431_v29  ;;  %2453 = vmatmul.bf16.vlgmr.msrb.gmra.mxu2 %v2431_v29 }
 0x684   :  { %2466 = vmatmul.bf16.vlgmr.msrb.gmra.mxu3 %v2431_v29  ;;  %2479 = vmatmul.bf16.vlgmr.msra.gmra.mxu0 %v2431_v29  ;;  %v8714_v29 = vld [vmem:[#allocation131_spill] sm:$0xff] }
 0x685   :  { %2528 = vmatpush.bf16.msra.mxu1 %v8704_v36  ;;  %2541 = vmatpush.bf16.msra.mxu2 %v8705_v18  ;;  %v8715_v36 = vld [vmem:[#allocation132_spill] sm:$0xff]  ;;  %v8716_v18 = vld [vmem:[#allocation134_spill] sm:$0xff] }
 0x686   :  { %2554 = vmatpush.bf16.msra.mxu3 %v8706_v55  ;;  %2567 = vmatpush.bf16.msrb.mxu0 %v8707_v45  ;;  %v8717_v55 = vld [vmem:[#allocation135_spill] sm:$0xff]  ;;  %v8718_v45 = vld [vmem:[#allocation136_spill] sm:$0xff] }
 0x689   :  { %2529 = vmatpush.bf16.msra.mxu1 %v8708_v60  ;;  %2542 = vmatpush.bf16.msra.mxu2 %v8709_v46  ;;  %v8719_v60 = vld [vmem:[#allocation137_spill] sm:$0xff]  ;;  %v8720_v46 = vld [vmem:[#allocation19_spill] sm:$0xff] }
 0x68a   :  { %2555 = vmatpush.bf16.msra.mxu3 %v8710_v47  ;;  %2568 = vmatpush.bf16.msrb.mxu0 %v8711_v2  ;;  %v8721_v47 = vld [vmem:[#allocation18_spill] sm:$0xff]  ;;  %v8722_v2 = vld [vmem:[#allocation21_spill] sm:$0xff] }
 0x68d   :  { %2530 = vmatpush.bf16.msra.mxu1 %v8712_v16  ;;  %2543 = vmatpush.bf16.msra.mxu2 %v8713_v51  ;;  %v8723_v16 = vld [vmem:[#allocation24_spill] sm:$0xff]  ;;  %v8724_v51 = vld [vmem:[#allocation22_spill] sm:$0xff] }
 0x68e   :  { %2556 = vmatpush.bf16.msra.mxu3 %v8714_v29  ;;  %2569 = vmatpush.bf16.msrb.mxu0 %v8715_v36  ;;  %v8725_v29 = vld [vmem:[#allocation20_spill] sm:$0xff]  ;;  %v8726_v36 = vld [vmem:[#allocation23_spill] sm:$0xff] }
 0x691   :  { %2531 = vmatpush.bf16.msra.mxu1 %v8716_v18  ;;  %2544 = vmatpush.bf16.msra.mxu2 %v8717_v55  ;;  %v8727_v18 = vld [vmem:[#allocation27_spill] sm:$0xff]  ;;  %v8728_v55 = vld [vmem:[#allocation26_spill] sm:$0xff] }
 0x692   :  { %2557 = vmatpush.bf16.msra.mxu3 %v8718_v45  ;;  %2570 = vmatpush.bf16.msrb.mxu0 %v8719_v60  ;;  %v8729_v45 = vld [vmem:[#allocation25_spill] sm:$0xff]  ;;  %v8730_v60 = vld [vmem:[#allocation28_spill] sm:$0xff] }
 0x695   :  { %2604 = vmatpush.bf16.msrb.mxu1 %v8720_v46  ;;  %2617 = vmatpush.bf16.msrb.mxu2 %v8721_v47  ;;  %v8731_v46 = vld [vmem:[#allocation31_spill] sm:$0xff]  ;;  %v8732_v47 = vld [vmem:[#allocation30_spill] sm:$0xff] }
 0x696   :  { %2630 = vmatpush.bf16.msrb.mxu3 %v8722_v2  ;;  %2643 = vmatpush.bf16.msra.mxu0 %v8723_v16  ;;  %v8733_v2 = vld [vmem:[#allocation29_spill] sm:$0xff]  ;;  %v8734_v16 = vld [vmem:[#allocation32_spill] sm:$0xff] }
 0x699   :  { %2605 = vmatpush.bf16.msrb.mxu1 %v8724_v51  ;;  %2618 = vmatpush.bf16.msrb.mxu2 %v8725_v29  ;;  %v8735_v51 = vld [vmem:[#allocation35_spill] sm:$0xff]  ;;  %v8736_v29 = vld [vmem:[#allocation34_spill] sm:$0xff] }
 0x69a   :  { %2631 = vmatpush.bf16.msrb.mxu3 %v8726_v36  ;;  %2644 = vmatpush.bf16.msra.mxu0 %v8727_v18  ;;  %v8737_v36 = vld [vmem:[#allocation33_spill] sm:$0xff]  ;;  %v8738_v18 = vld [vmem:[#allocation36_spill] sm:$0xff] }
 0x69d   :  { %2606 = vmatpush.bf16.msrb.mxu1 %v8728_v55  ;;  %2619 = vmatpush.bf16.msrb.mxu2 %v8729_v45  ;;  %v8739_v55 = vld [vmem:[#allocation40_spill] sm:$0xff]  ;;  %v8740_v45 = vld [vmem:[#allocation39_spill] sm:$0xff] }
 0x69e   :  { %2632 = vmatpush.bf16.msrb.mxu3 %v8730_v60  ;;  %2645 = vmatpush.bf16.msra.mxu0 %v8731_v46  ;;  %v8741_v60 = vld [vmem:[#allocation37_spill] sm:$0xff]  ;;  %v8742_v46 = vld [vmem:[#allocation42_spill] sm:$0xff] }
 0x6a1   :  { %2607 = vmatpush.bf16.msrb.mxu1 %v8732_v47  ;;  %2620 = vmatpush.bf16.msrb.mxu2 %v8733_v2  ;;  %v8743_v47 = vld [vmem:[#allocation45_spill] sm:$0xff]  ;;  %v8744_v2 = vld [vmem:[#allocation44_spill] sm:$0xff] }
 0x6a2   :  { %2633 = vmatpush.bf16.msrb.mxu3 %v8734_v16  ;;  %2646 = vmatpush.bf16.msra.mxu0 %v8735_v51  ;;  %v8745_v16 = vld [vmem:[#allocation43_spill] sm:$0xff]  ;;  %v8746_v51 = vld [vmem:[#allocation46_spill] sm:$0xff] }
 0x6a5   :  { %2608 = vmatpush.bf16.msrb.mxu1 %v8736_v29  ;;  %2621 = vmatpush.bf16.msrb.mxu2 %v8737_v36  ;;  %v8747_v29 = vld [vmem:[#allocation50_spill] sm:$0xff]  ;;  %v8748_v36 = vld [vmem:[#allocation49_spill] sm:$0xff] }
 0x6a6   :  { %2634 = vmatpush.bf16.msrb.mxu3 %v8738_v18  ;;  %2647 = vmatpush.bf16.msra.mxu0 %v8739_v55  ;;  %v8749_v18 = vld [vmem:[#allocation47_spill] sm:$0xff] }
 0x6a7   :  { %v8750_v55 = vld [vmem:[#allocation51_spill] sm:$0xff] }
 0x6a9   :  { %2609 = vmatpush.bf16.msrb.mxu1 %v8740_v45  ;;  %2622 = vmatpush.bf16.msrb.mxu2 %v8741_v60  ;;  %v8751_v45 = vld [vmem:[#allocation55_spill] sm:$0xff] }
 0x6aa   :  { %2635 = vmatpush.bf16.msrb.mxu3 %v8742_v46  ;;  %2648 = vmatpush.bf16.msra.mxu0 %v8743_v47 }
 0x6ad   :  { %2610 = vmatpush.bf16.msrb.mxu1 %v8744_v2  ;;  %2623 = vmatpush.bf16.msrb.mxu2 %v8745_v16 }
 0x6ae   :  { %2636 = vmatpush.bf16.msrb.mxu3 %v8746_v51  ;;  %2649 = vmatpush.bf16.msra.mxu0 %v8747_v29 }
 0x6b1   :  { %2611 = vmatpush.bf16.msrb.mxu1 %v8748_v36  ;;  %2624 = vmatpush.bf16.msrb.mxu2 %v8749_v18 }
 0x6b2   :  { %2637 = vmatpush.bf16.msrb.mxu3 %v8750_v55  ;;  %2650 = vmatpush.bf16.msra.mxu0 %v8751_v45 }
 0x6f0   :  { %v6794_v60 = vpop.f32.mrf.mxu1 }
 0x6f1   :  { %v6796_v46 = vpop.f32.mrf.mxu0 }
 0x6f6   :  { %v6798_v47 = vpop.f32.mrf.mxu2 }
 0x6f7   :  { %v6800_v2 = vpop.f32.mrf.mxu3 }
 0x6f8   :  { %v2384_v16 = vpop.f32.mrf.mxu1 }
 0x6f9   :  { %v2423_v51 = vpop.f32.mrf.mxu0 }
 0x6fe   :  { %v2397_v26 = vpop.f32.mrf.mxu2 }
 0x6ff   :  { %v2410_v29 = vpop.f32.mrf.mxu3 }
 0x700   :  { %v2441_v10 = vpop.f32.mrf.mxu1 }
 0x701   :  { %v2480_v36 = vpop.f32.mrf.mxu0 }
 0x702   :  { %v2489_v32 = vrot.slane %v2480_v36, 4 }
 0x706   :  { %v2454_v18 = vpop.f32.mrf.mxu2 }
 0x707   :  { %v2488_v5 = vrot.slane %v2454_v18, 4  ;;  %v2467_v55 = vpop.f32.mrf.mxu3 }
 0x708   :  { %v2491_v45 = vsel %vm145_vm0, %v2467_v55, %v2489_v32  ;;  %v2443_v61 = vpop.f32.mrf.mxu1 }
 0x709   :  { %v2490_v59 = vsel %vm145_vm0, %v2441_v10, %v2488_v5  ;;  %v2482_v27 = vpop.f32.mrf.mxu0  ;;  %v2495_v58 = vadd.f32 %v2491_v45, %v8753_v20  ;;  %v8754_v5 = vld [vmem:[#allocation87_spill] sm:$0xff] }
 0x70a   :  { %v2494_v56 = vadd.f32 %v2490_v59, %v8752_v53  ;;  %vm2520_vm6 = vcmp.eq.s32.totalorder %v8754_v5, 1  ;;  %v8773_v5 = vld [vmem:[#allocation121_spill] sm:$0xff] }
 0x70b   :  { %v2505_v26 = vrot.slane %v2495_v58, 4  ;;  %v2497_v36 = vmul.f32 0.5, %v2495_v58 }
 0x70c   :  { %v2496_v16 = vmul.f32 0.5, %v2494_v56 }
 0x70e   :  { %4974 = vtanh.f32 %v2496_v16  ;;  %v2456_v51 = vpop.f32.mrf.mxu2 }
 0x70f   :  { %v2469_v29 = vpop.f32.mrf.mxu3  ;;  %4976 = vtanh.f32 %v2505_v26  ;;  %v2428_v51 = vadd.f32 %v6796_v46, %v8687_v62 }
 0x710   :  { %4978 = vtanh.f32 %v2497_v36  ;;  %v2426_v36 = vadd.f32 %v6798_v47, %v8554_v48 }
 0x714   :  { %v4975_v42 = vpop.eup %4974 }
 0x715   :  { %v2500_v18 = vmul.f32 0.5, %v4975_v42  ;;  %v4977_v32 = vpop.eup %4976 }
 0x716   :  { %v4979_v53 = vpop.eup %4978 }
 0x717   :  { %v2502_v21 = vadd.f32 0.5, %v2500_v18  ;;  %v2501_v58 = vmul.f32 0.5, %v4979_v53 }
 0x719   :  { %v2509_v61 = vrot.slane %v2502_v21, 4  ;;  %v2512_v55 = vmul.f32 %v4977_v32, %v2502_v21  ;;  %v2503_v59 = vadd.f32 0.5, %v2501_v58 }
 0x71b   :  { %v2511_v27 = vmul.f32 %v2509_v61, %v6658_v15 }
 0x71d   :  { %v2513_v20 = vadd.f32 %v2512_v55, %v2511_v27  ;;  %v2427_v27 = vadd.f32 %v6800_v2, %v8555_v14 }
 0x71f   :  { %4980 = vtanh.f32 %v2513_v20  ;;  %v6811_v56 = vsel %vm2520_vm6, %v2513_v20, %v6658_v15  ;;  %v2425_v15 = vadd.f32 %v6794_v60, %v8686_v50 }
 0x725   :  { %v4981_v42 = vpop.eup %4980 }
 0x726   :  { %v6813_v10 = vmul.f32 %v4981_v42, %v2503_v59 }
 0x728   :  { %v2523_v21 = vpack.c.bf16 %v6813_v10, %v6813_v10 }
 0x72a   :  { %2532 = vmatmul.bf16.vlgmr.msra.gmra.mxu1 %v2523_v21  ;;  %2545 = vmatmul.bf16.vlgmr.msra.gmra.mxu2 %v2523_v21 }
 0x72b   :  { %2558 = vmatmul.bf16.vlgmr.msra.gmra.mxu3 %v2523_v21  ;;  %2571 = vmatmul.bf16.vlgmr.msrb.gmra.mxu0 %v2523_v21 }
 0x72c   :  { %2663 = vmatpush.bf16.msra.mxu1 %v8520_v57  ;;  %2676 = vmatpush.bf16.msra.mxu2 %v8521_v34 }
 0x72d   :  { %2689 = vmatpush.bf16.msra.mxu3 %v8522_v19  ;;  %2702 = vmatpush.bf16.msrb.mxu0 %v8523_v52 }
 0x730   :  { %2664 = vmatpush.bf16.msra.mxu1 %v8524_v4  ;;  %2677 = vmatpush.bf16.msra.mxu2 %v8525_v12 }
 0x731   :  { %2690 = vmatpush.bf16.msra.mxu3 %v8526_v30  ;;  %2703 = vmatpush.bf16.msrb.mxu0 %v8527_v39 }
 0x734   :  { %2665 = vmatpush.bf16.msra.mxu1 %v8528_v25  ;;  %2678 = vmatpush.bf16.msra.mxu2 %v8529_v41 }
 0x735   :  { %2691 = vmatpush.bf16.msra.mxu3 %v8530_v49  ;;  %2704 = vmatpush.bf16.msrb.mxu0 %v8531_v35 }
 0x738   :  { %2666 = vmatpush.bf16.msra.mxu1 %v8532_v23  ;;  %2679 = vmatpush.bf16.msra.mxu2 %v8533_v31 }
 0x739   :  { %2692 = vmatpush.bf16.msra.mxu3 %v8534_v8  ;;  %2705 = vmatpush.bf16.msrb.mxu0 %v8535_v17 }
 0x73c   :  { %2667 = vmatpush.bf16.msra.mxu1 %v8536_v63  ;;  %2680 = vmatpush.bf16.msra.mxu2 %v8537_v44 }
 0x73d   :  { %2693 = vmatpush.bf16.msra.mxu3 %v8538_v6  ;;  %2706 = vmatpush.bf16.msrb.mxu0 %v8539_v7 }
 0x740   :  { %2668 = vmatpush.bf16.msra.mxu1 %v8540_v22  ;;  %2681 = vmatpush.bf16.msra.mxu2 %v8541_v24 }
 0x741   :  { %2694 = vmatpush.bf16.msra.mxu3 %v8542_v9  ;;  %2707 = vmatpush.bf16.msrb.mxu0 %v8543_v40 }
 0x744   :  { %2669 = vmatpush.bf16.msra.mxu1 %v8544_v33  ;;  %2682 = vmatpush.bf16.msra.mxu2 %v8545_v54 }
 0x745   :  { %2695 = vmatpush.bf16.msra.mxu3 %v8546_v0  ;;  %2708 = vmatpush.bf16.msrb.mxu0 %v8547_v38 }
 0x748   :  { %2670 = vmatpush.bf16.msra.mxu1 %v8548_v1  ;;  %2683 = vmatpush.bf16.msra.mxu2 %v8549_v37 }
 0x749   :  { %2696 = vmatpush.bf16.msra.mxu3 %v8617_v13  ;;  %2709 = vmatpush.bf16.msrb.mxu0 %v8618_v43 }
 0x7a7   :  { %v2533_v45 = vpop.f32.mrf.mxu1 }
 0x7a8   :  { %v2576_v16 = vadd.f32 %v2533_v45, %v2425_v15  ;;  %v2572_v26 = vpop.f32.mrf.mxu0 }
 0x7a9   :  { %v2579_v18 = vadd.f32 %v2572_v26, %v2428_v51 }
 0x7aa   :  { %v2580_v29 = vmul.f32 0.5, %v2576_v16 }
 0x7ac   :  { %4982 = vtanh.f32 %v2580_v29 }
 0x7ad   :  { %v2546_v32 = vpop.f32.mrf.mxu2  ;;  %4984 = vtanh.f32 %v2579_v18 }
 0x7ae   :  { %v2577_v61 = vadd.f32 %v2546_v32, %v2426_v36  ;;  %v2559_v55 = vpop.f32.mrf.mxu3 }
 0x7af   :  { %v2535_v53 = vpop.f32.mrf.mxu1  ;;  %v2578_v58 = vadd.f32 %v2559_v55, %v2427_v27 }
 0x7b0   :  { %v2581_v60 = vmul.f32 0.5, %v2577_v61  ;;  %v2574_v20 = vpop.f32.mrf.mxu0 }
 0x7b1   :  { %v2582_v21 = vmul.f32 0.5, %v2578_v58 }
 0x7b2   :  { %v4983_v59 = vpop.eup %4982  ;;  %4986 = vtanh.f32 %v2581_v60 }
 0x7b3   :  { %v2586_v46 = vmul.f32 0.5, %v4983_v59  ;;  %v4985_v47 = vpop.eup %4984  ;;  %4988 = vtanh.f32 %v2582_v21  ;;  %v8759_v21 = vld [vmem:[#allocation93_spill] sm:$0xff] }
 0x7b5   :  { %v2589_v42 = vadd.f32 0.5, %v2586_v46  ;;  %v2548_v15 = vpop.f32.mrf.mxu2  ;;  %v8756_v46 = vld [vmem:[#allocation90_spill] sm:$0xff] }
 0x7b6   :  { %v2561_v45 = vpop.f32.mrf.mxu3  ;;  %v8760_v15 = vld [vmem:[#allocation94_spill] sm:$0xff] }
 0x7b7   :  { %v2594_v16 = vmul.f32 %v4985_v47, %v2589_v42  ;;  %v8757_v42 = vld [vmem:[#allocation91_spill] sm:$0xff]  ;;  %v8762_v47 = vld [vmem:[#allocation96_spill] sm:$0xff] }
 0x7b8   :  { %v4987_v26 = vpop.eup %4986  ;;  %v8763_v45 = vld [vmem:[#allocation100_spill] sm:$0xff] }
 0x7b9   :  { %v2587_v51 = vmul.f32 0.5, %v4987_v26  ;;  %v4989_v36 = vpop.eup %4988  ;;  %v8765_v26 = vld [vmem:[#allocation133_spill] sm:$0xff] }
 0x7ba   :  { %v2588_v61 = vmul.f32 0.5, %v4989_v36 }
 0x7bb   :  { %v2590_v29 = vadd.f32 0.5, %v2587_v51  ;;  %v6889_v51 = vsel %vm2520_vm6, %v6813_v10, %v8765_v26  ;;  %v8774_v10 = vld [vmem:[#allocation122_spill] sm:$0xff] }
 0x7bc   :  { %v2591_v55 = vadd.f32 0.5, %v2588_v61  ;;  %8766 = vst [vmem:[#allocation144_spill] sm:$0xff] %v6889_v51  ;;  %v2662_v36 = vpack.c.bf16 %v6889_v51, %v6889_v51  ;;  %v8770_v61 = vld [vmem:[#allocation113_spill] sm:$0xff]  ;;  %v8778_v26 = vld [vmem:[#allocation126_spill] sm:$0xff] }
 0x7bd   :  { %v2593_v2 = vmul.f32 %v2590_v29, %v6708_v3  ;;  %v8767_v29 = vld [vmem:[#allocation104_spill] sm:$0xff] }
 0x7bf   :  { %v2595_v18 = vadd.f32 %v2594_v16, %v2593_v2  ;;  %v8764_v16 = vld [vmem:[#allocation103_spill] sm:$0xff]  ;;  %v8768_v2 = vld [vmem:[#allocation109_spill] sm:$0xff] }
 0x7c1   :  { %4990 = vtanh.f32 %v2595_v18  ;;  %v6861_v32 = vsel %vm2520_vm6, %v2595_v18, %v6708_v3  ;;  %v8755_v3 = vld [vmem:[#allocation89_spill] sm:$0xff]  ;;  %v8769_v18 = vld [vmem:[#allocation110_spill] sm:$0xff] }
 0x7c7   :  { %v4991_v27 = vpop.eup %4990 }
 0x7c8   :  { %v2597_v53 = vmul.f32 %v4991_v27, %v2591_v55  ;;  %v8771_v55 = vld [vmem:[#allocation114_spill] sm:$0xff]  ;;  %v8772_v27 = vld [vmem:[#allocation116_spill] sm:$0xff] }
 0x7ca   :  { %v6866_v60 = vsel %vm2520_vm6, %v2597_v53, %v6713_v28  ;;  %v2600_v20 = vsel %vm2520_vm6, %v2597_v53, 0.0  ;;  %v8758_v28 = vld [vmem:[#allocation92_spill] sm:$0xff]  ;;  %v8775_v53 = vld [vmem:[#allocation123_spill] sm:$0xff] }
 0x7cb   :  { %v6871_v58 = vadd.f32 %v2600_v20, %v6718_v11  ;;  %v2603_v59 = vpack.c.bf16 %v6866_v60, %v6866_v60  ;;  %v8761_v11 = vld [vmem:[#allocation95_spill] sm:$0xff]  ;;  %v8776_v20 = vld [vmem:[#allocation124_spill] sm:$0xff] }
 0x7cd   :  { %2612 = vmatmul.bf16.vlgmr.msrb.gmra.mxu1 %v2603_v59  ;;  %2625 = vmatmul.bf16.vlgmr.msrb.gmra.mxu2 %v2603_v59 }
 0x7ce   :  { %2638 = vmatmul.bf16.vlgmr.msrb.gmra.mxu3 %v2603_v59  ;;  %2651 = vmatmul.bf16.vlgmr.msra.gmra.mxu0 %v2603_v59  ;;  %v8777_v59 = vld [vmem:[#allocation125_spill] sm:$0xff] }
 0x7cf   :  { %2755 = vmatpush.bf16.msrb.mxu1 %v8755_v3  ;;  %2768 = vmatpush.bf16.msrb.mxu2 %v8756_v46 }
 0x7d0   :  { %2781 = vmatpush.bf16.msrb.mxu3 %v8757_v42  ;;  %2794 = vmatpush.bf16.msra.mxu0 %v8758_v28  ;;  %v8822_v28 = vld [vmem:[#allocation150_spill] sm:$0xff] }
 0x7d3   :  { %2756 = vmatpush.bf16.msrb.mxu1 %v8759_v21  ;;  %2769 = vmatpush.bf16.msrb.mxu2 %v8760_v15  ;;  %v8821_v15 = vld [vmem:[#allocation149_spill] sm:$0xff] }
 0x7d4   :  { %2782 = vmatpush.bf16.msrb.mxu3 %v8761_v11  ;;  %2795 = vmatpush.bf16.msra.mxu0 %v8762_v47 }
 0x7d7   :  { %2757 = vmatpush.bf16.msrb.mxu1 %v8763_v45  ;;  %2770 = vmatpush.bf16.msrb.mxu2 %v8764_v16 }
 0x7d8   :  { %2783 = vmatpush.bf16.msrb.mxu3 %v8767_v29  ;;  %2796 = vmatpush.bf16.msra.mxu0 %v8768_v2 }
 0x7db   :  { %2758 = vmatpush.bf16.msrb.mxu1 %v8769_v18  ;;  %2771 = vmatpush.bf16.msrb.mxu2 %v8770_v61  ;;  %v8779_v61 = vld [vmem:[#allocation127_spill] sm:$0xff]  ;;  %v8782_v18 = vld [vmem:[#allocation130_spill] sm:$0xff] }
 0x7dc   :  { %2784 = vmatpush.bf16.msrb.mxu3 %v8771_v55  ;;  %2797 = vmatpush.bf16.msra.mxu0 %v8772_v27  ;;  %v8780_v55 = vld [vmem:[#allocation128_spill] sm:$0xff]  ;;  %v8781_v27 = vld [vmem:[#allocation129_spill] sm:$0xff] }
 0x7dd   :  { %2671 = vmatmul.bf16.vlgmr.msra.gmra.mxu1 %v2662_v36  ;;  %2684 = vmatmul.bf16.vlgmr.msra.gmra.mxu2 %v2662_v36 }
 0x7de   :  { %2697 = vmatmul.bf16.vlgmr.msra.gmra.mxu3 %v2662_v36  ;;  %2710 = vmatmul.bf16.vlgmr.msrb.gmra.mxu0 %v2662_v36  ;;  %v8783_v36 = vld [vmem:[#allocation131_spill] sm:$0xff] }
 0x7df   :  { %2759 = vmatpush.bf16.msrb.mxu1 %v8773_v5  ;;  %2772 = vmatpush.bf16.msrb.mxu2 %v8774_v10  ;;  %v8784_v5 = vld [vmem:[#allocation132_spill] sm:$0xff]  ;;  %v8785_v10 = vld [vmem:[#allocation134_spill] sm:$0xff] }
 0x7e0   :  { %2785 = vmatpush.bf16.msrb.mxu3 %v8775_v53  ;;  %2798 = vmatpush.bf16.msra.mxu0 %v8776_v20  ;;  %v8786_v53 = vld [vmem:[#allocation135_spill] sm:$0xff]  ;;  %v8787_v20 = vld [vmem:[#allocation136_spill] sm:$0xff] }
 0x7e3   :  { %2760 = vmatpush.bf16.msrb.mxu1 %v8777_v59  ;;  %2773 = vmatpush.bf16.msrb.mxu2 %v8778_v26  ;;  %v8788_v59 = vld [vmem:[#allocation137_spill] sm:$0xff]  ;;  %v8789_v26 = vld [vmem:[#allocation19_spill] sm:$0xff] }
 0x7e4   :  { %2786 = vmatpush.bf16.msrb.mxu3 %v8779_v61  ;;  %2799 = vmatpush.bf16.msra.mxu0 %v8780_v55  ;;  %v8790_v61 = vld [vmem:[#allocation18_spill] sm:$0xff]  ;;  %v8791_v55 = vld [vmem:[#allocation21_spill] sm:$0xff] }
 0x7e7   :  { %2761 = vmatpush.bf16.msrb.mxu1 %v8781_v27  ;;  %2774 = vmatpush.bf16.msrb.mxu2 %v8782_v18  ;;  %v8792_v27 = vld [vmem:[#allocation24_spill] sm:$0xff]  ;;  %v8793_v18 = vld [vmem:[#allocation22_spill] sm:$0xff] }
 0x7e8   :  { %2787 = vmatpush.bf16.msrb.mxu3 %v8783_v36  ;;  %2800 = vmatpush.bf16.msra.mxu0 %v8784_v5  ;;  %v8794_v36 = vld [vmem:[#allocation20_spill] sm:$0xff]  ;;  %v8795_v5 = vld [vmem:[#allocation23_spill] sm:$0xff] }
 0x7eb   :  { %2762 = vmatpush.bf16.msrb.mxu1 %v8785_v10  ;;  %2775 = vmatpush.bf16.msrb.mxu2 %v8786_v53  ;;  %v8796_v10 = vld [vmem:[#allocation27_spill] sm:$0xff]  ;;  %v8797_v53 = vld [vmem:[#allocation26_spill] sm:$0xff] }
 0x7ec   :  { %2788 = vmatpush.bf16.msrb.mxu3 %v8787_v20  ;;  %2801 = vmatpush.bf16.msra.mxu0 %v8788_v59  ;;  %v8798_v20 = vld [vmem:[#allocation25_spill] sm:$0xff]  ;;  %v8799_v59 = vld [vmem:[#allocation28_spill] sm:$0xff] }
 0x7ef   :  { %2835 = vmatpush.bf16.msra.mxu1 %v8789_v26  ;;  %2848 = vmatpush.bf16.msra.mxu2 %v8790_v61  ;;  %v8800_v26 = vld [vmem:[#allocation31_spill] sm:$0xff]  ;;  %v8801_v61 = vld [vmem:[#allocation30_spill] sm:$0xff] }
 0x7f0   :  { %2861 = vmatpush.bf16.msra.mxu3 %v8791_v55  ;;  %2874 = vmatpush.bf16.msrb.mxu0 %v8792_v27  ;;  %v8802_v55 = vld [vmem:[#allocation29_spill] sm:$0xff]  ;;  %v8803_v27 = vld [vmem:[#allocation32_spill] sm:$0xff] }
 0x7f3   :  { %2836 = vmatpush.bf16.msra.mxu1 %v8793_v18  ;;  %2849 = vmatpush.bf16.msra.mxu2 %v8794_v36  ;;  %v8804_v18 = vld [vmem:[#allocation35_spill] sm:$0xff]  ;;  %v8805_v36 = vld [vmem:[#allocation34_spill] sm:$0xff] }
 0x7f4   :  { %2862 = vmatpush.bf16.msra.mxu3 %v8795_v5  ;;  %2875 = vmatpush.bf16.msrb.mxu0 %v8796_v10  ;;  %v8806_v5 = vld [vmem:[#allocation33_spill] sm:$0xff]  ;;  %v8807_v10 = vld [vmem:[#allocation36_spill] sm:$0xff] }
 0x7f7   :  { %2837 = vmatpush.bf16.msra.mxu1 %v8797_v53  ;;  %2850 = vmatpush.bf16.msra.mxu2 %v8798_v20  ;;  %v8808_v53 = vld [vmem:[#allocation40_spill] sm:$0xff]  ;;  %v8809_v20 = vld [vmem:[#allocation39_spill] sm:$0xff] }
 0x7f8   :  { %2863 = vmatpush.bf16.msra.mxu3 %v8799_v59  ;;  %2876 = vmatpush.bf16.msrb.mxu0 %v8800_v26  ;;  %v8810_v59 = vld [vmem:[#allocation37_spill] sm:$0xff]  ;;  %v8811_v26 = vld [vmem:[#allocation42_spill] sm:$0xff] }
 0x7fb   :  { %2838 = vmatpush.bf16.msra.mxu1 %v8801_v61  ;;  %2851 = vmatpush.bf16.msra.mxu2 %v8802_v55  ;;  %v8812_v61 = vld [vmem:[#allocation45_spill] sm:$0xff]  ;;  %v8813_v55 = vld [vmem:[#allocation44_spill] sm:$0xff] }
 0x7fc   :  { %2864 = vmatpush.bf16.msra.mxu3 %v8803_v27  ;;  %2877 = vmatpush.bf16.msrb.mxu0 %v8804_v18  ;;  %v8814_v27 = vld [vmem:[#allocation43_spill] sm:$0xff]  ;;  %v8815_v18 = vld [vmem:[#allocation46_spill] sm:$0xff] }
 0x7ff   :  { %2839 = vmatpush.bf16.msra.mxu1 %v8805_v36  ;;  %2852 = vmatpush.bf16.msra.mxu2 %v8806_v5  ;;  %v8816_v36 = vld [vmem:[#allocation50_spill] sm:$0xff]  ;;  %v8817_v5 = vld [vmem:[#allocation49_spill] sm:$0xff] }
 0x800   :  { %2865 = vmatpush.bf16.msra.mxu3 %v8807_v10  ;;  %2878 = vmatpush.bf16.msrb.mxu0 %v8808_v53  ;;  %v8818_v10 = vld [vmem:[#allocation47_spill] sm:$0xff] }
 0x801   :  { %v8819_v53 = vld [vmem:[#allocation51_spill] sm:$0xff] }
 0x803   :  { %2840 = vmatpush.bf16.msra.mxu1 %v8809_v20  ;;  %2853 = vmatpush.bf16.msra.mxu2 %v8810_v59  ;;  %v8820_v20 = vld [vmem:[#allocation55_spill] sm:$0xff] }
 0x804   :  { %2866 = vmatpush.bf16.msra.mxu3 %v8811_v26  ;;  %2879 = vmatpush.bf16.msrb.mxu0 %v8812_v61 }
 0x807   :  { %2841 = vmatpush.bf16.msra.mxu1 %v8813_v55  ;;  %2854 = vmatpush.bf16.msra.mxu2 %v8814_v27 }
 0x808   :  { %2867 = vmatpush.bf16.msra.mxu3 %v8815_v18  ;;  %2880 = vmatpush.bf16.msrb.mxu0 %v8816_v36 }
 0x80b   :  { %2842 = vmatpush.bf16.msra.mxu1 %v8817_v5  ;;  %2855 = vmatpush.bf16.msra.mxu2 %v8818_v10 }
 0x80c   :  { %2868 = vmatpush.bf16.msra.mxu3 %v8819_v53  ;;  %2881 = vmatpush.bf16.msrb.mxu0 %v8820_v20 }
 0x84a   :  { %v6947_v59 = vpop.f32.mrf.mxu1 }
 0x84b   :  { %v6949_v26 = vpop.f32.mrf.mxu0 }
 0x850   :  { %v6951_v61 = vpop.f32.mrf.mxu2 }
 0x851   :  { %v6953_v55 = vpop.f32.mrf.mxu3 }
 0x852   :  { %v2615_v27 = vpop.f32.mrf.mxu1 }
 0x853   :  { %v2654_v18 = vpop.f32.mrf.mxu0 }
 0x858   :  { %v2628_v2 = vpop.f32.mrf.mxu2 }
 0x859   :  { %v2641_v36 = vpop.f32.mrf.mxu3 }
 0x85a   :  { %v2672_v29 = vpop.f32.mrf.mxu1 }
 0x85b   :  { %v2711_v5 = vpop.f32.mrf.mxu0 }
 0x85c   :  { %v2720_v51 = vrot.slane %v2711_v5, 4 }
 0x860   :  { %v2685_v10 = vpop.f32.mrf.mxu2 }
 0x861   :  { %v2719_v16 = vrot.slane %v2685_v10, 4  ;;  %v2698_v53 = vpop.f32.mrf.mxu3 }
 0x862   :  { %v2722_v20 = vsel %vm145_vm0, %v2698_v53, %v2720_v51  ;;  %v2674_v45 = vpop.f32.mrf.mxu1 }
 0x863   :  { %v2721_v47 = vsel %vm145_vm0, %v2672_v29, %v2719_v16  ;;  %v2713_v11 = vpop.f32.mrf.mxu0  ;;  %v2726_v42 = vadd.f32 %v2722_v20, %v8822_v28  ;;  %v8823_v16 = vld [vmem:[#allocation38_spill] sm:$0xff] }
 0x864   :  { %v2725_v21 = vadd.f32 %v2721_v47, %v8821_v15  ;;  %vm2751_vm7 = vcmp.eq.s32.totalorder %v8823_v16, 1  ;;  %v8842_v16 = vld [vmem:[#allocation121_spill] sm:$0xff] }
 0x865   :  { %v2736_v2 = vrot.slane %v2726_v42, 4  ;;  %v2728_v5 = vmul.f32 0.5, %v2726_v42 }
 0x866   :  { %v2727_v27 = vmul.f32 0.5, %v2725_v21 }
 0x868   :  { %4992 = vtanh.f32 %v2727_v27  ;;  %v2687_v18 = vpop.f32.mrf.mxu2 }
 0x869   :  { %v2700_v36 = vpop.f32.mrf.mxu3  ;;  %4994 = vtanh.f32 %v2736_v2  ;;  %v2659_v18 = vadd.f32 %v6949_v26, %v8687_v62 }
 0x86a   :  { %4996 = vtanh.f32 %v2728_v5  ;;  %v2657_v5 = vadd.f32 %v6951_v61, %v8554_v48 }
 0x86e   :  { %v4993_v46 = vpop.eup %4992 }
 0x86f   :  { %v2731_v10 = vmul.f32 0.5, %v4993_v46  ;;  %v4995_v51 = vpop.eup %4994 }
 0x870   :  { %v4997_v15 = vpop.eup %4996 }
 0x871   :  { %v2733_v3 = vadd.f32 0.5, %v2731_v10  ;;  %v2732_v42 = vmul.f32 0.5, %v4997_v15 }
 0x873   :  { %v2740_v45 = vrot.slane %v2733_v3, 4  ;;  %v2743_v53 = vmul.f32 %v4995_v51, %v2733_v3  ;;  %v2734_v47 = vadd.f32 0.5, %v2732_v42 }
 0x875   :  { %v2742_v11 = vmul.f32 %v2740_v45, %v6811_v56 }
 0x877   :  { %v2744_v28 = vadd.f32 %v2743_v53, %v2742_v11  ;;  %v2658_v11 = vadd.f32 %v6953_v55, %v8555_v14 }
 0x879   :  { %4998 = vtanh.f32 %v2744_v28  ;;  %v6964_v21 = vsel %vm2751_vm7, %v2744_v28, %v6811_v56  ;;  %v2656_v56 = vadd.f32 %v6947_v59, %v8686_v50 }
 0x87f   :  { %v4999_v46 = vpop.eup %4998 }
 0x880   :  { %v6966_v29 = vmul.f32 %v4999_v46, %v2734_v47 }
 0x882   :  { %v2754_v3 = vpack.c.bf16 %v6966_v29, %v6966_v29 }
 0x884   :  { %2763 = vmatmul.bf16.vlgmr.msrb.gmra.mxu1 %v2754_v3  ;;  %2776 = vmatmul.bf16.vlgmr.msrb.gmra.mxu2 %v2754_v3 }
 0x885   :  { %2789 = vmatmul.bf16.vlgmr.msrb.gmra.mxu3 %v2754_v3  ;;  %2802 = vmatmul.bf16.vlgmr.msra.gmra.mxu0 %v2754_v3 }
 0x886   :  { %2894 = vmatpush.bf16.msrb.mxu1 %v8520_v57  ;;  %2907 = vmatpush.bf16.msrb.mxu2 %v8521_v34 }
 0x887   :  { %2920 = vmatpush.bf16.msrb.mxu3 %v8522_v19  ;;  %2933 = vmatpush.bf16.msra.mxu0 %v8523_v52 }
 0x88a   :  { %2895 = vmatpush.bf16.msrb.mxu1 %v8524_v4  ;;  %2908 = vmatpush.bf16.msrb.mxu2 %v8525_v12 }
 0x88b   :  { %2921 = vmatpush.bf16.msrb.mxu3 %v8526_v30  ;;  %2934 = vmatpush.bf16.msra.mxu0 %v8527_v39 }
 0x88e   :  { %2896 = vmatpush.bf16.msrb.mxu1 %v8528_v25  ;;  %2909 = vmatpush.bf16.msrb.mxu2 %v8529_v41 }
 0x88f   :  { %2922 = vmatpush.bf16.msrb.mxu3 %v8530_v49  ;;  %2935 = vmatpush.bf16.msra.mxu0 %v8531_v35 }
 0x892   :  { %2897 = vmatpush.bf16.msrb.mxu1 %v8532_v23  ;;  %2910 = vmatpush.bf16.msrb.mxu2 %v8533_v31 }
 0x893   :  { %2923 = vmatpush.bf16.msrb.mxu3 %v8534_v8  ;;  %2936 = vmatpush.bf16.msra.mxu0 %v8535_v17 }
 0x896   :  { %2898 = vmatpush.bf16.msrb.mxu1 %v8536_v63  ;;  %2911 = vmatpush.bf16.msrb.mxu2 %v8537_v44 }
 0x897   :  { %2924 = vmatpush.bf16.msrb.mxu3 %v8538_v6  ;;  %2937 = vmatpush.bf16.msra.mxu0 %v8539_v7 }
 0x89a   :  { %2899 = vmatpush.bf16.msrb.mxu1 %v8540_v22  ;;  %2912 = vmatpush.bf16.msrb.mxu2 %v8541_v24 }
 0x89b   :  { %2925 = vmatpush.bf16.msrb.mxu3 %v8542_v9  ;;  %2938 = vmatpush.bf16.msra.mxu0 %v8543_v40 }
 0x89e   :  { %2900 = vmatpush.bf16.msrb.mxu1 %v8544_v33  ;;  %2913 = vmatpush.bf16.msrb.mxu2 %v8545_v54 }
 0x89f   :  { %2926 = vmatpush.bf16.msrb.mxu3 %v8546_v0  ;;  %2939 = vmatpush.bf16.msra.mxu0 %v8547_v38 }
 0x8a2   :  { %2901 = vmatpush.bf16.msrb.mxu1 %v8548_v1  ;;  %2914 = vmatpush.bf16.msrb.mxu2 %v8549_v37 }
 0x8a3   :  { %2927 = vmatpush.bf16.msrb.mxu3 %v8617_v13  ;;  %2940 = vmatpush.bf16.msra.mxu0 %v8618_v43 }
 0x901   :  { %v2764_v20 = vpop.f32.mrf.mxu1 }
 0x902   :  { %v2807_v27 = vadd.f32 %v2764_v20, %v2656_v56  ;;  %v2803_v2 = vpop.f32.mrf.mxu0 }
 0x903   :  { %v2810_v10 = vadd.f32 %v2803_v2, %v2659_v18 }
 0x904   :  { %v2811_v36 = vmul.f32 0.5, %v2807_v27 }
 0x906   :  { %5000 = vtanh.f32 %v2811_v36 }
 0x907   :  { %v2777_v51 = vpop.f32.mrf.mxu2  ;;  %5002 = vtanh.f32 %v2810_v10 }
 0x908   :  { %v2808_v45 = vadd.f32 %v2777_v51, %v2657_v5  ;;  %v2790_v53 = vpop.f32.mrf.mxu3 }
 0x909   :  { %v2766_v15 = vpop.f32.mrf.mxu1  ;;  %v2809_v42 = vadd.f32 %v2790_v53, %v2658_v11 }
 0x90a   :  { %v2812_v59 = vmul.f32 0.5, %v2808_v45  ;;  %v2805_v28 = vpop.f32.mrf.mxu0 }
 0x90b   :  { %v2813_v3 = vmul.f32 0.5, %v2809_v42 }
 0x90c   :  { %v5001_v47 = vpop.eup %5000  ;;  %5004 = vtanh.f32 %v2812_v59 }
 0x90d   :  { %v2817_v26 = vmul.f32 0.5, %v5001_v47  ;;  %v5003_v61 = vpop.eup %5002  ;;  %5006 = vtanh.f32 %v2813_v3  ;;  %v8828_v3 = vld [vmem:[#allocation93_spill] sm:$0xff] }
 0x90f   :  { %v2820_v46 = vadd.f32 0.5, %v2817_v26  ;;  %v2779_v56 = vpop.f32.mrf.mxu2  ;;  %v8825_v26 = vld [vmem:[#allocation90_spill] sm:$0xff] }
 0x910   :  { %v2792_v20 = vpop.f32.mrf.mxu3  ;;  %v8829_v56 = vld [vmem:[#allocation94_spill] sm:$0xff] }
 0x911   :  { %v2825_v27 = vmul.f32 %v5003_v61, %v2820_v46  ;;  %v8826_v46 = vld [vmem:[#allocation91_spill] sm:$0xff]  ;;  %v8831_v61 = vld [vmem:[#allocation96_spill] sm:$0xff] }
 0x912   :  { %v5005_v2 = vpop.eup %5004  ;;  %v8832_v20 = vld [vmem:[#allocation100_spill] sm:$0xff] }
 0x913   :  { %v2818_v18 = vmul.f32 0.5, %v5005_v2  ;;  %v5007_v5 = vpop.eup %5006  ;;  %v8834_v2 = vld [vmem:[#allocation144_spill] sm:$0xff] }
 0x914   :  { %v2819_v45 = vmul.f32 0.5, %v5007_v5 }
 0x915   :  { %v2821_v36 = vadd.f32 0.5, %v2818_v18  ;;  %v7042_v18 = vsel %vm2751_vm7, %v6966_v29, %v8834_v2  ;;  %v8843_v29 = vld [vmem:[#allocation122_spill] sm:$0xff] }
 0x916   :  { %v2822_v53 = vadd.f32 0.5, %v2819_v45  ;;  %8835 = vst [vmem:[#allocation52_spill] sm:$0xff] %v7042_v18  ;;  %v2893_v5 = vpack.c.bf16 %v7042_v18, %v7042_v18  ;;  %v8839_v45 = vld [vmem:[#allocation113_spill] sm:$0xff]  ;;  %v8847_v2 = vld [vmem:[#allocation126_spill] sm:$0xff] }
 0x917   :  { %v2824_v55 = vmul.f32 %v2821_v36, %v6861_v32  ;;  %v8836_v36 = vld [vmem:[#allocation104_spill] sm:$0xff] }
 0x919   :  { %v2826_v10 = vadd.f32 %v2825_v27, %v2824_v55  ;;  %v8833_v27 = vld [vmem:[#allocation103_spill] sm:$0xff]  ;;  %v8837_v55 = vld [vmem:[#allocation109_spill] sm:$0xff] }
 0x91b   :  { %5008 = vtanh.f32 %v2826_v10  ;;  %v7014_v51 = vsel %vm2751_vm7, %v2826_v10, %v6861_v32  ;;  %v8824_v32 = vld [vmem:[#allocation89_spill] sm:$0xff]  ;;  %v8838_v10 = vld [vmem:[#allocation110_spill] sm:$0xff] }
 0x921   :  { %v5009_v11 = vpop.eup %5008 }
 0x922   :  { %v2828_v15 = vmul.f32 %v5009_v11, %v2822_v53  ;;  %v8840_v53 = vld [vmem:[#allocation114_spill] sm:$0xff]  ;;  %v8841_v11 = vld [vmem:[#allocation116_spill] sm:$0xff] }
 0x924   :  { %v7019_v59 = vsel %vm2751_vm7, %v2828_v15, %v6866_v60  ;;  %v2831_v28 = vsel %vm2751_vm7, %v2828_v15, 0.0  ;;  %v8827_v60 = vld [vmem:[#allocation92_spill] sm:$0xff]  ;;  %v8844_v15 = vld [vmem:[#allocation123_spill] sm:$0xff] }
 0x925   :  { %v7024_v42 = vadd.f32 %v2831_v28, %v6871_v58  ;;  %v2834_v47 = vpack.c.bf16 %v7019_v59, %v7019_v59  ;;  %v8830_v58 = vld [vmem:[#allocation95_spill] sm:$0xff]  ;;  %v8845_v28 = vld [vmem:[#allocation124_spill] sm:$0xff] }
 0x927   :  { %2843 = vmatmul.bf16.vlgmr.msra.gmra.mxu1 %v2834_v47  ;;  %2856 = vmatmul.bf16.vlgmr.msra.gmra.mxu2 %v2834_v47 }
 0x928   :  { %2869 = vmatmul.bf16.vlgmr.msra.gmra.mxu3 %v2834_v47  ;;  %2882 = vmatmul.bf16.vlgmr.msrb.gmra.mxu0 %v2834_v47  ;;  %v8846_v47 = vld [vmem:[#allocation125_spill] sm:$0xff] }
 0x929   :  { %2986 = vmatpush.bf16.msra.mxu1 %v8824_v32  ;;  %2999 = vmatpush.bf16.msra.mxu2 %v8825_v26 }
 0x92a   :  { %3012 = vmatpush.bf16.msra.mxu3 %v8826_v46  ;;  %3025 = vmatpush.bf16.msrb.mxu0 %v8827_v60  ;;  %v8891_v60 = vld [vmem:[#allocation153_spill] sm:$0xff] }
 0x92d   :  { %2987 = vmatpush.bf16.msra.mxu1 %v8828_v3  ;;  %3000 = vmatpush.bf16.msra.mxu2 %v8829_v56  ;;  %v8890_v56 = vld [vmem:[#allocation152_spill] sm:$0xff] }
 0x92e   :  { %3013 = vmatpush.bf16.msra.mxu3 %v8830_v58  ;;  %3026 = vmatpush.bf16.msrb.mxu0 %v8831_v61 }
 0x931   :  { %2988 = vmatpush.bf16.msra.mxu1 %v8832_v20  ;;  %3001 = vmatpush.bf16.msra.mxu2 %v8833_v27 }
 0x932   :  { %3014 = vmatpush.bf16.msra.mxu3 %v8836_v36  ;;  %3027 = vmatpush.bf16.msrb.mxu0 %v8837_v55 }
 0x935   :  { %2989 = vmatpush.bf16.msra.mxu1 %v8838_v10  ;;  %3002 = vmatpush.bf16.msra.mxu2 %v8839_v45  ;;  %v8848_v45 = vld [vmem:[#allocation127_spill] sm:$0xff]  ;;  %v8851_v10 = vld [vmem:[#allocation130_spill] sm:$0xff] }
 0x936   :  { %3015 = vmatpush.bf16.msra.mxu3 %v8840_v53  ;;  %3028 = vmatpush.bf16.msrb.mxu0 %v8841_v11  ;;  %v8849_v53 = vld [vmem:[#allocation128_spill] sm:$0xff]  ;;  %v8850_v11 = vld [vmem:[#allocation129_spill] sm:$0xff] }
 0x937   :  { %2902 = vmatmul.bf16.vlgmr.msrb.gmra.mxu1 %v2893_v5  ;;  %2915 = vmatmul.bf16.vlgmr.msrb.gmra.mxu2 %v2893_v5 }
 0x938   :  { %2928 = vmatmul.bf16.vlgmr.msrb.gmra.mxu3 %v2893_v5  ;;  %2941 = vmatmul.bf16.vlgmr.msra.gmra.mxu0 %v2893_v5  ;;  %v8852_v5 = vld [vmem:[#allocation131_spill] sm:$0xff] }
 0x939   :  { %2990 = vmatpush.bf16.msra.mxu1 %v8842_v16  ;;  %3003 = vmatpush.bf16.msra.mxu2 %v8843_v29  ;;  %v8853_v16 = vld [vmem:[#allocation132_spill] sm:$0xff]  ;;  %v8854_v29 = vld [vmem:[#allocation134_spill] sm:$0xff] }
 0x93a   :  { %3016 = vmatpush.bf16.msra.mxu3 %v8844_v15  ;;  %3029 = vmatpush.bf16.msrb.mxu0 %v8845_v28  ;;  %v8855_v15 = vld [vmem:[#allocation135_spill] sm:$0xff]  ;;  %v8856_v28 = vld [vmem:[#allocation136_spill] sm:$0xff] }
 0x93d   :  { %2991 = vmatpush.bf16.msra.mxu1 %v8846_v47  ;;  %3004 = vmatpush.bf16.msra.mxu2 %v8847_v2  ;;  %v8857_v47 = vld [vmem:[#allocation137_spill] sm:$0xff]  ;;  %v8858_v2 = vld [vmem:[#allocation19_spill] sm:$0xff] }
 0x93e   :  { %3017 = vmatpush.bf16.msra.mxu3 %v8848_v45  ;;  %3030 = vmatpush.bf16.msrb.mxu0 %v8849_v53  ;;  %v8859_v45 = vld [vmem:[#allocation18_spill] sm:$0xff]  ;;  %v8860_v53 = vld [vmem:[#allocation21_spill] sm:$0xff] }
 0x941   :  { %2992 = vmatpush.bf16.msra.mxu1 %v8850_v11  ;;  %3005 = vmatpush.bf16.msra.mxu2 %v8851_v10  ;;  %v8861_v11 = vld [vmem:[#allocation24_spill] sm:$0xff]  ;;  %v8862_v10 = vld [vmem:[#allocation22_spill] sm:$0xff] }
 0x942   :  { %3018 = vmatpush.bf16.msra.mxu3 %v8852_v5  ;;  %3031 = vmatpush.bf16.msrb.mxu0 %v8853_v16  ;;  %v8863_v5 = vld [vmem:[#allocation20_spill] sm:$0xff]  ;;  %v8864_v16 = vld [vmem:[#allocation23_spill] sm:$0xff] }
 0x945   :  { %2993 = vmatpush.bf16.msra.mxu1 %v8854_v29  ;;  %3006 = vmatpush.bf16.msra.mxu2 %v8855_v15  ;;  %v8865_v29 = vld [vmem:[#allocation27_spill] sm:$0xff]  ;;  %v8866_v15 = vld [vmem:[#allocation26_spill] sm:$0xff] }
 0x946   :  { %3019 = vmatpush.bf16.msra.mxu3 %v8856_v28  ;;  %3032 = vmatpush.bf16.msrb.mxu0 %v8857_v47  ;;  %v8867_v28 = vld [vmem:[#allocation25_spill] sm:$0xff]  ;;  %v8868_v47 = vld [vmem:[#allocation28_spill] sm:$0xff] }
 0x949   :  { %3066 = vmatpush.bf16.msrb.mxu1 %v8858_v2  ;;  %3079 = vmatpush.bf16.msrb.mxu2 %v8859_v45  ;;  %v8869_v2 = vld [vmem:[#allocation31_spill] sm:$0xff]  ;;  %v8870_v45 = vld [vmem:[#allocation30_spill] sm:$0xff] }
 0x94a   :  { %3092 = vmatpush.bf16.msrb.mxu3 %v8860_v53  ;;  %3105 = vmatpush.bf16.msra.mxu0 %v8861_v11  ;;  %v8871_v53 = vld [vmem:[#allocation29_spill] sm:$0xff]  ;;  %v8872_v11 = vld [vmem:[#allocation32_spill] sm:$0xff] }
 0x94d   :  { %3067 = vmatpush.bf16.msrb.mxu1 %v8862_v10  ;;  %3080 = vmatpush.bf16.msrb.mxu2 %v8863_v5  ;;  %v8873_v10 = vld [vmem:[#allocation35_spill] sm:$0xff]  ;;  %v8874_v5 = vld [vmem:[#allocation34_spill] sm:$0xff] }
 0x94e   :  { %3093 = vmatpush.bf16.msrb.mxu3 %v8864_v16  ;;  %3106 = vmatpush.bf16.msra.mxu0 %v8865_v29  ;;  %v8875_v16 = vld [vmem:[#allocation33_spill] sm:$0xff]  ;;  %v8876_v29 = vld [vmem:[#allocation36_spill] sm:$0xff] }
 0x951   :  { %3068 = vmatpush.bf16.msrb.mxu1 %v8866_v15  ;;  %3081 = vmatpush.bf16.msrb.mxu2 %v8867_v28  ;;  %v8877_v15 = vld [vmem:[#allocation40_spill] sm:$0xff]  ;;  %v8878_v28 = vld [vmem:[#allocation39_spill] sm:$0xff] }
 0x952   :  { %3094 = vmatpush.bf16.msrb.mxu3 %v8868_v47  ;;  %3107 = vmatpush.bf16.msra.mxu0 %v8869_v2  ;;  %v8879_v47 = vld [vmem:[#allocation37_spill] sm:$0xff]  ;;  %v8880_v2 = vld [vmem:[#allocation42_spill] sm:$0xff] }
 0x955   :  { %3069 = vmatpush.bf16.msrb.mxu1 %v8870_v45  ;;  %3082 = vmatpush.bf16.msrb.mxu2 %v8871_v53  ;;  %v8881_v45 = vld [vmem:[#allocation45_spill] sm:$0xff]  ;;  %v8882_v53 = vld [vmem:[#allocation44_spill] sm:$0xff] }
 0x956   :  { %3095 = vmatpush.bf16.msrb.mxu3 %v8872_v11  ;;  %3108 = vmatpush.bf16.msra.mxu0 %v8873_v10  ;;  %v8883_v11 = vld [vmem:[#allocation43_spill] sm:$0xff]  ;;  %v8884_v10 = vld [vmem:[#allocation46_spill] sm:$0xff] }
 0x959   :  { %3070 = vmatpush.bf16.msrb.mxu1 %v8874_v5  ;;  %3083 = vmatpush.bf16.msrb.mxu2 %v8875_v16  ;;  %v8885_v5 = vld [vmem:[#allocation50_spill] sm:$0xff]  ;;  %v8886_v16 = vld [vmem:[#allocation49_spill] sm:$0xff] }
 0x95a   :  { %3096 = vmatpush.bf16.msrb.mxu3 %v8876_v29  ;;  %3109 = vmatpush.bf16.msra.mxu0 %v8877_v15  ;;  %v8887_v29 = vld [vmem:[#allocation47_spill] sm:$0xff] }
 0x95b   :  { %v8888_v15 = vld [vmem:[#allocation51_spill] sm:$0xff] }
 0x95d   :  { %3071 = vmatpush.bf16.msrb.mxu1 %v8878_v28  ;;  %3084 = vmatpush.bf16.msrb.mxu2 %v8879_v47  ;;  %v8889_v28 = vld [vmem:[#allocation55_spill] sm:$0xff] }
 0x95e   :  { %3097 = vmatpush.bf16.msrb.mxu3 %v8880_v2  ;;  %3110 = vmatpush.bf16.msra.mxu0 %v8881_v45 }
 0x961   :  { %3072 = vmatpush.bf16.msrb.mxu1 %v8882_v53  ;;  %3085 = vmatpush.bf16.msrb.mxu2 %v8883_v11 }
 0x962   :  { %3098 = vmatpush.bf16.msrb.mxu3 %v8884_v10  ;;  %3111 = vmatpush.bf16.msra.mxu0 %v8885_v5 }
 0x965   :  { %3073 = vmatpush.bf16.msrb.mxu1 %v8886_v16  ;;  %3086 = vmatpush.bf16.msrb.mxu2 %v8887_v29 }
 0x966   :  { %3099 = vmatpush.bf16.msrb.mxu3 %v8888_v15  ;;  %3112 = vmatpush.bf16.msra.mxu0 %v8889_v28 }
 0x9a4   :  { %v7100_v47 = vpop.f32.mrf.mxu1 }
 0x9a5   :  { %v7102_v2 = vpop.f32.mrf.mxu0 }
 0x9aa   :  { %v7104_v45 = vpop.f32.mrf.mxu2 }
 0x9ab   :  { %v7106_v53 = vpop.f32.mrf.mxu3 }
 0x9ac   :  { %v2846_v11 = vpop.f32.mrf.mxu1 }
 0x9ad   :  { %v2885_v10 = vpop.f32.mrf.mxu0 }
 0x9b2   :  { %v2859_v55 = vpop.f32.mrf.mxu2 }
 0x9b3   :  { %v2872_v5 = vpop.f32.mrf.mxu3 }
 0x9b4   :  { %v2903_v36 = vpop.f32.mrf.mxu1 }
 0x9b5   :  { %v2942_v16 = vpop.f32.mrf.mxu0 }
 0x9b6   :  { %v2951_v18 = vrot.slane %v2942_v16, 4 }
 0x9ba   :  { %v2916_v29 = vpop.f32.mrf.mxu2 }
 0x9bb   :  { %v2950_v27 = vrot.slane %v2916_v29, 4  ;;  %v2929_v15 = vpop.f32.mrf.mxu3 }
 0x9bc   :  { %v2953_v28 = vsel %vm145_vm0, %v2929_v15, %v2951_v18  ;;  %v2905_v20 = vpop.f32.mrf.mxu1 }
 0x9bd   :  { %v2952_v61 = vsel %vm145_vm0, %v2903_v36, %v2950_v27  ;;  %v2944_v58 = vpop.f32.mrf.mxu0  ;;  %v2957_v46 = vadd.f32 %v2953_v28, %v8891_v60 }
 0x9be   :  { %v2956_v3 = vadd.f32 %v2952_v61, %v8890_v56  ;;  %v8892_v61 = vld [vmem:[#allocation151_spill] sm:$0xff] }
 0x9bf   :  { %v2967_v55 = vrot.slane %v2957_v46, 4  ;;  %v2959_v16 = vmul.f32 0.5, %v2957_v46  ;;  %vm2982_vm8 = vcmp.eq.s32.totalorder %v8892_v61, 1  ;;  %v8911_v61 = vld [vmem:[#allocation121_spill] sm:$0xff] }
 0x9c0   :  { %v2958_v11 = vmul.f32 0.5, %v2956_v3 }
 0x9c2   :  { %5010 = vtanh.f32 %v2958_v11  ;;  %v2918_v10 = vpop.f32.mrf.mxu2 }
 0x9c3   :  { %v2931_v5 = vpop.f32.mrf.mxu3  ;;  %5012 = vtanh.f32 %v2967_v55  ;;  %v2890_v10 = vadd.f32 %v7102_v2, %v8687_v62 }
 0x9c4   :  { %5014 = vtanh.f32 %v2959_v16  ;;  %v2888_v16 = vadd.f32 %v7104_v45, %v8554_v48 }
 0x9c8   :  { %v5011_v26 = vpop.eup %5010 }
 0x9c9   :  { %v2962_v29 = vmul.f32 0.5, %v5011_v26  ;;  %v5013_v18 = vpop.eup %5012 }
 0x9ca   :  { %v5015_v27 = vpop.eup %5014 }
 0x9cb   :  { %v2964_v32 = vadd.f32 0.5, %v2962_v29  ;;  %v2963_v46 = vmul.f32 0.5, %v5015_v27 }
 0x9cd   :  { %v2971_v20 = vrot.slane %v2964_v32, 4  ;;  %v2974_v15 = vmul.f32 %v5013_v18, %v2964_v32  ;;  %v2965_v3 = vadd.f32 0.5, %v2963_v46 }
 0x9cf   :  { %v2973_v58 = vmul.f32 %v2971_v20, %v6964_v21 }
 0x9d1   :  { %v2975_v56 = vadd.f32 %v2974_v15, %v2973_v58  ;;  %v2889_v58 = vadd.f32 %v7106_v53, %v8555_v14 }
 0x9d3   :  { %5016 = vtanh.f32 %v2975_v56  ;;  %v7117_v60 = vsel %vm2982_vm8, %v2975_v56, %v6964_v21  ;;  %v2887_v21 = vadd.f32 %v7100_v47, %v8686_v50 }
 0x9d9   :  { %v5017_v26 = vpop.eup %5016 }
 0x9da   :  { %v7119_v36 = vmul.f32 %v5017_v26, %v2965_v3 }
 0x9dc   :  { %v2985_v32 = vpack.c.bf16 %v7119_v36, %v7119_v36 }
 0x9de   :  { %2994 = vmatmul.bf16.vlgmr.msra.gmra.mxu1 %v2985_v32  ;;  %3007 = vmatmul.bf16.vlgmr.msra.gmra.mxu2 %v2985_v32 }
 0x9df   :  { %3020 = vmatmul.bf16.vlgmr.msra.gmra.mxu3 %v2985_v32  ;;  %3033 = vmatmul.bf16.vlgmr.msrb.gmra.mxu0 %v2985_v32 }
 0x9e0   :  { %3125 = vmatpush.bf16.msra.mxu1 %v8520_v57  ;;  %3138 = vmatpush.bf16.msra.mxu2 %v8521_v34 }
 0x9e1   :  { %3151 = vmatpush.bf16.msra.mxu3 %v8522_v19  ;;  %3164 = vmatpush.bf16.msrb.mxu0 %v8523_v52 }
 0x9e4   :  { %3126 = vmatpush.bf16.msra.mxu1 %v8524_v4  ;;  %3139 = vmatpush.bf16.msra.mxu2 %v8525_v12 }
 0x9e5   :  { %3152 = vmatpush.bf16.msra.mxu3 %v8526_v30  ;;  %3165 = vmatpush.bf16.msrb.mxu0 %v8527_v39 }
 0x9e8   :  { %3127 = vmatpush.bf16.msra.mxu1 %v8528_v25  ;;  %3140 = vmatpush.bf16.msra.mxu2 %v8529_v41 }
 0x9e9   :  { %3153 = vmatpush.bf16.msra.mxu3 %v8530_v49  ;;  %3166 = vmatpush.bf16.msrb.mxu0 %v8531_v35 }
 0x9ec   :  { %3128 = vmatpush.bf16.msra.mxu1 %v8532_v23  ;;  %3141 = vmatpush.bf16.msra.mxu2 %v8533_v31 }
 0x9ed   :  { %3154 = vmatpush.bf16.msra.mxu3 %v8534_v8  ;;  %3167 = vmatpush.bf16.msrb.mxu0 %v8535_v17 }
 0x9f0   :  { %3129 = vmatpush.bf16.msra.mxu1 %v8536_v63  ;;  %3142 = vmatpush.bf16.msra.mxu2 %v8537_v44 }
 0x9f1   :  { %3155 = vmatpush.bf16.msra.mxu3 %v8538_v6  ;;  %3168 = vmatpush.bf16.msrb.mxu0 %v8539_v7 }
 0x9f4   :  { %3130 = vmatpush.bf16.msra.mxu1 %v8540_v22  ;;  %3143 = vmatpush.bf16.msra.mxu2 %v8541_v24 }
 0x9f5   :  { %3156 = vmatpush.bf16.msra.mxu3 %v8542_v9  ;;  %3169 = vmatpush.bf16.msrb.mxu0 %v8543_v40 }
 0x9f8   :  { %3131 = vmatpush.bf16.msra.mxu1 %v8544_v33  ;;  %3144 = vmatpush.bf16.msra.mxu2 %v8545_v54 }
 0x9f9   :  { %3157 = vmatpush.bf16.msra.mxu3 %v8546_v0  ;;  %3170 = vmatpush.bf16.msrb.mxu0 %v8547_v38 }
 0x9fc   :  { %3132 = vmatpush.bf16.msra.mxu1 %v8548_v1  ;;  %3145 = vmatpush.bf16.msra.mxu2 %v8549_v37 }
 0x9fd   :  { %3158 = vmatpush.bf16.msra.mxu3 %v8617_v13  ;;  %3171 = vmatpush.bf16.msrb.mxu0 %v8618_v43 }
 0xa5b   :  { %v2995_v28 = vpop.f32.mrf.mxu1 }
 0xa5c   :  { %v3038_v11 = vadd.f32 %v2995_v28, %v2887_v21  ;;  %v3034_v55 = vpop.f32.mrf.mxu0 }
 0xa5d   :  { %v3041_v29 = vadd.f32 %v3034_v55, %v2890_v10 }
 0xa5e   :  { %v3042_v5 = vmul.f32 0.5, %v3038_v11 }
 0xa60   :  { %5018 = vtanh.f32 %v3042_v5 }
 0xa61   :  { %v3008_v18 = vpop.f32.mrf.mxu2  ;;  %5020 = vtanh.f32 %v3041_v29 }
 0xa62   :  { %v3039_v20 = vadd.f32 %v3008_v18, %v2888_v16  ;;  %v3021_v15 = vpop.f32.mrf.mxu3 }
 0xa63   :  { %v2997_v27 = vpop.f32.mrf.mxu1  ;;  %v3040_v46 = vadd.f32 %v3021_v15, %v2889_v58 }
 0xa64   :  { %v3043_v47 = vmul.f32 0.5, %v3039_v20  ;;  %v3036_v56 = vpop.f32.mrf.mxu0 }
 0xa65   :  { %v3044_v32 = vmul.f32 0.5, %v3040_v46 }
 0xa66   :  { %v5019_v3 = vpop.eup %5018  ;;  %5022 = vtanh.f32 %v3043_v47 }
 0xa67   :  { %v3048_v2 = vmul.f32 0.5, %v5019_v3  ;;  %v5021_v45 = vpop.eup %5020  ;;  %5024 = vtanh.f32 %v3044_v32  ;;  %v8897_v32 = vld [vmem:[#allocation93_spill] sm:$0xff] }
 0xa69   :  { %v3051_v26 = vadd.f32 0.5, %v3048_v2  ;;  %v3010_v21 = vpop.f32.mrf.mxu2  ;;  %v8894_v2 = vld [vmem:[#allocation90_spill] sm:$0xff] }
 0xa6a   :  { %v3023_v28 = vpop.f32.mrf.mxu3  ;;  %v8898_v21 = vld [vmem:[#allocation94_spill] sm:$0xff] }
 0xa6b   :  { %v3056_v11 = vmul.f32 %v5021_v45, %v3051_v26  ;;  %v8895_v26 = vld [vmem:[#allocation91_spill] sm:$0xff]  ;;  %v8900_v45 = vld [vmem:[#allocation96_spill] sm:$0xff] }
 0xa6c   :  { %v5023_v55 = vpop.eup %5022  ;;  %v8901_v28 = vld [vmem:[#allocation100_spill] sm:$0xff] }
 0xa6d   :  { %v3049_v10 = vmul.f32 0.5, %v5023_v55  ;;  %v5025_v16 = vpop.eup %5024  ;;  %v8903_v55 = vld [vmem:[#allocation52_spill] sm:$0xff] }
 0xa6e   :  { %v3050_v20 = vmul.f32 0.5, %v5025_v16 }
 0xa6f   :  { %v3052_v5 = vadd.f32 0.5, %v3049_v10  ;;  %v7195_v10 = vsel %vm2982_vm8, %v7119_v36, %v8903_v55  ;;  %v8912_v36 = vld [vmem:[#allocation122_spill] sm:$0xff] }
 0xa70   :  { %v3053_v15 = vadd.f32 0.5, %v3050_v20  ;;  %8904 = vst [vmem:[#allocation48_spill] sm:$0xff] %v7195_v10  ;;  %v3124_v16 = vpack.c.bf16 %v7195_v10, %v7195_v10  ;;  %v8908_v20 = vld [vmem:[#allocation113_spill] sm:$0xff]  ;;  %v8916_v55 = vld [vmem:[#allocation126_spill] sm:$0xff] }
 0xa71   :  { %v3055_v53 = vmul.f32 %v3052_v5, %v7014_v51  ;;  %v8905_v5 = vld [vmem:[#allocation104_spill] sm:$0xff] }
 0xa73   :  { %v3057_v29 = vadd.f32 %v3056_v11, %v3055_v53  ;;  %v8902_v11 = vld [vmem:[#allocation103_spill] sm:$0xff]  ;;  %v8906_v53 = vld [vmem:[#allocation109_spill] sm:$0xff] }
 0xa75   :  { %5026 = vtanh.f32 %v3057_v29  ;;  %v7167_v18 = vsel %vm2982_vm8, %v3057_v29, %v7014_v51  ;;  %v8893_v51 = vld [vmem:[#allocation89_spill] sm:$0xff]  ;;  %v8907_v29 = vld [vmem:[#allocation110_spill] sm:$0xff] }
 0xa7b   :  { %v5027_v58 = vpop.eup %5026 }
 0xa7c   :  { %v3059_v27 = vmul.f32 %v5027_v58, %v3053_v15  ;;  %v8909_v15 = vld [vmem:[#allocation114_spill] sm:$0xff]  ;;  %v8910_v58 = vld [vmem:[#allocation116_spill] sm:$0xff] }
 0xa7e   :  { %v7172_v47 = vsel %vm2982_vm8, %v3059_v27, %v7019_v59  ;;  %v3062_v56 = vsel %vm2982_vm8, %v3059_v27, 0.0  ;;  %v8896_v59 = vld [vmem:[#allocation92_spill] sm:$0xff]  ;;  %v8913_v27 = vld [vmem:[#allocation123_spill] sm:$0xff] }
 0xa7f   :  { %v7177_v46 = vadd.f32 %v3062_v56, %v7024_v42  ;;  %v3065_v3 = vpack.c.bf16 %v7172_v47, %v7172_v47  ;;  %v8899_v42 = vld [vmem:[#allocation95_spill] sm:$0xff]  ;;  %v8914_v56 = vld [vmem:[#allocation124_spill] sm:$0xff] }
 0xa81   :  { %3074 = vmatmul.bf16.vlgmr.msrb.gmra.mxu1 %v3065_v3  ;;  %3087 = vmatmul.bf16.vlgmr.msrb.gmra.mxu2 %v3065_v3 }
 0xa82   :  { %3100 = vmatmul.bf16.vlgmr.msrb.gmra.mxu3 %v3065_v3  ;;  %3113 = vmatmul.bf16.vlgmr.msra.gmra.mxu0 %v3065_v3  ;;  %v8915_v3 = vld [vmem:[#allocation125_spill] sm:$0xff] }
 0xa83   :  { %3217 = vmatpush.bf16.msrb.mxu1 %v8893_v51  ;;  %3230 = vmatpush.bf16.msrb.mxu2 %v8894_v2 }
 0xa84   :  { %3243 = vmatpush.bf16.msrb.mxu3 %v8895_v26  ;;  %3256 = vmatpush.bf16.msra.mxu0 %v8896_v59  ;;  %v8960_v59 = vld [vmem:[#allocation156_spill] sm:$0xff] }
 0xa87   :  { %3218 = vmatpush.bf16.msrb.mxu1 %v8897_v32  ;;  %3231 = vmatpush.bf16.msrb.mxu2 %v8898_v21  ;;  %v8959_v21 = vld [vmem:[#allocation155_spill] sm:$0xff] }
 0xa88   :  { %3244 = vmatpush.bf16.msrb.mxu3 %v8899_v42  ;;  %3257 = vmatpush.bf16.msra.mxu0 %v8900_v45 }
 0xa8b   :  { %3219 = vmatpush.bf16.msrb.mxu1 %v8901_v28  ;;  %3232 = vmatpush.bf16.msrb.mxu2 %v8902_v11 }
 0xa8c   :  { %3245 = vmatpush.bf16.msrb.mxu3 %v8905_v5  ;;  %3258 = vmatpush.bf16.msra.mxu0 %v8906_v53 }
 0xa8f   :  { %3220 = vmatpush.bf16.msrb.mxu1 %v8907_v29  ;;  %3233 = vmatpush.bf16.msrb.mxu2 %v8908_v20  ;;  %v8917_v20 = vld [vmem:[#allocation127_spill] sm:$0xff]  ;;  %v8920_v29 = vld [vmem:[#allocation130_spill] sm:$0xff] }
 0xa90   :  { %3246 = vmatpush.bf16.msrb.mxu3 %v8909_v15  ;;  %3259 = vmatpush.bf16.msra.mxu0 %v8910_v58  ;;  %v8918_v15 = vld [vmem:[#allocation128_spill] sm:$0xff]  ;;  %v8919_v58 = vld [vmem:[#allocation129_spill] sm:$0xff] }
 0xa91   :  { %3133 = vmatmul.bf16.vlgmr.msra.gmra.mxu1 %v3124_v16  ;;  %3146 = vmatmul.bf16.vlgmr.msra.gmra.mxu2 %v3124_v16 }
 0xa92   :  { %3159 = vmatmul.bf16.vlgmr.msra.gmra.mxu3 %v3124_v16  ;;  %3172 = vmatmul.bf16.vlgmr.msrb.gmra.mxu0 %v3124_v16  ;;  %v8921_v16 = vld [vmem:[#allocation131_spill] sm:$0xff] }
 0xa93   :  { %3221 = vmatpush.bf16.msrb.mxu1 %v8911_v61  ;;  %3234 = vmatpush.bf16.msrb.mxu2 %v8912_v36  ;;  %v8922_v61 = vld [vmem:[#allocation132_spill] sm:$0xff]  ;;  %v8923_v36 = vld [vmem:[#allocation134_spill] sm:$0xff] }
 0xa94   :  { %3247 = vmatpush.bf16.msrb.mxu3 %v8913_v27  ;;  %3260 = vmatpush.bf16.msra.mxu0 %v8914_v56  ;;  %v8924_v27 = vld [vmem:[#allocation135_spill] sm:$0xff]  ;;  %v8925_v56 = vld [vmem:[#allocation136_spill] sm:$0xff] }
 0xa97   :  { %3222 = vmatpush.bf16.msrb.mxu1 %v8915_v3  ;;  %3235 = vmatpush.bf16.msrb.mxu2 %v8916_v55  ;;  %v8926_v3 = vld [vmem:[#allocation137_spill] sm:$0xff]  ;;  %v8927_v55 = vld [vmem:[#allocation19_spill] sm:$0xff] }
 0xa98   :  { %3248 = vmatpush.bf16.msrb.mxu3 %v8917_v20  ;;  %3261 = vmatpush.bf16.msra.mxu0 %v8918_v15  ;;  %v8928_v20 = vld [vmem:[#allocation18_spill] sm:$0xff]  ;;  %v8929_v15 = vld [vmem:[#allocation21_spill] sm:$0xff] }
 0xa9b   :  { %3223 = vmatpush.bf16.msrb.mxu1 %v8919_v58  ;;  %3236 = vmatpush.bf16.msrb.mxu2 %v8920_v29  ;;  %v8930_v58 = vld [vmem:[#allocation24_spill] sm:$0xff]  ;;  %v8931_v29 = vld [vmem:[#allocation22_spill] sm:$0xff] }
 0xa9c   :  { %3249 = vmatpush.bf16.msrb.mxu3 %v8921_v16  ;;  %3262 = vmatpush.bf16.msra.mxu0 %v8922_v61  ;;  %v8932_v16 = vld [vmem:[#allocation20_spill] sm:$0xff]  ;;  %v8933_v61 = vld [vmem:[#allocation23_spill] sm:$0xff] }
 0xa9f   :  { %3224 = vmatpush.bf16.msrb.mxu1 %v8923_v36  ;;  %3237 = vmatpush.bf16.msrb.mxu2 %v8924_v27  ;;  %v8934_v36 = vld [vmem:[#allocation27_spill] sm:$0xff]  ;;  %v8935_v27 = vld [vmem:[#allocation26_spill] sm:$0xff] }
 0xaa0   :  { %3250 = vmatpush.bf16.msrb.mxu3 %v8925_v56  ;;  %3263 = vmatpush.bf16.msra.mxu0 %v8926_v3  ;;  %v8936_v56 = vld [vmem:[#allocation25_spill] sm:$0xff]  ;;  %v8937_v3 = vld [vmem:[#allocation28_spill] sm:$0xff] }
 0xaa3   :  { %3297 = vmatpush.bf16.msra.mxu1 %v8927_v55  ;;  %3310 = vmatpush.bf16.msra.mxu2 %v8928_v20  ;;  %v8938_v55 = vld [vmem:[#allocation31_spill] sm:$0xff]  ;;  %v8939_v20 = vld [vmem:[#allocation30_spill] sm:$0xff] }
 0xaa4   :  { %3323 = vmatpush.bf16.msra.mxu3 %v8929_v15  ;;  %3336 = vmatpush.bf16.msrb.mxu0 %v8930_v58  ;;  %v8940_v15 = vld [vmem:[#allocation29_spill] sm:$0xff]  ;;  %v8941_v58 = vld [vmem:[#allocation32_spill] sm:$0xff] }
 0xaa7   :  { %3298 = vmatpush.bf16.msra.mxu1 %v8931_v29  ;;  %3311 = vmatpush.bf16.msra.mxu2 %v8932_v16  ;;  %v8942_v29 = vld [vmem:[#allocation35_spill] sm:$0xff]  ;;  %v8943_v16 = vld [vmem:[#allocation34_spill] sm:$0xff] }
 0xaa8   :  { %3324 = vmatpush.bf16.msra.mxu3 %v8933_v61  ;;  %3337 = vmatpush.bf16.msrb.mxu0 %v8934_v36  ;;  %v8944_v61 = vld [vmem:[#allocation33_spill] sm:$0xff]  ;;  %v8945_v36 = vld [vmem:[#allocation36_spill] sm:$0xff] }
 0xaab   :  { %3299 = vmatpush.bf16.msra.mxu1 %v8935_v27  ;;  %3312 = vmatpush.bf16.msra.mxu2 %v8936_v56  ;;  %v8946_v27 = vld [vmem:[#allocation40_spill] sm:$0xff]  ;;  %v8947_v56 = vld [vmem:[#allocation39_spill] sm:$0xff] }
 0xaac   :  { %3325 = vmatpush.bf16.msra.mxu3 %v8937_v3  ;;  %3338 = vmatpush.bf16.msrb.mxu0 %v8938_v55  ;;  %v8948_v3 = vld [vmem:[#allocation37_spill] sm:$0xff]  ;;  %v8949_v55 = vld [vmem:[#allocation42_spill] sm:$0xff] }
 0xaaf   :  { %3300 = vmatpush.bf16.msra.mxu1 %v8939_v20  ;;  %3313 = vmatpush.bf16.msra.mxu2 %v8940_v15  ;;  %v8950_v20 = vld [vmem:[#allocation45_spill] sm:$0xff]  ;;  %v8951_v15 = vld [vmem:[#allocation44_spill] sm:$0xff] }
 0xab0   :  { %3326 = vmatpush.bf16.msra.mxu3 %v8941_v58  ;;  %3339 = vmatpush.bf16.msrb.mxu0 %v8942_v29  ;;  %v8952_v58 = vld [vmem:[#allocation43_spill] sm:$0xff]  ;;  %v8953_v29 = vld [vmem:[#allocation46_spill] sm:$0xff] }
 0xab3   :  { %3301 = vmatpush.bf16.msra.mxu1 %v8943_v16  ;;  %3314 = vmatpush.bf16.msra.mxu2 %v8944_v61  ;;  %v8954_v16 = vld [vmem:[#allocation50_spill] sm:$0xff]  ;;  %v8955_v61 = vld [vmem:[#allocation49_spill] sm:$0xff] }
 0xab4   :  { %3327 = vmatpush.bf16.msra.mxu3 %v8945_v36  ;;  %3340 = vmatpush.bf16.msrb.mxu0 %v8946_v27  ;;  %v8956_v36 = vld [vmem:[#allocation47_spill] sm:$0xff] }
 0xab5   :  { %v8957_v27 = vld [vmem:[#allocation51_spill] sm:$0xff] }
 0xab7   :  { %3302 = vmatpush.bf16.msra.mxu1 %v8947_v56  ;;  %3315 = vmatpush.bf16.msra.mxu2 %v8948_v3  ;;  %v8958_v56 = vld [vmem:[#allocation55_spill] sm:$0xff] }
 0xab8   :  { %3328 = vmatpush.bf16.msra.mxu3 %v8949_v55  ;;  %3341 = vmatpush.bf16.msrb.mxu0 %v8950_v20 }
 0xabb   :  { %3303 = vmatpush.bf16.msra.mxu1 %v8951_v15  ;;  %3316 = vmatpush.bf16.msra.mxu2 %v8952_v58 }
 0xabc   :  { %3329 = vmatpush.bf16.msra.mxu3 %v8953_v29  ;;  %3342 = vmatpush.bf16.msrb.mxu0 %v8954_v16 }
 0xabf   :  { %3304 = vmatpush.bf16.msra.mxu1 %v8955_v61  ;;  %3317 = vmatpush.bf16.msra.mxu2 %v8956_v36 }
 0xac0   :  { %3330 = vmatpush.bf16.msra.mxu3 %v8957_v27  ;;  %3343 = vmatpush.bf16.msrb.mxu0 %v8958_v56 }
 0xafe   :  { %v7253_v3 = vpop.f32.mrf.mxu1 }
 0xaff   :  { %v7255_v55 = vpop.f32.mrf.mxu0 }
 0xb04   :  { %v7257_v20 = vpop.f32.mrf.mxu2 }
 0xb05   :  { %v7259_v15 = vpop.f32.mrf.mxu3 }
 0xb06   :  { %v3077_v58 = vpop.f32.mrf.mxu1 }
 0xb07   :  { %v3116_v29 = vpop.f32.mrf.mxu0 }
 0xb0c   :  { %v3090_v53 = vpop.f32.mrf.mxu2 }
 0xb0d   :  { %v3103_v16 = vpop.f32.mrf.mxu3 }
 0xb0e   :  { %v3134_v5 = vpop.f32.mrf.mxu1 }
 0xb0f   :  { %v3173_v61 = vpop.f32.mrf.mxu0 }
 0xb10   :  { %v3182_v10 = vrot.slane %v3173_v61, 4 }
 0xb14   :  { %v3147_v36 = vpop.f32.mrf.mxu2 }
 0xb15   :  { %v3181_v11 = vrot.slane %v3147_v36, 4  ;;  %v3160_v27 = vpop.f32.mrf.mxu3 }
 0xb16   :  { %v3184_v56 = vsel %vm145_vm0, %v3160_v27, %v3182_v10  ;;  %v3136_v28 = vpop.f32.mrf.mxu1 }
 0xb17   :  { %v3183_v45 = vsel %vm145_vm0, %v3134_v5, %v3181_v11  ;;  %v3175_v42 = vpop.f32.mrf.mxu0  ;;  %v3188_v26 = vadd.f32 %v3184_v56, %v8960_v59  ;;  %v8961_v11 = vld [vmem:[#allocation154_spill] sm:$0xff] }
 0xb18   :  { %v3187_v32 = vadd.f32 %v3183_v45, %v8959_v21  ;;  %vm3213_vm9 = vcmp.eq.s32.totalorder %v8961_v11, 1  ;;  %v8980_v11 = vld [vmem:[#allocation121_spill] sm:$0xff] }
 0xb19   :  { %v3198_v53 = vrot.slane %v3188_v26, 4  ;;  %v3190_v61 = vmul.f32 0.5, %v3188_v26 }
 0xb1a   :  { %v3189_v58 = vmul.f32 0.5, %v3187_v32 }
 0xb1c   :  { %5028 = vtanh.f32 %v3189_v58  ;;  %v3149_v29 = vpop.f32.mrf.mxu2 }
 0xb1d   :  { %v3162_v16 = vpop.f32.mrf.mxu3  ;;  %5030 = vtanh.f32 %v3198_v53  ;;  %v3121_v29 = vadd.f32 %v7255_v55, %v8687_v62 }
 0xb1e   :  { %5032 = vtanh.f32 %v3190_v61  ;;  %v3119_v61 = vadd.f32 %v7257_v20, %v8554_v48 }
 0xb22   :  { %v5029_v2 = vpop.eup %5028 }
 0xb23   :  { %v3193_v36 = vmul.f32 0.5, %v5029_v2  ;;  %v5031_v10 = vpop.eup %5030 }
 0xb24   :  { %v5033_v21 = vpop.eup %5032 }
 0xb25   :  { %v3195_v51 = vadd.f32 0.5, %v3193_v36  ;;  %v3194_v26 = vmul.f32 0.5, %v5033_v21 }
 0xb27   :  { %v3202_v28 = vrot.slane %v3195_v51, 4  ;;  %v3205_v27 = vmul.f32 %v5031_v10, %v3195_v51  ;;  %v3196_v45 = vadd.f32 0.5, %v3194_v26 }
 0xb29   :  { %v3204_v42 = vmul.f32 %v3202_v28, %v7117_v60 }
 0xb2b   :  { %v3206_v59 = vadd.f32 %v3205_v27, %v3204_v42  ;;  %v3120_v42 = vadd.f32 %v7259_v15, %v8555_v14 }
 0xb2d   :  { %5034 = vtanh.f32 %v3206_v59  ;;  %v7270_v32 = vsel %vm3213_vm9, %v3206_v59, %v7117_v60  ;;  %v3118_v60 = vadd.f32 %v7253_v3, %v8686_v50 }
 0xb33   :  { %v5035_v2 = vpop.eup %5034 }
 0xb34   :  { %v7272_v5 = vmul.f32 %v5035_v2, %v3196_v45 }
 0xb36   :  { %v3216_v51 = vpack.c.bf16 %v7272_v5, %v7272_v5 }
 0xb38   :  { %3225 = vmatmul.bf16.vlgmr.msrb.gmra.mxu1 %v3216_v51  ;;  %3238 = vmatmul.bf16.vlgmr.msrb.gmra.mxu2 %v3216_v51 }
 0xb39   :  { %3251 = vmatmul.bf16.vlgmr.msrb.gmra.mxu3 %v3216_v51  ;;  %3264 = vmatmul.bf16.vlgmr.msra.gmra.mxu0 %v3216_v51 }
 0xb3a   :  { %3356 = vmatpush.bf16.msrb.mxu1 %v8520_v57  ;;  %3369 = vmatpush.bf16.msrb.mxu2 %v8521_v34 }
 0xb3b   :  { %3382 = vmatpush.bf16.msrb.mxu3 %v8522_v19  ;;  %3395 = vmatpush.bf16.msra.mxu0 %v8523_v52 }
 0xb3e   :  { %3357 = vmatpush.bf16.msrb.mxu1 %v8524_v4  ;;  %3370 = vmatpush.bf16.msrb.mxu2 %v8525_v12 }
 0xb3f   :  { %3383 = vmatpush.bf16.msrb.mxu3 %v8526_v30  ;;  %3396 = vmatpush.bf16.msra.mxu0 %v8527_v39 }
 0xb42   :  { %3358 = vmatpush.bf16.msrb.mxu1 %v8528_v25  ;;  %3371 = vmatpush.bf16.msrb.mxu2 %v8529_v41 }
 0xb43   :  { %3384 = vmatpush.bf16.msrb.mxu3 %v8530_v49  ;;  %3397 = vmatpush.bf16.msra.mxu0 %v8531_v35 }
 0xb46   :  { %3359 = vmatpush.bf16.msrb.mxu1 %v8532_v23  ;;  %3372 = vmatpush.bf16.msrb.mxu2 %v8533_v31 }
 0xb47   :  { %3385 = vmatpush.bf16.msrb.mxu3 %v8534_v8  ;;  %3398 = vmatpush.bf16.msra.mxu0 %v8535_v17 }
 0xb4a   :  { %3360 = vmatpush.bf16.msrb.mxu1 %v8536_v63  ;;  %3373 = vmatpush.bf16.msrb.mxu2 %v8537_v44 }
 0xb4b   :  { %3386 = vmatpush.bf16.msrb.mxu3 %v8538_v6  ;;  %3399 = vmatpush.bf16.msra.mxu0 %v8539_v7 }
 0xb4e   :  { %3361 = vmatpush.bf16.msrb.mxu1 %v8540_v22  ;;  %3374 = vmatpush.bf16.msrb.mxu2 %v8541_v24 }
 0xb4f   :  { %3387 = vmatpush.bf16.msrb.mxu3 %v8542_v9  ;;  %3400 = vmatpush.bf16.msra.mxu0 %v8543_v40 }
 0xb52   :  { %3362 = vmatpush.bf16.msrb.mxu1 %v8544_v33  ;;  %3375 = vmatpush.bf16.msrb.mxu2 %v8545_v54 }
 0xb53   :  { %3388 = vmatpush.bf16.msrb.mxu3 %v8546_v0  ;;  %3401 = vmatpush.bf16.msra.mxu0 %v8547_v38 }
 0xb56   :  { %3363 = vmatpush.bf16.msrb.mxu1 %v8548_v1  ;;  %3376 = vmatpush.bf16.msrb.mxu2 %v8549_v37 }
 0xb57   :  { %3389 = vmatpush.bf16.msrb.mxu3 %v8617_v13  ;;  %3402 = vmatpush.bf16.msra.mxu0 %v8618_v43 }
 0xbb5   :  { %v3226_v56 = vpop.f32.mrf.mxu1 }
 0xbb6   :  { %v3269_v58 = vadd.f32 %v3226_v56, %v3118_v60  ;;  %v3265_v53 = vpop.f32.mrf.mxu0 }
 0xbb7   :  { %v3272_v36 = vadd.f32 %v3265_v53, %v3121_v29 }
 0xbb8   :  { %v3273_v16 = vmul.f32 0.5, %v3269_v58 }
 0xbba   :  { %5036 = vtanh.f32 %v3273_v16 }
 0xbbb   :  { %v3239_v10 = vpop.f32.mrf.mxu2  ;;  %5038 = vtanh.f32 %v3272_v36 }
 0xbbc   :  { %v3270_v28 = vadd.f32 %v3239_v10, %v3119_v61  ;;  %v3252_v27 = vpop.f32.mrf.mxu3 }
 0xbbd   :  { %v3228_v21 = vpop.f32.mrf.mxu1  ;;  %v3271_v26 = vadd.f32 %v3252_v27, %v3120_v42 }
 0xbbe   :  { %v3274_v3 = vmul.f32 0.5, %v3270_v28  ;;  %v3267_v59 = vpop.f32.mrf.mxu0 }
 0xbbf   :  { %v3275_v51 = vmul.f32 0.5, %v3271_v26 }
 0xbc0   :  { %v5037_v45 = vpop.eup %5036  ;;  %5040 = vtanh.f32 %v3274_v3 }
 0xbc1   :  { %v3279_v55 = vmul.f32 0.5, %v5037_v45  ;;  %v5039_v20 = vpop.eup %5038  ;;  %5042 = vtanh.f32 %v3275_v51  ;;  %v8966_v51 = vld [vmem:[#allocation93_spill] sm:$0xff] }
 0xbc3   :  { %v3282_v2 = vadd.f32 0.5, %v3279_v55  ;;  %v3241_v60 = vpop.f32.mrf.mxu2  ;;  %v8963_v55 = vld [vmem:[#allocation90_spill] sm:$0xff] }
 0xbc4   :  { %v3254_v56 = vpop.f32.mrf.mxu3  ;;  %v8967_v60 = vld [vmem:[#allocation94_spill] sm:$0xff] }
 0xbc5   :  { %v3287_v58 = vmul.f32 %v5039_v20, %v3282_v2  ;;  %v8964_v2 = vld [vmem:[#allocation91_spill] sm:$0xff]  ;;  %v8969_v20 = vld [vmem:[#allocation96_spill] sm:$0xff] }
 0xbc6   :  { %v5041_v53 = vpop.eup %5040  ;;  %v8970_v56 = vld [vmem:[#allocation100_spill] sm:$0xff] }
 0xbc7   :  { %v3280_v29 = vmul.f32 0.5, %v5041_v53  ;;  %v5043_v61 = vpop.eup %5042  ;;  %v8972_v53 = vld [vmem:[#allocation48_spill] sm:$0xff] }
 0xbc8   :  { %v3281_v28 = vmul.f32 0.5, %v5043_v61 }
 0xbc9   :  { %v3283_v16 = vadd.f32 0.5, %v3280_v29  ;;  %v7348_v29 = vsel %vm3213_vm9, %v7272_v5, %v8972_v53  ;;  %v8981_v5 = vld [vmem:[#allocation122_spill] sm:$0xff] }
 0xbca   :  { %v3284_v27 = vadd.f32 0.5, %v3281_v28  ;;  %8973 = vst [vmem:[#allocation53_spill] sm:$0xff] %v7348_v29  ;;  %v3355_v61 = vpack.c.bf16 %v7348_v29, %v7348_v29  ;;  %v8977_v28 = vld [vmem:[#allocation113_spill] sm:$0xff]  ;;  %v8985_v53 = vld [vmem:[#allocation126_spill] sm:$0xff] }
 0xbcb   :  { %v3286_v15 = vmul.f32 %v3283_v16, %v7167_v18  ;;  %v8974_v16 = vld [vmem:[#allocation104_spill] sm:$0xff] }
 0xbcd   :  { %v3288_v36 = vadd.f32 %v3287_v58, %v3286_v15  ;;  %v8971_v58 = vld [vmem:[#allocation103_spill] sm:$0xff]  ;;  %v8975_v15 = vld [vmem:[#allocation109_spill] sm:$0xff] }
 0xbcf   :  { %5044 = vtanh.f32 %v3288_v36  ;;  %v7320_v10 = vsel %vm3213_vm9, %v3288_v36, %v7167_v18  ;;  %v8962_v18 = vld [vmem:[#allocation89_spill] sm:$0xff]  ;;  %v8976_v36 = vld [vmem:[#allocation110_spill] sm:$0xff] }
 0xbd5   :  { %v5045_v42 = vpop.eup %5044 }
 0xbd6   :  { %v3290_v21 = vmul.f32 %v5045_v42, %v3284_v27  ;;  %v8978_v27 = vld [vmem:[#allocation114_spill] sm:$0xff]  ;;  %v8979_v42 = vld [vmem:[#allocation116_spill] sm:$0xff] }
 0xbd8   :  { %v7325_v3 = vsel %vm3213_vm9, %v3290_v21, %v7172_v47  ;;  %v3293_v59 = vsel %vm3213_vm9, %v3290_v21, 0.0  ;;  %v8965_v47 = vld [vmem:[#allocation92_spill] sm:$0xff]  ;;  %v8982_v21 = vld [vmem:[#allocation123_spill] sm:$0xff] }
 0xbd9   :  { %v7330_v26 = vadd.f32 %v3293_v59, %v7177_v46  ;;  %v3296_v45 = vpack.c.bf16 %v7325_v3, %v7325_v3  ;;  %v8968_v46 = vld [vmem:[#allocation95_spill] sm:$0xff]  ;;  %v8983_v59 = vld [vmem:[#allocation124_spill] sm:$0xff] }
 0xbdb   :  { %3305 = vmatmul.bf16.vlgmr.msra.gmra.mxu1 %v3296_v45  ;;  %3318 = vmatmul.bf16.vlgmr.msra.gmra.mxu2 %v3296_v45 }
 0xbdc   :  { %3331 = vmatmul.bf16.vlgmr.msra.gmra.mxu3 %v3296_v45  ;;  %3344 = vmatmul.bf16.vlgmr.msrb.gmra.mxu0 %v3296_v45  ;;  %v8984_v45 = vld [vmem:[#allocation125_spill] sm:$0xff] }
 0xbdd   :  { %3448 = vmatpush.bf16.msra.mxu1 %v8962_v18  ;;  %3461 = vmatpush.bf16.msra.mxu2 %v8963_v55 }
 0xbde   :  { %3474 = vmatpush.bf16.msra.mxu3 %v8964_v2  ;;  %3487 = vmatpush.bf16.msrb.mxu0 %v8965_v47  ;;  %v9029_v47 = vld [vmem:[#allocation138_spill] sm:$0xff] }
 0xbe1   :  { %3449 = vmatpush.bf16.msra.mxu1 %v8966_v51  ;;  %3462 = vmatpush.bf16.msra.mxu2 %v8967_v60  ;;  %v9028_v60 = vld [vmem:[#allocation157_spill] sm:$0xff] }
 0xbe2   :  { %3475 = vmatpush.bf16.msra.mxu3 %v8968_v46  ;;  %3488 = vmatpush.bf16.msrb.mxu0 %v8969_v20 }
 0xbe5   :  { %3450 = vmatpush.bf16.msra.mxu1 %v8970_v56  ;;  %3463 = vmatpush.bf16.msra.mxu2 %v8971_v58 }
 0xbe6   :  { %3476 = vmatpush.bf16.msra.mxu3 %v8974_v16  ;;  %3489 = vmatpush.bf16.msrb.mxu0 %v8975_v15 }
 0xbe9   :  { %3451 = vmatpush.bf16.msra.mxu1 %v8976_v36  ;;  %3464 = vmatpush.bf16.msra.mxu2 %v8977_v28  ;;  %v8986_v28 = vld [vmem:[#allocation127_spill] sm:$0xff]  ;;  %v8989_v36 = vld [vmem:[#allocation130_spill] sm:$0xff] }
 0xbea   :  { %3477 = vmatpush.bf16.msra.mxu3 %v8978_v27  ;;  %3490 = vmatpush.bf16.msrb.mxu0 %v8979_v42  ;;  %v8987_v27 = vld [vmem:[#allocation128_spill] sm:$0xff]  ;;  %v8988_v42 = vld [vmem:[#allocation129_spill] sm:$0xff] }
 0xbeb   :  { %3364 = vmatmul.bf16.vlgmr.msrb.gmra.mxu1 %v3355_v61  ;;  %3377 = vmatmul.bf16.vlgmr.msrb.gmra.mxu2 %v3355_v61 }
 0xbec   :  { %3390 = vmatmul.bf16.vlgmr.msrb.gmra.mxu3 %v3355_v61  ;;  %3403 = vmatmul.bf16.vlgmr.msra.gmra.mxu0 %v3355_v61  ;;  %v8990_v61 = vld [vmem:[#allocation131_spill] sm:$0xff] }
 0xbed   :  { %3452 = vmatpush.bf16.msra.mxu1 %v8980_v11  ;;  %3465 = vmatpush.bf16.msra.mxu2 %v8981_v5  ;;  %v8991_v11 = vld [vmem:[#allocation132_spill] sm:$0xff]  ;;  %v8992_v5 = vld [vmem:[#allocation134_spill] sm:$0xff] }
 0xbee   :  { %3478 = vmatpush.bf16.msra.mxu3 %v8982_v21  ;;  %3491 = vmatpush.bf16.msrb.mxu0 %v8983_v59  ;;  %v8993_v21 = vld [vmem:[#allocation135_spill] sm:$0xff]  ;;  %v8994_v59 = vld [vmem:[#allocation136_spill] sm:$0xff] }
 0xbf1   :  { %3453 = vmatpush.bf16.msra.mxu1 %v8984_v45  ;;  %3466 = vmatpush.bf16.msra.mxu2 %v8985_v53  ;;  %v8995_v45 = vld [vmem:[#allocation137_spill] sm:$0xff]  ;;  %v8996_v53 = vld [vmem:[#allocation19_spill] sm:$0xff] }
 0xbf2   :  { %3479 = vmatpush.bf16.msra.mxu3 %v8986_v28  ;;  %3492 = vmatpush.bf16.msrb.mxu0 %v8987_v27  ;;  %v8997_v28 = vld [vmem:[#allocation18_spill] sm:$0xff]  ;;  %v8998_v27 = vld [vmem:[#allocation21_spill] sm:$0xff] }
 0xbf5   :  { %3454 = vmatpush.bf16.msra.mxu1 %v8988_v42  ;;  %3467 = vmatpush.bf16.msra.mxu2 %v8989_v36  ;;  %v8999_v42 = vld [vmem:[#allocation24_spill] sm:$0xff]  ;;  %v9000_v36 = vld [vmem:[#allocation22_spill] sm:$0xff] }
 0xbf6   :  { %3480 = vmatpush.bf16.msra.mxu3 %v8990_v61  ;;  %3493 = vmatpush.bf16.msrb.mxu0 %v8991_v11  ;;  %v9001_v61 = vld [vmem:[#allocation20_spill] sm:$0xff]  ;;  %v9002_v11 = vld [vmem:[#allocation23_spill] sm:$0xff] }
 0xbf9   :  { %3455 = vmatpush.bf16.msra.mxu1 %v8992_v5  ;;  %3468 = vmatpush.bf16.msra.mxu2 %v8993_v21  ;;  %v9003_v5 = vld [vmem:[#allocation27_spill] sm:$0xff]  ;;  %v9004_v21 = vld [vmem:[#allocation26_spill] sm:$0xff] }
 0xbfa   :  { %3481 = vmatpush.bf16.msra.mxu3 %v8994_v59  ;;  %3494 = vmatpush.bf16.msrb.mxu0 %v8995_v45  ;;  %v9005_v59 = vld [vmem:[#allocation25_spill] sm:$0xff]  ;;  %v9006_v45 = vld [vmem:[#allocation28_spill] sm:$0xff] }
 0xbfd   :  { %3528 = vmatpush.bf16.msrb.mxu1 %v8996_v53  ;;  %3541 = vmatpush.bf16.msrb.mxu2 %v8997_v28  ;;  %v9007_v53 = vld [vmem:[#allocation31_spill] sm:$0xff]  ;;  %v9008_v28 = vld [vmem:[#allocation30_spill] sm:$0xff] }
 0xbfe   :  { %3554 = vmatpush.bf16.msrb.mxu3 %v8998_v27  ;;  %3567 = vmatpush.bf16.msra.mxu0 %v8999_v42  ;;  %v9009_v27 = vld [vmem:[#allocation29_spill] sm:$0xff]  ;;  %v9010_v42 = vld [vmem:[#allocation32_spill] sm:$0xff] }
 0xc01   :  { %3529 = vmatpush.bf16.msrb.mxu1 %v9000_v36  ;;  %3542 = vmatpush.bf16.msrb.mxu2 %v9001_v61  ;;  %v9011_v36 = vld [vmem:[#allocation35_spill] sm:$0xff]  ;;  %v9012_v61 = vld [vmem:[#allocation34_spill] sm:$0xff] }
 0xc02   :  { %3555 = vmatpush.bf16.msrb.mxu3 %v9002_v11  ;;  %3568 = vmatpush.bf16.msra.mxu0 %v9003_v5  ;;  %v9013_v11 = vld [vmem:[#allocation33_spill] sm:$0xff]  ;;  %v9014_v5 = vld [vmem:[#allocation36_spill] sm:$0xff] }
 0xc05   :  { %3530 = vmatpush.bf16.msrb.mxu1 %v9004_v21  ;;  %3543 = vmatpush.bf16.msrb.mxu2 %v9005_v59  ;;  %v9015_v21 = vld [vmem:[#allocation40_spill] sm:$0xff]  ;;  %v9016_v59 = vld [vmem:[#allocation39_spill] sm:$0xff] }
 0xc06   :  { %3556 = vmatpush.bf16.msrb.mxu3 %v9006_v45  ;;  %3569 = vmatpush.bf16.msra.mxu0 %v9007_v53  ;;  %v9017_v45 = vld [vmem:[#allocation37_spill] sm:$0xff]  ;;  %v9018_v53 = vld [vmem:[#allocation42_spill] sm:$0xff] }
 0xc09   :  { %3531 = vmatpush.bf16.msrb.mxu1 %v9008_v28  ;;  %3544 = vmatpush.bf16.msrb.mxu2 %v9009_v27  ;;  %v9019_v28 = vld [vmem:[#allocation45_spill] sm:$0xff]  ;;  %v9020_v27 = vld [vmem:[#allocation44_spill] sm:$0xff] }
 0xc0a   :  { %3557 = vmatpush.bf16.msrb.mxu3 %v9010_v42  ;;  %3570 = vmatpush.bf16.msra.mxu0 %v9011_v36  ;;  %v9021_v42 = vld [vmem:[#allocation43_spill] sm:$0xff]  ;;  %v9022_v36 = vld [vmem:[#allocation46_spill] sm:$0xff] }
 0xc0d   :  { %3532 = vmatpush.bf16.msrb.mxu1 %v9012_v61  ;;  %3545 = vmatpush.bf16.msrb.mxu2 %v9013_v11  ;;  %v9023_v61 = vld [vmem:[#allocation50_spill] sm:$0xff]  ;;  %v9024_v11 = vld [vmem:[#allocation49_spill] sm:$0xff] }
 0xc0e   :  { %3558 = vmatpush.bf16.msrb.mxu3 %v9014_v5  ;;  %3571 = vmatpush.bf16.msra.mxu0 %v9015_v21  ;;  %v9025_v5 = vld [vmem:[#allocation47_spill] sm:$0xff] }
 0xc0f   :  { %v9026_v21 = vld [vmem:[#allocation51_spill] sm:$0xff] }
 0xc11   :  { %3533 = vmatpush.bf16.msrb.mxu1 %v9016_v59  ;;  %3546 = vmatpush.bf16.msrb.mxu2 %v9017_v45  ;;  %v9027_v59 = vld [vmem:[#allocation55_spill] sm:$0xff] }
 0xc12   :  { %3559 = vmatpush.bf16.msrb.mxu3 %v9018_v53  ;;  %3572 = vmatpush.bf16.msra.mxu0 %v9019_v28 }
 0xc15   :  { %3534 = vmatpush.bf16.msrb.mxu1 %v9020_v27  ;;  %3547 = vmatpush.bf16.msrb.mxu2 %v9021_v42 }
 0xc16   :  { %3560 = vmatpush.bf16.msrb.mxu3 %v9022_v36  ;;  %3573 = vmatpush.bf16.msra.mxu0 %v9023_v61 }
 0xc19   :  { %3535 = vmatpush.bf16.msrb.mxu1 %v9024_v11  ;;  %3548 = vmatpush.bf16.msrb.mxu2 %v9025_v5 }
 0xc1a   :  { %3561 = vmatpush.bf16.msrb.mxu3 %v9026_v21  ;;  %3574 = vmatpush.bf16.msra.mxu0 %v9027_v59 }
 0xc58   :  { %v7406_v45 = vpop.f32.mrf.mxu1 }
 0xc59   :  { %v7408_v53 = vpop.f32.mrf.mxu0 }
 0xc5e   :  { %v7410_v28 = vpop.f32.mrf.mxu2 }
 0xc5f   :  { %v7412_v27 = vpop.f32.mrf.mxu3 }
 0xc60   :  { %v3308_v42 = vpop.f32.mrf.mxu1 }
 0xc61   :  { %v3347_v36 = vpop.f32.mrf.mxu0 }
 0xc66   :  { %v3321_v15 = vpop.f32.mrf.mxu2 }
 0xc67   :  { %v3334_v61 = vpop.f32.mrf.mxu3 }
 0xc68   :  { %v3365_v16 = vpop.f32.mrf.mxu1 }
 0xc69   :  { %v3404_v11 = vpop.f32.mrf.mxu0 }
 0xc6a   :  { %v3413_v29 = vrot.slane %v3404_v11, 4 }
 0xc6e   :  { %v3378_v5 = vpop.f32.mrf.mxu2 }
 0xc6f   :  { %v3412_v58 = vrot.slane %v3378_v5, 4  ;;  %v3391_v21 = vpop.f32.mrf.mxu3 }
 0xc70   :  { %v3415_v59 = vsel %vm145_vm0, %v3391_v21, %v3413_v29  ;;  %v3367_v56 = vpop.f32.mrf.mxu1 }
 0xc71   :  { %v3414_v20 = vsel %vm145_vm0, %v3365_v16, %v3412_v58  ;;  %v3406_v46 = vpop.f32.mrf.mxu0  ;;  %v3419_v2 = vadd.f32 %v3415_v59, %v9029_v47  ;;  %v7418_v58 = vpop.permute.xlu0 %3442 }
 0xc72   :  { %v3418_v51 = vadd.f32 %v3414_v20, %v9028_v60  ;;  %vm3444_vm10 = vcmp.eq.s32.totalorder %v7418_v58, 1  ;;  %v9051_v58 = vld [vmem:[#allocation121_spill] sm:$0xff] }
 0xc73   :  { %v3429_v15 = vrot.slane %v3419_v2, 4  ;;  %v3421_v11 = vmul.f32 0.5, %v3419_v2 }
 0xc74   :  { %v3420_v42 = vmul.f32 0.5, %v3418_v51 }
 0xc76   :  { %5046 = vtanh.f32 %v3420_v42  ;;  %v3380_v36 = vpop.f32.mrf.mxu2 }
 0xc77   :  { %v3393_v61 = vpop.f32.mrf.mxu3  ;;  %5048 = vtanh.f32 %v3429_v15 }
 0xc78   :  { %5050 = vtanh.f32 %v3421_v11  ;;  %v3350_v61 = vadd.f32 %v7410_v28, %v8554_v48  ;;  %v9115_v48 = vld [vmem:[#allocation99_spill] sm:$0xff] }
 0xc7c   :  { %v5047_v55 = vpop.eup %5046 }
 0xc7d   :  { %v3424_v5 = vmul.f32 0.5, %v5047_v55  ;;  %v5049_v29 = vpop.eup %5048 }
 0xc7e   :  { %v5051_v47 = vpop.eup %5050 }
 0xc7f   :  { %v3426_v18 = vadd.f32 0.5, %v3424_v5  ;;  %v3425_v55 = vmul.f32 0.5, %v5051_v47 }
 0xc81   :  { %v3433_v56 = vrot.slane %v3426_v18, 4  ;;  %v3436_v21 = vmul.f32 %v5049_v29, %v3426_v18  ;;  %v3427_v46 = vadd.f32 0.5, %v3425_v55 }
 0xc83   :  { %v3435_v60 = vmul.f32 %v3433_v56, %v7270_v32  ;;  %v3351_v56 = vadd.f32 %v7412_v27, %v8555_v14 }
 0xc85   :  { %v3437_v51 = vadd.f32 %v3436_v21, %v3435_v60  ;;  %v3352_v60 = vadd.f32 %v7408_v53, %v8687_v62 }
 0xc87   :  { %5052 = vtanh.f32 %v3437_v51  ;;  %v7425_v2 = vsel %vm3444_vm10, %v3437_v51, %v7270_v32  ;;  %v3349_v32 = vadd.f32 %v7406_v45, %v8686_v50 }
 0xc8d   :  { %v5053_v20 = vpop.eup %5052 }
 0xc8e   :  { %v7427_v16 = vmul.f32 %v5053_v20, %v3427_v46 }
 0xc90   :  { %v3447_v18 = vpack.c.bf16 %v7427_v16, %v7427_v16 }
 0xc92   :  { %3456 = vmatmul.bf16.vlgmr.msra.gmra.mxu1 %v3447_v18  ;;  %3469 = vmatmul.bf16.vlgmr.msra.gmra.mxu2 %v3447_v18 }
 0xc93   :  { %3482 = vmatmul.bf16.vlgmr.msra.gmra.mxu3 %v3447_v18  ;;  %3495 = vmatmul.bf16.vlgmr.msrb.gmra.mxu0 %v3447_v18 }
 0xc94   :  { %3587 = vmatpush.bf16.msra.mxu1 %v8520_v57  ;;  %3600 = vmatpush.bf16.msra.mxu2 %v8521_v34 }
 0xc95   :  { %3613 = vmatpush.bf16.msra.mxu3 %v8522_v19  ;;  %3626 = vmatpush.bf16.msrb.mxu0 %v8523_v52 }
 0xc98   :  { %3588 = vmatpush.bf16.msra.mxu1 %v8524_v4  ;;  %3601 = vmatpush.bf16.msra.mxu2 %v8525_v12 }
 0xc99   :  { %3614 = vmatpush.bf16.msra.mxu3 %v8526_v30  ;;  %3627 = vmatpush.bf16.msrb.mxu0 %v8527_v39 }
 0xc9c   :  { %3589 = vmatpush.bf16.msra.mxu1 %v8528_v25  ;;  %3602 = vmatpush.bf16.msra.mxu2 %v8529_v41 }
 0xc9d   :  { %3615 = vmatpush.bf16.msra.mxu3 %v8530_v49  ;;  %3628 = vmatpush.bf16.msrb.mxu0 %v8531_v35 }
 0xca0   :  { %3590 = vmatpush.bf16.msra.mxu1 %v8532_v23  ;;  %3603 = vmatpush.bf16.msra.mxu2 %v8533_v31 }
 0xca1   :  { %3616 = vmatpush.bf16.msra.mxu3 %v8534_v8  ;;  %3629 = vmatpush.bf16.msrb.mxu0 %v8535_v17 }
 0xca4   :  { %3591 = vmatpush.bf16.msra.mxu1 %v8536_v63  ;;  %3604 = vmatpush.bf16.msra.mxu2 %v8537_v44 }
 0xca5   :  { %3617 = vmatpush.bf16.msra.mxu3 %v8538_v6  ;;  %3630 = vmatpush.bf16.msrb.mxu0 %v8539_v7 }
 0xca8   :  { %3592 = vmatpush.bf16.msra.mxu1 %v8540_v22  ;;  %3605 = vmatpush.bf16.msra.mxu2 %v8541_v24 }
 0xca9   :  { %3618 = vmatpush.bf16.msra.mxu3 %v8542_v9  ;;  %3631 = vmatpush.bf16.msrb.mxu0 %v8543_v40 }
 0xcac   :  { %3593 = vmatpush.bf16.msra.mxu1 %v8544_v33  ;;  %3606 = vmatpush.bf16.msra.mxu2 %v8545_v54 }
 0xcad   :  { %3619 = vmatpush.bf16.msra.mxu3 %v8546_v0  ;;  %3632 = vmatpush.bf16.msrb.mxu0 %v8547_v38 }
 0xcb0   :  { %3594 = vmatpush.bf16.msra.mxu1 %v8548_v1  ;;  %3607 = vmatpush.bf16.msra.mxu2 %v8549_v37 }
 0xcb1   :  { %3620 = vmatpush.bf16.msra.mxu3 %v8617_v13  ;;  %3633 = vmatpush.bf16.msrb.mxu0 %v8618_v43 }
 0xd0f   :  { %v3457_v59 = vpop.f32.mrf.mxu1 }
 0xd10   :  { %v3500_v42 = vadd.f32 %v3457_v59, %v3349_v32  ;;  %v3496_v15 = vpop.f32.mrf.mxu0 }
 0xd11   :  { %v3503_v46 = vadd.f32 %v3496_v15, %v3352_v60 }
 0xd12   :  { %v3504_v36 = vmul.f32 0.5, %v3500_v42 }
 0xd14   :  { %5054 = vtanh.f32 %v3504_v36 }
 0xd15   :  { %v3470_v11 = vpop.f32.mrf.mxu2 }
 0xd16   :  { %v3501_v5 = vadd.f32 %v3470_v11, %v3350_v61  ;;  %v3483_v29 = vpop.f32.mrf.mxu3 }
 0xd17   :  { %v3459_v21 = vpop.f32.mrf.mxu1  ;;  %v3502_v51 = vadd.f32 %v3483_v29, %v3351_v56 }
 0xd18   :  { %v3505_v47 = vmul.f32 0.5, %v3501_v5  ;;  %v3498_v45 = vpop.f32.mrf.mxu0 }
 0xd19   :  { %v3506_v18 = vmul.f32 0.5, %v3502_v51 }
 0xd1a   :  { %v5055_v55 = vpop.eup %5054  ;;  %5056 = vtanh.f32 %v3505_v47 }
 0xd1b   :  { %v3510_v20 = vmul.f32 0.5, %v5055_v55  ;;  %5058 = vtanh.f32 %v3503_v46 }
 0xd1c   :  { %5060 = vtanh.f32 %v3506_v18  ;;  %v9035_v18 = vld [vmem:[#allocation91_spill] sm:$0xff] }
 0xd1d   :  { %v3472_v28 = vpop.f32.mrf.mxu2  ;;  %v3513_v42 = vadd.f32 0.5, %v3510_v20  ;;  %v9034_v20 = vld [vmem:[#allocation90_spill] sm:$0xff] }
 0xd1e   :  { %v3485_v32 = vpop.f32.mrf.mxu3  ;;  %v9037_v28 = vld [vmem:[#allocation93_spill] sm:$0xff] }
 0xd1f   :  { %v9038_v32 = vld [vmem:[#allocation94_spill] sm:$0xff] }
 0xd20   :  { %v5057_v59 = vpop.eup %5056 }
 0xd21   :  { %v3511_v36 = vmul.f32 0.5, %v5057_v59  ;;  %v5059_v61 = vpop.eup %5058  ;;  %v9039_v59 = vld [vmem:[#allocation95_spill] sm:$0xff] }
 0xd22   :  { %v3518_v11 = vmul.f32 %v5059_v61, %v3513_v42  ;;  %v5061_v5 = vpop.eup %5060  ;;  %v9041_v42 = vld [vmem:[#allocation100_spill] sm:$0xff] }
 0xd23   :  { %v3514_v27 = vadd.f32 0.5, %v3511_v36  ;;  %v3512_v29 = vmul.f32 0.5, %v5061_v5  ;;  %v9042_v36 = vld [vmem:[#allocation103_spill] sm:$0xff] }
 0xd25   :  { %v3517_v53 = vmul.f32 %v3514_v27, %v7320_v10  ;;  %v3515_v56 = vadd.f32 0.5, %v3512_v29  ;;  %v9043_v27 = vld [vmem:[#allocation53_spill] sm:$0xff] }
 0xd26   :  { %v7503_v61 = vsel %vm3444_vm10, %v7427_v16, %v9043_v27  ;;  %v9048_v29 = vld [vmem:[#allocation113_spill] sm:$0xff]  ;;  %v9052_v16 = vld [vmem:[#allocation122_spill] sm:$0xff] }
 0xd27   :  { %v3519_v21 = vadd.f32 %v3518_v11, %v3517_v53  ;;  %9044 = vst [vmem:[#allocation58_spill] sm:$0xff] %v7503_v61  ;;  %v9045_v11 = vld [vmem:[#allocation104_spill] sm:$0xff]  ;;  %v9046_v53 = vld [vmem:[#allocation109_spill] sm:$0xff]  ;;  %v3586_v5 = vpack.c.bf16 %v7503_v61, %v7503_v61  ;;  %v9056_v27 = vld [vmem:[#allocation126_spill] sm:$0xff] }
 0xd29   :  { %5062 = vtanh.f32 %v3519_v21  ;;  %v7475_v15 = vsel %vm3444_vm10, %v3519_v21, %v7320_v10  ;;  %v9033_v10 = vld [vmem:[#allocation89_spill] sm:$0xff]  ;;  %v9047_v21 = vld [vmem:[#allocation110_spill] sm:$0xff] }
 0xd2a   :  { %9030 = vst [vmem:[#allocation57_spill] sm:$0xff] %v7475_v15  ;;  %v9111_v15 = vld [vmem:[#allocation105_spill] sm:$0xff] }
 0xd2f   :  { %v5063_v60 = vpop.eup %5062 }
 0xd30   :  { %v3521_v47 = vmul.f32 %v5063_v60, %v3515_v56  ;;  %v9049_v56 = vld [vmem:[#allocation114_spill] sm:$0xff]  ;;  %v9050_v60 = vld [vmem:[#allocation116_spill] sm:$0xff] }
 0xd32   :  { %v7480_v45 = vsel %vm3444_vm10, %v3521_v47, %v7325_v3  ;;  %v3524_v51 = vsel %vm3444_vm10, %v3521_v47, 0.0  ;;  %v9036_v3 = vld [vmem:[#allocation92_spill] sm:$0xff]  ;;  %v9053_v47 = vld [vmem:[#allocation123_spill] sm:$0xff] }
 0xd33   :  { %9031 = vst [vmem:[#allocation56_spill] sm:$0xff] %v7480_v45  ;;  %v3527_v55 = vpack.c.bf16 %v7480_v45, %v7480_v45  ;;  %v7487_v46 = vadd.f32 %v3524_v51, %v7330_v26  ;;  %v9040_v26 = vld [vmem:[#allocation96_spill] sm:$0xff] }
 0xd34   :  { %v9054_v51 = vld [vmem:[#allocation124_spill] sm:$0xff] }
 0xd35   :  { %9032 = vst [vmem:[#allocation54_spill] sm:$0xff] %v7487_v46  ;;  %3536 = vmatmul.bf16.vlgmr.msrb.gmra.mxu1 %v3527_v55  ;;  %3549 = vmatmul.bf16.vlgmr.msrb.gmra.mxu2 %v3527_v55 }
 0xd36   :  { %3562 = vmatmul.bf16.vlgmr.msrb.gmra.mxu3 %v3527_v55  ;;  %3575 = vmatmul.bf16.vlgmr.msra.gmra.mxu0 %v3527_v55  ;;  %v9055_v55 = vld [vmem:[#allocation125_spill] sm:$0xff] }
 0xd37   :  { %3679 = vmatpush.bf16.msrb.mxu1 %v9033_v10  ;;  %3692 = vmatpush.bf16.msrb.mxu2 %v9034_v20 }
 0xd38   :  { %3705 = vmatpush.bf16.msrb.mxu3 %v9035_v18  ;;  %3718 = vmatpush.bf16.msra.mxu0 %v9036_v3  ;;  %v9109_v18 = vld [vmem:[#allocation120_spill] sm:$0xff] }
 0xd3b   :  { %3680 = vmatpush.bf16.msrb.mxu1 %v9037_v28  ;;  %3693 = vmatpush.bf16.msrb.mxu2 %v9038_v32  ;;  %v742_v32 = vpop.permute.xlu1 %741  ;;  %v9108_v28 = vld [vmem:[#allocation107_spill] sm:$0xff] }
 0xd3c   :  { %3706 = vmatpush.bf16.msrb.mxu3 %v9039_v59  ;;  %3719 = vmatpush.bf16.msra.mxu0 %v9040_v26  ;;  %v9107_v26 = vld [vmem:[#allocation101_spill] sm:$0xff] }
 0xd3f   :  { %3681 = vmatpush.bf16.msrb.mxu1 %v9041_v42  ;;  %3694 = vmatpush.bf16.msrb.mxu2 %v9042_v36  ;;  %v9106_v42 = vld [vmem:[#allocation118_spill] sm:$0xff] }
 0xd40   :  { %3707 = vmatpush.bf16.msrb.mxu3 %v9045_v11  ;;  %3720 = vmatpush.bf16.msra.mxu0 %v9046_v53 }
 0xd43   :  { %3682 = vmatpush.bf16.msrb.mxu1 %v9047_v21  ;;  %3695 = vmatpush.bf16.msrb.mxu2 %v9048_v29  ;;  %v9057_v29 = vld [vmem:[#allocation127_spill] sm:$0xff]  ;;  %v9060_v21 = vld [vmem:[#allocation130_spill] sm:$0xff] }
 0xd44   :  { %3708 = vmatpush.bf16.msrb.mxu3 %v9049_v56  ;;  %3721 = vmatpush.bf16.msra.mxu0 %v9050_v60  ;;  %v9058_v56 = vld [vmem:[#allocation128_spill] sm:$0xff]  ;;  %v9059_v60 = vld [vmem:[#allocation129_spill] sm:$0xff] }
 0xd45   :  { %3595 = vmatmul.bf16.vlgmr.msra.gmra.mxu1 %v3586_v5  ;;  %3608 = vmatmul.bf16.vlgmr.msra.gmra.mxu2 %v3586_v5 }
 0xd46   :  { %3621 = vmatmul.bf16.vlgmr.msra.gmra.mxu3 %v3586_v5  ;;  %3634 = vmatmul.bf16.vlgmr.msrb.gmra.mxu0 %v3586_v5  ;;  %v9061_v5 = vld [vmem:[#allocation131_spill] sm:$0xff] }
 0xd47   :  { %3683 = vmatpush.bf16.msrb.mxu1 %v9051_v58  ;;  %3696 = vmatpush.bf16.msrb.mxu2 %v9052_v16  ;;  %v9062_v58 = vld [vmem:[#allocation132_spill] sm:$0xff]  ;;  %v9063_v16 = vld [vmem:[#allocation134_spill] sm:$0xff] }
 0xd48   :  { %3709 = vmatpush.bf16.msrb.mxu3 %v9053_v47  ;;  %3722 = vmatpush.bf16.msra.mxu0 %v9054_v51  ;;  %v9064_v47 = vld [vmem:[#allocation135_spill] sm:$0xff]  ;;  %v9065_v51 = vld [vmem:[#allocation136_spill] sm:$0xff] }
 0xd4b   :  { %3684 = vmatpush.bf16.msrb.mxu1 %v9055_v55  ;;  %3697 = vmatpush.bf16.msrb.mxu2 %v9056_v27  ;;  %v9066_v55 = vld [vmem:[#allocation137_spill] sm:$0xff]  ;;  %v9067_v27 = vld [vmem:[#allocation19_spill] sm:$0xff] }
 0xd4c   :  { %3710 = vmatpush.bf16.msrb.mxu3 %v9057_v29  ;;  %3723 = vmatpush.bf16.msra.mxu0 %v9058_v56  ;;  %v9068_v29 = vld [vmem:[#allocation18_spill] sm:$0xff]  ;;  %v9069_v56 = vld [vmem:[#allocation21_spill] sm:$0xff] }
 0xd4f   :  { %3685 = vmatpush.bf16.msrb.mxu1 %v9059_v60  ;;  %3698 = vmatpush.bf16.msrb.mxu2 %v9060_v21  ;;  %v9070_v60 = vld [vmem:[#allocation24_spill] sm:$0xff]  ;;  %v9071_v21 = vld [vmem:[#allocation22_spill] sm:$0xff] }
 0xd50   :  { %3711 = vmatpush.bf16.msrb.mxu3 %v9061_v5  ;;  %3724 = vmatpush.bf16.msra.mxu0 %v9062_v58  ;;  %v9072_v5 = vld [vmem:[#allocation20_spill] sm:$0xff]  ;;  %v9073_v58 = vld [vmem:[#allocation23_spill] sm:$0xff] }
 0xd53   :  { %3686 = vmatpush.bf16.msrb.mxu1 %v9063_v16  ;;  %3699 = vmatpush.bf16.msrb.mxu2 %v9064_v47  ;;  %v9074_v16 = vld [vmem:[#allocation27_spill] sm:$0xff]  ;;  %v9075_v47 = vld [vmem:[#allocation26_spill] sm:$0xff] }
 0xd54   :  { %3712 = vmatpush.bf16.msrb.mxu3 %v9065_v51  ;;  %3725 = vmatpush.bf16.msra.mxu0 %v9066_v55  ;;  %v9076_v51 = vld [vmem:[#allocation25_spill] sm:$0xff]  ;;  %v9077_v55 = vld [vmem:[#allocation28_spill] sm:$0xff] }
 0xd57   :  { %3759 = vmatpush.bf16.msra.mxu1 %v9067_v27  ;;  %3772 = vmatpush.bf16.msra.mxu2 %v9068_v29  ;;  %v9078_v27 = vld [vmem:[#allocation31_spill] sm:$0xff]  ;;  %v9079_v29 = vld [vmem:[#allocation30_spill] sm:$0xff] }
 0xd58   :  { %3785 = vmatpush.bf16.msra.mxu3 %v9069_v56  ;;  %3798 = vmatpush.bf16.msrb.mxu0 %v9070_v60  ;;  %v9080_v56 = vld [vmem:[#allocation29_spill] sm:$0xff]  ;;  %v9081_v60 = vld [vmem:[#allocation32_spill] sm:$0xff] }
 0xd5b   :  { %3760 = vmatpush.bf16.msra.mxu1 %v9071_v21  ;;  %3773 = vmatpush.bf16.msra.mxu2 %v9072_v5  ;;  %v9082_v21 = vld [vmem:[#allocation35_spill] sm:$0xff]  ;;  %v9083_v5 = vld [vmem:[#allocation34_spill] sm:$0xff] }
 0xd5c   :  { %3786 = vmatpush.bf16.msra.mxu3 %v9073_v58  ;;  %3799 = vmatpush.bf16.msrb.mxu0 %v9074_v16  ;;  %v9084_v58 = vld [vmem:[#allocation33_spill] sm:$0xff]  ;;  %v9085_v16 = vld [vmem:[#allocation36_spill] sm:$0xff] }
 0xd5f   :  { %3761 = vmatpush.bf16.msra.mxu1 %v9075_v47  ;;  %3774 = vmatpush.bf16.msra.mxu2 %v9076_v51  ;;  %v9086_v47 = vld [vmem:[#allocation40_spill] sm:$0xff]  ;;  %v9087_v51 = vld [vmem:[#allocation39_spill] sm:$0xff] }
 0xd60   :  { %3787 = vmatpush.bf16.msra.mxu3 %v9077_v55  ;;  %3800 = vmatpush.bf16.msrb.mxu0 %v9078_v27  ;;  %v9088_v55 = vld [vmem:[#allocation37_spill] sm:$0xff]  ;;  %v9089_v27 = vld [vmem:[#allocation42_spill] sm:$0xff] }
 0xd63   :  { %3762 = vmatpush.bf16.msra.mxu1 %v9079_v29  ;;  %3775 = vmatpush.bf16.msra.mxu2 %v9080_v56  ;;  %v9090_v29 = vld [vmem:[#allocation45_spill] sm:$0xff]  ;;  %v9091_v56 = vld [vmem:[#allocation44_spill] sm:$0xff] }
 0xd64   :  { %3788 = vmatpush.bf16.msra.mxu3 %v9081_v60  ;;  %3801 = vmatpush.bf16.msrb.mxu0 %v9082_v21  ;;  %v9092_v60 = vld [vmem:[#allocation43_spill] sm:$0xff]  ;;  %v9093_v21 = vld [vmem:[#allocation46_spill] sm:$0xff] }
 0xd67   :  { %3763 = vmatpush.bf16.msra.mxu1 %v9083_v5  ;;  %3776 = vmatpush.bf16.msra.mxu2 %v9084_v58  ;;  %v9094_v5 = vld [vmem:[#allocation50_spill] sm:$0xff]  ;;  %v9095_v58 = vld [vmem:[#allocation49_spill] sm:$0xff] }
 0xd68   :  { %3789 = vmatpush.bf16.msra.mxu3 %v9085_v16  ;;  %3802 = vmatpush.bf16.msrb.mxu0 %v9086_v47  ;;  %v9096_v16 = vld [vmem:[#allocation47_spill] sm:$0xff] }
 0xd69   :  { %v9097_v47 = vld [vmem:[#allocation51_spill] sm:$0xff] }
 0xd6b   :  { %3764 = vmatpush.bf16.msra.mxu1 %v9087_v51  ;;  %3777 = vmatpush.bf16.msra.mxu2 %v9088_v55  ;;  %v9098_v51 = vld [vmem:[#allocation55_spill] sm:$0xff] }
 0xd6c   :  { %3790 = vmatpush.bf16.msra.mxu3 %v9089_v27  ;;  %3803 = vmatpush.bf16.msrb.mxu0 %v9090_v29  ;;  %v718_v29 = vpop.permute.xlu2 %717 }
 0xd6d   :  { %v720_v3 = vmul.f32 %v718_v29, %v9108_v28 }
 0xd6f   :  { %3765 = vmatpush.bf16.msra.mxu1 %v9091_v56  ;;  %3778 = vmatpush.bf16.msra.mxu2 %v9092_v60  ;;  %v730_v56 = vpop.permute.xlu0 %729  ;;  %v9102_v60 = vld [vmem:[#allocation108_spill] sm:$0xff] }
 0xd70   :  { %3791 = vmatpush.bf16.msra.mxu3 %v9093_v21  ;;  %3804 = vmatpush.bf16.msrb.mxu0 %v9094_v5  ;;  %v721_v21 = vmul.f32 %v718_v29, %v9102_v60  ;;  %v735_v59 = vmul.f32 %v730_v56, %v9107_v26  ;;  %v9110_v60 = vld [vmem:[#allocation111_spill] sm:$0xff] }
 0xd71   :  { %v722_v45 = vmul.f32 %v718_v29, %v9110_v60 }
 0xd73   :  { %3766 = vmatpush.bf16.msra.mxu1 %v9095_v58  ;;  %3779 = vmatpush.bf16.msra.mxu2 %v9096_v16  ;;  %v9104_v58 = vld [vmem:[#allocation112_spill] sm:$0xff]  ;;  %v9105_v16 = vld [vmem:[#allocation98_spill] sm:$0xff] }
 0xd74   :  { %3792 = vmatpush.bf16.msra.mxu3 %v9097_v47  ;;  %3805 = vmatpush.bf16.msrb.mxu0 %v9098_v51  ;;  %v723_v61 = vmul.f32 %v718_v29, %v9104_v58  ;;  %v733_v36 = vmul.f32 %v730_v56, %v9105_v16  ;;  %v725_v51 = vadd.f32 %v721_v21, %v9106_v42  ;;  %v9114_v42 = vld [vmem:[#allocation115_spill] sm:$0xff]  ;;  %v9117_v29 = vld [vmem:[#allocation102_spill] sm:$0xff] }
 0xd75   :  { %v747_v26 = vmul.f32 %v742_v32, %v9114_v42  ;;  %v744_v60 = vmul.f32 %v742_v32, %v9117_v29 }
 0xd76   :  { %v727_v20 = vadd.f32 %v723_v61, %v9109_v18  ;;  %v737_v10 = vadd.f32 %v733_v36, %v725_v51  ;;  %v9116_v61 = vld [vmem:[#allocation119_spill] sm:$0xff] }
 0xd77   :  { %v726_v36 = vadd.f32 %v722_v45, %v9116_v61 }
 0xd78   :  { %v739_v14 = vadd.f32 %v735_v59, %v727_v20 }
 0xd7a   :  { %v751_v51 = vadd.f32 %v747_v26, %v739_v14 }
 0xdb2   :  { %v7561_v55 = vpop.f32.mrf.mxu1 }
 0xdb3   :  { %9099 = vst [vmem:[#allocation61_spill] sm:$0xff] %v7561_v55  ;;  %v7563_v27 = vpop.f32.mrf.mxu0 }
 0xdb4   :  { %9100 = vst [vmem:[#allocation60_spill] sm:$0xff] %v7563_v27  ;;  %v734_v27 = vmul.f32 %v730_v56, %v9115_v48 }
 0xdb8   :  { %v7565_v53 = vpop.f32.mrf.mxu2 }
 0xdb9   :  { %9101 = vst [vmem:[#allocation59_spill] sm:$0xff] %v7565_v53  ;;  %v7568_v11 = vpop.f32.mrf.mxu3  ;;  %v9113_v53 = vld [vmem:[#allocation117_spill] sm:$0xff] }
 0xdba   :  { %9103 = vst [vmem:[#allocation62_spill] sm:$0xff] %v7568_v11  ;;  %v3539_v5 = vpop.f32.mrf.mxu1  ;;  %v9112_v11 = vld [vmem:[#allocation97_spill] sm:$0xff]  ;;  %v724_v21 = vadd.f32 %v720_v3, %v9113_v53  ;;  %v757_v53 = vrot.slane %v751_v51, 4  ;;  %v7590_v51 = vpop.permute.xlu2 %3673 }
 0xdbb   :  { %v3578_v47 = vpop.f32.mrf.mxu0  ;;  %v745_v5 = vmul.f32 %v742_v32, %v9111_v15  ;;  %v732_v58 = vmul.f32 %v730_v56, %v9112_v11  ;;  %v738_v15 = vadd.f32 %v734_v27, %v726_v36  ;;  %v9118_v11 = vld [vmem:[#allocation106_spill] sm:$0xff]  ;;  %vm3675_vm11 = vcmp.eq.s32.totalorder %v7590_v51, 1  ;;  %v9151_v51 = vld [vmem:[#allocation121_spill] sm:$0xff] }
 0xdbc   :  { %v746_v20 = vmul.f32 %v742_v32, %v9118_v11 }
 0xdbd   :  { %v749_v28 = vadd.f32 %v745_v5, %v737_v10 }
 0xdbe   :  { %v750_v45 = vadd.f32 %v746_v20, %v738_v15 }
 0xdbf   :  { %v756_v18 = vrot.slane %v749_v28, 4 }
 0xdc0   :  { %v3552_v46 = vpop.f32.mrf.mxu2  ;;  %v759_v28 = vsel %vm145_vm0, %v750_v45, %v757_v53  ;;  %v9120_v45 = vld [vmem:[#allocation61_spill] sm:$0xff] }
 0xdc1   :  { %v3565_v16 = vpop.f32.mrf.mxu3  ;;  %v736_v46 = vadd.f32 %v732_v58, %v724_v21 }
 0xdc2   :  { %v3596_v47 = vpop.f32.mrf.mxu1 }
 0xdc3   :  { %v3635_v62 = vpop.f32.mrf.mxu0  ;;  %v748_v16 = vadd.f32 %v744_v60, %v736_v46 }
 0xdc4   :  { %v3644_v55 = vrot.slane %v3635_v62, 4 }
 0xdc5   :  { %v758_v10 = vsel %vm145_vm0, %v748_v16, %v756_v18 }
 0xdc8   :  { %v3609_v59 = vpop.f32.mrf.mxu2 }
 0xdc9   :  { %v3643_v3 = vrot.slane %v3609_v59, 4  ;;  %v3622_v42 = vpop.f32.mrf.mxu3 }
 0xdca   :  { %v3598_v50 = vpop.f32.mrf.mxu1  ;;  %v3646_v14 = vsel %vm145_vm0, %v3622_v42, %v3644_v55 }
 0xdcb   :  { %v3645_v56 = vsel %vm145_vm0, %v3596_v47, %v3643_v3  ;;  %v3637_v26 = vpop.f32.mrf.mxu0  ;;  %v3650_v32 = vadd.f32 %v3646_v14, %v759_v28 }
 0xdcc   :  { %v3649_v58 = vadd.f32 %v3645_v56, %v758_v10 }
 0xdcd   :  { %v3660_v5 = vrot.slane %v3650_v32, 4  ;;  %v3652_v21 = vmul.f32 0.5, %v3650_v32  ;;  %v9122_v32 = vld [vmem:[#allocation60_spill] sm:$0xff] }
 0xdce   :  { %v3651_v27 = vmul.f32 0.5, %v3649_v58 }
 0xdd0   :  { %5064 = vtanh.f32 %v3651_v27  ;;  %v3611_v60 = vpop.f32.mrf.mxu2  ;;  %v9121_v27 = vld [vmem:[#allocation145_spill] sm:$0xff] }
 0xdd1   :  { %v3624_v62 = vpop.f32.mrf.mxu3  ;;  %5066 = vtanh.f32 %v3660_v5  ;;  %v3583_v60 = vadd.f32 %v9122_v32, %v9121_v27  ;;  %v9123_v5 = vld [vmem:[#allocation146_spill] sm:$0xff] }
 0xdd2   :  { %5068 = vtanh.f32 %v3652_v21  ;;  %v9124_v21 = vld [vmem:[#allocation59_spill] sm:$0xff] }
 0xdd6   :  { %v5065_v36 = vpop.eup %5064 }
 0xdd7   :  { %v3655_v50 = vmul.f32 0.5, %v5065_v36  ;;  %v5067_v15 = vpop.eup %5066  ;;  %v3581_v36 = vadd.f32 %v9124_v21, %v9123_v5  ;;  %v9211_v5 = vld [vmem:[#allocation117_spill] sm:$0xff] }
 0xdd8   :  { %v5069_v46 = vpop.eup %5068 }
 0xdd9   :  { %v3657_v18 = vadd.f32 0.5, %v3655_v50  ;;  %v3656_v59 = vmul.f32 0.5, %v5069_v46 }
 0xddb   :  { %v3664_v47 = vrot.slane %v3657_v18, 4  ;;  %v3667_v55 = vmul.f32 %v5067_v15, %v3657_v18  ;;  %v3658_v16 = vadd.f32 0.5, %v3656_v59 }
 0xddd   :  { %v3666_v42 = vmul.f32 %v3664_v47, %v7425_v2 }
 0xddf   :  { %v3668_v53 = vadd.f32 %v3667_v55, %v3666_v42  ;;  %v9125_v42 = vld [vmem:[#allocation86_spill] sm:$0xff] }
 0xde0   :  { %v9126_v55 = vld [vmem:[#allocation62_spill] sm:$0xff] }
 0xde1   :  { %5070 = vtanh.f32 %v3668_v53  ;;  %v7596_v20 = vsel %vm3675_vm11, %v3668_v53, %v7425_v2  ;;  %v9119_v2 = vld [vmem:[#allocation41_spill] sm:$0xff]  ;;  %v3582_v46 = vadd.f32 %v9126_v55, %v9125_v42 }
 0xde2   :  { %v3580_v14 = vadd.f32 %v9120_v45, %v9119_v2 }
 0xde7   :  { %v5071_v3 = vpop.eup %5070 }
 0xde8   :  { %v7598_v10 = vmul.f32 %v5071_v3, %v3658_v16 }
 0xdea   :  { %v3678_v56 = vpack.c.bf16 %v7598_v10, %v7598_v10 }
 0xdec   :  { %3687 = vmatmul.bf16.vlgmr.msrb.gmra.mxu1 %v3678_v56  ;;  %3700 = vmatmul.bf16.vlgmr.msrb.gmra.mxu2 %v3678_v56 }
 0xded   :  { %3713 = vmatmul.bf16.vlgmr.msrb.gmra.mxu3 %v3678_v56  ;;  %3726 = vmatmul.bf16.vlgmr.msra.gmra.mxu0 %v3678_v56 }
 0xdee   :  { %3818 = vmatpush.bf16.msrb.mxu1 %v8520_v57  ;;  %3831 = vmatpush.bf16.msrb.mxu2 %v8521_v34 }
 0xdef   :  { %3844 = vmatpush.bf16.msrb.mxu3 %v8522_v19  ;;  %3857 = vmatpush.bf16.msra.mxu0 %v8523_v52 }
 0xdf2   :  { %3819 = vmatpush.bf16.msrb.mxu1 %v8524_v4  ;;  %3832 = vmatpush.bf16.msrb.mxu2 %v8525_v12 }
 0xdf3   :  { %3845 = vmatpush.bf16.msrb.mxu3 %v8526_v30  ;;  %3858 = vmatpush.bf16.msra.mxu0 %v8527_v39 }
 0xdf6   :  { %3820 = vmatpush.bf16.msrb.mxu1 %v8528_v25  ;;  %3833 = vmatpush.bf16.msrb.mxu2 %v8529_v41 }
 0xdf7   :  { %3846 = vmatpush.bf16.msrb.mxu3 %v8530_v49  ;;  %3859 = vmatpush.bf16.msra.mxu0 %v8531_v35 }
 0xdfa   :  { %3821 = vmatpush.bf16.msrb.mxu1 %v8532_v23  ;;  %3834 = vmatpush.bf16.msrb.mxu2 %v8533_v31 }
 0xdfb   :  { %3847 = vmatpush.bf16.msrb.mxu3 %v8534_v8  ;;  %3860 = vmatpush.bf16.msra.mxu0 %v8535_v17 }
 0xdfe   :  { %3822 = vmatpush.bf16.msrb.mxu1 %v8536_v63  ;;  %3835 = vmatpush.bf16.msrb.mxu2 %v8537_v44 }
 0xdff   :  { %3848 = vmatpush.bf16.msrb.mxu3 %v8538_v6  ;;  %3861 = vmatpush.bf16.msra.mxu0 %v8539_v7 }
 0xe02   :  { %3823 = vmatpush.bf16.msrb.mxu1 %v8540_v22  ;;  %3836 = vmatpush.bf16.msrb.mxu2 %v8541_v24 }
 0xe03   :  { %3849 = vmatpush.bf16.msrb.mxu3 %v8542_v9  ;;  %3862 = vmatpush.bf16.msra.mxu0 %v8543_v40 }
 0xe06   :  { %3824 = vmatpush.bf16.msrb.mxu1 %v8544_v33  ;;  %3837 = vmatpush.bf16.msrb.mxu2 %v8545_v54 }
 0xe07   :  { %3850 = vmatpush.bf16.msrb.mxu3 %v8546_v0  ;;  %3863 = vmatpush.bf16.msra.mxu0 %v8547_v38 }
 0xe0a   :  { %3825 = vmatpush.bf16.msrb.mxu1 %v8548_v1  ;;  %3838 = vmatpush.bf16.msrb.mxu2 %v8549_v37 }
 0xe0b   :  { %3851 = vmatpush.bf16.msrb.mxu3 %v8617_v13  ;;  %3864 = vmatpush.bf16.msra.mxu0 %v8618_v43 }
 0xe69   :  { %v3688_v26 = vpop.f32.mrf.mxu1 }
 0xe6a   :  { %v3731_v58 = vadd.f32 %v3688_v26, %v3580_v14  ;;  %v3727_v28 = vpop.f32.mrf.mxu0 }
 0xe6b   :  { %v3734_v50 = vadd.f32 %v3727_v28, %v3583_v60 }
 0xe6c   :  { %v3735_v62 = vmul.f32 0.5, %v3731_v58 }
 0xe6e   :  { %5072 = vtanh.f32 %v3735_v62 }
 0xe6f   :  { %v3701_v18 = vpop.f32.mrf.mxu2  ;;  %5074 = vtanh.f32 %v3734_v50 }
 0xe70   :  { %v3732_v47 = vadd.f32 %v3701_v18, %v3581_v36  ;;  %v3714_v15 = vpop.f32.mrf.mxu3  ;;  %v9127_v18 = vld [vmem:[#allocation57_spill] sm:$0xff] }
 0xe71   :  { %v3690_v53 = vpop.f32.mrf.mxu1  ;;  %v3733_v3 = vadd.f32 %v3714_v15, %v3582_v46 }
 0xe72   :  { %v3736_v59 = vmul.f32 0.5, %v3732_v47  ;;  %v3729_v16 = vpop.f32.mrf.mxu0 }
 0xe73   :  { %v3737_v26 = vmul.f32 0.5, %v3733_v3  ;;  %v9129_v3 = vld [vmem:[#allocation56_spill] sm:$0xff] }
 0xe74   :  { %v5073_v56 = vpop.eup %5072  ;;  %5076 = vtanh.f32 %v3736_v59 }
 0xe75   :  { %v3741_v45 = vmul.f32 0.5, %v5073_v56  ;;  %v5075_v32 = vpop.eup %5074  ;;  %5078 = vtanh.f32 %v3737_v26  ;;  %v9131_v26 = vld [vmem:[#allocation54_spill] sm:$0xff] }
 0xe77   :  { %v3744_v14 = vadd.f32 0.5, %v3741_v45  ;;  %v3703_v58 = vpop.f32.mrf.mxu2 }
 0xe78   :  { %v3716_v62 = vpop.f32.mrf.mxu3 }
 0xe79   :  { %v3749_v28 = vmul.f32 %v5075_v32, %v3744_v14  ;;  %v9133_v32 = vld [vmem:[#allocation89_spill] sm:$0xff]  ;;  %v9134_v62 = vld [vmem:[#allocation90_spill] sm:$0xff] }
 0xe7a   :  { %v5077_v60 = vpop.eup %5076 }
 0xe7b   :  { %v3742_v21 = vmul.f32 0.5, %v5077_v60  ;;  %v5079_v53 = vpop.eup %5078  ;;  %v9136_v60 = vld [vmem:[#allocation92_spill] sm:$0xff] }
 0xe7c   :  { %v3743_v15 = vmul.f32 0.5, %v5079_v53  ;;  %v9141_v53 = vld [vmem:[#allocation100_spill] sm:$0xff] }
 0xe7d   :  { %v3745_v36 = vadd.f32 0.5, %v3742_v21  ;;  %v9137_v21 = vld [vmem:[#allocation93_spill] sm:$0xff] }
 0xe7e   :  { %v3746_v46 = vadd.f32 0.5, %v3743_v15  ;;  %v9143_v15 = vld [vmem:[#allocation58_spill] sm:$0xff] }
 0xe7f   :  { %v3748_v55 = vmul.f32 %v3745_v36, %v9127_v18  ;;  %v9138_v36 = vld [vmem:[#allocation94_spill] sm:$0xff] }
 0xe81   :  { %v3750_v50 = vadd.f32 %v3749_v28, %v3748_v55  ;;  %v9135_v28 = vld [vmem:[#allocation91_spill] sm:$0xff]  ;;  %v9140_v55 = vld [vmem:[#allocation96_spill] sm:$0xff] }
 0xe83   :  { %5080 = vtanh.f32 %v3750_v50  ;;  %v7646_v47 = vsel %vm3675_vm11, %v3750_v50, %v9127_v18  ;;  %v9139_v18 = vld [vmem:[#allocation95_spill] sm:$0xff] }
 0xe84   :  { %9128 = vst [vmem:[#allocation65_spill] sm:$0xff] %v7646_v47  ;;  %v9142_v50 = vld [vmem:[#allocation103_spill] sm:$0xff] }
 0xe85   :  { %v9210_v47 = vld [vmem:[#allocation111_spill] sm:$0xff] }
 0xe89   :  { %v5081_v59 = vpop.eup %5080 }
 0xe8a   :  { %v3752_v16 = vmul.f32 %v5081_v59, %v3746_v46  ;;  %v7674_v46 = vsel %vm3675_vm11, %v7598_v10, %v9143_v15  ;;  %v9145_v59 = vld [vmem:[#allocation104_spill] sm:$0xff]  ;;  %v9152_v10 = vld [vmem:[#allocation122_spill] sm:$0xff]  ;;  %v9153_v15 = vld [vmem:[#allocation123_spill] sm:$0xff] }
 0xe8b   :  { %9144 = vst [vmem:[#allocation66_spill] sm:$0xff] %v7674_v46 }
 0xe8c   :  { %v7651_v56 = vsel %vm3675_vm11, %v3752_v16, %v9129_v3  ;;  %v3755_v45 = vsel %vm3675_vm11, %v3752_v16, 0.0  ;;  %v9146_v16 = vld [vmem:[#allocation109_spill] sm:$0xff]  ;;  %v3817_v3 = vpack.c.bf16 %v7674_v46, %v7674_v46  ;;  %v9160_v46 = vld [vmem:[#allocation130_spill] sm:$0xff] }
 0xe8d   :  { %9130 = vst [vmem:[#allocation64_spill] sm:$0xff] %v7651_v56  ;;  %v3758_v14 = vpack.c.bf16 %v7651_v56, %v7651_v56  ;;  %v7658_v58 = vadd.f32 %v3755_v45, %v9131_v26  ;;  %v9147_v45 = vld [vmem:[#allocation110_spill] sm:$0xff]  ;;  %v9209_v56 = vld [vmem:[#allocation101_spill] sm:$0xff] }
 0xe8e   :  { %v9149_v26 = vld [vmem:[#allocation114_spill] sm:$0xff] }
 0xe8f   :  { %9132 = vst [vmem:[#allocation63_spill] sm:$0xff] %v7658_v58  ;;  %3767 = vmatmul.bf16.vlgmr.msra.gmra.mxu1 %v3758_v14  ;;  %3780 = vmatmul.bf16.vlgmr.msra.gmra.mxu2 %v3758_v14  ;;  %v791_v58 = vpop.permute.xlu0 %790 }
 0xe90   :  { %3793 = vmatmul.bf16.vlgmr.msra.gmra.mxu3 %v3758_v14  ;;  %3806 = vmatmul.bf16.vlgmr.msrb.gmra.mxu0 %v3758_v14  ;;  %v9148_v14 = vld [vmem:[#allocation113_spill] sm:$0xff] }
 0xe91   :  { %3910 = vmatpush.bf16.msra.mxu1 %v9133_v32  ;;  %3923 = vmatpush.bf16.msra.mxu2 %v9134_v62  ;;  %v9208_v62 = vld [vmem:[#allocation120_spill] sm:$0xff] }
 0xe92   :  { %3936 = vmatpush.bf16.msra.mxu3 %v9135_v28  ;;  %3949 = vmatpush.bf16.msrb.mxu0 %v9136_v60  ;;  %v9207_v60 = vld [vmem:[#allocation107_spill] sm:$0xff] }
 0xe95   :  { %3911 = vmatpush.bf16.msra.mxu1 %v9137_v21  ;;  %3924 = vmatpush.bf16.msra.mxu2 %v9138_v36  ;;  %v9206_v21 = vld [vmem:[#allocation98_spill] sm:$0xff] }
 0xe96   :  { %3937 = vmatpush.bf16.msra.mxu3 %v9139_v18  ;;  %3950 = vmatpush.bf16.msrb.mxu0 %v9140_v55 }
 0xe99   :  { %3912 = vmatpush.bf16.msra.mxu1 %v9141_v53  ;;  %3925 = vmatpush.bf16.msra.mxu2 %v9142_v50  ;;  %v9150_v50 = vld [vmem:[#allocation116_spill] sm:$0xff] }
 0xe9a   :  { %3938 = vmatpush.bf16.msra.mxu3 %v9145_v59  ;;  %3951 = vmatpush.bf16.msrb.mxu0 %v9146_v16  ;;  %v9154_v16 = vld [vmem:[#allocation124_spill] sm:$0xff]  ;;  %v9155_v59 = vld [vmem:[#allocation125_spill] sm:$0xff] }
 0xe9d   :  { %3913 = vmatpush.bf16.msra.mxu1 %v9147_v45  ;;  %3926 = vmatpush.bf16.msra.mxu2 %v9148_v14  ;;  %v9156_v45 = vld [vmem:[#allocation126_spill] sm:$0xff]  ;;  %v9157_v14 = vld [vmem:[#allocation127_spill] sm:$0xff] }
 0xe9e   :  { %3939 = vmatpush.bf16.msra.mxu3 %v9149_v26  ;;  %3952 = vmatpush.bf16.msrb.mxu0 %v9150_v50  ;;  %v9158_v26 = vld [vmem:[#allocation128_spill] sm:$0xff]  ;;  %v9159_v50 = vld [vmem:[#allocation129_spill] sm:$0xff] }
 0xe9f   :  { %3826 = vmatmul.bf16.vlgmr.msrb.gmra.mxu1 %v3817_v3  ;;  %3839 = vmatmul.bf16.vlgmr.msrb.gmra.mxu2 %v3817_v3 }
 0xea0   :  { %3852 = vmatmul.bf16.vlgmr.msrb.gmra.mxu3 %v3817_v3  ;;  %3865 = vmatmul.bf16.vlgmr.msra.gmra.mxu0 %v3817_v3  ;;  %v9161_v3 = vld [vmem:[#allocation131_spill] sm:$0xff] }
 0xea1   :  { %3914 = vmatpush.bf16.msra.mxu1 %v9151_v51  ;;  %3927 = vmatpush.bf16.msra.mxu2 %v9152_v10  ;;  %v9162_v51 = vld [vmem:[#allocation132_spill] sm:$0xff]  ;;  %v9163_v10 = vld [vmem:[#allocation134_spill] sm:$0xff] }
 0xea2   :  { %3940 = vmatpush.bf16.msra.mxu3 %v9153_v15  ;;  %3953 = vmatpush.bf16.msrb.mxu0 %v9154_v16  ;;  %v9164_v15 = vld [vmem:[#allocation135_spill] sm:$0xff]  ;;  %v9165_v16 = vld [vmem:[#allocation136_spill] sm:$0xff] }
 0xea5   :  { %3915 = vmatpush.bf16.msra.mxu1 %v9155_v59  ;;  %3928 = vmatpush.bf16.msra.mxu2 %v9156_v45  ;;  %v9166_v59 = vld [vmem:[#allocation137_spill] sm:$0xff]  ;;  %v9167_v45 = vld [vmem:[#allocation19_spill] sm:$0xff] }
 0xea6   :  { %3941 = vmatpush.bf16.msra.mxu3 %v9157_v14  ;;  %3954 = vmatpush.bf16.msrb.mxu0 %v9158_v26  ;;  %v9168_v14 = vld [vmem:[#allocation18_spill] sm:$0xff]  ;;  %v9169_v26 = vld [vmem:[#allocation21_spill] sm:$0xff] }
 0xea9   :  { %3916 = vmatpush.bf16.msra.mxu1 %v9159_v50  ;;  %3929 = vmatpush.bf16.msra.mxu2 %v9160_v46  ;;  %v9170_v50 = vld [vmem:[#allocation24_spill] sm:$0xff]  ;;  %v9171_v46 = vld [vmem:[#allocation22_spill] sm:$0xff] }
 0xeaa   :  { %3942 = vmatpush.bf16.msra.mxu3 %v9161_v3  ;;  %3955 = vmatpush.bf16.msrb.mxu0 %v9162_v51  ;;  %v9172_v3 = vld [vmem:[#allocation20_spill] sm:$0xff]  ;;  %v9173_v51 = vld [vmem:[#allocation23_spill] sm:$0xff] }
 0xead   :  { %3917 = vmatpush.bf16.msra.mxu1 %v9163_v10  ;;  %3930 = vmatpush.bf16.msra.mxu2 %v9164_v15  ;;  %v9174_v10 = vld [vmem:[#allocation27_spill] sm:$0xff]  ;;  %v9175_v15 = vld [vmem:[#allocation26_spill] sm:$0xff] }
 0xeae   :  { %3943 = vmatpush.bf16.msra.mxu3 %v9165_v16  ;;  %3956 = vmatpush.bf16.msrb.mxu0 %v9166_v59  ;;  %v9176_v16 = vld [vmem:[#allocation25_spill] sm:$0xff]  ;;  %v9177_v59 = vld [vmem:[#allocation28_spill] sm:$0xff] }
 0xeb1   :  { %3990 = vmatpush.bf16.msrb.mxu1 %v9167_v45  ;;  %4003 = vmatpush.bf16.msrb.mxu2 %v9168_v14  ;;  %v9178_v45 = vld [vmem:[#allocation31_spill] sm:$0xff]  ;;  %v9179_v14 = vld [vmem:[#allocation30_spill] sm:$0xff] }
 0xeb2   :  { %4016 = vmatpush.bf16.msrb.mxu3 %v9169_v26  ;;  %4029 = vmatpush.bf16.msra.mxu0 %v9170_v50  ;;  %v9180_v26 = vld [vmem:[#allocation29_spill] sm:$0xff]  ;;  %v9181_v50 = vld [vmem:[#allocation32_spill] sm:$0xff] }
 0xeb5   :  { %3991 = vmatpush.bf16.msrb.mxu1 %v9171_v46  ;;  %4004 = vmatpush.bf16.msrb.mxu2 %v9172_v3  ;;  %v9182_v46 = vld [vmem:[#allocation35_spill] sm:$0xff]  ;;  %v9183_v3 = vld [vmem:[#allocation34_spill] sm:$0xff] }
 0xeb6   :  { %4017 = vmatpush.bf16.msrb.mxu3 %v9173_v51  ;;  %4030 = vmatpush.bf16.msra.mxu0 %v9174_v10  ;;  %v9184_v51 = vld [vmem:[#allocation33_spill] sm:$0xff]  ;;  %v9185_v10 = vld [vmem:[#allocation36_spill] sm:$0xff] }
 0xeb9   :  { %3992 = vmatpush.bf16.msrb.mxu1 %v9175_v15  ;;  %4005 = vmatpush.bf16.msrb.mxu2 %v9176_v16  ;;  %v9186_v15 = vld [vmem:[#allocation40_spill] sm:$0xff]  ;;  %v9187_v16 = vld [vmem:[#allocation39_spill] sm:$0xff] }
 0xeba   :  { %4018 = vmatpush.bf16.msrb.mxu3 %v9177_v59  ;;  %4031 = vmatpush.bf16.msra.mxu0 %v9178_v45  ;;  %v9188_v59 = vld [vmem:[#allocation37_spill] sm:$0xff]  ;;  %v9189_v45 = vld [vmem:[#allocation42_spill] sm:$0xff] }
 0xebd   :  { %3993 = vmatpush.bf16.msrb.mxu1 %v9179_v14  ;;  %4006 = vmatpush.bf16.msrb.mxu2 %v9180_v26  ;;  %v9190_v14 = vld [vmem:[#allocation45_spill] sm:$0xff]  ;;  %v9191_v26 = vld [vmem:[#allocation44_spill] sm:$0xff] }
 0xebe   :  { %4019 = vmatpush.bf16.msrb.mxu3 %v9181_v50  ;;  %4032 = vmatpush.bf16.msra.mxu0 %v9182_v46  ;;  %v9192_v50 = vld [vmem:[#allocation43_spill] sm:$0xff]  ;;  %v9193_v46 = vld [vmem:[#allocation46_spill] sm:$0xff] }
 0xec1   :  { %3994 = vmatpush.bf16.msrb.mxu1 %v9183_v3  ;;  %4007 = vmatpush.bf16.msrb.mxu2 %v9184_v51  ;;  %v9194_v3 = vld [vmem:[#allocation50_spill] sm:$0xff]  ;;  %v9195_v51 = vld [vmem:[#allocation49_spill] sm:$0xff] }
 0xec2   :  { %4020 = vmatpush.bf16.msrb.mxu3 %v9185_v10  ;;  %4033 = vmatpush.bf16.msra.mxu0 %v9186_v15  ;;  %v9196_v10 = vld [vmem:[#allocation47_spill] sm:$0xff] }
 0xec3   :  { %v9197_v15 = vld [vmem:[#allocation51_spill] sm:$0xff] }
 0xec5   :  { %3995 = vmatpush.bf16.msrb.mxu1 %v9187_v16  ;;  %4008 = vmatpush.bf16.msrb.mxu2 %v9188_v59  ;;  %v9198_v16 = vld [vmem:[#allocation55_spill] sm:$0xff] }
 0xec6   :  { %4021 = vmatpush.bf16.msrb.mxu3 %v9189_v45  ;;  %4034 = vmatpush.bf16.msra.mxu0 %v9190_v14  ;;  %v767_v14 = vpop.permute.xlu1 %766 }
 0xec7   :  { %v769_v28 = vmul.f32 %v767_v14, %v9207_v60  ;;  %v771_v42 = vmul.f32 %v767_v14, %v9210_v47 }
 0xec9   :  { %3996 = vmatpush.bf16.msrb.mxu1 %v9191_v26  ;;  %4009 = vmatpush.bf16.msrb.mxu2 %v9192_v50  ;;  %v9201_v26 = vld [vmem:[#allocation108_spill] sm:$0xff]  ;;  %v775_v60 = vadd.f32 %v771_v42, %v9116_v61 }
 0xeca   :  { %4022 = vmatpush.bf16.msrb.mxu3 %v9193_v46  ;;  %4035 = vmatpush.bf16.msra.mxu0 %v9194_v3  ;;  %v770_v53 = vmul.f32 %v767_v14, %v9201_v26  ;;  %v9203_v46 = vld [vmem:[#allocation112_spill] sm:$0xff] }
 0xecb   :  { %v772_v55 = vmul.f32 %v767_v14, %v9203_v46 }
 0xecd   :  { %3997 = vmatpush.bf16.msrb.mxu1 %v9195_v51  ;;  %4010 = vmatpush.bf16.msrb.mxu2 %v9196_v10  ;;  %v779_v51 = vpop.permute.xlu2 %778  ;;  %v9205_v10 = vld [vmem:[#allocation118_spill] sm:$0xff]  ;;  %v776_v32 = vadd.f32 %v772_v55, %v9208_v62 }
 0xece   :  { %4023 = vmatpush.bf16.msrb.mxu3 %v9197_v15  ;;  %4036 = vmatpush.bf16.msra.mxu0 %v9198_v16  ;;  %v774_v36 = vadd.f32 %v770_v53, %v9205_v10  ;;  %v782_v16 = vmul.f32 %v779_v51, %v9206_v21  ;;  %v784_v26 = vmul.f32 %v779_v51, %v9209_v56  ;;  %v9213_v10 = vld [vmem:[#allocation97_spill] sm:$0xff] }
 0xecf   :  { %v781_v21 = vmul.f32 %v779_v51, %v9213_v10  ;;  %v783_v56 = vmul.f32 %v779_v51, %v9115_v48 }
 0xf0c   :  { %v7732_v59 = vpop.f32.mrf.mxu1 }
 0xf0d   :  { %9199 = vst [vmem:[#allocation69_spill] sm:$0xff] %v7732_v59  ;;  %v7734_v45 = vpop.f32.mrf.mxu0  ;;  %v9214_v59 = vld [vmem:[#allocation115_spill] sm:$0xff] }
 0xf0e   :  { %9200 = vst [vmem:[#allocation68_spill] sm:$0xff] %v7734_v45  ;;  %v788_v45 = vadd.f32 %v784_v26, %v776_v32  ;;  %v796_v55 = vmul.f32 %v791_v58, %v9214_v59  ;;  %v795_v26 = vmul.f32 %v791_v58, %v9118_v11 }
 0xf12   :  { %v7737_v50 = vpop.f32.mrf.mxu2 }
 0xf13   :  { %9202 = vst [vmem:[#allocation67_spill] sm:$0xff] %v7737_v50  ;;  %v7740_v3 = vpop.f32.mrf.mxu3  ;;  %v786_v50 = vadd.f32 %v782_v16, %v774_v36  ;;  %v800_v36 = vadd.f32 %v796_v55, %v788_v45 }
 0xf14   :  { %9204 = vst [vmem:[#allocation70_spill] sm:$0xff] %v7740_v3  ;;  %v3770_v18 = vpop.f32.mrf.mxu1  ;;  %v773_v3 = vadd.f32 %v769_v28, %v9211_v5  ;;  %v793_v28 = vmul.f32 %v791_v58, %v9117_v29 }
 0xf15   :  { %v3809_v15 = vpop.f32.mrf.mxu0  ;;  %v9212_v18 = vld [vmem:[#allocation105_spill] sm:$0xff] }
 0xf16   :  { %v794_v27 = vmul.f32 %v791_v58, %v9212_v18  ;;  %v785_v14 = vadd.f32 %v781_v21, %v773_v3  ;;  %v806_v18 = vrot.slane %v800_v36, 4 }
 0xf18   :  { %v798_v62 = vadd.f32 %v794_v27, %v786_v50 }
 0xf1a   :  { %v3783_v46 = vpop.f32.mrf.mxu2  ;;  %v805_v32 = vrot.slane %v798_v62, 4 }
 0xf1b   :  { %v3796_v53 = vpop.f32.mrf.mxu3  ;;  %v787_v46 = vadd.f32 %v783_v56, %v775_v60 }
 0xf1c   :  { %v3827_v15 = vpop.f32.mrf.mxu1  ;;  %v797_v53 = vadd.f32 %v793_v28, %v785_v14 }
 0xf1d   :  { %v3866_v2 = vpop.f32.mrf.mxu0  ;;  %v799_v59 = vadd.f32 %v795_v26, %v787_v46 }
 0xf1e   :  { %v3875_v5 = vrot.slane %v3866_v2, 4  ;;  %v807_v27 = vsel %vm145_vm0, %v797_v53, %v805_v32 }
 0xf1f   :  { %v808_v62 = vsel %vm145_vm0, %v799_v59, %v806_v18 }
 0xf22   :  { %v3840_v16 = vpop.f32.mrf.mxu2 }
 0xf23   :  { %v3874_v10 = vrot.slane %v3840_v16, 4  ;;  %v3853_v42 = vpop.f32.mrf.mxu3 }
 0xf24   :  { %v3829_v61 = vpop.f32.mrf.mxu1  ;;  %v3877_v21 = vsel %vm145_vm0, %v3853_v42, %v3875_v5 }
 0xf25   :  { %v3876_v50 = vsel %vm145_vm0, %v3827_v15, %v3874_v10  ;;  %v3868_v56 = vpop.f32.mrf.mxu0  ;;  %v3881_v58 = vadd.f32 %v3877_v21, %v808_v62  ;;  %v7760_v15 = vpop.permute.xlu1 %3904 }
 0xf26   :  { %v3880_v60 = vadd.f32 %v3876_v50, %v807_v27  ;;  %vm3906_vm12 = vcmp.eq.s32.totalorder %v7760_v15, 1  ;;  %v9223_v56 = vld [vmem:[#allocation65_spill] sm:$0xff]  ;;  %v9244_v15 = vld [vmem:[#allocation122_spill] sm:$0xff] }
 0xf27   :  { %v3891_v51 = vrot.slane %v3881_v58, 4  ;;  %v3883_v55 = vmul.f32 0.5, %v3881_v58 }
 0xf28   :  { %v3882_v45 = vmul.f32 0.5, %v3880_v60 }
 0xf2a   :  { %5082 = vtanh.f32 %v3882_v45  ;;  %v3842_v3 = vpop.f32.mrf.mxu2 }
 0xf2b   :  { %v3855_v2 = vpop.f32.mrf.mxu3  ;;  %5084 = vtanh.f32 %v3891_v51 }
 0xf2c   :  { %5086 = vtanh.f32 %v3883_v55 }
 0xf30   :  { %v5083_v14 = vpop.eup %5082 }
 0xf31   :  { %v3886_v61 = vmul.f32 0.5, %v5083_v14  ;;  %v5085_v10 = vpop.eup %5084  ;;  %v9224_v14 = vld [vmem:[#allocation64_spill] sm:$0xff] }
 0xf32   :  { %v5087_v59 = vpop.eup %5086 }
 0xf33   :  { %v3888_v36 = vadd.f32 0.5, %v3886_v61  ;;  %v3887_v26 = vmul.f32 0.5, %v5087_v59  ;;  %v9227_v59 = vld [vmem:[#allocation90_spill] sm:$0xff] }
 0xf35   :  { %v3895_v46 = vrot.slane %v3888_v36, 4  ;;  %v3898_v28 = vmul.f32 %v5085_v10, %v3888_v36  ;;  %v3889_v16 = vadd.f32 0.5, %v3887_v26  ;;  %v9225_v10 = vld [vmem:[#allocation63_spill] sm:$0xff]  ;;  %v9229_v26 = vld [vmem:[#allocation92_spill] sm:$0xff] }
 0xf37   :  { %v3897_v5 = vmul.f32 %v3895_v46, %v7596_v20 }
 0xf39   :  { %v3899_v18 = vadd.f32 %v3898_v28, %v3897_v5  ;;  %v9226_v28 = vld [vmem:[#allocation89_spill] sm:$0xff] }
 0xf3b   :  { %5088 = vtanh.f32 %v3899_v18  ;;  %v7767_v32 = vsel %vm3906_vm12, %v3899_v18, %v7596_v20  ;;  %v9228_v18 = vld [vmem:[#allocation91_spill] sm:$0xff] }
 0xf41   :  { %v5089_v53 = vpop.eup %5088 }
 0xf42   :  { %v7769_v42 = vmul.f32 %v5089_v53, %v3889_v16  ;;  %v9230_v16 = vld [vmem:[#allocation93_spill] sm:$0xff]  ;;  %v9231_v53 = vld [vmem:[#allocation94_spill] sm:$0xff] }
 0xf44   :  { %v3909_v27 = vpack.c.bf16 %v7769_v42, %v7769_v42 }
 0xf46   :  { %3918 = vmatmul.bf16.vlgmr.msra.gmra.mxu1 %v3909_v27  ;;  %3931 = vmatmul.bf16.vlgmr.msra.gmra.mxu2 %v3909_v27 }
 0xf47   :  { %3944 = vmatmul.bf16.vlgmr.msra.gmra.mxu3 %v3909_v27  ;;  %3957 = vmatmul.bf16.vlgmr.msrb.gmra.mxu0 %v3909_v27  ;;  %v9232_v27 = vld [vmem:[#allocation95_spill] sm:$0xff] }
 0xf48   :  { %4049 = vmatpush.bf16.msra.mxu1 %v8520_v57  ;;  %4062 = vmatpush.bf16.msra.mxu2 %v8521_v34  ;;  %v9215_v57 = vld [vmem:[#allocation41_spill] sm:$0xff] }
 0xf49   :  { %4075 = vmatpush.bf16.msra.mxu3 %v8522_v19  ;;  %4088 = vmatpush.bf16.msrb.mxu0 %v8523_v52  ;;  %v9216_v34 = vld [vmem:[#allocation69_spill] sm:$0xff] }
 0xf4a   :  { %v3811_v19 = vadd.f32 %v9216_v34, %v9215_v57  ;;  %v9233_v34 = vld [vmem:[#allocation96_spill] sm:$0xff] }
 0xf4c   :  { %4050 = vmatpush.bf16.msra.mxu1 %v8524_v4  ;;  %4063 = vmatpush.bf16.msra.mxu2 %v8525_v12 }
 0xf4d   :  { %4076 = vmatpush.bf16.msra.mxu3 %v8526_v30  ;;  %4089 = vmatpush.bf16.msrb.mxu0 %v8527_v39  ;;  %v9217_v30 = vld [vmem:[#allocation145_spill] sm:$0xff]  ;;  %v9218_v39 = vld [vmem:[#allocation68_spill] sm:$0xff] }
 0xf50   :  { %4051 = vmatpush.bf16.msra.mxu1 %v8528_v25  ;;  %4064 = vmatpush.bf16.msra.mxu2 %v8529_v41  ;;  %v3814_v25 = vadd.f32 %v9218_v39, %v9217_v30  ;;  %v9237_v39 = vld [vmem:[#allocation104_spill] sm:$0xff] }
 0xf51   :  { %4077 = vmatpush.bf16.msra.mxu3 %v8530_v49  ;;  %4090 = vmatpush.bf16.msrb.mxu0 %v8531_v35  ;;  %v9219_v49 = vld [vmem:[#allocation146_spill] sm:$0xff]  ;;  %v9220_v35 = vld [vmem:[#allocation67_spill] sm:$0xff] }
 0xf54   :  { %4052 = vmatpush.bf16.msra.mxu1 %v8532_v23  ;;  %4065 = vmatpush.bf16.msra.mxu2 %v8533_v31  ;;  %v3812_v23 = vadd.f32 %v9220_v35, %v9219_v49  ;;  %v9239_v35 = vld [vmem:[#allocation110_spill] sm:$0xff] }
 0xf55   :  { %4078 = vmatpush.bf16.msra.mxu3 %v8534_v8  ;;  %4091 = vmatpush.bf16.msrb.mxu0 %v8535_v17 }
 0xf58   :  { %4053 = vmatpush.bf16.msra.mxu1 %v8536_v63  ;;  %4066 = vmatpush.bf16.msra.mxu2 %v8537_v44  ;;  %v9221_v44 = vld [vmem:[#allocation86_spill] sm:$0xff] }
 0xf59   :  { %4079 = vmatpush.bf16.msra.mxu3 %v8538_v6  ;;  %4092 = vmatpush.bf16.msrb.mxu0 %v8539_v7  ;;  %v9222_v6 = vld [vmem:[#allocation70_spill] sm:$0xff] }
 0xf5a   :  { %v3813_v7 = vadd.f32 %v9222_v6, %v9221_v44  ;;  %v9247_v6 = vld [vmem:[#allocation125_spill] sm:$0xff] }
 0xf5c   :  { %4054 = vmatpush.bf16.msra.mxu1 %v8540_v22  ;;  %4067 = vmatpush.bf16.msra.mxu2 %v8541_v24 }
 0xf5d   :  { %4080 = vmatpush.bf16.msra.mxu3 %v8542_v9  ;;  %4093 = vmatpush.bf16.msrb.mxu0 %v8543_v40 }
 0xf60   :  { %4055 = vmatpush.bf16.msra.mxu1 %v8544_v33  ;;  %4068 = vmatpush.bf16.msra.mxu2 %v8545_v54 }
 0xf61   :  { %4081 = vmatpush.bf16.msra.mxu3 %v8546_v0  ;;  %4094 = vmatpush.bf16.msrb.mxu0 %v8547_v38 }
 0xf64   :  { %4056 = vmatpush.bf16.msra.mxu1 %v8548_v1  ;;  %4069 = vmatpush.bf16.msra.mxu2 %v8549_v37 }
 0xf65   :  { %4082 = vmatpush.bf16.msra.mxu3 %v8617_v13  ;;  %4095 = vmatpush.bf16.msrb.mxu0 %v8618_v43 }
 0xfc3   :  { %v3919_v52 = vpop.f32.mrf.mxu1 }
 0xfc4   :  { %v3962_v4 = vadd.f32 %v3919_v52, %v3811_v19  ;;  %v3958_v12 = vpop.f32.mrf.mxu0  ;;  %v9234_v19 = vld [vmem:[#allocation100_spill] sm:$0xff]  ;;  %v9235_v52 = vld [vmem:[#allocation103_spill] sm:$0xff] }
 0xfc5   :  { %v3965_v31 = vadd.f32 %v3958_v12, %v3814_v25  ;;  %v9238_v25 = vld [vmem:[#allocation109_spill] sm:$0xff] }
 0xfc6   :  { %v3966_v41 = vmul.f32 0.5, %v3962_v4  ;;  %v9236_v4 = vld [vmem:[#allocation66_spill] sm:$0xff] }
 0xfc7   :  { %v3907_v12 = vsel %vm3906_vm12, %v7769_v42, %v9236_v4  ;;  %v9245_v42 = vld [vmem:[#allocation123_spill] sm:$0xff]  ;;  %v9267_v4 = vld [vmem:[#allocation97_spill] sm:$0xff] }
 0xfc8   :  { %5090 = vtanh.f32 %v3966_v41  ;;  %v4048_v41 = vpack.c.bf16 %v3907_v12, %v3907_v12 }
 0xfc9   :  { %v3932_v8 = vpop.f32.mrf.mxu2  ;;  %5092 = vtanh.f32 %v3965_v31  ;;  %v9241_v31 = vld [vmem:[#allocation114_spill] sm:$0xff] }
 0xfca   :  { %v3963_v17 = vadd.f32 %v3932_v8, %v3812_v23  ;;  %v3945_v63 = vpop.f32.mrf.mxu3  ;;  %v9240_v23 = vld [vmem:[#allocation113_spill] sm:$0xff]  ;;  %v9242_v8 = vld [vmem:[#allocation116_spill] sm:$0xff] }
 0xfcb   :  { %v3921_v22 = vpop.f32.mrf.mxu1  ;;  %v3964_v40 = vadd.f32 %v3945_v63, %v3813_v7  ;;  %v9246_v63 = vld [vmem:[#allocation124_spill] sm:$0xff]  ;;  %v9248_v7 = vld [vmem:[#allocation126_spill] sm:$0xff] }
 0xfcc   :  { %v3967_v24 = vmul.f32 0.5, %v3963_v17  ;;  %v3960_v9 = vpop.f32.mrf.mxu0  ;;  %v9243_v17 = vld [vmem:[#allocation121_spill] sm:$0xff]  ;;  %v9249_v22 = vld [vmem:[#allocation127_spill] sm:$0xff] }
 0xfcd   :  { %v3968_v38 = vmul.f32 0.5, %v3964_v40  ;;  %v9251_v9 = vld [vmem:[#allocation129_spill] sm:$0xff]  ;;  %v9252_v40 = vld [vmem:[#allocation130_spill] sm:$0xff] }
 0xfce   :  { %v5091_v33 = vpop.eup %5090  ;;  %5094 = vtanh.f32 %v3967_v24  ;;  %v9250_v24 = vld [vmem:[#allocation128_spill] sm:$0xff] }
 0xfcf   :  { %v3972_v54 = vmul.f32 0.5, %v5091_v33  ;;  %v5093_v37 = vpop.eup %5092  ;;  %5096 = vtanh.f32 %v3968_v38  ;;  %v9253_v33 = vld [vmem:[#allocation131_spill] sm:$0xff] }
 0xfd0   :  { %v9256_v38 = vld [vmem:[#allocation135_spill] sm:$0xff] }
 0xfd1   :  { %v3975_v0 = vadd.f32 0.5, %v3972_v54  ;;  %v3934_v1 = vpop.f32.mrf.mxu2  ;;  %v9254_v54 = vld [vmem:[#allocation132_spill] sm:$0xff] }
 0xfd2   :  { %v3947_v13 = vpop.f32.mrf.mxu3  ;;  %v9257_v1 = vld [vmem:[#allocation136_spill] sm:$0xff] }
 0xfd3   :  { %v3980_v43 = vmul.f32 %v5093_v37, %v3975_v0  ;;  %v9255_v0 = vld [vmem:[#allocation134_spill] sm:$0xff]  ;;  %v9258_v37 = vld [vmem:[#allocation137_spill] sm:$0xff] }
 0xfd4   :  { %v5095_v20 = vpop.eup %5094 }
 0xfd5   :  { %v3973_v50 = vmul.f32 0.5, %v5095_v20  ;;  %v5097_v62 = vpop.eup %5096  ;;  %v816_v20 = vpop.permute.xlu2 %815 }
 0xfd6   :  { %v3974_v3 = vmul.f32 0.5, %v5097_v62 }
 0xfd7   :  { %v3976_v21 = vadd.f32 0.5, %v3973_v50  ;;  %v828_v50 = vpop.permute.xlu1 %827 }
 0xfd8   :  { %v3977_v2 = vadd.f32 0.5, %v3974_v3  ;;  %v9260_v3 = vld [vmem:[#allocation112_spill] sm:$0xff]  ;;  %v830_v12 = vmul.f32 %v828_v50, %v9267_v4 }
 0xfd9   :  { %v3979_v60 = vmul.f32 %v3976_v21, %v9223_v56 }
 0xfdb   :  { %v3981_v45 = vadd.f32 %v3980_v43, %v3979_v60 }
 0xfdd   :  { %5098 = vtanh.f32 %v3981_v45  ;;  %v7817_v58 = vsel %vm3906_vm12, %v3981_v45, %v9223_v56  ;;  %v9259_v56 = vld [vmem:[#allocation108_spill] sm:$0xff] }
 0xfde   :  { %v819_v60 = vmul.f32 %v816_v20, %v9259_v56 }
 0xfe3   :  { %v5099_v51 = vpop.eup %5098 }
 0xfe4   :  { %v3983_v55 = vmul.f32 %v5099_v51, %v3977_v2  ;;  %v821_v2 = vmul.f32 %v816_v20, %v9260_v3  ;;  %v9261_v51 = vld [vmem:[#allocation98_spill] sm:$0xff] }
 0xfe6   :  { %v3984_v61 = vsel %vm3906_vm12, %v3983_v55, %v9224_v14  ;;  %v3986_v36 = vsel %vm3906_vm12, %v3983_v55, 0.0  ;;  %v831_v55 = vmul.f32 %v828_v50, %v9261_v51 }
 0xfe7   :  { %v3989_v46 = vpack.c.bf16 %v3984_v61, %v3984_v61  ;;  %v7825_v5 = vadd.f32 %v3986_v36, %v9225_v10  ;;  %v9262_v61 = vld [vmem:[#allocation118_spill] sm:$0xff] }
 0xfe8   :  { %v823_v36 = vadd.f32 %v819_v60, %v9262_v61 }
 0xfe9   :  { %3998 = vmatmul.bf16.vlgmr.msrb.gmra.mxu1 %v3989_v46  ;;  %4011 = vmatmul.bf16.vlgmr.msrb.gmra.mxu2 %v3989_v46 }
 0xfea   :  { %4024 = vmatmul.bf16.vlgmr.msrb.gmra.mxu3 %v3989_v46  ;;  %4037 = vmatmul.bf16.vlgmr.msra.gmra.mxu0 %v3989_v46  ;;  %v9263_v46 = vld [vmem:[#allocation101_spill] sm:$0xff] }
 0xfeb   :  { %4134 = vmatpush.bf16.msrb.mxu1 %v9226_v28  ;;  %4147 = vmatpush.bf16.msrb.mxu2 %v9227_v59  ;;  %v833_v10 = vmul.f32 %v828_v50, %v9263_v46  ;;  %v840_v28 = vpop.permute.xlu2 %839  ;;  %v9264_v59 = vld [vmem:[#allocation107_spill] sm:$0xff] }
 0xfec   :  { %4160 = vmatpush.bf16.msrb.mxu3 %v9228_v18  ;;  %4173 = vmatpush.bf16.msra.mxu0 %v9229_v26  ;;  %v818_v18 = vmul.f32 %v816_v20, %v9264_v59  ;;  %v9265_v26 = vld [vmem:[#allocation120_spill] sm:$0xff] }
 0xfef   :  { %4135 = vmatpush.bf16.msrb.mxu1 %v9230_v16  ;;  %4148 = vmatpush.bf16.msrb.mxu2 %v9231_v53  ;;  %v825_v16 = vadd.f32 %v821_v2, %v9265_v26  ;;  %v835_v53 = vadd.f32 %v831_v55, %v823_v36  ;;  %v9271_v55 = vmov 0  }
 0xff0   :  { %4161 = vmatpush.bf16.msrb.mxu3 %v9232_v27  ;;  %4174 = vmatpush.bf16.msra.mxu0 %v9233_v34  ;;  %v820_v34 = vmul.f32 %v816_v20, %v9210_v47  ;;  %v842_v47 = vmul.f32 %v840_v28, %v9117_v29 }
 0xff3   :  { %4136 = vmatpush.bf16.msrb.mxu1 %v9234_v19  ;;  %4149 = vmatpush.bf16.msrb.mxu2 %v9235_v52  ;;  %v9266_v19 = vld [vmem:[#allocation105_spill] sm:$0xff] }
 0xff4   :  { %4162 = vmatpush.bf16.msrb.mxu3 %v9237_v39  ;;  %4175 = vmatpush.bf16.msra.mxu0 %v9238_v25  ;;  %v843_v52 = vmul.f32 %v840_v28, %v9266_v19  ;;  %v837_v39 = vadd.f32 %v833_v10, %v825_v16 }
 0xff7   :  { %4137 = vmatpush.bf16.msrb.mxu1 %v9239_v35  ;;  %4150 = vmatpush.bf16.msrb.mxu2 %v9240_v23  ;;  %v9268_v35 = vld [vmem:[#allocation115_spill] sm:$0xff] }
 0xff8   :  { %4163 = vmatpush.bf16.msrb.mxu3 %v9241_v31  ;;  %4176 = vmatpush.bf16.msra.mxu0 %v9242_v8  ;;  %v845_v23 = vmul.f32 %v840_v28, %v9268_v35  ;;  %v9269_v31 = vld [vmem:[#allocation117_spill] sm:$0xff]  ;;  %v4232_v35 = vld [vmem:[#allocation10 + $0x70] sm:$0xff] }
 0xff9   :  { %4057 = vmatmul.bf16.vlgmr.msra.gmra.mxu1 %v4048_v41  ;;  %4070 = vmatmul.bf16.vlgmr.msra.gmra.mxu2 %v4048_v41  ;;  %v822_v8 = vadd.f32 %v818_v18, %v9269_v31  ;;  %v4230_v31 = vld [vmem:[#allocation10 + $0x60] sm:$0xff] }
 0xffa   :  { %4083 = vmatmul.bf16.vlgmr.msra.gmra.mxu3 %v4048_v41  ;;  %4096 = vmatmul.bf16.vlgmr.msrb.gmra.mxu0 %v4048_v41 }
 0xffb   :  { %4138 = vmatpush.bf16.msrb.mxu1 %v9243_v17  ;;  %4151 = vmatpush.bf16.msrb.mxu2 %v9244_v15  ;;  %v832_v17 = vmul.f32 %v828_v50, %v9115_v48  ;;  %v847_v15 = vadd.f32 %v843_v52, %v835_v53 }
 0xffc   :  { %4164 = vmatpush.bf16.msrb.mxu3 %v9245_v42  ;;  %4177 = vmatpush.bf16.msra.mxu0 %v9246_v63  ;;  %v9270_v63 = vld [vmem:[#allocation119_spill] sm:$0xff] }
 0xfff   :  { %4139 = vmatpush.bf16.msrb.mxu1 %v9247_v6  ;;  %4152 = vmatpush.bf16.msrb.mxu2 %v9248_v7  ;;  %v824_v6 = vadd.f32 %v820_v34, %v9270_v63  ;;  %v834_v7 = vadd.f32 %v830_v12, %v822_v8  ;;  %v4228_v63 = vld [vmem:[#allocation10 + $0x50] sm:$0xff] }
0x1000   :  { %4165 = vmatpush.bf16.msrb.mxu3 %v9249_v22  ;;  %4178 = vmatpush.bf16.msra.mxu0 %v9250_v24  ;;  %v849_v22 = vadd.f32 %v845_v23, %v837_v39  ;;  %v4231_v23 = vld [vmem:[#allocation10 + $0x68] sm:$0xff] }
0x1001   :  { %v836_v24 = vadd.f32 %v832_v17, %v824_v6  ;;  %v4229_v17 = vld [vmem:[#allocation10 + $0x58] sm:$0xff] }
0x1003   :  { %4140 = vmatpush.bf16.msrb.mxu1 %v9251_v9  ;;  %4153 = vmatpush.bf16.msrb.mxu2 %v9252_v40  ;;  %v854_v9 = vrot.slane %v847_v15, 4  ;;  %v844_v40 = vmul.f32 %v840_v28, %v9118_v11  ;;  %v5121_v11 = vld [vmem:[%s7923_s5] sm:$0xf] }
0x1004   :  { %4166 = vmatpush.bf16.msrb.mxu3 %v9253_v33  ;;  %4179 = vmatpush.bf16.msra.mxu0 %v9254_v54  ;;  %v846_v54 = vadd.f32 %v842_v47, %v834_v7  ;;  %vm3988_vm13 = vcmp.gt.s32.totalorder %v5121_v11, 11 }
0x1005   :  { %v848_v48 = vadd.f32 %v844_v40, %v836_v24 }
0x1006   :  { %v856_v50 = vsel %vm145_vm0, %v846_v54, %v854_v9 }
0x1007   :  { %4141 = vmatpush.bf16.msrb.mxu1 %v9255_v0  ;;  %4154 = vmatpush.bf16.msrb.mxu2 %v9256_v38  ;;  %v855_v0 = vrot.slane %v849_v22, 4  ;;  %v4227_v22 = vld [vmem:[#allocation10 + $0x48] sm:$0xff] }
0x1008   :  { %4167 = vmatpush.bf16.msrb.mxu3 %v9257_v1  ;;  %4180 = vmatpush.bf16.msra.mxu0 %v9258_v37 }
0x1009   :  { %v857_v3 = vsel %vm145_vm0, %v848_v48, %v855_v0  ;;  %v4225_v0 = vld [vmem:[#allocation10 + $0x38] sm:$0xff] }
0x1066   :  { %v7863_v13 = vpop.f32.mrf.mxu1 }
0x1067   :  { %v7865_v43 = vpop.f32.mrf.mxu0 }
0x1068   :  { %v4045_v6 = vadd.f32 %v7865_v43, %v9217_v30  ;;  %v4274_v30 = vld [vmem:[#allocation12 + $0x78] sm:$0xff]  ;;  %v4273_v43 = vld [vmem:[#allocation12 + $0x70] sm:$0xff] }
0x1069   :  { %4279 = vmatpush.msra.mxu2 %v4274_v30 }
0x106b   :  { %4280 = vmatpush.msra.mxu2 %v4273_v43 }
0x106c   :  { %v7867_v21 = vpop.f32.mrf.mxu2 }
0x106d   :  { %v7870_v62 = vpop.f32.mrf.mxu3  ;;  %v4043_v47 = vadd.f32 %v7867_v21, %v9219_v49  ;;  %v4224_v21 = vld [vmem:[#allocation10 + $0x30] sm:$0xff] }
0x106e   :  { %v4001_v45 = vpop.f32.mrf.mxu1 }
0x106f   :  { %v4040_v14 = vpop.f32.mrf.mxu0 }
0x1070   :  { %v4208_v14 = vsel %vm3988_vm13, 1, %v9271_v55  ;;  %v4269_v55 = vld [vmem:[#allocation12 + $0x50] sm:$0xff] }
0x1071   :  { %4210 = vperm.xlu0 %4898, %v4208_v14  }
0x1074   :  { %v4014_v27 = vpop.f32.mrf.mxu2 }
0x1075   :  { %v4027_v25 = vpop.f32.mrf.mxu3 }
0x1076   :  { %v4058_v41 = vpop.f32.mrf.mxu1 }
0x1077   :  { %v4097_v42 = vpop.f32.mrf.mxu0 }
0x1078   :  { %v4106_v38 = vrot.slane %v4097_v42, 4 }
0x107c   :  { %v4071_v33 = vpop.f32.mrf.mxu2 }
0x107d   :  { %v4105_v1 = vrot.slane %v4071_v33, 4  ;;  %v4084_v37 = vpop.f32.mrf.mxu3  ;;  %v4044_v33 = vadd.f32 %v7870_v62, %v9221_v44 }
0x107e   :  { %v4060_v20 = vpop.f32.mrf.mxu1  ;;  %v4108_v60 = vsel %vm145_vm0, %v4084_v37, %v4106_v38  ;;  %v4272_v37 = vld [vmem:[#allocation12 + $0x68] sm:$0xff] }
0x107f   :  { %v4107_v56 = vsel %vm145_vm0, %v4058_v41, %v4105_v1  ;;  %v4099_v45 = vpop.f32.mrf.mxu0  ;;  %v4112_v51 = vadd.f32 %v4108_v60, %v857_v3  ;;  %v4233_v41 = vld [vmem:[#allocation10 + $0x78] sm:$0xff]  ;;  %4281 = vmatpush.msra.mxu2 %v4272_v37 }
0x1080   :  { %v4111_v29 = vadd.f32 %v4107_v56, %v856_v50  ;;  %4238 = vmatpush.msra.mxu1 %v4233_v41  ;;  %v4223_v50 = vld [vmem:[#allocation10 + $0x28] sm:$0xff]  ;;  %v4271_v56 = vld [vmem:[#allocation12 + $0x60] sm:$0xff] }
0x1081   :  { %v4122_v46 = vrot.slane %v4112_v51, 4  ;;  %v4114_v10 = vmul.f32 0.5, %v4112_v51  ;;  %v4222_v45 = vld [vmem:[#allocation10 + $0x20] sm:$0xff]  ;;  %4282 = vmatpush.msra.mxu2 %v4271_v56  ;;  %v4221_v51 = vld [vmem:[#allocation10 + $0x18] sm:$0xff] }
0x1082   :  { %v4113_v2 = vmul.f32 0.5, %v4111_v29  ;;  %4239 = vmatpush.msra.mxu1 %v4232_v35  ;;  %v4270_v29 = vld [vmem:[#allocation12 + $0x58] sm:$0xff]  ;;  %v4216_v35 = vstv %s7924_s6 }
0x1083   :  { %4283 = vmatpush.msra.mxu2 %v4270_v29 }
0x1084   :  { %5100 = vtanh.f32 %v4113_v2  ;;  %v4073_v61 = vpop.f32.mrf.mxu2  ;;  %4240 = vmatpush.msra.mxu1 %v4231_v23 }
0x1085   :  { %v4086_v36 = vpop.f32.mrf.mxu3  ;;  %5102 = vtanh.f32 %v4122_v46  ;;  %v4268_v46 = vld [vmem:[#allocation12 + $0x48] sm:$0xff]  ;;  %4284 = vmatpush.msra.mxu2 %v4269_v55 }
0x1086   :  { %5104 = vtanh.f32 %v4114_v10  ;;  %4241 = vmatpush.msra.mxu1 %v4230_v31  ;;  %v4220_v36 = vld [vmem:[#allocation10 + $0x10] sm:$0xff] }
0x1087   :  { %4285 = vmatpush.msra.mxu2 %v4268_v46 }
0x1088   :  { %4242 = vmatpush.msra.mxu1 %v4229_v17  ;;  %v4260_v17 = vld [vmem:[#allocation12 + $0x8] sm:$0xff] }
0x108a   :  { %v5101_v28 = vpop.eup %5100  ;;  %4243 = vmatpush.msra.mxu1 %v4228_v63 }
0x108b   :  { %v4117_v59 = vmul.f32 0.5, %v5101_v28  ;;  %v5103_v16 = vpop.eup %5102  ;;  %v4219_v28 = vld [vmem:[#allocation10 + $0x8] sm:$0xff] }
0x108c   :  { %v5105_v34 = vpop.eup %5104  ;;  %4244 = vmatpush.msra.mxu1 %v4227_v22 }
0x108d   :  { %v4119_v18 = vadd.f32 0.5, %v4117_v59  ;;  %v4118_v52 = vmul.f32 0.5, %v5105_v34  ;;  %v4267_v59 = vld [vmem:[#allocation12 + $0x40] sm:$0xff]  ;;  %v4265_v34 = vld [vmem:[#allocation12 + $0x30] sm:$0xff] }
0x108e   :  { %4286 = vmatpush.msra.mxu2 %v4267_v59 }
0x108f   :  { %v4126_v26 = vrot.slane %v4119_v18, 4  ;;  %v4129_v27 = vmul.f32 %v5103_v16, %v4119_v18  ;;  %v4120_v4 = vadd.f32 0.5, %v4118_v52  ;;  %v4266_v16 = vld [vmem:[#allocation12 + $0x38] sm:$0xff] }
0x1090   :  { %4287 = vmatpush.msra.mxu2 %v4266_v16 }
0x1091   :  { %v4128_v53 = vmul.f32 %v4126_v26, %v7767_v32  ;;  %v4042_v32 = vadd.f32 %v7863_v13, %v9215_v57  ;;  %v4226_v13 = vld [vmem:[#allocation10 + $0x40] sm:$0xff] }
0x1092   :  { %4245 = vmatpush.msra.mxu1 %v4226_v13  ;;  %v4218_v26 = vld [vmem:[#allocation10] sm:$0xff]  ;;  %4288 = vmatpush.msra.mxu2 %v4265_v34 }
0x1093   :  { %v4130_v19 = vadd.f32 %v4129_v27, %v4128_v53 }
0x1094   :  { %4246 = vmatpush.msra.mxu1 %v4225_v0 }
0x1095   :  { %5106 = vtanh.f32 %v4130_v19  ;;  %v4264_v19 = vld [vmem:[#allocation12 + $0x28] sm:$0xff] }
0x1096   :  { %4247 = vmatpush.msra.mxu1 %v4224_v21  ;;  %4289 = vmatpush.msra.mxu2 %v4264_v19 }
0x1098   :  { %4248 = vmatpush.msra.mxu1 %v4223_v50 }
0x109a   :  { %4249 = vmatpush.msra.mxu1 %v4222_v45 }
0x109b   :  { %v5107_v12 = vpop.eup %5106 }
0x109c   :  { %v4132_v39 = vmul.f32 %v5107_v12, %v4120_v4  ;;  %4250 = vmatpush.msra.mxu1 %v4221_v51  ;;  %v4263_v4 = vld [vmem:[#allocation12 + $0x20] sm:$0xff] }
0x109d   :  { %4290 = vmatpush.msra.mxu2 %v4263_v4 }
0x109e   :  { %v4133_v25 = vpack.c.bf16 %v4132_v39, %v4132_v39  ;;  %4251 = vmatpush.msra.mxu1 %v4220_v36  ;;  %v4262_v39 = vld [vmem:[#allocation12 + $0x18] sm:$0xff] }
0x109f   :  { %4291 = vmatpush.msra.mxu2 %v4262_v39 }
0x10a0   :  { %4142 = vmatmul.bf16.vlgmr.msrb.gmra.mxu1 %v4133_v25  ;;  %4155 = vmatmul.bf16.vlgmr.msrb.gmra.mxu2 %v4133_v25 }
0x10a1   :  { %4168 = vmatmul.bf16.vlgmr.msrb.gmra.mxu3 %v4133_v25  ;;  %4181 = vmatmul.bf16.vlgmr.msra.gmra.mxu0 %v4133_v25 }
0x10a2   :  { %4252 = vmatpush.msra.mxu1 %v4219_v28 }
0x10a4   :  { %4253 = vmatpush.msra.mxu1 %v4218_v26 }
0x10e3   :  { %v4211_v12 = vpop.permute.xlu0 %4210 }
0x10e4   :  { %vm4212_vm0 = vcmp.eq.s32.totalorder %v4211_v12, 1 }
0x111d   :  { %v4143_v8 = vpop.f32.mrf.mxu1 }
0x111e   :  { %v4186_v15 = vadd.f32 %v4143_v8, %v4042_v32  ;;  %v4182_v42 = vpop.f32.mrf.mxu0  ;;  %v4261_v8 = vld [vmem:[#allocation12 + $0x10] sm:$0xff] }
0x111f   :  { %v4189_v24 = vadd.f32 %v4182_v42, %v4045_v6  ;;  %4292 = vmatpush.msra.mxu2 %v4261_v8  ;;  %v4900_v42 = vld [vmem:[%s7930_s12] ss:$0 sm:$0xff] }
0x1120   :  { %v4190_v7 = vmul.f32 0.5, %v4186_v15  ;;  %v4259_v15 = vld [vmem:[#allocation12] sm:$0xff] }
0x1121   :  { %4293 = vmatpush.msra.mxu2 %v4260_v17 }
0x1122   :  { %5108 = vtanh.f32 %v4190_v7 }
0x1123   :  { %v4156_v57 = vpop.f32.mrf.mxu2  ;;  %5110 = vtanh.f32 %v4189_v24  ;;  %4294 = vmatpush.msra.mxu2 %v4259_v15 }
0x1124   :  { %v4187_v9 = vadd.f32 %v4156_v57, %v4043_v47  ;;  %v4169_v40 = vpop.f32.mrf.mxu3 }
0x1125   :  { %v4145_v54 = vpop.f32.mrf.mxu1  ;;  %v4188_v49 = vadd.f32 %v4169_v40, %v4044_v33 }
0x1126   :  { %v4191_v38 = vmul.f32 0.5, %v4187_v9  ;;  %v4184_v1 = vpop.f32.mrf.mxu0 }
0x1127   :  { %v4192_v62 = vmul.f32 0.5, %v4188_v49 }
0x1128   :  { %v5109_v20 = vpop.eup %5108  ;;  %5112 = vtanh.f32 %v4191_v38 }
0x1129   :  { %v4196_v48 = vmul.f32 0.5, %v5109_v20  ;;  %v5111_v3 = vpop.eup %5110  ;;  %5114 = vtanh.f32 %v4192_v62 }
0x112b   :  { %v4199_v44 = vadd.f32 0.5, %v4196_v48  ;;  %v4158_v60 = vpop.f32.mrf.mxu2 }
0x112c   :  { %v4171_v11 = vpop.f32.mrf.mxu3 }
0x112d   :  { %v4204_v2 = vmul.f32 %v5111_v3, %v4199_v44 }
0x112e   :  { %v5113_v14 = vpop.eup %5112 }
0x112f   :  { %v4197_v61 = vmul.f32 0.5, %v5113_v14  ;;  %v5115_v53 = vpop.eup %5114 }
0x1130   :  { %v4198_v52 = vmul.f32 0.5, %v5115_v53 }
0x1131   :  { %v4200_v10 = vadd.f32 0.5, %v4197_v61 }
0x1132   :  { %v4201_v25 = vadd.f32 0.5, %v4198_v52 }
0x1133   :  { %v4203_v18 = vmul.f32 %v4200_v10, %v7817_v58 }
0x1135   :  { %v4205_v27 = vadd.f32 %v4204_v2, %v4203_v18 }
0x1137   :  { %5116 = vtanh.f32 %v4205_v27 }
0x113d   :  { %v5117_v58 = vpop.eup %5116 }
0x113e   :  { %v4207_v41 = vmul.f32 %v5117_v58, %v4201_v25 }
0x1140   :  { %v4213_v23 = vsel %vm4212_vm0, %v4207_v41, 0.0 }
0x1141   :  { %v4214_v31 = vadd.f32 %v4213_v23, %v7825_v5  ;;  %v4901_v5 = vld [vmem:[%s7932_s14] ss:$0 sm:$0xff] }
0x1143   :  { %v4217_v32 = vmul.f32 %v4216_v35, %v4214_v31 }
0x1145   :  { %4254 = vmatmul.f32.vlgmr.msra.gmra.mxu1 %v4217_v32 }
0x11c2   :  { %v4255_v63 = vpop.f32.mrf.mxu1 }
0x11c3   :  { %v4256_v6 = vadd.f32 %v4900_v42, %v4255_v63 }
0x11c5   :  { %v4258_v7 = vmax.f32 %v4256_v6, 0.0 }
0x11c7   :  { %4295 = vmatmul.f32.vlgmr.msra.gmra.mxu2 %v4258_v7 }
0x124a   :  { %v4296_v22 = vpop.f32.mrf.mxu2 }
0x124b   :  { %v4297_v47 = vadd.f32 %v4901_v5, %v4296_v22 }
0x124d   :  { %v4299_v24 = vmul.f32 0.5, %v4297_v47 }
0x124f   :  { %5118 = vtanh.f32 %v4299_v24 }
0x1255   :  { %v5119_v57 = vpop.eup %5118 }
0x1256   :  { %v4301_v13 = vmul.f32 0.5, %v5119_v57 }
0x1258   :  { %v4302_v9 = vadd.f32 0.5, %v4301_v13 }
0x125a   :  { %4304 = vst.msk [vmem:[#allocation13] sm:$0xf] %vm4303_vm14, %v4302_v9 }
0x125b   :  { %4315 = dma.vmem_to_hbm [thread:$0]  %s4311_s21, 64, %s4313_s23, [#allocation6]  }
0x125c   :  { %5272 = dma.done.wait [#allocation6], 64  }
0x125d   :  { %5273 = vsyncadd [#allocation6], 4294967232 }
0x125e   :  { %4320 = vsyncpa [#allocation5], 1 }
0x125f   :  { %4321 = vsyncpa [#allocation8], 1 }
0x1260   :  { %4322 = vsyncpa [#allocation11], 1 }
0x1261   :  { %4323 = vsyncpa [#allocation6], 1 }

</bundles_post_ra>
